<compile_context>
chip_gen: v5e
topology: v5e:2x2
jax: 0.10.0
libtpu: 0.0.40
codegen_flags: <defaults>
</compile_context>

<pallas_src>
import functools

import jax
import jax.numpy as jnp
from jax.experimental import pallas as pl
from jax.experimental.pallas import tpu as pltpu

EPS = 1e-5                      # nn.BatchNorm2d default eps
LANE = 128


def _round_up(x, m):
    return (x + m - 1) // m * m


# --------------------------------------------------------------------------
# Kernels
# --------------------------------------------------------------------------
def _conv1_stats_kernel(xp_ref, w_ref, y_ref, st_ref, *, H, W):
    """conv1 as 9-tap accumulated matmul + per-image per-channel sum/sumsq.

    xp_ref: (1, H+2, W+2, Cp) bf16 (spatially zero-padded input image)
    w_ref : (9, Cp, Cp)       bf16
    y_ref : (1, H*W, Cp)      f32  (raw conv output, pre-BN)
    st_ref: (1, 2, Cp)        f32  (row 0: sum, row 1: sum of squares)
    """
    HW = H * W
    Cp = w_ref.shape[1]
    acc = jnp.zeros((HW, Cp), jnp.float32)
    for dh in range(3):
        for dw in range(3):
            xs = xp_ref[0, dh:dh + H, dw:dw + W, :].reshape(HW, Cp)
            acc = acc + jnp.dot(xs, w_ref[dh * 3 + dw],
                                preferred_element_type=jnp.float32)
    y_ref[0] = acc
    st_ref[0, 0:1, :] = jnp.sum(acc, axis=0, keepdims=True)
    st_ref[0, 1:2, :] = jnp.sum(acc * acc, axis=0, keepdims=True)


def _bn1_relu_conv2_stats_kernel(y1_ref, sc_ref, sh_ref, w_ref,
                                 y2_ref, st_ref, hpad_ref, *, H, W):
    """Apply BN1 (folded scale/shift) + ReLU, then conv2 (9-tap matmul) and
    accumulate conv2 per-image per-channel sum/sumsq.

    y1_ref  : (1, H*W, Cp) f32   raw conv1 output tile
    sc_ref  : (1, Cp)      f32   gamma1 / sqrt(var1+eps)
    sh_ref  : (1, Cp)      f32   beta1 - mu1*scale1
    w_ref   : (9, Cp, Cp)  bf16
    y2_ref  : (1, H*W, Cp) f32   raw conv2 output tile
    st_ref  : (1, 2, Cp)   f32
    hpad_ref: (H+2, W+2, Cp) bf16 scratch (padded normalized activation)
    """
    HW = H * W
    Cp = w_ref.shape[1]

    h = jnp.maximum(y1_ref[0] * sc_ref[...] + sh_ref[...], 0.0)      # f32
    # Build the spatially padded tile in VMEM (zero borders every iteration so
    # this stays correct under "parallel" grid sharding across TensorCores).
    hpad_ref[...] = jnp.zeros(hpad_ref.shape, hpad_ref.dtype)
    hpad_ref[1:H + 1, 1:W + 1, :] = h.reshape(H, W, Cp).astype(hpad_ref.dtype)

    acc = jnp.zeros((HW, Cp), jnp.float32)
    for dh in range(3):
        for dw in range(3):
            xs = hpad_ref[dh:dh + H, dw:dw + W, :].reshape(HW, Cp)
            acc = acc + jnp.dot(xs, w_ref[dh * 3 + dw],
                                preferred_element_type=jnp.float32)
    y2_ref[0] = acc
    st_ref[0, 0:1, :] = jnp.sum(acc, axis=0, keepdims=True)
    st_ref[0, 1:2, :] = jnp.sum(acc * acc, axis=0, keepdims=True)


def _bn2_add_relu_kernel(y2_ref, sc_ref, sh_ref, id_ref, out_ref):
    """Apply BN2 (folded scale/shift) + residual add + ReLU."""
    y = y2_ref[0] * sc_ref[...] + sh_ref[...]
    out_ref[0] = jnp.maximum(y + id_ref[0], 0.0)


# --------------------------------------------------------------------------
# Wrapper
# --------------------------------------------------------------------------
def resnet_block_forward(x_nchw, params):
    """Forward of ResnetBlock (num_layers<=34, stride=1, downsample=None)."""
    w1, b1, g1, be1, w2, g2, be2 = params        # w1, w2 in HWIO [3,3,Cin,Cout]
    del b1  # conv1 bias is exactly cancelled by train-mode BN mean subtraction
    N, C, H, W = x_nchw.shape
    Cout = w1.shape[-1]
    assert C == Cout, "basic block with stride=1 / downsample=None needs Cin==Cout"

    Cp = _round_up(C, LANE)                      # lane-dense channel padding
    HW = H * W
    Hp, Wp = H + 2, W + 2
    M = N * HW
    inv_m = 1.0 / float(M)

    # ---- layout glue (plain JAX): NCHW -> NHWC, channel pad, spatial pad ----
    x_nhwc = jnp.transpose(x_nchw, (0, 2, 3, 1)).astype(jnp.float32)
    x_cpad = jnp.pad(x_nhwc, ((0, 0), (0, 0), (0, 0), (0, Cp - C)))
    xp = jnp.pad(x_cpad, ((0, 0), (1, 1), (1, 1), (0, 0))).astype(jnp.bfloat16)
    identity = x_cpad.reshape(N, HW, Cp)                          # f32

    def prep_w(w):
        w = jnp.pad(w.astype(jnp.float32),
                    ((0, 0), (0, 0), (0, Cp - w.shape[2]), (0, Cp - w.shape[3])))
        return w.reshape(9, Cp, Cp).astype(jnp.bfloat16)

    def prep_vec(v):
        return jnp.pad(v.astype(jnp.float32), (0, Cp - v.shape[0]))

    w1p, w2p = prep_w(w1), prep_w(w2)
    g1p, be1p, g2p, be2p = map(prep_vec, (g1, be1, g2, be2))

    cparams = pltpu.CompilerParams(
        dimension_semantics=("parallel",),
        vmem_limit_bytes=48 * 1024 * 1024)

    act_spec = pl.BlockSpec((1, HW, Cp), lambda n: (n, 0, 0))
    st_spec = pl.BlockSpec((1, 2, Cp), lambda n: (n, 0, 0))
    w_spec = pl.BlockSpec((9, Cp, Cp), lambda n: (0, 0, 0))
    vec_spec = pl.BlockSpec((1, Cp), lambda n: (0, 0))

    # ---- pass A: conv1 (9-tap matmul) + per-image BN1 partial stats --------
    y1, st1 = pl.pallas_call(
        functools.partial(_conv1_stats_kernel, H=H, W=W),
        grid=(N,),
        in_specs=[pl.BlockSpec((1, Hp, Wp, Cp), lambda n: (n, 0, 0, 0)), w_spec],
        out_specs=[act_spec, st_spec],
        out_shape=[jax.ShapeDtypeStruct((N, HW, Cp), jnp.float32),
                   jax.ShapeDtypeStruct((N, 2, Cp), jnp.float32)],
        compiler_params=cparams,
    )(xp, w1p)

    # tiny per-channel finalize (cross-tile BN reduction) in plain JAX
    s1 = jnp.sum(st1, axis=0)                       # (2, Cp)
    mu1 = s1[0] * inv_m
    var1 = s1[1] * inv_m - mu1 * mu1                # E[y^2] - mu^2 (biased)
    sc1 = g1p * jax.lax.rsqrt(var1 + EPS)
    sh1 = be1p - mu1 * sc1
    sc1, sh1 = sc1.reshape(1, Cp), sh1.reshape(1, Cp)

    # ---- pass B: BN1 apply + ReLU fused with conv2 + BN2 partial stats -----
    y2, st2 = pl.pallas_call(
        functools.partial(_bn1_relu_conv2_stats_kernel, H=H, W=W),
        grid=(N,),
        in_specs=[act_spec, vec_spec, vec_spec, w_spec],
        out_specs=[act_spec, st_spec],
        out_shape=[jax.ShapeDtypeStruct((N, HW, Cp), jnp.float32),
                   jax.ShapeDtypeStruct((N, 2, Cp), jnp.float32)],
        scratch_shapes=[pltpu.VMEM((Hp, Wp, Cp), jnp.bfloat16)],
        compiler_params=cparams,
    )(y1, sc1, sh1, w2p)

    s2 = jnp.sum(st2, axis=0)
    mu2 = s2[0] * inv_m
    var2 = s2[1] * inv_m - mu2 * mu2
    sc2 = g2p * jax.lax.rsqrt(var2 + EPS)
    sh2 = be2p - mu2 * sc2
    sc2, sh2 = sc2.reshape(1, Cp), sh2.reshape(1, Cp)

    # ---- pass C: BN2 apply + residual add + ReLU ---------------------------
    out = pl.pallas_call(
        _bn2_add_relu_kernel,
        grid=(N,),
        in_specs=[act_spec, vec_spec, vec_spec, act_spec],
        out_specs=act_spec,
        out_shape=jax.ShapeDtypeStruct((N, HW, Cp), jnp.float32),
        compiler_params=cparams,
    )(y2, sc2, sh2, identity)

    out = out[:, :, :C].reshape(N, H, W, C)
    return jnp.transpose(out, (0, 3, 1, 2))          # back to NCHW
    # TODO(synk): the num_layers > 34 bottleneck branch and a non-None
    # `downsample` submodule are not instantiated in this configuration.


# --------------------------------------------------------------------------
# Parameters + pure-JAX reference
# --------------------------------------------------------------------------
def init_params(key, in_channels, out_channels):
    """Deterministic synthetic parameters matching ResnetBlock(<=34).__init__ shapes."""
    k1, k2, k3 = jax.random.split(key, 3)
    w1 = 0.1 * jax.random.normal(k1, (3, 3, in_channels, out_channels), jnp.float32)
    b1 = 0.1 * jax.random.normal(k2, (out_channels,), jnp.float32)
    g1 = jnp.ones((out_channels,), jnp.float32)
    be1 = jnp.zeros((out_channels,), jnp.float32)
    w2 = 0.1 * jax.random.normal(k3, (3, 3, out_channels, out_channels), jnp.float32)
    g2 = jnp.ones((out_channels,), jnp.float32)
    be2 = jnp.zeros((out_channels,), jnp.float32)
    return (w1, b1, g1, be1, w2, g2, be2)


def _reference_forward(x_nchw, params):
    """Pure-JAX f32 reference (includes the conv1 bias, which BN cancels)."""
    w1, b1, g1, be1, w2, g2, be2 = params
    x = jnp.transpose(x_nchw, (0, 2, 3, 1)).astype(jnp.float32)
    dn = ("NHWC", "HWIO", "NHWC")

    def conv(a, w):
        return jax.lax.conv_general_dilated(a, w, (1, 1), "SAME",
                                            dimension_numbers=dn)

    def bn(y, g, b):
        mu = jnp.mean(y, axis=(0, 1, 2))
        var = jnp.mean((y - mu) ** 2, axis=(0, 1, 2))
        return (y - mu) * jax.lax.rsqrt(var + EPS) * g + b

    h = jax.nn.relu(bn(conv(x, w1) + b1, g1, be1))
    y = bn(conv(h, w2), g2, be2)
    out = jax.nn.relu(y + x)
    return jnp.transpose(out, (0, 3, 1, 2))


if __name__ == "__main__":
    key = jax.random.PRNGKey(0)
    kx, kp = jax.random.split(key)

    N, C, H, W = 2, 4, 16, 16                 # in_channels == out_channels, stride=1
    x = jax.random.normal(kx, (N, C, H, W), jnp.float32)
    params = init_params(kp, in_channels=C, out_channels=C)

    y = jax.jit(resnet_block_forward)(x, params)
    y = jax.block_until_ready(y)
    assert y.shape == (N, C, H, W) and y.dtype == jnp.float32

    y_ref = _reference_forward(x, params)
    err = float(jnp.max(jnp.abs(y - y_ref)))
    assert err < 1e-1, f"mismatch vs pure-JAX reference: max abs err = {err}"
    print("KERNEL_OK")
</pallas_src>

<mosaic_0001>
module attributes {stable_mosaic.version = 11 : i64} {
  func.func @_conv1_stats_kernel(%arg0: i32, %arg1: memref<1x18x18x128xbf16, #tpu.memory_space<vmem>>, %arg2: memref<9x128x128xbf16, #tpu.memory_space<vmem>>, %arg3: memref<1x256x128xf32, #tpu.memory_space<vmem>>, %arg4: memref<1x2x128xf32, #tpu.memory_space<vmem>>) attributes {dimension_semantics = [#tpu.dimension_semantics<parallel>], iteration_bounds = array<i64: 2>, scalar_prefetch = 0 : i64, scratch_operands = 0 : i64, tpu.core_type = #tpu.core_type<tc>, window_params = [{transform_indices = @transform_0, window_bounds = array<i64: 1, 18, 18, 128>}, {pipeline_mode = #tpu.pipeline_mode<synchronous>, transform_indices = @transform_1, window_bounds = array<i64: 9, 128, 128>}, {transform_indices = @transform_2, window_bounds = array<i64: 1, 256, 128>}, {transform_indices = @transform_3, window_bounds = array<i64: 1, 2, 128>}]} {
    %cst = arith.constant 0.000000e+00 : f32
    %0 = vector.broadcast %cst : f32 to vector<256x128xf32>
    %c0 = arith.constant 0 : index
    %c0_0 = arith.constant 0 : index
    %c0_1 = arith.constant 0 : index
    %c0_2 = arith.constant 0 : index
    %1 = vector.load %arg1[%c0, %c0_0, %c0_1, %c0_2] : memref<1x18x18x128xbf16, #tpu.memory_space<vmem>>, vector<1x16x16x128xbf16>
    %2 = vector.shape_cast %1 : vector<1x16x16x128xbf16> to vector<16x16x128xbf16>
    %3 = vector.shape_cast %2 : vector<16x16x128xbf16> to vector<256x128xbf16>
    %c0_3 = arith.constant 0 : index
    %c0_4 = arith.constant 0 : index
    %c0_5 = arith.constant 0 : index
    %4 = vector.load %arg2[%c0_3, %c0_4, %c0_5] : memref<9x128x128xbf16, #tpu.memory_space<vmem>>, vector<1x128x128xbf16>
    %5 = vector.shape_cast %4 : vector<1x128x128xbf16> to vector<128x128xbf16>
    %cst_6 = arith.constant dense<0.000000e+00> : vector<256x128xf32>
    %6 = tpu.matmul %3, %5, %cst_6 {dimension_numbers = #tpu.dot_dimension_numbers<[1], [0], [0], [1], [0, 0, 1, 1], [], []>} : vector<256x128xbf16>, vector<128x128xbf16>, vector<256x128xf32> -> vector<256x128xf32>
    %7 = arith.addf %0, %6 : vector<256x128xf32>
    %c0_7 = arith.constant 0 : index
    %c0_8 = arith.constant 0 : index
    %c1 = arith.constant 1 : index
    %c0_9 = arith.constant 0 : index
    %8 = vector.load %arg1[%c0_7, %c0_8, %c1, %c0_9] : memref<1x18x18x128xbf16, #tpu.memory_space<vmem>>, vector<1x16x16x128xbf16>
    %9 = vector.shape_cast %8 : vector<1x16x16x128xbf16> to vector<16x16x128xbf16>
    %10 = vector.shape_cast %9 : vector<16x16x128xbf16> to vector<256x128xbf16>
    %c1_10 = arith.constant 1 : index
    %c0_11 = arith.constant 0 : index
    %c0_12 = arith.constant 0 : index
    %11 = vector.load %arg2[%c1_10, %c0_11, %c0_12] : memref<9x128x128xbf16, #tpu.memory_space<vmem>>, vector<1x128x128xbf16>
    %12 = vector.shape_cast %11 : vector<1x128x128xbf16> to vector<128x128xbf16>
    %cst_13 = arith.constant dense<0.000000e+00> : vector<256x128xf32>
    %13 = tpu.matmul %10, %12, %cst_13 {dimension_numbers = #tpu.dot_dimension_numbers<[1], [0], [0], [1], [0, 0, 1, 1], [], []>} : vector<256x128xbf16>, vector<128x128xbf16>, vector<256x128xf32> -> vector<256x128xf32>
    %14 = arith.addf %7, %13 : vector<256x128xf32>
    %c0_14 = arith.constant 0 : index
    %c0_15 = arith.constant 0 : index
    %c2 = arith.constant 2 : index
    %c0_16 = arith.constant 0 : index
    %15 = vector.load %arg1[%c0_14, %c0_15, %c2, %c0_16] : memref<1x18x18x128xbf16, #tpu.memory_space<vmem>>, vector<1x16x16x128xbf16>
    %16 = vector.shape_cast %15 : vector<1x16x16x128xbf16> to vector<16x16x128xbf16>
    %17 = vector.shape_cast %16 : vector<16x16x128xbf16> to vector<256x128xbf16>
    %c2_17 = arith.constant 2 : index
    %c0_18 = arith.constant 0 : index
    %c0_19 = arith.constant 0 : index
    %18 = vector.load %arg2[%c2_17, %c0_18, %c0_19] : memref<9x128x128xbf16, #tpu.memory_space<vmem>>, vector<1x128x128xbf16>
    %19 = vector.shape_cast %18 : vector<1x128x128xbf16> to vector<128x128xbf16>
    %cst_20 = arith.constant dense<0.000000e+00> : vector<256x128xf32>
    %20 = tpu.matmul %17, %19, %cst_20 {dimension_numbers = #tpu.dot_dimension_numbers<[1], [0], [0], [1], [0, 0, 1, 1], [], []>} : vector<256x128xbf16>, vector<128x128xbf16>, vector<256x128xf32> -> vector<256x128xf32>
    %21 = arith.addf %14, %20 : vector<256x128xf32>
    %c0_21 = arith.constant 0 : index
    %c1_22 = arith.constant 1 : index
    %c0_23 = arith.constant 0 : index
    %c0_24 = arith.constant 0 : index
    %22 = vector.load %arg1[%c0_21, %c1_22, %c0_23, %c0_24] : memref<1x18x18x128xbf16, #tpu.memory_space<vmem>>, vector<1x16x16x128xbf16>
    %23 = vector.shape_cast %22 : vector<1x16x16x128xbf16> to vector<16x16x128xbf16>
    %24 = vector.shape_cast %23 : vector<16x16x128xbf16> to vector<256x128xbf16>
    %c3 = arith.constant 3 : index
    %c0_25 = arith.constant 0 : index
    %c0_26 = arith.constant 0 : index
    %25 = vector.load %arg2[%c3, %c0_25, %c0_26] : memref<9x128x128xbf16, #tpu.memory_space<vmem>>, vector<1x128x128xbf16>
    %26 = vector.shape_cast %25 : vector<1x128x128xbf16> to vector<128x128xbf16>
    %cst_27 = arith.constant dense<0.000000e+00> : vector<256x128xf32>
    %27 = tpu.matmul %24, %26, %cst_27 {dimension_numbers = #tpu.dot_dimension_numbers<[1], [0], [0], [1], [0, 0, 1, 1], [], []>} : vector<256x128xbf16>, vector<128x128xbf16>, vector<256x128xf32> -> vector<256x128xf32>
    %28 = arith.addf %21, %27 : vector<256x128xf32>
    %c0_28 = arith.constant 0 : index
    %c1_29 = arith.constant 1 : index
    %c1_30 = arith.constant 1 : index
    %c0_31 = arith.constant 0 : index
    %29 = vector.load %arg1[%c0_28, %c1_29, %c1_30, %c0_31] : memref<1x18x18x128xbf16, #tpu.memory_space<vmem>>, vector<1x16x16x128xbf16>
    %30 = vector.shape_cast %29 : vector<1x16x16x128xbf16> to vector<16x16x128xbf16>
    %31 = vector.shape_cast %30 : vector<16x16x128xbf16> to vector<256x128xbf16>
    %c4 = arith.constant 4 : index
    %c0_32 = arith.constant 0 : index
    %c0_33 = arith.constant 0 : index
    %32 = vector.load %arg2[%c4, %c0_32, %c0_33] : memref<9x128x128xbf16, #tpu.memory_space<vmem>>, vector<1x128x128xbf16>
    %33 = vector.shape_cast %32 : vector<1x128x128xbf16> to vector<128x128xbf16>
    %cst_34 = arith.constant dense<0.000000e+00> : vector<256x128xf32>
    %34 = tpu.matmul %31, %33, %cst_34 {dimension_numbers = #tpu.dot_dimension_numbers<[1], [0], [0], [1], [0, 0, 1, 1], [], []>} : vector<256x128xbf16>, vector<128x128xbf16>, vector<256x128xf32> -> vector<256x128xf32>
    %35 = arith.addf %28, %34 : vector<256x128xf32>
    %c0_35 = arith.constant 0 : index
    %c1_36 = arith.constant 1 : index
    %c2_37 = arith.constant 2 : index
    %c0_38 = arith.constant 0 : index
    %36 = vector.load %arg1[%c0_35, %c1_36, %c2_37, %c0_38] : memref<1x18x18x128xbf16, #tpu.memory_space<vmem>>, vector<1x16x16x128xbf16>
    %37 = vector.shape_cast %36 : vector<1x16x16x128xbf16> to vector<16x16x128xbf16>
    %38 = vector.shape_cast %37 : vector<16x16x128xbf16> to vector<256x128xbf16>
    %c5 = arith.constant 5 : index
    %c0_39 = arith.constant 0 : index
    %c0_40 = arith.constant 0 : index
    %39 = vector.load %arg2[%c5, %c0_39, %c0_40] : memref<9x128x128xbf16, #tpu.memory_space<vmem>>, vector<1x128x128xbf16>
    %40 = vector.shape_cast %39 : vector<1x128x128xbf16> to vector<128x128xbf16>
    %cst_41 = arith.constant dense<0.000000e+00> : vector<256x128xf32>
    %41 = tpu.matmul %38, %40, %cst_41 {dimension_numbers = #tpu.dot_dimension_numbers<[1], [0], [0], [1], [0, 0, 1, 1], [], []>} : vector<256x128xbf16>, vector<128x128xbf16>, vector<256x128xf32> -> vector<256x128xf32>
    %42 = arith.addf %35, %41 : vector<256x128xf32>
    %c0_42 = arith.constant 0 : index
    %c2_43 = arith.constant 2 : index
    %c0_44 = arith.constant 0 : index
    %c0_45 = arith.constant 0 : index
    %43 = vector.load %arg1[%c0_42, %c2_43, %c0_44, %c0_45] : memref<1x18x18x128xbf16, #tpu.memory_space<vmem>>, vector<1x16x16x128xbf16>
    %44 = vector.shape_cast %43 : vector<1x16x16x128xbf16> to vector<16x16x128xbf16>
    %45 = vector.shape_cast %44 : vector<16x16x128xbf16> to vector<256x128xbf16>
    %c6 = arith.constant 6 : index
    %c0_46 = arith.constant 0 : index
    %c0_47 = arith.constant 0 : index
    %46 = vector.load %arg2[%c6, %c0_46, %c0_47] : memref<9x128x128xbf16, #tpu.memory_space<vmem>>, vector<1x128x128xbf16>
    %47 = vector.shape_cast %46 : vector<1x128x128xbf16> to vector<128x128xbf16>
    %cst_48 = arith.constant dense<0.000000e+00> : vector<256x128xf32>
    %48 = tpu.matmul %45, %47, %cst_48 {dimension_numbers = #tpu.dot_dimension_numbers<[1], [0], [0], [1], [0, 0, 1, 1], [], []>} : vector<256x128xbf16>, vector<128x128xbf16>, vector<256x128xf32> -> vector<256x128xf32>
    %49 = arith.addf %42, %48 : vector<256x128xf32>
    %c0_49 = arith.constant 0 : index
    %c2_50 = arith.constant 2 : index
    %c1_51 = arith.constant 1 : index
    %c0_52 = arith.constant 0 : index
    %50 = vector.load %arg1[%c0_49, %c2_50, %c1_51, %c0_52] : memref<1x18x18x128xbf16, #tpu.memory_space<vmem>>, vector<1x16x16x128xbf16>
    %51 = vector.shape_cast %50 : vector<1x16x16x128xbf16> to vector<16x16x128xbf16>
    %52 = vector.shape_cast %51 : vector<16x16x128xbf16> to vector<256x128xbf16>
    %c7 = arith.constant 7 : index
    %c0_53 = arith.constant 0 : index
    %c0_54 = arith.constant 0 : index
    %53 = vector.load %arg2[%c7, %c0_53, %c0_54] : memref<9x128x128xbf16, #tpu.memory_space<vmem>>, vector<1x128x128xbf16>
    %54 = vector.shape_cast %53 : vector<1x128x128xbf16> to vector<128x128xbf16>
    %cst_55 = arith.constant dense<0.000000e+00> : vector<256x128xf32>
    %55 = tpu.matmul %52, %54, %cst_55 {dimension_numbers = #tpu.dot_dimension_numbers<[1], [0], [0], [1], [0, 0, 1, 1], [], []>} : vector<256x128xbf16>, vector<128x128xbf16>, vector<256x128xf32> -> vector<256x128xf32>
    %56 = arith.addf %49, %55 : vector<256x128xf32>
    %c0_56 = arith.constant 0 : index
    %c2_57 = arith.constant 2 : index
    %c2_58 = arith.constant 2 : index
    %c0_59 = arith.constant 0 : index
    %57 = vector.load %arg1[%c0_56, %c2_57, %c2_58, %c0_59] : memref<1x18x18x128xbf16, #tpu.memory_space<vmem>>, vector<1x16x16x128xbf16>
    %58 = vector.shape_cast %57 : vector<1x16x16x128xbf16> to vector<16x16x128xbf16>
    %59 = vector.shape_cast %58 : vector<16x16x128xbf16> to vector<256x128xbf16>
    %c8 = arith.constant 8 : index
    %c0_60 = arith.constant 0 : index
    %c0_61 = arith.constant 0 : index
    %60 = vector.load %arg2[%c8, %c0_60, %c0_61] : memref<9x128x128xbf16, #tpu.memory_space<vmem>>, vector<1x128x128xbf16>
    %61 = vector.shape_cast %60 : vector<1x128x128xbf16> to vector<128x128xbf16>
    %cst_62 = arith.constant dense<0.000000e+00> : vector<256x128xf32>
    %62 = tpu.matmul %59, %61, %cst_62 {dimension_numbers = #tpu.dot_dimension_numbers<[1], [0], [0], [1], [0, 0, 1, 1], [], []>} : vector<256x128xbf16>, vector<128x128xbf16>, vector<256x128xf32> -> vector<256x128xf32>
    %63 = arith.addf %56, %62 : vector<256x128xf32>
    %c0_63 = arith.constant 0 : index
    %c0_64 = arith.constant 0 : index
    %c0_65 = arith.constant 0 : index
    %64 = vector.load %arg3[%c0_63, %c0_64, %c0_65] : memref<1x256x128xf32, #tpu.memory_space<vmem>>, vector<1x256x128xf32>
    %65 = vector.shape_cast %64 : vector<1x256x128xf32> to vector<256x128xf32>
    %66 = vector.shape_cast %63 : vector<256x128xf32> to vector<1x256x128xf32>
    tpu.vector_store %arg3[%c0_63, %c0_64, %c0_65], %66 {strides = array<i32>} : memref<1x256x128xf32, #tpu.memory_space<vmem>>, vector<1x256x128xf32>,
    %cst_66 = arith.constant dense<0.000000e+00> : vector<128xf32>
    %67 = vector.multi_reduction <add>, %63, %cst_66 [0] : vector<256x128xf32> to vector<128xf32>
    %68 = vector.shape_cast %67 : vector<128xf32> to vector<1x128xf32>
    %c0_67 = arith.constant 0 : index
    %c0_68 = arith.constant 0 : index
    %c0_69 = arith.constant 0 : index
    %69 = vector.load %arg4[%c0_67, %c0_68, %c0_69] : memref<1x2x128xf32, #tpu.memory_space<vmem>>, vector<1x1x128xf32>
    %70 = vector.shape_cast %69 : vector<1x1x128xf32> to vector<1x128xf32>
    %71 = vector.shape_cast %68 : vector<1x128xf32> to vector<1x1x128xf32>
    tpu.vector_store %arg4[%c0_67, %c0_68, %c0_69], %71 {strides = array<i32>} : memref<1x2x128xf32, #tpu.memory_space<vmem>>, vector<1x1x128xf32>,
    %72 = arith.mulf %63, %63 : vector<256x128xf32>
    %cst_70 = arith.constant dense<0.000000e+00> : vector<128xf32>
    %73 = vector.multi_reduction <add>, %72, %cst_70 [0] : vector<256x128xf32> to vector<128xf32>
    %74 = vector.shape_cast %73 : vector<128xf32> to vector<1x128xf32>
    %c0_71 = arith.constant 0 : index
    %c1_72 = arith.constant 1 : index
    %c0_73 = arith.constant 0 : index
    %75 = vector.load %arg4[%c0_71, %c1_72, %c0_73] : memref<1x2x128xf32, #tpu.memory_space<vmem>>, vector<1x1x128xf32>
    %76 = vector.shape_cast %75 : vector<1x1x128xf32> to vector<1x128xf32>
    %77 = vector.shape_cast %74 : vector<1x128xf32> to vector<1x1x128xf32>
    tpu.vector_store %arg4[%c0_71, %c1_72, %c0_73], %77 {strides = array<i32>} : memref<1x2x128xf32, #tpu.memory_space<vmem>>, vector<1x1x128xf32>,
    return
  }
  func.func @transform_0(%arg0: i32) -> (i32, i32, i32, i32) {
    %c0_i32 = arith.constant 0 : i32
    %c0_i32_0 = arith.constant 0 : i32
    %c0_i32_1 = arith.constant 0 : i32
    %c0_i32_2 = arith.constant 0 : i32
    return %arg0, %c0_i32, %c0_i32_0, %c0_i32_1 : i32, i32, i32, i32
  }
  func.func @transform_1(%arg0: i32) -> (i32, i32, i32) {
    %c0_i32 = arith.constant 0 : i32
    %c0_i32_0 = arith.constant 0 : i32
    %c0_i32_1 = arith.constant 0 : i32
    %c0_i32_2 = arith.constant 0 : i32
    return %c0_i32, %c0_i32_0, %c0_i32_1 : i32, i32, i32
  }
  func.func @transform_2(%arg0: i32) -> (i32, i32, i32) {
    %c0_i32 = arith.constant 0 : i32
    %c0_i32_0 = arith.constant 0 : i32
    %c0_i32_1 = arith.constant 0 : i32
    return %arg0, %c0_i32, %c0_i32_0 : i32, i32, i32
  }
  func.func @transform_3(%arg0: i32) -> (i32, i32, i32) {
    %c0_i32 = arith.constant 0 : i32
    %c0_i32_0 = arith.constant 0 : i32
    %c0_i32_1 = arith.constant 0 : i32
    return %arg0, %c0_i32, %c0_i32_0 : i32, i32, i32
  }
}

module attributes {stable_mosaic.version = 11 : i64} {
  func.func @_bn1_relu_conv2_stats_kernel(%arg0: i32, %arg1: memref<1x256x128xf32, #tpu.memory_space<vmem>>, %arg2: memref<1x128xf32, #tpu.memory_space<vmem>>, %arg3: memref<1x128xf32, #tpu.memory_space<vmem>>, %arg4: memref<9x128x128xbf16, #tpu.memory_space<vmem>>, %arg5: memref<1x256x128xf32, #tpu.memory_space<vmem>>, %arg6: memref<1x2x128xf32, #tpu.memory_space<vmem>>, %arg7: memref<18x18x128xbf16, #tpu.memory_space<vmem>>) attributes {dimension_semantics = [#tpu.dimension_semantics<parallel>], iteration_bounds = array<i64: 2>, scalar_prefetch = 0 : i64, scratch_operands = 1 : i64, tpu.core_type = #tpu.core_type<tc>, window_params = [{transform_indices = @transform_0, window_bounds = array<i64: 1, 256, 128>}, {pipeline_mode = #tpu.pipeline_mode<synchronous>, transform_indices = @transform_1, window_bounds = array<i64: 1, 128>}, {pipeline_mode = #tpu.pipeline_mode<synchronous>, transform_indices = @transform_2, window_bounds = array<i64: 1, 128>}, {pipeline_mode = #tpu.pipeline_mode<synchronous>, transform_indices = @transform_3, window_bounds = array<i64: 9, 128, 128>}, {transform_indices = @transform_4, window_bounds = array<i64: 1, 256, 128>}, {transform_indices = @transform_5, window_bounds = array<i64: 1, 2, 128>}]} {
    %c0 = arith.constant 0 : index
    %c0_0 = arith.constant 0 : index
    %c0_1 = arith.constant 0 : index
    %0 = vector.load %arg1[%c0, %c0_0, %c0_1] : memref<1x256x128xf32, #tpu.memory_space<vmem>>, vector<1x256x128xf32>
    %1 = vector.shape_cast %0 : vector<1x256x128xf32> to vector<256x128xf32>
    %c0_2 = arith.constant 0 : index
    %c0_3 = arith.constant 0 : index
    %2 = vector.load %arg2[%c0_2, %c0_3] : memref<1x128xf32, #tpu.memory_space<vmem>>, vector<1x128xf32>
    %3 = vector.broadcast %2 : vector<1x128xf32> to vector<256x128xf32>
    %4 = arith.mulf %1, %3 : vector<256x128xf32>
    %c0_4 = arith.constant 0 : index
    %c0_5 = arith.constant 0 : index
    %5 = vector.load %arg3[%c0_4, %c0_5] : memref<1x128xf32, #tpu.memory_space<vmem>>, vector<1x128xf32>
    %6 = vector.broadcast %5 : vector<1x128xf32> to vector<256x128xf32>
    %7 = arith.addf %4, %6 : vector<256x128xf32>
    %cst = arith.constant 0.000000e+00 : f32
    %8 = vector.broadcast %cst : f32 to vector<256x128xf32>
    %9 = arith.maximumf %7, %8 : vector<256x128xf32>
    %cst_6 = arith.constant 0.000000e+00 : bf16
    %10 = vector.broadcast %cst_6 : bf16 to vector<18x18x128xbf16>
    %c0_7 = arith.constant 0 : index
    %c0_8 = arith.constant 0 : index
    %c0_9 = arith.constant 0 : index
    %11 = vector.load %arg7[%c0_7, %c0_8, %c0_9] : memref<18x18x128xbf16, #tpu.memory_space<vmem>>, vector<18x18x128xbf16>
    tpu.vector_store %arg7[%c0_7, %c0_8, %c0_9], %10 {strides = array<i32>} : memref<18x18x128xbf16, #tpu.memory_space<vmem>>, vector<18x18x128xbf16>,
    %12 = vector.shape_cast %9 : vector<256x128xf32> to vector<16x16x128xf32>
    %13 = arith.truncf %12 : vector<16x16x128xf32> to vector<16x16x128xbf16>
    %c1 = arith.constant 1 : index
    %c1_10 = arith.constant 1 : index
    %c0_11 = arith.constant 0 : index
    %14 = vector.load %arg7[%c1, %c1_10, %c0_11] : memref<18x18x128xbf16, #tpu.memory_space<vmem>>, vector<16x16x128xbf16>
    tpu.vector_store %arg7[%c1, %c1_10, %c0_11], %13 {strides = array<i32>} : memref<18x18x128xbf16, #tpu.memory_space<vmem>>, vector<16x16x128xbf16>,
    %cst_12 = arith.constant 0.000000e+00 : f32
    %15 = vector.broadcast %cst_12 : f32 to vector<256x128xf32>
    %c0_13 = arith.constant 0 : index
    %c0_14 = arith.constant 0 : index
    %c0_15 = arith.constant 0 : index
    %16 = vector.load %arg7[%c0_13, %c0_14, %c0_15] : memref<18x18x128xbf16, #tpu.memory_space<vmem>>, vector<16x16x128xbf16>
    %17 = vector.shape_cast %16 : vector<16x16x128xbf16> to vector<256x128xbf16>
    %c0_16 = arith.constant 0 : index
    %c0_17 = arith.constant 0 : index
    %c0_18 = arith.constant 0 : index
    %18 = vector.load %arg4[%c0_16, %c0_17, %c0_18] : memref<9x128x128xbf16, #tpu.memory_space<vmem>>, vector<1x128x128xbf16>
    %19 = vector.shape_cast %18 : vector<1x128x128xbf16> to vector<128x128xbf16>
    %cst_19 = arith.constant dense<0.000000e+00> : vector<256x128xf32>
    %20 = tpu.matmul %17, %19, %cst_19 {dimension_numbers = #tpu.dot_dimension_numbers<[1], [0], [0], [1], [0, 0, 1, 1], [], []>} : vector<256x128xbf16>, vector<128x128xbf16>, vector<256x128xf32> -> vector<256x128xf32>
    %21 = arith.addf %15, %20 : vector<256x128xf32>
    %c0_20 = arith.constant 0 : index
    %c1_21 = arith.constant 1 : index
    %c0_22 = arith.constant 0 : index
    %22 = vector.load %arg7[%c0_20, %c1_21, %c0_22] : memref<18x18x128xbf16, #tpu.memory_space<vmem>>, vector<16x16x128xbf16>
    %23 = vector.shape_cast %22 : vector<16x16x128xbf16> to vector<256x128xbf16>
    %c1_23 = arith.constant 1 : index
    %c0_24 = arith.constant 0 : index
    %c0_25 = arith.constant 0 : index
    %24 = vector.load %arg4[%c1_23, %c0_24, %c0_25] : memref<9x128x128xbf16, #tpu.memory_space<vmem>>, vector<1x128x128xbf16>
    %25 = vector.shape_cast %24 : vector<1x128x128xbf16> to vector<128x128xbf16>
    %cst_26 = arith.constant dense<0.000000e+00> : vector<256x128xf32>
    %26 = tpu.matmul %23, %25, %cst_26 {dimension_numbers = #tpu.dot_dimension_numbers<[1], [0], [0], [1], [0, 0, 1, 1], [], []>} : vector<256x128xbf16>, vector<128x128xbf16>, vector<256x128xf32> -> vector<256x128xf32>
    %27 = arith.addf %21, %26 : vector<256x128xf32>
    %c0_27 = arith.constant 0 : index
    %c2 = arith.constant 2 : index
    %c0_28 = arith.constant 0 : index
    %28 = vector.load %arg7[%c0_27, %c2, %c0_28] : memref<18x18x128xbf16, #tpu.memory_space<vmem>>, vector<16x16x128xbf16>
    %29 = vector.shape_cast %28 : vector<16x16x128xbf16> to vector<256x128xbf16>
    %c2_29 = arith.constant 2 : index
    %c0_30 = arith.constant 0 : index
    %c0_31 = arith.constant 0 : index
    %30 = vector.load %arg4[%c2_29, %c0_30, %c0_31] : memref<9x128x128xbf16, #tpu.memory_space<vmem>>, vector<1x128x128xbf16>
    %31 = vector.shape_cast %30 : vector<1x128x128xbf16> to vector<128x128xbf16>
    %cst_32 = arith.constant dense<0.000000e+00> : vector<256x128xf32>
    %32 = tpu.matmul %29, %31, %cst_32 {dimension_numbers = #tpu.dot_dimension_numbers<[1], [0], [0], [1], [0, 0, 1, 1], [], []>} : vector<256x128xbf16>, vector<128x128xbf16>, vector<256x128xf32> -> vector<256x128xf32>
    %33 = arith.addf %27, %32 : vector<256x128xf32>
    %c1_33 = arith.constant 1 : index
    %c0_34 = arith.constant 0 : index
    %c0_35 = arith.constant 0 : index
    %34 = vector.load %arg7[%c1_33, %c0_34, %c0_35] : memref<18x18x128xbf16, #tpu.memory_space<vmem>>, vector<16x16x128xbf16>
    %35 = vector.shape_cast %34 : vector<16x16x128xbf16> to vector<256x128xbf16>
    %c3 = arith.constant 3 : index
    %c0_36 = arith.constant 0 : index
    %c0_37 = arith.constant 0 : index
    %36 = vector.load %arg4[%c3, %c0_36, %c0_37] : memref<9x128x128xbf16, #tpu.memory_space<vmem>>, vector<1x128x128xbf16>
    %37 = vector.shape_cast %36 : vector<1x128x128xbf16> to vector<128x128xbf16>
    %cst_38 = arith.constant dense<0.000000e+00> : vector<256x128xf32>
    %38 = tpu.matmul %35, %37, %cst_38 {dimension_numbers = #tpu.dot_dimension_numbers<[1], [0], [0], [1], [0, 0, 1, 1], [], []>} : vector<256x128xbf16>, vector<128x128xbf16>, vector<256x128xf32> -> vector<256x128xf32>
    %39 = arith.addf %33, %38 : vector<256x128xf32>
    %c1_39 = arith.constant 1 : index
    %c1_40 = arith.constant 1 : index
    %c0_41 = arith.constant 0 : index
    %40 = vector.load %arg7[%c1_39, %c1_40, %c0_41] : memref<18x18x128xbf16, #tpu.memory_space<vmem>>, vector<16x16x128xbf16>
    %41 = vector.shape_cast %40 : vector<16x16x128xbf16> to vector<256x128xbf16>
    %c4 = arith.constant 4 : index
    %c0_42 = arith.constant 0 : index
    %c0_43 = arith.constant 0 : index
    %42 = vector.load %arg4[%c4, %c0_42, %c0_43] : memref<9x128x128xbf16, #tpu.memory_space<vmem>>, vector<1x128x128xbf16>
    %43 = vector.shape_cast %42 : vector<1x128x128xbf16> to vector<128x128xbf16>
    %cst_44 = arith.constant dense<0.000000e+00> : vector<256x128xf32>
    %44 = tpu.matmul %41, %43, %cst_44 {dimension_numbers = #tpu.dot_dimension_numbers<[1], [0], [0], [1], [0, 0, 1, 1], [], []>} : vector<256x128xbf16>, vector<128x128xbf16>, vector<256x128xf32> -> vector<256x128xf32>
    %45 = arith.addf %39, %44 : vector<256x128xf32>
    %c1_45 = arith.constant 1 : index
    %c2_46 = arith.constant 2 : index
    %c0_47 = arith.constant 0 : index
    %46 = vector.load %arg7[%c1_45, %c2_46, %c0_47] : memref<18x18x128xbf16, #tpu.memory_space<vmem>>, vector<16x16x128xbf16>
    %47 = vector.shape_cast %46 : vector<16x16x128xbf16> to vector<256x128xbf16>
    %c5 = arith.constant 5 : index
    %c0_48 = arith.constant 0 : index
    %c0_49 = arith.constant 0 : index
    %48 = vector.load %arg4[%c5, %c0_48, %c0_49] : memref<9x128x128xbf16, #tpu.memory_space<vmem>>, vector<1x128x128xbf16>
    %49 = vector.shape_cast %48 : vector<1x128x128xbf16> to vector<128x128xbf16>
    %cst_50 = arith.constant dense<0.000000e+00> : vector<256x128xf32>
    %50 = tpu.matmul %47, %49, %cst_50 {dimension_numbers = #tpu.dot_dimension_numbers<[1], [0], [0], [1], [0, 0, 1, 1], [], []>} : vector<256x128xbf16>, vector<128x128xbf16>, vector<256x128xf32> -> vector<256x128xf32>
    %51 = arith.addf %45, %50 : vector<256x128xf32>
    %c2_51 = arith.constant 2 : index
    %c0_52 = arith.constant 0 : index
    %c0_53 = arith.constant 0 : index
    %52 = vector.load %arg7[%c2_51, %c0_52, %c0_53] : memref<18x18x128xbf16, #tpu.memory_space<vmem>>, vector<16x16x128xbf16>
    %53 = vector.shape_cast %52 : vector<16x16x128xbf16> to vector<256x128xbf16>
    %c6 = arith.constant 6 : index
    %c0_54 = arith.constant 0 : index
    %c0_55 = arith.constant 0 : index
    %54 = vector.load %arg4[%c6, %c0_54, %c0_55] : memref<9x128x128xbf16, #tpu.memory_space<vmem>>, vector<1x128x128xbf16>
    %55 = vector.shape_cast %54 : vector<1x128x128xbf16> to vector<128x128xbf16>
    %cst_56 = arith.constant dense<0.000000e+00> : vector<256x128xf32>
    %56 = tpu.matmul %53, %55, %cst_56 {dimension_numbers = #tpu.dot_dimension_numbers<[1], [0], [0], [1], [0, 0, 1, 1], [], []>} : vector<256x128xbf16>, vector<128x128xbf16>, vector<256x128xf32> -> vector<256x128xf32>
    %57 = arith.addf %51, %56 : vector<256x128xf32>
    %c2_57 = arith.constant 2 : index
    %c1_58 = arith.constant 1 : index
    %c0_59 = arith.constant 0 : index
    %58 = vector.load %arg7[%c2_57, %c1_58, %c0_59] : memref<18x18x128xbf16, #tpu.memory_space<vmem>>, vector<16x16x128xbf16>
    %59 = vector.shape_cast %58 : vector<16x16x128xbf16> to vector<256x128xbf16>
    %c7 = arith.constant 7 : index
    %c0_60 = arith.constant 0 : index
    %c0_61 = arith.constant 0 : index
    %60 = vector.load %arg4[%c7, %c0_60, %c0_61] : memref<9x128x128xbf16, #tpu.memory_space<vmem>>, vector<1x128x128xbf16>
    %61 = vector.shape_cast %60 : vector<1x128x128xbf16> to vector<128x128xbf16>
    %cst_62 = arith.constant dense<0.000000e+00> : vector<256x128xf32>
    %62 = tpu.matmul %59, %61, %cst_62 {dimension_numbers = #tpu.dot_dimension_numbers<[1], [0], [0], [1], [0, 0, 1, 1], [], []>} : vector<256x128xbf16>, vector<128x128xbf16>, vector<256x128xf32> -> vector<256x128xf32>
    %63 = arith.addf %57, %62 : vector<256x128xf32>
    %c2_63 = arith.constant 2 : index
    %c2_64 = arith.constant 2 : index
    %c0_65 = arith.constant 0 : index
    %64 = vector.load %arg7[%c2_63, %c2_64, %c0_65] : memref<18x18x128xbf16, #tpu.memory_space<vmem>>, vector<16x16x128xbf16>
    %65 = vector.shape_cast %64 : vector<16x16x128xbf16> to vector<256x128xbf16>
    %c8 = arith.constant 8 : index
    %c0_66 = arith.constant 0 : index
    %c0_67 = arith.constant 0 : index
    %66 = vector.load %arg4[%c8, %c0_66, %c0_67] : memref<9x128x128xbf16, #tpu.memory_space<vmem>>, vector<1x128x128xbf16>
    %67 = vector.shape_cast %66 : vector<1x128x128xbf16> to vector<128x128xbf16>
    %cst_68 = arith.constant dense<0.000000e+00> : vector<256x128xf32>
    %68 = tpu.matmul %65, %67, %cst_68 {dimension_numbers = #tpu.dot_dimension_numbers<[1], [0], [0], [1], [0, 0, 1, 1], [], []>} : vector<256x128xbf16>, vector<128x128xbf16>, vector<256x128xf32> -> vector<256x128xf32>
    %69 = arith.addf %63, %68 : vector<256x128xf32>
    %c0_69 = arith.constant 0 : index
    %c0_70 = arith.constant 0 : index
    %c0_71 = arith.constant 0 : index
    %70 = vector.load %arg5[%c0_69, %c0_70, %c0_71] : memref<1x256x128xf32, #tpu.memory_space<vmem>>, vector<1x256x128xf32>
    %71 = vector.shape_cast %70 : vector<1x256x128xf32> to vector<256x128xf32>
    %72 = vector.shape_cast %69 : vector<256x128xf32> to vector<1x256x128xf32>
    tpu.vector_store %arg5[%c0_69, %c0_70, %c0_71], %72 {strides = array<i32>} : memref<1x256x128xf32, #tpu.memory_space<vmem>>, vector<1x256x128xf32>,
    %cst_72 = arith.constant dense<0.000000e+00> : vector<128xf32>
    %73 = vector.multi_reduction <add>, %69, %cst_72 [0] : vector<256x128xf32> to vector<128xf32>
    %74 = vector.shape_cast %73 : vector<128xf32> to vector<1x128xf32>
    %c0_73 = arith.constant 0 : index
    %c0_74 = arith.constant 0 : index
    %c0_75 = arith.constant 0 : index
    %75 = vector.load %arg6[%c0_73, %c0_74, %c0_75] : memref<1x2x128xf32, #tpu.memory_space<vmem>>, vector<1x1x128xf32>
    %76 = vector.shape_cast %75 : vector<1x1x128xf32> to vector<1x128xf32>
    %77 = vector.shape_cast %74 : vector<1x128xf32> to vector<1x1x128xf32>
    tpu.vector_store %arg6[%c0_73, %c0_74, %c0_75], %77 {strides = array<i32>} : memref<1x2x128xf32, #tpu.memory_space<vmem>>, vector<1x1x128xf32>,
    %78 = arith.mulf %69, %69 : vector<256x128xf32>
    %cst_76 = arith.constant dense<0.000000e+00> : vector<128xf32>
    %79 = vector.multi_reduction <add>, %78, %cst_76 [0] : vector<256x128xf32> to vector<128xf32>
    %80 = vector.shape_cast %79 : vector<128xf32> to vector<1x128xf32>
    %c0_77 = arith.constant 0 : index
    %c1_78 = arith.constant 1 : index
    %c0_79 = arith.constant 0 : index
    %81 = vector.load %arg6[%c0_77, %c1_78, %c0_79] : memref<1x2x128xf32, #tpu.memory_space<vmem>>, vector<1x1x128xf32>
    %82 = vector.shape_cast %81 : vector<1x1x128xf32> to vector<1x128xf32>
    %83 = vector.shape_cast %80 : vector<1x128xf32> to vector<1x1x128xf32>
    tpu.vector_store %arg6[%c0_77, %c1_78, %c0_79], %83 {strides = array<i32>} : memref<1x2x128xf32, #tpu.memory_space<vmem>>, vector<1x1x128xf32>,
    return
  }
  func.func @transform_0(%arg0: i32) -> (i32, i32, i32) {
    %c0_i32 = arith.constant 0 : i32
    %c0_i32_0 = arith.constant 0 : i32
    %c0_i32_1 = arith.constant 0 : i32
    return %arg0, %c0_i32, %c0_i32_0 : i32, i32, i32
  }
  func.func @transform_1(%arg0: i32) -> (i32, i32) {
    %c0_i32 = arith.constant 0 : i32
    %c0_i32_0 = arith.constant 0 : i32
    %c0_i32_1 = arith.constant 0 : i32
    return %c0_i32, %c0_i32_0 : i32, i32
  }
  func.func @transform_2(%arg0: i32) -> (i32, i32) {
    %c0_i32 = arith.constant 0 : i32
    %c0_i32_0 = arith.constant 0 : i32
    %c0_i32_1 = arith.constant 0 : i32
    return %c0_i32, %c0_i32_0 : i32, i32
  }
  func.func @transform_3(%arg0: i32) -> (i32, i32, i32) {
    %c0_i32 = arith.constant 0 : i32
    %c0_i32_0 = arith.constant 0 : i32
    %c0_i32_1 = arith.constant 0 : i32
    %c0_i32_2 = arith.constant 0 : i32
    return %c0_i32, %c0_i32_0, %c0_i32_1 : i32, i32, i32
  }
  func.func @transform_4(%arg0: i32) -> (i32, i32, i32) {
    %c0_i32 = arith.constant 0 : i32
    %c0_i32_0 = arith.constant 0 : i32
    %c0_i32_1 = arith.constant 0 : i32
    return %arg0, %c0_i32, %c0_i32_0 : i32, i32, i32
  }
  func.func @transform_5(%arg0: i32) -> (i32, i32, i32) {
    %c0_i32 = arith.constant 0 : i32
    %c0_i32_0 = arith.constant 0 : i32
    %c0_i32_1 = arith.constant 0 : i32
    return %arg0, %c0_i32, %c0_i32_0 : i32, i32, i32
  }
}

module attributes {stable_mosaic.version = 11 : i64} {
  func.func @_bn2_add_relu_kernel(%arg0: i32, %arg1: memref<1x256x128xf32, #tpu.memory_space<vmem>>, %arg2: memref<1x128xf32, #tpu.memory_space<vmem>>, %arg3: memref<1x128xf32, #tpu.memory_space<vmem>>, %arg4: memref<1x256x128xf32, #tpu.memory_space<vmem>>, %arg5: memref<1x256x128xf32, #tpu.memory_space<vmem>>) attributes {dimension_semantics = [#tpu.dimension_semantics<parallel>], iteration_bounds = array<i64: 2>, scalar_prefetch = 0 : i64, scratch_operands = 0 : i64, tpu.core_type = #tpu.core_type<tc>, window_params = [{transform_indices = @transform_0, window_bounds = array<i64: 1, 256, 128>}, {pipeline_mode = #tpu.pipeline_mode<synchronous>, transform_indices = @transform_1, window_bounds = array<i64: 1, 128>}, {pipeline_mode = #tpu.pipeline_mode<synchronous>, transform_indices = @transform_2, window_bounds = array<i64: 1, 128>}, {transform_indices = @transform_3, window_bounds = array<i64: 1, 256, 128>}, {transform_indices = @transform_4, window_bounds = array<i64: 1, 256, 128>}]} {
    %c0 = arith.constant 0 : index
    %c0_0 = arith.constant 0 : index
    %c0_1 = arith.constant 0 : index
    %0 = vector.load %arg1[%c0, %c0_0, %c0_1] : memref<1x256x128xf32, #tpu.memory_space<vmem>>, vector<1x256x128xf32>
    %1 = vector.shape_cast %0 : vector<1x256x128xf32> to vector<256x128xf32>
    %c0_2 = arith.constant 0 : index
    %c0_3 = arith.constant 0 : index
    %2 = vector.load %arg2[%c0_2, %c0_3] : memref<1x128xf32, #tpu.memory_space<vmem>>, vector<1x128xf32>
    %3 = vector.broadcast %2 : vector<1x128xf32> to vector<256x128xf32>
    %4 = arith.mulf %1, %3 : vector<256x128xf32>
    %c0_4 = arith.constant 0 : index
    %c0_5 = arith.constant 0 : index
    %5 = vector.load %arg3[%c0_4, %c0_5] : memref<1x128xf32, #tpu.memory_space<vmem>>, vector<1x128xf32>
    %6 = vector.broadcast %5 : vector<1x128xf32> to vector<256x128xf32>
    %7 = arith.addf %4, %6 : vector<256x128xf32>
    %c0_6 = arith.constant 0 : index
    %c0_7 = arith.constant 0 : index
    %c0_8 = arith.constant 0 : index
    %8 = vector.load %arg4[%c0_6, %c0_7, %c0_8] : memref<1x256x128xf32, #tpu.memory_space<vmem>>, vector<1x256x128xf32>
    %9 = vector.shape_cast %8 : vector<1x256x128xf32> to vector<256x128xf32>
    %10 = arith.addf %7, %9 : vector<256x128xf32>
    %cst = arith.constant 0.000000e+00 : f32
    %11 = vector.broadcast %cst : f32 to vector<256x128xf32>
    %12 = arith.maximumf %10, %11 : vector<256x128xf32>
    %c0_9 = arith.constant 0 : index
    %c0_10 = arith.constant 0 : index
    %c0_11 = arith.constant 0 : index
    %13 = vector.load %arg5[%c0_9, %c0_10, %c0_11] : memref<1x256x128xf32, #tpu.memory_space<vmem>>, vector<1x256x128xf32>
    %14 = vector.shape_cast %13 : vector<1x256x128xf32> to vector<256x128xf32>
    %15 = vector.shape_cast %12 : vector<256x128xf32> to vector<1x256x128xf32>
    tpu.vector_store %arg5[%c0_9, %c0_10, %c0_11], %15 {strides = array<i32>} : memref<1x256x128xf32, #tpu.memory_space<vmem>>, vector<1x256x128xf32>,
    return
  }
  func.func @transform_0(%arg0: i32) -> (i32, i32, i32) {
    %c0_i32 = arith.constant 0 : i32
    %c0_i32_0 = arith.constant 0 : i32
    %c0_i32_1 = arith.constant 0 : i32
    return %arg0, %c0_i32, %c0_i32_0 : i32, i32, i32
  }
  func.func @transform_1(%arg0: i32) -> (i32, i32) {
    %c0_i32 = arith.constant 0 : i32
    %c0_i32_0 = arith.constant 0 : i32
    %c0_i32_1 = arith.constant 0 : i32
    return %c0_i32, %c0_i32_0 : i32, i32
  }
  func.func @transform_2(%arg0: i32) -> (i32, i32) {
    %c0_i32 = arith.constant 0 : i32
    %c0_i32_0 = arith.constant 0 : i32
    %c0_i32_1 = arith.constant 0 : i32
    return %c0_i32, %c0_i32_0 : i32, i32
  }
  func.func @transform_3(%arg0: i32) -> (i32, i32, i32) {
    %c0_i32 = arith.constant 0 : i32
    %c0_i32_0 = arith.constant 0 : i32
    %c0_i32_1 = arith.constant 0 : i32
    return %arg0, %c0_i32, %c0_i32_0 : i32, i32, i32
  }
  func.func @transform_4(%arg0: i32) -> (i32, i32, i32) {
    %c0_i32 = arith.constant 0 : i32
    %c0_i32_0 = arith.constant 0 : i32
    %c0_i32_1 = arith.constant 0 : i32
    return %arg0, %c0_i32, %c0_i32_0 : i32, i32, i32
  }
}

</mosaic_0001>

<bundles_post_ra>
// kernel: resnet_block_forward.5
= control target key start
LH: loop header
LB: loop body
LE: loop exit
PB: predicated region body
PF: predicated region fallthrough
CT: control target
= control target key end

     0   :  { %s576_s15 = smov 0   ;;  %s777_s0 = inlined_call_operand.vmem [shape: f32[2,256,128], index: 0, kind: input, shape index: {}]   ;;  %s778_s1 = inlined_call_operand.vmem [shape: f32[1,128], index: 1, kind: input, shape index: {}]   ;;  %s779_s2 = inlined_call_operand.vmem [shape: f32[1,128], index: 2, kind: input, shape index: {}]   ;;  %s780_s3 = inlined_call_operand.vmem [shape: f32[2,256,128], index: 3, kind: input, shape index: {}]   ;;  %s781_s4 = inlined_call_operand.vmem [shape: f32[2,256,128], index: 4, kind: output, shape index: {}]  }
   0x1 LB: > { %s517_s16 = sadd.s32 4294967295, %s549_s15   ;;  %p521_p0 = scmp.ge.s32.totalorder %s549_s15, 1  ;;  %s549_s15 = sphi %s576_s15, %s14_s15  }
   0x2   : > { %p172_p1 = scmp.lt.s32.totalorder %s549_s15, 3 }
   0x4   : > { %p173_p2 = pnand %p521_p0, %p172_p1 }
   0x5   : > { %p203_p3 = scmp.lt.s32.totalorder (!%p173_p2), %s517_s16, 1 }
   0x6   : > { %176 = sbr.rel (%p173_p2) target bundleno = 55 (0x37), region = 36 }
   0xb   : > { %s783_s16 = smov (!%p203_p3, %s517_s16), 1  ;;  %v587_v0 = vld [vmem:[%s778_s1] ss:$0 sm:$0xff] }
   0xc   : > { %s589_s19 = sshll.u32 %s783_s16, 8  ;;  %v606_v1 = vld [vmem:[%s779_s2] ss:$0 sm:$0xff] }
   0xd   : > { %s595_s22 = scalar_lea.vmem %s777_s0, %s589_s19  ;;  %s601_s25 = scalar_lea.vmem %s780_s3, %s589_s19 }
   0xe   : > { %v218_v2 = vld [vmem:[%s595_s22] sm:$0xff]  ;;  %v219_v3 = vld [vmem:[%s595_s22 + $0x8] sm:$0xff]  ;;  %v220_v7 = vld [vmem:[%s595_s22 + $0x10] sm:$0xff]  ;;  %s637_s30 = scalar_lea.vmem %s781_s4, %s589_s19 }
   0xf   : > { %v254_v4 = vmul.f32 %v587_v0, %v218_v2  ;;  %v322_v5 = vld [vmem:[%s601_s25] sm:$0xff]  ;;  %v255_v6 = vmul.f32 %v587_v0, %v219_v3  ;;  %v323_v8 = vld [vmem:[%s601_s25 + $0x8] sm:$0xff]  ;;  %v256_v9 = vmul.f32 %v587_v0, %v220_v7  ;;  %v221_v10 = vld [vmem:[%s595_s22 + $0x18] sm:$0xff] }
  0x10   : > { %v222_v11 = vld [vmem:[%s595_s22 + $0x20] sm:$0xff]  ;;  %v324_v14 = vld [vmem:[%s601_s25 + $0x10] sm:$0xff]  ;;  %v257_v15 = vmul.f32 %v587_v0, %v221_v10  ;;  %v325_v16 = vld [vmem:[%s601_s25 + $0x18] sm:$0xff] }
  0x11   : > { %v290_v12 = vadd.f32 %v606_v1, %v254_v4  ;;  %v291_v13 = vadd.f32 %v606_v1, %v255_v6  ;;  %v258_v17 = vmul.f32 %v587_v0, %v222_v11  ;;  %v223_v18 = vld [vmem:[%s595_s22 + $0x28] sm:$0xff]  ;;  %v292_v19 = vadd.f32 %v606_v1, %v256_v9  ;;  %v326_v20 = vld [vmem:[%s601_s25 + $0x20] sm:$0xff]  ;;  %v224_v22 = vld [vmem:[%s595_s22 + $0x30] sm:$0xff] }
  0x12   : > { %v259_v21 = vmul.f32 %v587_v0, %v223_v18  ;;  %v225_v23 = vld [vmem:[%s595_s22 + $0x38] sm:$0xff]  ;;  %v293_v26 = vadd.f32 %v606_v1, %v257_v15  ;;  %v327_v28 = vld [vmem:[%s601_s25 + $0x28] sm:$0xff]  ;;  %v260_v31 = vmul.f32 %v587_v0, %v224_v22  ;;  %v226_v33 = vld [vmem:[%s595_s22 + $0x40] sm:$0xff] }
  0x13   : > { %v354_v24 = vadd.f32 %v322_v5, %v290_v12  ;;  %v355_v25 = vadd.f32 %v323_v8, %v291_v13  ;;  %v294_v27 = vadd.f32 %v606_v1, %v258_v17  ;;  %v356_v29 = vadd.f32 %v324_v14, %v292_v19  ;;  %v227_v34 = vld [vmem:[%s595_s22 + $0x48] sm:$0xff]  ;;  %v328_v39 = vld [vmem:[%s601_s25 + $0x30] sm:$0xff]  ;;  %v329_v40 = vld [vmem:[%s601_s25 + $0x38] sm:$0xff] }
  0x14   : > { %v295_v30 = vadd.f32 %v606_v1, %v259_v21  ;;  %v261_v32 = vmul.f32 %v587_v0, %v225_v23  ;;  %v357_v37 = vadd.f32 %v325_v16, %v293_v26  ;;  %v228_v41 = vld [vmem:[%s595_s22 + $0x50] sm:$0xff]  ;;  %v296_v44 = vadd.f32 %v606_v1, %v260_v31  ;;  %v229_v46 = vld [vmem:[%s595_s22 + $0x58] sm:$0xff]  ;;  %v230_v47 = vld [vmem:[%s595_s22 + $0x60] sm:$0xff] }
  0x15   : > { %v386_v35 = vmax.f32 %v354_v24, 0.0  ;;  %v387_v36 = vmax.f32 %v355_v25, 0.0  ;;  %v358_v38 = vadd.f32 %v326_v20, %v294_v27  ;;  %v388_v42 = vmax.f32 %v356_v29, 0.0  ;;  %v231_v52 = vld [vmem:[%s595_s22 + $0x68] sm:$0xff]  ;;  %v330_v56 = vld [vmem:[%s601_s25 + $0x40] sm:$0xff]  ;;  %v332_v61 = vld [vmem:[%s601_s25 + $0x50] sm:$0xff] }
  0x16   : > { %v359_v43 = vadd.f32 %v327_v28, %v295_v30  ;;  %v297_v45 = vadd.f32 %v606_v1, %v261_v32  ;;  %v389_v48 = vmax.f32 %v357_v37, 0.0  ;;  %v262_v50 = vmul.f32 %v587_v0, %v226_v33  ;;  %v331_v57 = vld [vmem:[%s601_s25 + $0x48] sm:$0xff]  ;;  %v232_v2 = vld [vmem:[%s595_s22 + $0x70] sm:$0xff]  ;;  %v233_v3 = vld [vmem:[%s595_s22 + $0x78] sm:$0xff] }
  0x17   : > { %418 = vst [vmem:[%s637_s30] sm:$0xff] %v386_v35  ;;  %v390_v49 = vmax.f32 %v358_v38, 0.0  ;;  %v263_v51 = vmul.f32 %v587_v0, %v227_v34  ;;  %v360_v54 = vadd.f32 %v328_v39, %v296_v44  ;;  %v264_v58 = vmul.f32 %v587_v0, %v228_v41  ;;  %v333_v7 = vld [vmem:[%s601_s25 + $0x58] sm:$0xff]  ;;  %v334_v8 = vld [vmem:[%s601_s25 + $0x60] sm:$0xff]  ;;  %v335_v14 = vld [vmem:[%s601_s25 + $0x68] sm:$0xff] }
  0x18   : > { %419 = vst [vmem:[%s637_s30 + $0x8] sm:$0xff] %v387_v36  ;;  %v391_v53 = vmax.f32 %v359_v43, 0.0  ;;  %v361_v55 = vadd.f32 %v329_v40, %v297_v45  ;;  %v298_v59 = vadd.f32 %v606_v1, %v262_v50  ;;  %v265_v62 = vmul.f32 %v587_v0, %v229_v46  ;;  %v234_v19 = vld [vmem:[%s595_s22 + $0x80] sm:$0xff]  ;;  %v235_v20 = vld [vmem:[%s595_s22 + $0x88] sm:$0xff]  ;;  %v336_v25 = vld [vmem:[%s601_s25 + $0x70] sm:$0xff] }
  0x19   : > { %420 = vst [vmem:[%s637_s30 + $0x10] sm:$0xff] %v388_v42  ;;  %v299_v60 = vadd.f32 %v606_v1, %v263_v51  ;;  %v266_v63 = vmul.f32 %v587_v0, %v230_v47  ;;  %v392_v4 = vmax.f32 %v360_v54, 0.0  ;;  %v300_v6 = vadd.f32 %v606_v1, %v264_v58  ;;  %v337_v26 = vld [vmem:[%s601_s25 + $0x78] sm:$0xff]  ;;  %v236_v27 = vld [vmem:[%s595_s22 + $0x90] sm:$0xff]  ;;  %v238_v33 = vld [vmem:[%s595_s22 + $0xa0] sm:$0xff] }
  0x1a   : > { %421 = vst [vmem:[%s637_s30 + $0x18] sm:$0xff] %v389_v48  ;;  %v393_v5 = vmax.f32 %v361_v55, 0.0  ;;  %v267_v9 = vmul.f32 %v587_v0, %v231_v52  ;;  %v362_v10 = vadd.f32 %v330_v56, %v298_v59  ;;  %v301_v12 = vadd.f32 %v606_v1, %v265_v62  ;;  %v237_v32 = vld [vmem:[%s595_s22 + $0x98] sm:$0xff]  ;;  %v239_v38 = vld [vmem:[%s595_s22 + $0xa8] sm:$0xff]  ;;  %v338_v42 = vld [vmem:[%s601_s25 + $0x80] sm:$0xff] }
  0x1b   : > { %422 = vst [vmem:[%s637_s30 + $0x20] sm:$0xff] %v390_v49  ;;  %v363_v11 = vadd.f32 %v331_v57, %v299_v60  ;;  %v302_v13 = vadd.f32 %v606_v1, %v266_v63  ;;  %v364_v15 = vadd.f32 %v332_v61, %v300_v6  ;;  %v268_v17 = vmul.f32 %v587_v0, %v232_v2  ;;  %v339_v43 = vld [vmem:[%s601_s25 + $0x88] sm:$0xff]  ;;  %v340_v47 = vld [vmem:[%s601_s25 + $0x90] sm:$0xff]  ;;  %v241_v51 = vld [vmem:[%s595_s22 + $0xb8] sm:$0xff] }
  0x1c   : > { %423 = vst [vmem:[%s637_s30 + $0x28] sm:$0xff] %v391_v53  ;;  %v303_v16 = vadd.f32 %v606_v1, %v267_v9  ;;  %v269_v18 = vmul.f32 %v587_v0, %v233_v3  ;;  %v394_v21 = vmax.f32 %v362_v10, 0.0  ;;  %v365_v23 = vadd.f32 %v333_v7, %v301_v12  ;;  %v240_v50 = vld [vmem:[%s595_s22 + $0xb0] sm:$0xff]  ;;  %v341_v55 = vld [vmem:[%s601_s25 + $0x98] sm:$0xff]  ;;  %v342_v56 = vld [vmem:[%s601_s25 + $0xa0] sm:$0xff] }
  0x1d   : > { %424 = vst [vmem:[%s637_s30 + $0x30] sm:$0xff] %v392_v4  ;;  %v395_v22 = vmax.f32 %v363_v11, 0.0  ;;  %v366_v24 = vadd.f32 %v334_v8, %v302_v13  ;;  %v396_v28 = vmax.f32 %v364_v15, 0.0  ;;  %v304_v30 = vadd.f32 %v606_v1, %v268_v17  ;;  %v343_v62 = vld [vmem:[%s601_s25 + $0xa8] sm:$0xff]  ;;  %v344_v11 = vld [vmem:[%s601_s25 + $0xb0] sm:$0xff]  ;;  %v345_v12 = vld [vmem:[%s601_s25 + $0xb8] sm:$0xff] }
  0x1e   : > { %425 = vst [vmem:[%s637_s30 + $0x38] sm:$0xff] %v393_v5  ;;  %v367_v29 = vadd.f32 %v335_v14, %v303_v16  ;;  %v305_v31 = vadd.f32 %v606_v1, %v269_v18  ;;  %v397_v34 = vmax.f32 %v365_v23, 0.0  ;;  %v270_v36 = vmul.f32 %v587_v0, %v234_v19  ;;  %v242_v5 = vld [vmem:[%s595_s22 + $0xc0] sm:$0xff]  ;;  %v243_v6 = vld [vmem:[%s595_s22 + $0xc8] sm:$0xff]  ;;  %v244_v13 = vld [vmem:[%s595_s22 + $0xd0] sm:$0xff] }
  0x1f   : > { %426 = vst [vmem:[%s637_s30 + $0x40] sm:$0xff] %v394_v21  ;;  %v398_v35 = vmax.f32 %v366_v24, 0.0  ;;  %v271_v37 = vmul.f32 %v587_v0, %v235_v20  ;;  %v368_v40 = vadd.f32 %v336_v25, %v304_v30  ;;  %v272_v44 = vmul.f32 %v587_v0, %v236_v27  ;;  %v245_v18 = vld [vmem:[%s595_s22 + $0xd8] sm:$0xff]  ;;  %v246_v19 = vld [vmem:[%s595_s22 + $0xe0] sm:$0xff]  ;;  %v247_v24 = vld [vmem:[%s595_s22 + $0xe8] sm:$0xff] }
  0x20   : > { %427 = vst [vmem:[%s637_s30 + $0x48] sm:$0xff] %v395_v22  ;;  %v399_v39 = vmax.f32 %v367_v29, 0.0  ;;  %v369_v41 = vadd.f32 %v337_v26, %v305_v31  ;;  %v306_v45 = vadd.f32 %v606_v1, %v270_v36  ;;  %v273_v48 = vmul.f32 %v587_v0, %v237_v32  ;;  %v347_v29 = vld [vmem:[%s601_s25 + $0xc8] sm:$0xff]  ;;  %v248_v36 = vld [vmem:[%s595_s22 + $0xf0] sm:$0xff] }
  0x21   : > { %428 = vst [vmem:[%s637_s30 + $0x50] sm:$0xff] %v396_v28  ;;  %v307_v46 = vadd.f32 %v606_v1, %v271_v37  ;;  %v274_v49 = vmul.f32 %v587_v0, %v238_v33  ;;  %v400_v52 = vmax.f32 %v368_v40, 0.0  ;;  %v308_v54 = vadd.f32 %v606_v1, %v272_v44  ;;  %v346_v28 = vld [vmem:[%s601_s25 + $0xc0] sm:$0xff]  ;;  %v348_v33 = vld [vmem:[%s601_s25 + $0xd0] sm:$0xff]  ;;  %v249_v37 = vld [vmem:[%s595_s22 + $0xf8] sm:$0xff] }
  0x22   : > { %429 = vst [vmem:[%s637_s30 + $0x58] sm:$0xff] %v397_v34  ;;  %v401_v53 = vmax.f32 %v369_v41, 0.0  ;;  %v275_v57 = vmul.f32 %v587_v0, %v239_v38  ;;  %v370_v58 = vadd.f32 %v338_v42, %v306_v45  ;;  %v309_v60 = vadd.f32 %v606_v1, %v273_v48  ;;  %v349_v41 = vld [vmem:[%s601_s25 + $0xd8] sm:$0xff]  ;;  %v350_v42 = vld [vmem:[%s601_s25 + $0xe0] sm:$0xff]  ;;  %v351_v48 = vld [vmem:[%s601_s25 + $0xe8] sm:$0xff] }
  0x23   : > { %430 = vst [vmem:[%s637_s30 + $0x60] sm:$0xff] %v398_v35  ;;  %v371_v59 = vadd.f32 %v339_v43, %v307_v46  ;;  %v310_v61 = vadd.f32 %v606_v1, %v274_v49  ;;  %v372_v63 = vadd.f32 %v340_v47, %v308_v54  ;;  %v276_v3 = vmul.f32 %v587_v0, %v240_v50 }
  0x24   : > { %431 = vst [vmem:[%s637_s30 + $0x68] sm:$0xff] %v399_v39  ;;  %v311_v2 = vadd.f32 %v606_v1, %v275_v57  ;;  %v277_v4 = vmul.f32 %v587_v0, %v241_v51  ;;  %v402_v7 = vmax.f32 %v370_v58, 0.0  ;;  %v373_v9 = vadd.f32 %v341_v55, %v309_v60  ;;  %v352_v57 = vld [vmem:[%s601_s25 + $0xf0] sm:$0xff]  ;;  %v353_v58 = vld [vmem:[%s601_s25 + $0xf8] sm:$0xff] }
  0x25   : > { %432 = vst [vmem:[%s637_s30 + $0x70] sm:$0xff] %v400_v52  ;;  %v403_v8 = vmax.f32 %v371_v59, 0.0  ;;  %v374_v10 = vadd.f32 %v342_v56, %v310_v61  ;;  %v404_v14 = vmax.f32 %v372_v63, 0.0  ;;  %v312_v16 = vadd.f32 %v606_v1, %v276_v3 }
  0x26   : > { %433 = vst [vmem:[%s637_s30 + $0x78] sm:$0xff] %v401_v53  ;;  %v375_v15 = vadd.f32 %v343_v62, %v311_v2  ;;  %v313_v17 = vadd.f32 %v606_v1, %v277_v4  ;;  %v405_v20 = vmax.f32 %v373_v9, 0.0  ;;  %v278_v22 = vmul.f32 %v587_v0, %v242_v5 }
  0x27   : > { %434 = vst [vmem:[%s637_s30 + $0x80] sm:$0xff] %v402_v7  ;;  %v406_v21 = vmax.f32 %v374_v10, 0.0  ;;  %v279_v23 = vmul.f32 %v587_v0, %v243_v6  ;;  %v376_v26 = vadd.f32 %v344_v11, %v312_v16  ;;  %v280_v30 = vmul.f32 %v587_v0, %v244_v13 }
  0x28   : > { %435 = vst [vmem:[%s637_s30 + $0x88] sm:$0xff] %v403_v8  ;;  %v407_v25 = vmax.f32 %v375_v15, 0.0  ;;  %v377_v27 = vadd.f32 %v345_v12, %v313_v17  ;;  %v314_v31 = vadd.f32 %v606_v1, %v278_v22  ;;  %v281_v34 = vmul.f32 %v587_v0, %v245_v18 }
  0x29   : > { %436 = vst [vmem:[%s637_s30 + $0x90] sm:$0xff] %v404_v14  ;;  %v315_v32 = vadd.f32 %v606_v1, %v279_v23  ;;  %v282_v35 = vmul.f32 %v587_v0, %v246_v19  ;;  %v408_v38 = vmax.f32 %v376_v26, 0.0  ;;  %v316_v40 = vadd.f32 %v606_v1, %v280_v30 }
  0x2a   : > { %437 = vst [vmem:[%s637_s30 + $0x98] sm:$0xff] %v405_v20  ;;  %v409_v39 = vmax.f32 %v377_v27, 0.0  ;;  %v283_v43 = vmul.f32 %v587_v0, %v247_v24  ;;  %v378_v44 = vadd.f32 %v346_v28, %v314_v31  ;;  %v317_v46 = vadd.f32 %v606_v1, %v281_v34 }
  0x2b   : > { %438 = vst [vmem:[%s637_s30 + $0xa0] sm:$0xff] %v406_v21  ;;  %v379_v45 = vadd.f32 %v347_v29, %v315_v32  ;;  %v318_v47 = vadd.f32 %v606_v1, %v282_v35  ;;  %v380_v49 = vadd.f32 %v348_v33, %v316_v40  ;;  %v284_v51 = vmul.f32 %v587_v0, %v248_v36 }
  0x2c   : > { %439 = vst [vmem:[%s637_s30 + $0xa8] sm:$0xff] %v407_v25  ;;  %v319_v50 = vadd.f32 %v606_v1, %v283_v43  ;;  %v285_v52 = vmul.f32 %v587_v0, %v249_v37  ;;  %v410_v53 = vmax.f32 %v378_v44, 0.0  ;;  %v381_v55 = vadd.f32 %v349_v41, %v317_v46 }
  0x2d   : > { %440 = vst [vmem:[%s637_s30 + $0xb0] sm:$0xff] %v408_v38  ;;  %v411_v54 = vmax.f32 %v379_v45, 0.0  ;;  %v382_v56 = vadd.f32 %v350_v42, %v318_v47  ;;  %v412_v59 = vmax.f32 %v380_v49, 0.0  ;;  %v320_v61 = vadd.f32 %v606_v1, %v284_v51 }
  0x2e   : > { %441 = vst [vmem:[%s637_s30 + $0xb8] sm:$0xff] %v409_v39  ;;  %v383_v60 = vadd.f32 %v351_v48, %v319_v50  ;;  %v321_v0 = vadd.f32 %v606_v1, %v285_v52  ;;  %v413_v62 = vmax.f32 %v381_v55, 0.0 }
  0x2f   : > { %442 = vst [vmem:[%s637_s30 + $0xc0] sm:$0xff] %v410_v53  ;;  %v414_v63 = vmax.f32 %v382_v56, 0.0  ;;  %v384_v3 = vadd.f32 %v352_v57, %v320_v61 }
  0x30   : > { %443 = vst [vmem:[%s637_s30 + $0xc8] sm:$0xff] %v411_v54  ;;  %v415_v2 = vmax.f32 %v383_v60, 0.0  ;;  %v385_v4 = vadd.f32 %v353_v58, %v321_v0 }
  0x31   : > { %444 = vst [vmem:[%s637_s30 + $0xd0] sm:$0xff] %v412_v59  ;;  %v416_v5 = vmax.f32 %v384_v3, 0.0 }
  0x32   : > { %445 = vst [vmem:[%s637_s30 + $0xd8] sm:$0xff] %v413_v62  ;;  %v417_v6 = vmax.f32 %v385_v4, 0.0 }
  0x33   : > { %446 = vst [vmem:[%s637_s30 + $0xe0] sm:$0xff] %v414_v63 }
  0x34   : > { %447 = vst [vmem:[%s637_s30 + $0xe8] sm:$0xff] %v415_v2 }
  0x35   : > { %448 = vst [vmem:[%s637_s30 + $0xf0] sm:$0xff] %v416_v5 }
  0x36   : > { %449 = vst [vmem:[%s637_s30 + $0xf8] sm:$0xff] %v417_v6 }
  0x37 PF: > { %s14_s15 = sadd.s32 1, %s549_s15  }
  0x38   : > { %p11_p4 = scmp.ge.s32.totalorder %s14_s15, 4  }
  0x3a   :  { %13 = sbr.rel (!%p11_p4) target bundleno = 1 (0x1), region = 69 }

// kernel: resnet_block_forward.3
= control target key start
LH: loop header
LB: loop body
LE: loop exit
PB: predicated region body
PF: predicated region fallthrough
CT: control target
= control target key end

     0   :  { %s5663_s12 = smov 0   ;;  %s7070_s0 = inlined_call_operand.vmem [shape: bf16[2,18,18,128], index: 0, kind: input, shape index: {}]   ;;  %s7071_s1 = inlined_call_operand.vmem [shape: bf16[9,128,128], index: 1, kind: input, shape index: {}]   ;;  %s7072_s2 = inlined_call_operand.vmem [shape: f32[2,256,128], index: 2, kind: output, shape index: {0}]   ;;  %s7073_s3 = inlined_call_operand.vmem [shape: f32[2,2,128], index: 3, kind: output, shape index: {1}]  }
   0x1 LB: > { %s4569_s13 = sadd.s32 4294967295, %s5641_s12   ;;  %p4573_p0 = scmp.ge.s32.totalorder %s5641_s12, 1  ;;  %s5641_s12 = sphi %s5663_s12, %s14_s12  }
   0x2   : > { %p140_p1 = scmp.lt.s32.totalorder %s5641_s12, 3 }
   0x4   : > { %p141_p2 = pnand %p4573_p0, %p140_p1 }
   0x6   : > { %144 = sbr.rel (%p141_p2) target bundleno = 770 (0x302), region = 28 }
   0xb   : > { %v5460_v0 = vld [vmem:[%s7071_s1 + $0x78] sm:$0xff]  ;;  %p168_p3 = scmp.lt.s32.totalorder %s4569_s13, 1  ;;  %v5459_v1 = vld [vmem:[%s7071_s1 + $0x70] sm:$0xff]  ;;  %v5458_v2 = vld [vmem:[%s7071_s1 + $0x68] sm:$0xff]  ;;  %vm246_vm0 = vsmask.f32 3328 }
   0xc   : > { %5549 = vmatpush.bf16.msra.mxu1 %v5460_v0  ;;  %5550 = vmatpush.bf16.msra.mxu2 %v5460_v0  ;;  %vm247_vm1 = vsmask.f32 7440  ;;  %v5457_v6 = vld [vmem:[%s7071_s1 + $0x60] sm:$0xff]  ;;  %v5456_v35 = vld [vmem:[%s7071_s1 + $0x58] sm:$0xff]  ;;  %v5455_v54 = vld [vmem:[%s7071_s1 + $0x50] sm:$0xff]  ;;  %vm1132_vm3 = vcmask 1042432  }
   0xd   : > { %s7083_s13 = smov (!%p168_p3, %s4569_s13), 1  ;;  %5551 = vmatpush.bf16.msra.mxu3 %v5460_v0  ;;  %762 = vmatpush.bf16.msra.mxu0 %v5460_v0  ;;  %vm5701_vm2 = vmor %vm246_vm0, %vm247_vm1  ;;  %vm1133_vm4 = vcmask 1046532  }
   0xe   : > { %s5573_s18 = smul.u32 216, %s7083_s13  ;;  %vm6001_vm5 = vmor %vm1132_vm3, %vm1133_vm4  ;;  %s5428_s17 = sshll.u32 %s7083_s13, 8 }
   0xf   : > { %s6837_s20 = scalar_lea.vmem %s7072_s2, %s5428_s17 }
  0x10   : > { %5552 = vmatpush.bf16.msra.mxu1 %v5459_v1  ;;  %5553 = vmatpush.bf16.msra.mxu2 %v5459_v1  ;;  %s5686_s23 = scalar_lea.vmem %s7070_s0, %s5573_s18 }
  0x11   : > { %5554 = vmatpush.bf16.msra.mxu3 %v5459_v1  ;;  %763 = vmatpush.bf16.msra.mxu0 %v5459_v1  ;;  %v190_v3 = vld [vmem:[%s5686_s23 + $0x30] sm:$0xf]  ;;  %v191_v4 = vld [vmem:[%s5686_s23 + $0x34] sm:$0xf]  ;;  %v234_v5 = vld [vmem:[%s5686_s23 + $0x38] sm:$0x1] }
  0x12   : > { %v346_v7 = vshrl.u32 %v190_v3, 16  ;;  %v349_v8 = vshll.u32 %v190_v3, 16  ;;  %v355_v9 = vshll.u32 %v191_v4, 16  ;;  %v359_v10 = vshrl.u32 %v191_v4, 16  ;;  %v198_v11 = vld [vmem:[%s5686_s23 + $0x60] sm:$0xf] }
  0x13   : > { %v365_v12 = vshll.u32 %v234_v5, 16  ;;  %v199_v13 = vld [vmem:[%s5686_s23 + $0x64] sm:$0xf]  ;;  %v238_v14 = vld [vmem:[%s5686_s23 + $0x68] sm:$0x1]  ;;  %v442_v15 = vshrl.u32 %v198_v11, 16 }
  0x14   : > { %5555 = vmatpush.bf16.msra.mxu1 %v5458_v2  ;;  %5556 = vmatpush.bf16.msra.mxu2 %v5458_v2  ;;  %v348_v16 = vrot.slane %v346_v7, 4  ;;  %v351_v17 = vrot.slane %v349_v8, 5  ;;  %v357_v18 = vrot.slane %v355_v9, 5  ;;  %v361_v19 = vrot.slane %v359_v10, 4  ;;  %v206_v20 = vld [vmem:[%s5686_s23 + $0x90] sm:$0xf] }
  0x15   : > { %5557 = vmatpush.bf16.msra.mxu3 %v5458_v2  ;;  %764 = vmatpush.bf16.msra.mxu0 %v5458_v2  ;;  %v367_v21 = vrot.slane %v365_v12, 5  ;;  %v444_v22 = vrot.slane %v442_v15, 4  ;;  %v445_v23 = vshll.u32 %v198_v11, 16  ;;  %v451_v24 = vshll.u32 %v199_v13, 16  ;;  %v207_v29 = vld [vmem:[%s5686_s23 + $0x94] sm:$0xf] }
  0x16   : > { %v352_v25 = vor.u32 %v351_v17, %v348_v16  ;;  %v362_v26 = vor.u32 %v361_v19, %v357_v18  ;;  %v455_v27 = vshrl.u32 %v199_v13, 16  ;;  %v461_v28 = vshll.u32 %v238_v14, 16  ;;  %v242_v41 = vld [vmem:[%s5686_s23 + $0x98] sm:$0x1]  ;;  %v182_v49 = vld [vmem:[%s5686_s23] sm:$0xf] }
  0x17   : > { %v447_v31 = vrot.slane %v445_v23, 5  ;;  %v453_v32 = vrot.slane %v451_v24, 5  ;;  %v538_v33 = vshrl.u32 %v206_v20, 16  ;;  %v541_v34 = vshll.u32 %v206_v20, 16  ;;  %v5726_v62 = vld [vmem:[%s5686_s23 + $0x4] sm:$0xf] }
  0x18   : > { %5558 = vmatpush.bf16.msra.mxu1 %v5457_v6  ;;  %5559 = vmatpush.bf16.msra.mxu2 %v5457_v6  ;;  %v353_v36 = vrot.slane %v352_v25, 4  ;;  %v363_v37 = vrot.slane %v362_v26, 4  ;;  %v457_v38 = vrot.slane %v455_v27, 4  ;;  %v463_v39 = vrot.slane %v461_v28, 5  ;;  %v5733_v4 = vld [vmem:[%s5686_s23 + $0x8] sm:$0x1] }
  0x19   : > { %5560 = vmatpush.bf16.msra.mxu3 %v5457_v6  ;;  %765 = vmatpush.bf16.msra.mxu0 %v5457_v6  ;;  %v448_v40 = vor.u32 %v447_v31, %v444_v22  ;;  %v540_v42 = vrot.slane %v538_v33, 4  ;;  %v543_v43 = vrot.slane %v541_v34, 5  ;;  %v547_v44 = vshll.u32 %v207_v29, 16  ;;  %v192_v5 = vld [vmem:[%s5686_s23 + $0x3c] sm:$0xf]  ;;  %v5454_v10 = vld [vmem:[%s7071_s1 + $0x48] sm:$0xff] }
  0x1a   : > { %v358_v45 = vsel %vm5701_vm2, %v353_v36, %v357_v18  ;;  %v368_v46 = vsel %vm5701_vm2, %v363_v37, %v367_v21  ;;  %v458_v47 = vor.u32 %v457_v38, %v453_v32  ;;  %v551_v48 = vshrl.u32 %v207_v29, 16  ;;  %v193_v15 = vld [vmem:[%s5686_s23 + $0x40] sm:$0xf]  ;;  %v235_v19 = vld [vmem:[%s5686_s23 + $0x44] sm:$0x1]  ;;  %v5468_v37 = vld [vmem:[%s7071_s1 + $0xb8] sm:$0xff] }
  0x1b   : > { %v5714_v50 = vunpack.c.l.b16 %v358_v45  ;;  %v5716_v51 = vunpack.c.l.b16 %v368_v46  ;;  %v449_v52 = vrot.slane %v448_v40, 4  ;;  %v544_v53 = vor.u32 %v543_v43, %v540_v42  ;;  %v200_v25 = vld [vmem:[%s5686_s23 + $0x6c] sm:$0xf]  ;;  %v5453_v31 = vld [vmem:[%s7071_s1 + $0x40] sm:$0xff]  ;;  %v201_v40 = vld [vmem:[%s5686_s23 + $0x70] sm:$0xf] }
  0x1c   : > { %5561 = vmatpush.bf16.msra.mxu1 %v5456_v35  ;;  %5562 = vmatpush.bf16.msra.mxu2 %v5456_v35  ;;  %v459_v55 = vrot.slane %v458_v47, 4  ;;  %v549_v56 = vrot.slane %v547_v44, 5  ;;  %v553_v57 = vrot.slane %v551_v48, 4  ;;  %v557_v58 = vshll.u32 %v242_v41, 16  ;;  %v5492_v43 = vld [vmem:[%s7071_s1 + $0xf8] sm:$0xff] }
  0x1d   : > { %5563 = vmatpush.bf16.msra.mxu3 %v5456_v35  ;;  %766 = vmatpush.bf16.msra.mxu0 %v5456_v35  ;;  %v686_v59 = vpack.c.b16 %v5716_v51, %v5714_v50  ;;  %v454_v60 = vsel %vm5701_vm2, %v449_v52, %v453_v32  ;;  %v545_v61 = vrot.slane %v544_v53, 4  ;;  %v250_v63 = vshrl.u32 %v182_v49, 16  ;;  %v239_v47 = vld [vmem:[%s5686_s23 + $0x74] sm:$0x1] }
  0x1e   : > { %v464_v0 = vsel %vm5701_vm2, %v459_v55, %v463_v39  ;;  %v5730_v1 = vunpack.c.l.b16 %v454_v60  ;;  %v554_v2 = vor.u32 %v553_v57, %v549_v56  ;;  %v559_v3 = vrot.slane %v557_v58, 5  ;;  %v5452_v57 = vld [vmem:[%s7071_s1 + $0x38] sm:$0xff] }
  0x1f   : > { %v5736_v6 = vunpack.c.l.b16 %v464_v0  ;;  %v550_v7 = vsel %vm5701_vm2, %v545_v61, %v549_v56  ;;  %v252_v8 = vrot.slane %v250_v63, 4  ;;  %v253_v9 = vshll.u32 %v182_v49, 16  ;;  %v5467_v63 = vld [vmem:[%s7071_s1 + $0xb0] sm:$0xff] }
  0x20   : > { %5564 = vmatpush.bf16.msra.mxu1 %v5455_v54  ;;  %5565 = vmatpush.bf16.msra.mxu2 %v5455_v54  ;;  %v555_v11 = vrot.slane %v554_v2, 4  ;;  %v5743_v12 = vunpack.c.l.b16 %v550_v7  ;;  %v259_v13 = vshll.u32 %v5726_v62, 16  ;;  %v263_v14 = vshrl.u32 %v5726_v62, 16 }
  0x21   : > { %5566 = vmatpush.bf16.msra.mxu3 %v5455_v54  ;;  %767 = vmatpush.bf16.msra.mxu0 %v5455_v54  ;;  %v690_v16 = vpack.c.b16 %v5736_v6, %v5730_v1  ;;  %v255_v17 = vrot.slane %v253_v9, 5  ;;  %v269_v18 = vshll.u32 %v5733_v4, 16  ;;  %v370_v20 = vshrl.u32 %v192_v5, 16  ;;  %v208_v54 = vld [vmem:[%s5686_s23 + $0x9c] sm:$0xf] }
  0x22   : > { %v560_v21 = vsel %vm5701_vm2, %v555_v11, %v559_v3  ;;  %v261_v22 = vrot.slane %v259_v13, 5  ;;  %v265_v23 = vrot.slane %v263_v14, 4  ;;  %v373_v24 = vshll.u32 %v192_v5, 16  ;;  %v5491_v3 = vld [vmem:[%s7071_s1 + $0xf0] sm:$0xff]  ;;  %v5500_v11 = vld [vmem:[%s7071_s1 + $0x138] sm:$0xff] }
  0x23   : > { %v675_v26 = vunpack.c.l.b16 %v560_v21  ;;  %v256_v27 = vor.u32 %v255_v17, %v252_v8  ;;  %v271_v28 = vrot.slane %v269_v18, 5  ;;  %v372_v29 = vrot.slane %v370_v20, 4  ;;  %v209_v8 = vld [vmem:[%s5686_s23 + $0xa0] sm:$0xf]  ;;  %v184_v17 = vld [vmem:[%s5686_s23 + $0xc] sm:$0xf] }
  0x24   : > { %5567 = vmatpush.bf16.msra.mxu1 %v5454_v10  ;;  %5568 = vmatpush.bf16.msra.mxu2 %v5454_v10  ;;  %v266_v32 = vor.u32 %v265_v23, %v261_v22  ;;  %v375_v33 = vrot.slane %v373_v24, 5  ;;  %v379_v34 = vshll.u32 %v193_v15, 16  ;;  %v383_v35 = vshrl.u32 %v193_v15, 16  ;;  %v243_v15 = vld [vmem:[%s5686_s23 + $0xa4] sm:$0x1]  ;;  %v5451_v18 = vld [vmem:[%s7071_s1 + $0x30] sm:$0xff] }
  0x25   : > { %5569 = vmatpush.bf16.msra.mxu3 %v5454_v10  ;;  %768 = vmatpush.bf16.msra.mxu0 %v5454_v10  ;;  %v694_v36 = vpack.c.b16 %v675_v26, %v5743_v12  ;;  %v257_v38 = vrot.slane %v256_v27, 4  ;;  %v389_v39 = vshll.u32 %v235_v19, 16  ;;  %v466_v41 = vshrl.u32 %v200_v25, 16  ;;  %v5466_v23 = vld [vmem:[%s7071_s1 + $0xa8] sm:$0xff]  ;;  %v5805_v27 = vld [vmem:[%s5686_s23 + $0x10] sm:$0xf] }
  0x26   : > { %v267_v42 = vrot.slane %v266_v32, 4  ;;  %v376_v44 = vor.u32 %v375_v33, %v372_v29  ;;  %v381_v45 = vrot.slane %v379_v34, 5  ;;  %v385_v46 = vrot.slane %v383_v35, 4  ;;  %v5490_v29 = vld [vmem:[%s7071_s1 + $0xe8] sm:$0xff]  ;;  %v5815_v35 = vld [vmem:[%s5686_s23 + $0x14] sm:$0x1] }
  0x27   : > { %v262_v48 = vsel %vm5701_vm2, %v257_v38, %v261_v22  ;;  %v391_v49 = vrot.slane %v389_v39, 5  ;;  %v468_v52 = vrot.slane %v466_v41, 4  ;;  %v469_v53 = vshll.u32 %v200_v25, 16  ;;  %v5450_v41 = vld [vmem:[%s7071_s1 + $0x28] sm:$0xff] }
  0x28   : > { %5570 = vmatpush.bf16.msra.mxu1 %v5453_v31  ;;  %5571 = vmatpush.bf16.msra.mxu2 %v5453_v31  ;;  %v272_v55 = vsel %vm5701_vm2, %v267_v42, %v271_v28  ;;  %v650_v56 = vunpack.c.l.b16 %v262_v48  ;;  %v377_v58 = vrot.slane %v376_v44, 4  ;;  %v386_v60 = vor.u32 %v385_v46, %v381_v45  ;;  %v194_v46 = vld [vmem:[%s5686_s23 + $0x48] sm:$0xf] }
  0x29   : > { %5572 = vmatpush.bf16.msra.mxu3 %v5453_v31  ;;  %769 = vmatpush.bf16.msra.mxu0 %v5453_v31  ;;  %v651_v61 = vunpack.c.l.b16 %v272_v55  ;;  %v471_v0 = vrot.slane %v469_v53, 5  ;;  %v475_v1 = vshll.u32 %v201_v40, 16  ;;  %v479_v2 = vshrl.u32 %v201_v40, 16  ;;  %v5465_v53 = vld [vmem:[%s7071_s1 + $0xa0] sm:$0xff] }
  0x2a   : > { %v382_v5 = vsel %vm5701_vm2, %v377_v58, %v381_v45  ;;  %v387_v6 = vrot.slane %v386_v60, 4  ;;  %v485_v7 = vshll.u32 %v239_v47, 16  ;;  %v562_v9 = vshrl.u32 %v208_v54, 16  ;;  %v5498_v60 = vld [vmem:[%s7071_s1 + $0x128] sm:$0xff] }
  0x2b   : > { %790 = vmatmul.bf16.vlgmr.msra.gmra.mxu1 %v686_v59  ;;  %810 = vmatmul.bf16.vlgmr.msra.gmra.mxu2 %v690_v16  ;;  %v682_v10 = vpack.c.b16 %v651_v61, %v650_v56  ;;  %v5790_v12 = vunpack.c.l.b16 %v382_v5  ;;  %v472_v13 = vor.u32 %v471_v0, %v468_v52  ;;  %v477_v14 = vrot.slane %v475_v1, 5  ;;  %v5449_v61 = vld [vmem:[%s7071_s1 + $0x20] sm:$0xff] }
  0x2c   : > { %1376 = vmatpush.bf16.msrb.mxu2 %v5468_v37  ;;  %830 = vmatmul.bf16.vlgmr.msra.gmra.mxu3 %v694_v36  ;;  %v392_v50 = vsel %vm5701_vm2, %v387_v6, %v391_v49  ;;  %v481_v51 = vrot.slane %v479_v2, 4  ;;  %v487_v59 = vrot.slane %v485_v7, 5  ;;  %v564_v16 = vrot.slane %v562_v9, 4  ;;  %v5499_v36 = vld [vmem:[%s7071_s1 + $0x130] sm:$0xff]  ;;  %v5844_v2 = vld [vmem:[%s5686_s23 + $0x4c] sm:$0xf] }
  0x2d   : > { %1691 = vmatpush.bf16.msrb.mxu3 %v5492_v43  ;;  %995 = vmatpush.bf16.msrb.mxu1 %v5452_v57  ;;  %v5799_v19 = vunpack.c.l.b16 %v392_v50  ;;  %v473_v20 = vrot.slane %v472_v13, 4  ;;  %v565_v21 = vshll.u32 %v208_v54, 16  ;;  %v571_v22 = vshll.u32 %v209_v8, 16  ;;  %v5489_v54 = vld [vmem:[%s7071_s1 + $0xe0] sm:$0xff] }
  0x2e   : > { %770 = vmatmul.bf16.vlgmr.msra.gmra.mxu0 %v682_v10  ;;  %v482_v24 = vor.u32 %v481_v51, %v477_v14  ;;  %v575_v25 = vshrl.u32 %v209_v8, 16  ;;  %v581_v26 = vshll.u32 %v243_v15, 16  ;;  %v274_v28 = vshrl.u32 %v184_v17, 16  ;;  %v236_v8 = vld [vmem:[%s5686_s23 + $0x50] sm:$0x1] }
  0x2f   : > { %2373 = vmatpush.bf16.msrb.mxu0 %v5500_v11  ;;  %v687_v31 = vpack.c.b16 %v5799_v19, %v5790_v12  ;;  %v478_v32 = vsel %vm5701_vm2, %v473_v20, %v477_v14  ;;  %v567_v33 = vrot.slane %v565_v21, 5  ;;  %v573_v34 = vrot.slane %v571_v22, 5  ;;  %v202_v10 = vld [vmem:[%s5686_s23 + $0x78] sm:$0xf] }
  0x30   : > { %1377 = vmatpush.bf16.msrb.mxu2 %v5467_v63  ;;  %v483_v37 = vrot.slane %v482_v24, 4  ;;  %v5820_v38 = vunpack.c.l.b16 %v478_v32  ;;  %v577_v39 = vrot.slane %v575_v25, 4  ;;  %v583_v40 = vrot.slane %v581_v26, 5  ;;  %v5497_v24 = vld [vmem:[%s7071_s1 + $0x120] sm:$0xff]  ;;  %v203_v32 = vld [vmem:[%s5686_s23 + $0x7c] sm:$0xf] }
  0x31   : > { %1692 = vmatpush.bf16.msrb.mxu3 %v5491_v3  ;;  %996 = vmatpush.bf16.msrb.mxu1 %v5451_v18  ;;  %v568_v42 = vor.u32 %v567_v33, %v564_v16  ;;  %v276_v43 = vrot.slane %v274_v28, 4  ;;  %v277_v44 = vshll.u32 %v184_v17, 16  ;;  %v283_v45 = vshll.u32 %v5805_v27, 16  ;;  %v5464_v17 = vld [vmem:[%s7071_s1 + $0x98] sm:$0xff]  ;;  %v240_v33 = vld [vmem:[%s5686_s23 + $0x80] sm:$0x1] }
  0x32   : > { %v488_v47 = vsel %vm5701_vm2, %v483_v37, %v487_v59  ;;  %v578_v48 = vor.u32 %v577_v39, %v573_v34  ;;  %v287_v49 = vshrl.u32 %v5805_v27, 16  ;;  %v293_v52 = vshll.u32 %v5815_v35, 16  ;;  %v5488_v18 = vld [vmem:[%s7071_s1 + $0xd8] sm:$0xff] }
  0x33   : > { %v669_v55 = vunpack.c.l.b16 %v488_v47  ;;  %v569_v56 = vrot.slane %v568_v42, 4  ;;  %v279_v57 = vrot.slane %v277_v44, 5  ;;  %v285_v58 = vrot.slane %v283_v45, 5  ;;  %2374 = vmatpush.bf16.msrb.mxu0 %v5499_v36  ;;  %v5487_v42 = vld [vmem:[%s7071_s1 + $0xd0] sm:$0xff] }
  0x34   : > { %1378 = vmatpush.bf16.msrb.mxu2 %v5466_v23  ;;  %v579_v63 = vrot.slane %v578_v48, 4  ;;  %v289_v0 = vrot.slane %v287_v49, 4  ;;  %v295_v1 = vrot.slane %v293_v52, 5  ;;  %v394_v3 = vshrl.u32 %v194_v46, 16 }
  0x35   : > { %1693 = vmatpush.bf16.msrb.mxu3 %v5490_v29  ;;  %997 = vmatpush.bf16.msrb.mxu1 %v5450_v41  ;;  %v691_v5 = vpack.c.b16 %v669_v55, %v5820_v38  ;;  %v574_v6 = vsel %vm5701_vm2, %v569_v56, %v573_v34  ;;  %v280_v7 = vor.u32 %v279_v57, %v276_v43  ;;  %v397_v9 = vshll.u32 %v194_v46, 16  ;;  %v5448_v34 = vld [vmem:[%s7071_s1 + $0x18] sm:$0xff]  ;;  %v5463_v41 = vld [vmem:[%s7071_s1 + $0x90] sm:$0xff] }
  0x36   : > { %v584_v11 = vsel %vm5701_vm2, %v579_v63, %v583_v40  ;;  %v676_v13 = vunpack.c.l.b16 %v574_v6  ;;  %v290_v14 = vor.u32 %v289_v0, %v285_v58  ;;  %v396_v15 = vrot.slane %v394_v3, 4  ;;  %v210_v40 = vld [vmem:[%s5686_s23 + $0xa8] sm:$0xf]  ;;  %v5447_v56 = vld [vmem:[%s7071_s1 + $0x10] sm:$0xff]  ;;  %v186_v6 = vld [vmem:[%s5686_s23 + $0x18] sm:$0xf] }
  0x37   : > { %v677_v50 = vunpack.c.l.b16 %v584_v11  ;;  %v281_v51 = vrot.slane %v280_v7, 4  ;;  %2375 = vmatpush.bf16.msrb.mxu0 %v5498_v60  ;;  %v399_v59 = vrot.slane %v397_v9, 5  ;;  %v403_v16 = vshll.u32 %v5844_v2, 16  ;;  %v244_v63 = vld [vmem:[%s5686_s23 + $0xb0] sm:$0x1] }
  0x38   : > { %1379 = vmatpush.bf16.msrb.mxu2 %v5465_v53  ;;  %v291_v20 = vrot.slane %v290_v14, 4  ;;  %v407_v21 = vshrl.u32 %v5844_v2, 16  ;;  %v413_v22 = vshll.u32 %v236_v8, 16  ;;  %v490_v23 = vshrl.u32 %v202_v10, 16  ;;  %v5496_v53 = vld [vmem:[%s7071_s1 + $0x118] sm:$0xff] }
  0x39   : > { %1694 = vmatpush.bf16.msrb.mxu3 %v5489_v54  ;;  %998 = vmatpush.bf16.msrb.mxu1 %v5449_v61  ;;  %v695_v25 = vpack.c.b16 %v677_v50, %v676_v13  ;;  %v286_v26 = vsel %vm5701_vm2, %v281_v51, %v285_v58  ;;  %v400_v28 = vor.u32 %v399_v59, %v396_v15  ;;  %v405_v29 = vrot.slane %v403_v16, 5  ;;  %v5902_v59 = vld [vmem:[%s5686_s23 + $0x1c] sm:$0xf] }
  0x3a   : > { %v296_v36 = vsel %vm5701_vm2, %v291_v20, %v295_v1  ;;  %v652_v37 = vunpack.c.l.b16 %v286_v26  ;;  %v409_v38 = vrot.slane %v407_v21, 4  ;;  %v415_v39 = vrot.slane %v413_v22, 5 }
  0x3b   : > { %795 = vmatmul.bf16.gmra.mxu1 %v687_v31  ;;  %815 = vmatmul.bf16.gmra.mxu2 %v691_v5  ;;  %v653_v43 = vunpack.c.l.b16 %v296_v36  ;;  %v401_v44 = vrot.slane %v400_v28, 4  ;;  %v492_v45 = vrot.slane %v490_v23, 4  ;;  %v493_v46 = vshll.u32 %v202_v10, 16  ;;  %v211_v31 = vld [vmem:[%s5686_s23 + $0xac] sm:$0xf] }
  0x3c   : > { %1380 = vmatpush.bf16.msrb.mxu2 %v5464_v17  ;;  %835 = vmatmul.bf16.gmra.mxu3 %v695_v25  ;;  %v410_v47 = vor.u32 %v409_v38, %v405_v29  ;;  %v499_v48 = vshll.u32 %v203_v32, 16  ;;  %v503_v49 = vshrl.u32 %v203_v32, 16  ;;  %v509_v52 = vshll.u32 %v240_v33, 16  ;;  %v5462_v17 = vld [vmem:[%s7071_s1 + $0x88] sm:$0xff]  ;;  %v196_v25 = vld [vmem:[%s5686_s23 + $0x54] sm:$0xf] }
  0x3d   : > { %1695 = vmatpush.bf16.msrb.mxu3 %v5488_v18  ;;  %2376 = vmatpush.bf16.msrb.mxu0 %v5497_v24  ;;  %v683_v54 = vpack.c.b16 %v653_v43, %v652_v37  ;;  %v406_v12 = vsel %vm5701_vm2, %v401_v44, %v405_v29  ;;  %v495_v19 = vrot.slane %v493_v46, 5  ;;  %v586_v55 = vshrl.u32 %v210_v40, 16  ;;  %v5908_v24 = vld [vmem:[%s5686_s23 + $0x20] sm:$0x1]  ;;  %v5486_v38 = vld [vmem:[%s7071_s1 + $0xc8] sm:$0xff] }
  0x3e   : > { %999 = vmatpush.bf16.msrb.mxu1 %v5448_v34  ;;  %v411_v57 = vrot.slane %v410_v47, 4  ;;  %v5892_v58 = vunpack.c.l.b16 %v406_v12  ;;  %v501_v60 = vrot.slane %v499_v48, 5  ;;  %v505_v61 = vrot.slane %v503_v49, 4 }
  0x3f   : > { %775 = vmatmul.bf16.gmra.mxu0 %v683_v54  ;;  %v496_v0 = vor.u32 %v495_v19, %v492_v45  ;;  %v511_v1 = vrot.slane %v509_v52, 5  ;;  %v588_v3 = vrot.slane %v586_v55, 4  ;;  %v589_v5 = vshll.u32 %v210_v40, 16  ;;  %v5446_v40 = vld [vmem:[%s7071_s1 + $0x8] sm:$0xff]  ;;  %v5461_v45 = vld [vmem:[%s7071_s1 + $0x80] sm:$0xff] }
  0x40   : > { %1381 = vmatpush.bf16.msrb.mxu2 %v5463_v41  ;;  %v416_v7 = vsel %vm5701_vm2, %v411_v57, %v415_v39  ;;  %v506_v8 = vor.u32 %v505_v61, %v501_v60  ;;  %v595_v9 = vshll.u32 %v211_v31, 16  ;;  %v599_v10 = vshrl.u32 %v211_v31, 16  ;;  %v5495_v39 = vld [vmem:[%s7071_s1 + $0x110] sm:$0xff]  ;;  %v5931_v52 = vld [vmem:[%s5686_s23 + $0x58] sm:$0xf]  ;;  %v5494_v57 = vld [vmem:[%s7071_s1 + $0x108] sm:$0xff] }
  0x41   : > { %1696 = vmatpush.bf16.msrb.mxu3 %v5487_v42  ;;  %2377 = vmatpush.bf16.msrb.mxu0 %v5496_v53  ;;  %v663_v11 = vunpack.c.l.b16 %v416_v7  ;;  %v497_v13 = vrot.slane %v496_v0, 4  ;;  %v591_v14 = vrot.slane %v589_v5, 5  ;;  %v605_v15 = vshll.u32 %v244_v63, 16  ;;  %v5934_v53 = vld [vmem:[%s5686_s23 + $0x5c] sm:$0x1]  ;;  %v5445_v0 = vld [vmem:[%s7071_s1] sm:$0xff] }
  0x42   : > { %1000 = vmatpush.bf16.msrb.mxu1 %v5447_v56  ;;  %v507_v18 = vrot.slane %v506_v8, 4  ;;  %v597_v50 = vrot.slane %v595_v9, 5  ;;  %v601_v51 = vrot.slane %v599_v10, 4  ;;  %v298_v16 = vshrl.u32 %v186_v6, 16  ;;  %v204_v55 = vld [vmem:[%s5686_s23 + $0x84] sm:$0xf] }
  0x43   : > { %v688_v20 = vpack.c.b16 %v663_v11, %v5892_v58  ;;  %v502_v21 = vsel %vm5701_vm2, %v497_v13, %v501_v60  ;;  %v592_v22 = vor.u32 %v591_v14, %v588_v3  ;;  %v607_v23 = vrot.slane %v605_v15, 5  ;;  %v5485_v56 = vld [vmem:[%s7071_s1 + $0xc0] sm:$0xff]  ;;  %v205_v10 = vld [vmem:[%s5686_s23 + $0x88] sm:$0xf] }
  0x44   : > { %1382 = vmatpush.bf16.msrb.mxu2 %v5462_v17  ;;  %v512_v26 = vsel %vm5701_vm2, %v507_v18, %v511_v1  ;;  %v670_v28 = vunpack.c.l.b16 %v502_v21  ;;  %v602_v29 = vor.u32 %v601_v51, %v597_v50  ;;  %v300_v32 = vrot.slane %v298_v16, 4  ;;  %v5493_v18 = vld [vmem:[%s7071_s1 + $0x100] sm:$0xff]  ;;  %v241_v16 = vld [vmem:[%s5686_s23 + $0x8c] sm:$0x1] }
  0x45   : > { %v671_v33 = vunpack.c.l.b16 %v512_v26  ;;  %v593_v34 = vrot.slane %v592_v22, 4  ;;  %v301_v36 = vshll.u32 %v186_v6, 16  ;;  %v307_v37 = vshll.u32 %v5902_v59, 16  ;;  %1697 = vmatpush.bf16.msrb.mxu3 %v5486_v38  ;;  %2378 = vmatpush.bf16.msrb.mxu0 %v5495_v39  ;;  %v212_v22 = vld [vmem:[%s5686_s23 + $0xb4] sm:$0xf] }
  0x46   : > { %v603_v41 = vrot.slane %v602_v29, 4  ;;  %v311_v42 = vshrl.u32 %v5902_v59, 16  ;;  %v317_v43 = vshll.u32 %v5908_v24, 16  ;;  %v418_v44 = vshrl.u32 %v196_v25, 16  ;;  %1001 = vmatpush.bf16.msrb.mxu1 %v5446_v40  ;;  %v213_v39 = vld [vmem:[%s5686_s23 + $0xb8] sm:$0xf] }
  0x47   : > { %v692_v46 = vpack.c.b16 %v671_v33, %v670_v28  ;;  %v598_v47 = vsel %vm5701_vm2, %v593_v34, %v597_v50  ;;  %v303_v48 = vrot.slane %v301_v36, 5  ;;  %v309_v49 = vrot.slane %v307_v37, 5 }
  0x48   : > { %v608_v54 = vsel %vm5701_vm2, %v603_v41, %v607_v23  ;;  %v678_v12 = vunpack.c.l.b16 %v598_v47  ;;  %v313_v19 = vrot.slane %v311_v42, 4  ;;  %v319_v31 = vrot.slane %v317_v43, 5  ;;  %1383 = vmatpush.bf16.msrb.mxu2 %v5461_v45  ;;  %v245_v45 = vld [vmem:[%s5686_s23 + $0xbc] sm:$0x1] }
  0x49   : > { %v679_v58 = vunpack.c.l.b16 %v608_v54  ;;  %v304_v60 = vor.u32 %v303_v48, %v300_v32  ;;  %v420_v61 = vrot.slane %v418_v44, 4  ;;  %v421_v63 = vshll.u32 %v196_v25, 16  ;;  %1698 = vmatpush.bf16.msrb.mxu3 %v5485_v56  ;;  %2379 = vmatpush.bf16.msrb.mxu0 %v5494_v57  ;;  %v5532_v47 = vld [vmem:[%s7071_s1 + $0x1b8] sm:$0xff] }
  0x4a   : > { %v314_v1 = vor.u32 %v313_v19, %v309_v49  ;;  %v427_v3 = vshll.u32 %v5931_v52, 16  ;;  %v431_v5 = vshrl.u32 %v5931_v52, 16  ;;  %v437_v6 = vshll.u32 %v5934_v53, 16  ;;  %1002 = vmatpush.bf16.msrb.mxu1 %v5445_v0 }
  0x4b   : > { %800 = vmatmul.bf16.gmra.mxu1 %v688_v20  ;;  %820 = vmatmul.bf16.gmra.mxu2 %v692_v46  ;;  %v696_v7 = vpack.c.b16 %v679_v58, %v678_v12  ;;  %v305_v8 = vrot.slane %v304_v60, 4  ;;  %v423_v9 = vrot.slane %v421_v63, 5  ;;  %v514_v11 = vshrl.u32 %v204_v55, 16  ;;  %v188_v46 = vld [vmem:[%s5686_s23 + $0x24] sm:$0xf] }
  0x4c   : > { %v315_v13 = vrot.slane %v314_v1, 4  ;;  %v429_v14 = vrot.slane %v427_v3, 5  ;;  %v433_v15 = vrot.slane %v431_v5, 4  ;;  %v439_v17 = vrot.slane %v437_v6, 5  ;;  %3114 = vmatpush.bf16.msra.mxu2 %v5532_v47  ;;  %v5540_v6 = vld [vmem:[%s7071_s1 + $0x1f8] sm:$0xff] }
  0x4d   : > { %840 = vmatmul.bf16.gmra.mxu3 %v696_v7  ;;  %v310_v50 = vsel %vm5701_vm2, %v305_v8, %v309_v49  ;;  %v424_v51 = vor.u32 %v423_v9, %v420_v61  ;;  %v516_v20 = vrot.slane %v514_v11, 4  ;;  %v517_v21 = vshll.u32 %v204_v55, 16  ;;  %2380 = vmatpush.bf16.msrb.mxu0 %v5493_v18  ;;  %v5972_v61 = vld [vmem:[%s5686_s23 + $0x28] sm:$0xf]  ;;  %v5508_v7 = vld [vmem:[%s7071_s1 + $0x178] sm:$0xff] }
  0x4e   : > { %v320_v23 = vsel %vm5701_vm2, %v315_v13, %v319_v31  ;;  %v654_v25 = vunpack.c.l.b16 %v310_v50  ;;  %v434_v26 = vor.u32 %v433_v15, %v429_v14  ;;  %v523_v28 = vshll.u32 %v205_v10, 16  ;;  %v5548_v8 = vld [vmem:[%s7071_s1 + $0x238] sm:$0xff]  ;;  %3796 = vmatpush.bf16.msra.mxu3 %v5540_v6  ;;  %2799 = vmatpush.bf16.msra.mxu1 %v5508_v7 }
  0x4f   : > { %v655_v29 = vunpack.c.l.b16 %v320_v23  ;;  %v425_v32 = vrot.slane %v424_v51, 4  ;;  %v519_v33 = vrot.slane %v517_v21, 5  ;;  %v527_v34 = vshrl.u32 %v205_v10, 16 }
  0x50   : > { %v435_v36 = vrot.slane %v434_v26, 4  ;;  %v525_v37 = vrot.slane %v523_v28, 5  ;;  %v533_v38 = vshll.u32 %v241_v16, 16  ;;  %v610_v40 = vshrl.u32 %v212_v22, 16  ;;  %v1084_v26 = vld [vmem:[%s5686_s23] sm:$0xe] }
  0x51   : > { %v684_v41 = vpack.c.b16 %v655_v29, %v654_v25  ;;  %v430_v42 = vsel %vm5701_vm2, %v425_v32, %v429_v14  ;;  %v520_v43 = vor.u32 %v519_v33, %v516_v20  ;;  %v529_v44 = vrot.slane %v527_v34, 4  ;;  %v5986_v14 = vld [vmem:[%s5686_s23 + $0x2c] sm:$0x1]  ;;  %4222 = vmatpush.bf16.msra.mxu0 %v5548_v8 }
  0x52   : > { %v440_v48 = vsel %vm5701_vm2, %v435_v36, %v439_v17  ;;  %v664_v49 = vunpack.c.l.b16 %v430_v42  ;;  %v535_v54 = vrot.slane %v533_v38, 5  ;;  %v612_v12 = vrot.slane %v610_v40, 4  ;;  %v4930_v38 = vld [vmem:[%s5686_s23 + $0xc] sm:$0xf] }
  0x53   : > { %780 = vmatmul.bf16.gmra.mxu0 %v684_v41  ;;  %v665_v19 = vunpack.c.l.b16 %v440_v48  ;;  %v521_v31 = vrot.slane %v520_v43, 4  ;;  %v530_v55 = vor.u32 %v529_v44, %v525_v37  ;;  %v613_v56 = vshll.u32 %v212_v22, 16 }
  0x54   : > { %v619_v57 = vshll.u32 %v213_v39, 16  ;;  %v623_v58 = vshrl.u32 %v213_v39, 16  ;;  %v629_v60 = vshll.u32 %v245_v45, 16  ;;  %v322_v63 = vshrl.u32 %v188_v46, 16  ;;  %v4931_v39 = vld [vmem:[%s5686_s23 + $0x10] sm:$0xf] }
  0x55   : > { %v689_v0 = vpack.c.b16 %v665_v19, %v664_v49  ;;  %v526_v1 = vsel %vm5701_vm2, %v521_v31, %v525_v37  ;;  %v531_v3 = vrot.slane %v530_v55, 4  ;;  %v615_v5 = vrot.slane %v613_v56, 5 }
  0x56   : > { %v672_v9 = vunpack.c.l.b16 %v526_v1  ;;  %v621_v10 = vrot.slane %v619_v57, 5  ;;  %v625_v11 = vrot.slane %v623_v58, 4  ;;  %v631_v13 = vrot.slane %v629_v60, 5  ;;  %v4932_v58 = vld [vmem:[%s5686_s23 + $0x14] sm:$0x1] }
  0x57   : > { %v536_v15 = vsel %vm5701_vm2, %v531_v3, %v535_v54  ;;  %v616_v17 = vor.u32 %v615_v5, %v612_v12  ;;  %v324_v18 = vrot.slane %v322_v63, 4  ;;  %v325_v50 = vshll.u32 %v188_v46, 16 }
  0x58   : > { %v673_v51 = vunpack.c.l.b16 %v536_v15  ;;  %v626_v16 = vor.u32 %v625_v11, %v621_v10  ;;  %v331_v20 = vshll.u32 %v5972_v61, 16  ;;  %v335_v21 = vshrl.u32 %v5972_v61, 16 }
  0x59   : > { %v617_v22 = vrot.slane %v616_v17, 4  ;;  %v327_v23 = vrot.slane %v325_v50, 5  ;;  %v341_v25 = vshll.u32 %v5986_v14, 16  ;;  %v4722_v44 = vrot.slane %v1084_v26, 9  ;;  %v4933_v50 = vld [vmem:[%s5686_s23 + $0x18] sm:$0xf] }
  0x5a   : > { %v693_v28 = vpack.c.b16 %v673_v51, %v672_v9  ;;  %v627_v29 = vrot.slane %v626_v16, 4  ;;  %v333_v32 = vrot.slane %v331_v20, 5  ;;  %v337_v33 = vrot.slane %v335_v21, 4  ;;  %v5429_v51 = vld [vmem:[%s5686_s23] sm:$0xff]  ;;  %v4934_v16 = vld [vmem:[%s5686_s23 + $0x1c] sm:$0xf] }
  0x5b   : > { %805 = vmatmul.bf16.gmra.mxu1 %v689_v0  ;;  %v622_v34 = vsel %vm5701_vm2, %v617_v22, %v621_v10  ;;  %v328_v36 = vor.u32 %v327_v23, %v324_v18  ;;  %v343_v37 = vrot.slane %v341_v25, 5  ;;  %v1137_v47 = vrot.slane %v5726_v62, 5  ;;  %v1085_v21 = vld [vmem:[%s5686_s23 + $0xc] sm:$0xe] }
  0x5c   : > { %825 = vmatmul.bf16.gmra.mxu2 %v693_v28  ;;  %v632_v40 = vsel %vm5701_vm2, %v627_v29, %v631_v13  ;;  %v680_v41 = vunpack.c.l.b16 %v622_v34  ;;  %v338_v42 = vor.u32 %v337_v33, %v333_v32  ;;  %v1140_v48 = vrot.slane %v5733_v4, 5  ;;  %v5469_v34 = vld [vmem:[%s5686_s23 + $0xc] sm:$0xff] }
  0x5d   : > { %v681_v45 = vunpack.c.l.b16 %v632_v40  ;;  %v329_v46 = vrot.slane %v328_v36, 4  ;;  %v1861_v54 = vshrl.u32 %v4930_v38, 16  ;;  %v1864_v12 = vshll.u32 %v4930_v38, 16 }
  0x5e   : > { %v339_v49 = vrot.slane %v338_v42, 4  ;;  %v1870_v19 = vshll.u32 %v4931_v39, 16  ;;  %v1138_v56 = vsel %vm6001_vm5, %v4722_v44, %v1137_v47  ;;  %v1139_v57 = vrot.slane %v1137_v47, 4  ;;  %v4935_v44 = vld [vmem:[%s5686_s23 + $0x20] sm:$0x1] }
  0x5f   : > { %v697_v31 = vpack.c.b16 %v681_v45, %v680_v41  ;;  %v334_v55 = vsel %vm5701_vm2, %v329_v46, %v333_v32  ;;  %v1264_v62 = vunpack.c.l.b16 %v1138_v56  ;;  %v1863_v0 = vrot.slane %v1861_v54, 4  ;;  %v5507_v56 = vld [vmem:[%s7071_s1 + $0x170] sm:$0xff] }
  0x60   : > { %v344_v60 = vsel %vm5701_vm2, %v339_v49, %v343_v37  ;;  %v656_v63 = vunpack.c.l.b16 %v334_v55  ;;  %v1141_v1 = vsel %vm6001_vm5, %v1139_v57, %v1140_v48  ;;  %v1866_v3 = vrot.slane %v1864_v12, 5  ;;  %v5531_v48 = vld [vmem:[%s7071_s1 + $0x1b0] sm:$0xff]  ;;  %2800 = vmatpush.bf16.msra.mxu1 %v5507_v56 }
  0x61   : > { %845 = vmatmul.bf16.gmra.mxu3 %v697_v31  ;;  %v657_v4 = vunpack.c.l.b16 %v344_v60  ;;  %v1265_v5 = vunpack.c.l.b16 %v1141_v1  ;;  %v1872_v6 = vrot.slane %v1870_v19, 5  ;;  %v1874_v7 = vshrl.u32 %v4931_v39, 16  ;;  %3115 = vmatpush.bf16.msra.mxu2 %v5531_v48  ;;  %v4936_v31 = vld [vmem:[%s5686_s23 + $0x24] sm:$0xf]  ;;  %v5539_v55 = vld [vmem:[%s7071_s1 + $0x1f0] sm:$0xff] }
  0x62   : > { %v1880_v8 = vshll.u32 %v4932_v58, 16  ;;  %v1867_v10 = vor.u32 %v1866_v3, %v1863_v0  ;;  %v1144_v22 = vrot.slane %v5805_v27, 5  ;;  %v1885_v23 = vshrl.u32 %v4933_v50, 16  ;;  %v5547_v57 = vld [vmem:[%s7071_s1 + $0x230] sm:$0xff]  ;;  %3797 = vmatpush.bf16.msra.mxu3 %v5539_v55  ;;  %v1087_v48 = vld [vmem:[%s5686_s23 + $0x24] sm:$0xe] }
  0x63   : > { %v685_v9 = vpack.c.b16 %v657_v4, %v656_v63  ;;  %v1296_v11 = vpack.c.b16 %v1265_v5, %v1264_v62  ;;  %v1876_v13 = vrot.slane %v1874_v7, 4  ;;  %v1888_v25 = vshll.u32 %v4933_v50, 16  ;;  %v4937_v62 = vld [vmem:[%s5686_s23 + $0x28] sm:$0xf]  ;;  %v5430_v0 = vld [vmem:[%s5686_s23 + $0xc] sm:$0xff]  ;;  %4223 = vmatpush.bf16.msra.mxu0 %v5547_v57 }
  0x64   : > { %v1868_v15 = vrot.slane %v1867_v10, 4  ;;  %v1882_v18 = vrot.slane %v1880_v8, 5  ;;  %v1894_v29 = vshll.u32 %v4934_v16, 16  ;;  %v1898_v32 = vshrl.u32 %v4934_v16, 16 }
  0x65   : > { %785 = vmatmul.bf16.gmra.mxu0 %v685_v9  ;;  %v1877_v17 = vor.u32 %v1876_v13, %v1872_v6  ;;  %v4723_v33 = vrot.slane %v1085_v21, 9  ;;  %v1146_v38 = vrot.slane %v1144_v22, 4  ;;  %v1147_v27 = vrot.slane %v5815_v35, 5  ;;  %v4938_v21 = vld [vmem:[%s5686_s23 + $0x2c] sm:$0x1] }
  0x66   : > { %v1873_v26 = vsel %vm5701_vm2, %v1868_v15, %v1872_v6  ;;  %v1887_v39 = vrot.slane %v1885_v23, 4  ;;  %v1890_v40 = vrot.slane %v1888_v25, 5  ;;  %v1896_v41 = vrot.slane %v1894_v29, 5  ;;  %v1086_v6 = vld [vmem:[%s5686_s23 + $0x18] sm:$0xe] }
  0x67   : > { %v1878_v20 = vrot.slane %v1877_v17, 4  ;;  %v2261_v36 = vunpack.c.l.b16 %v1873_v26  ;;  %v1900_v42 = vrot.slane %v1898_v32, 4  ;;  %v1145_v46 = vsel %vm6001_vm5, %v4723_v33, %v1144_v22 }
  0x68   : > { %v1148_v47 = vsel %vm6001_vm5, %v1146_v38, %v1147_v27  ;;  %v1891_v35 = vor.u32 %v1890_v40, %v1887_v39  ;;  %v1904_v54 = vshll.u32 %v4935_v44, 16  ;;  %v1266_v12 = vunpack.c.l.b16 %v1145_v46  ;;  %v4940_v38 = vld [vmem:[%s5686_s23 + $0x34] sm:$0xf]  ;;  %v5431_v27 = vld [vmem:[%s5686_s23 + $0x18] sm:$0xff] }
  0x69   : > { %v1883_v28 = vsel %vm5701_vm2, %v1878_v20, %v1882_v18  ;;  %v1901_v49 = vor.u32 %v1900_v42, %v1896_v41  ;;  %v1267_v19 = vunpack.c.l.b16 %v1148_v47  ;;  %v1151_v1 = vrot.slane %v5902_v59, 5  ;;  %v5470_v18 = vld [vmem:[%s5686_s23 + $0x18] sm:$0xff] }
  0x6a   : > { %v2262_v37 = vunpack.c.l.b16 %v1883_v28  ;;  %v1892_v58 = vrot.slane %v1891_v35, 4  ;;  %v1906_v63 = vrot.slane %v1904_v54, 5  ;;  %v1909_v3 = vshrl.u32 %v4936_v31, 16 }
  0x6b   : > { %1003 = vmatmul.bf16.vlgmr.msrb.gmra.mxu1 %v5429_v51  ;;  %v1902_v60 = vrot.slane %v1901_v49, 4  ;;  %v1297_v4 = vpack.c.b16 %v1267_v19, %v1266_v12  ;;  %v1912_v5 = vshll.u32 %v4936_v31, 16  ;;  %v1918_v7 = vshll.u32 %v4937_v62, 16  ;;  %v5471_v31 = vld [vmem:[%s5686_s23 + $0x24] sm:$0xff] }
  0x6c   : > { %1384 = vmatmul.bf16.vlgmr.msrb.gmra.mxu2 %v1296_v11  ;;  %v2293_v45 = vpack.c.b16 %v2262_v37, %v2261_v36  ;;  %v1922_v8 = vshrl.u32 %v4937_v62, 16  ;;  %v1897_v9 = vsel %vm5701_vm2, %v1892_v58, %v1896_v41  ;;  %v1154_v11 = vrot.slane %v5908_v24, 5  ;;  %v4939_v37 = vld [vmem:[%s5686_s23 + $0x30] sm:$0xf] }
  0x6d   : > { %v1907_v10 = vsel %vm5701_vm2, %v1902_v60, %v1906_v63  ;;  %v4724_v13 = vrot.slane %v1086_v6, 9  ;;  %v1153_v59 = vrot.slane %v1151_v1, 4  ;;  %v1911_v15 = vrot.slane %v1909_v3, 4  ;;  %v4942_v6 = vld [vmem:[%s5686_s23 + $0x3c] sm:$0xf] }
  0x6e   : > { %v1914_v17 = vrot.slane %v1912_v5, 5  ;;  %v2263_v50 = vunpack.c.l.b16 %v1897_v9  ;;  %v2264_v51 = vunpack.c.l.b16 %v1907_v10  ;;  %v1920_v16 = vrot.slane %v1918_v7, 5  ;;  %v4943_v7 = vld [vmem:[%s5686_s23 + $0x40] sm:$0xf] }
  0x6f   : > { %v1924_v20 = vrot.slane %v1922_v8, 4  ;;  %v1152_v22 = vsel %vm6001_vm5, %v4724_v13, %v1151_v1  ;;  %v1155_v25 = vsel %vm6001_vm5, %v1153_v59, %v1154_v11  ;;  %v1928_v28 = vshll.u32 %v4938_v21, 16  ;;  %v5530_v1 = vld [vmem:[%s7071_s1 + $0x1a8] sm:$0xff]  ;;  %v5582_v21 = vld [vmem:[%s5686_s23 + $0x34] sm:$0xf] }
  0x70   : > { %v1915_v23 = vor.u32 %v1914_v17, %v1911_v15  ;;  %v2294_v24 = vpack.c.b16 %v2264_v51, %v2263_v50  ;;  %v1268_v29 = vunpack.c.l.b16 %v1152_v22  ;;  %v1269_v32 = vunpack.c.l.b16 %v1155_v25  ;;  %3116 = vmatpush.bf16.msra.mxu2 %v5530_v1  ;;  %v5538_v11 = vld [vmem:[%s7071_s1 + $0x1e8] sm:$0xff]  ;;  %v1089_v1 = vld [vmem:[%s5686_s23 + $0x3c] sm:$0xe] }
  0x71   : > { %1699 = vmatmul.bf16.vlgmr.msrb.gmra.mxu3 %v5469_v34  ;;  %v1925_v26 = vor.u32 %v1924_v20, %v1920_v16  ;;  %v1930_v36 = vrot.slane %v1928_v28, 5  ;;  %v1933_v41 = vshrl.u32 %v4939_v37, 16  ;;  %v1936_v42 = vshll.u32 %v4939_v37, 16  ;;  %v5506_v13 = vld [vmem:[%s7071_s1 + $0x168] sm:$0xff]  ;;  %v5583_v37 = vld [vmem:[%s5686_s23 + $0x38] sm:$0x1] }
  0x72   : > { %v1916_v33 = vrot.slane %v1915_v23, 4  ;;  %v1298_v39 = vpack.c.b16 %v1269_v32, %v1268_v29  ;;  %v1942_v46 = vshll.u32 %v4940_v38, 16  ;;  %v1946_v47 = vshrl.u32 %v4940_v38, 16  ;;  %v5546_v59 = vld [vmem:[%s7071_s1 + $0x228] sm:$0xff]  ;;  %3798 = vmatpush.bf16.msra.mxu3 %v5538_v11  ;;  %2801 = vmatpush.bf16.msra.mxu1 %v5506_v13  ;;  %v5585_v13 = vld [vmem:[%s5686_s23 + $0x44] sm:$0x1] }
  0x73   : > { %v1926_v34 = vrot.slane %v1925_v26, 4  ;;  %v1161_v54 = vrot.slane %v5986_v14, 5  ;;  %v1935_v12 = vrot.slane %v1933_v41, 4  ;;  %v1938_v19 = vrot.slane %v1936_v42, 5  ;;  %v5432_v15 = vld [vmem:[%s5686_s23 + $0x24] sm:$0xff]  ;;  %4224 = vmatpush.bf16.msra.mxu0 %v5546_v59 }
  0x74   : > { %v1921_v40 = vsel %vm5701_vm2, %v1916_v33, %v1920_v16  ;;  %v4725_v55 = vrot.slane %v1087_v48, 9  ;;  %v1944_v57 = vrot.slane %v1942_v46, 5  ;;  %v1948_v58 = vrot.slane %v1946_v47, 4  ;;  %v5472_v33 = vld [vmem:[%s5686_s23 + $0x30] sm:$0xff] }
  0x75   : > { %2381 = vmatmul.bf16.vlgmr.msrb.gmra.mxu0 %v2293_v45  ;;  %v1931_v44 = vsel %vm5701_vm2, %v1926_v34, %v1930_v36  ;;  %v1158_v45 = vrot.slane %v5972_v61, 5  ;;  %v2265_v35 = vunpack.c.l.b16 %v1921_v40  ;;  %v4941_v61 = vld [vmem:[%s5686_s23 + $0x38] sm:$0x1]  ;;  %v1939_v63 = vor.u32 %v1938_v19, %v1935_v12  ;;  %v4945_v12 = vld [vmem:[%s5686_s23 + $0x48] sm:$0xf] }
  0x76   : > { %v2266_v49 = vunpack.c.l.b16 %v1931_v44  ;;  %v1949_v14 = vor.u32 %v1948_v58, %v1944_v57  ;;  %v1957_v17 = vshrl.u32 %v4942_v6, 16  ;;  %v1966_v51 = vshll.u32 %v4943_v7, 16  ;;  %v4946_v19 = vld [vmem:[%s5686_s23 + $0x4c] sm:$0xf] }
  0x77   : > { %v1160_v56 = vrot.slane %v1158_v45, 4  ;;  %v1159_v62 = vsel %vm6001_vm5, %v4725_v55, %v1158_v45  ;;  %v1940_v8 = vrot.slane %v1939_v63, 4  ;;  %v1165_v22 = vrot.slane %v5582_v21, 5 }
  0x78   : > { %v2295_v60 = vpack.c.b16 %v2266_v49, %v2265_v35  ;;  %v1270_v3 = vunpack.c.l.b16 %v1159_v62  ;;  %v1950_v9 = vrot.slane %v1949_v14, 4  ;;  %v1970_v23 = vshrl.u32 %v4943_v7, 16  ;;  %v5584_v62 = vld [vmem:[%s5686_s23 + $0x40] sm:$0xf] }
  0x79   : > { %v1945_v16 = vsel %vm5701_vm2, %v1940_v8, %v1944_v57  ;;  %v1959_v25 = vrot.slane %v1957_v17, 4  ;;  %v1968_v32 = vrot.slane %v1966_v51, 5  ;;  %v1167_v36 = vrot.slane %v1165_v22, 4 }
  0x7a   : > { %v2267_v28 = vunpack.c.l.b16 %v1945_v16  ;;  %v1168_v38 = vrot.slane %v5583_v37, 5  ;;  %v1981_v58 = vshrl.u32 %v4945_v12, 16  ;;  %v1994_v14 = vshrl.u32 %v4946_v19, 16  ;;  %v4949_v37 = vld [vmem:[%s5686_s23 + $0x58] sm:$0xf] }
  0x7b   : > { %1008 = vmatmul.bf16.gmra.mxu1 %v5430_v0  ;;  %v1162_v0 = vsel %vm6001_vm5, %v1160_v56, %v1161_v54  ;;  %v1175_v59 = vrot.slane %v5585_v13, 5 }
  0x7c   : > { %1389 = vmatmul.bf16.gmra.mxu2 %v1297_v4  ;;  %v1952_v4 = vshll.u32 %v4941_v61, 16  ;;  %v1271_v5 = vunpack.c.l.b16 %v1162_v0  ;;  %v1169_v44 = vsel %vm6001_vm5, %v1167_v36, %v1168_v38  ;;  %v1984_v61 = vshll.u32 %v4945_v12, 16  ;;  %v5537_v38 = vld [vmem:[%s7071_s1 + $0x1e0] sm:$0xff] }
  0x7d   : > { %v1273_v35 = vunpack.c.l.b16 %v1169_v44  ;;  %v1172_v0 = vrot.slane %v5584_v62, 5  ;;  %3799 = vmatpush.bf16.msra.mxu3 %v5537_v38  ;;  %v2018_v12 = vshrl.u32 %v4949_v37, 16 }
  0x7e   : > { %v1954_v10 = vrot.slane %v1952_v4, 5  ;;  %v1299_v50 = vpack.c.b16 %v1271_v5, %v1270_v3  ;;  %v1986_v7 = vrot.slane %v1984_v61, 5 }
  0x7f   : > { %v1174_v11 = vrot.slane %v1172_v0, 4 }
  0x80   : > { %v1955_v20 = vsel %vm5701_vm2, %v1950_v9, %v1954_v10  ;;  %v5473_v9 = vld [vmem:[%s5686_s23 + $0x3c] sm:$0xff]  ;;  %v4727_v10 = vrot.slane %v1089_v1, 9 }
  0x81   : > { %1704 = vmatmul.bf16.gmra.mxu3 %v5470_v18  ;;  %v1960_v18 = vshll.u32 %v4942_v6, 16  ;;  %v2268_v29 = vunpack.c.l.b16 %v1955_v20  ;;  %v1983_v6 = vrot.slane %v1981_v58, 4 }
  0x82   : > { %v1173_v21 = vsel %vm6001_vm5, %v4727_v10, %v1172_v0 }
  0x83   : > { %v1962_v26 = vrot.slane %v1960_v18, 5  ;;  %v2296_v41 = vpack.c.b16 %v2268_v29, %v2267_v28  ;;  %v4947_v18 = vld [vmem:[%s5686_s23 + $0x50] sm:$0x1]  ;;  %v1987_v20 = vor.u32 %v1986_v7, %v1983_v6  ;;  %v1274_v28 = vunpack.c.l.b16 %v1173_v21 }
  0x85   : > { %2386 = vmatmul.bf16.gmra.mxu0 %v2294_v24  ;;  %v1088_v24 = vld [vmem:[%s5686_s23 + $0x30] sm:$0xe]  ;;  %v1963_v40 = vor.u32 %v1962_v26, %v1959_v25  ;;  %v5529_v25 = vld [vmem:[%s7071_s1 + $0x1a0] sm:$0xff] }
  0x86   : > { %v4726_v34 = vrot.slane %v1088_v24, 9  ;;  %v2000_v24 = vshll.u32 %v4947_v18, 16  ;;  %3117 = vmatpush.bf16.msra.mxu2 %v5529_v25 }
  0x87   : > { %v1964_v47 = vrot.slane %v1963_v40, 4 }
  0x88   : > { %v1166_v42 = vsel %vm6001_vm5, %v4726_v34, %v1165_v22  ;;  %v1176_v22 = vsel %vm6001_vm5, %v1174_v11, %v1175_v59  ;;  %v2002_v36 = vrot.slane %v2000_v24, 5 }
  0x89   : > { %v1272_v48 = vunpack.c.l.b16 %v1166_v42  ;;  %v1969_v55 = vsel %vm5701_vm2, %v1964_v47, %v1968_v32  ;;  %v1275_v29 = vunpack.c.l.b16 %v1176_v22  ;;  %v2014_v47 = vshll.u32 %v4949_v37, 16  ;;  %v4951_v22 = vld [vmem:[%s5686_s23 + $0x60] sm:$0xf] }
  0x8a   : > { %v2269_v3 = vunpack.c.l.b16 %v1969_v55  ;;  %v2032_v37 = vshll.u32 %v4951_v22, 16 }
  0x8b   : > { %1013 = vmatmul.bf16.gmra.mxu1 %v5431_v27  ;;  %v1972_v27 = vrot.slane %v1970_v23, 4  ;;  %v1300_v57 = vpack.c.b16 %v1273_v35, %v1272_v48  ;;  %v5545_v48 = vld [vmem:[%s7071_s1 + $0x220] sm:$0xff] }
  0x8c   : > { %1394 = vmatmul.bf16.gmra.mxu2 %v1298_v39  ;;  %v4944_v39 = vld [vmem:[%s5686_s23 + $0x44] sm:$0x1]  ;;  %4225 = vmatpush.bf16.msra.mxu0 %v5545_v48 }
  0x8d   : > { %v1973_v45 = vor.u32 %v1972_v27, %v1968_v32  ;;  %v1976_v46 = vshll.u32 %v4944_v39, 16  ;;  %v1988_v32 = vrot.slane %v1987_v20, 4  ;;  %v5505_v27 = vld [vmem:[%s7071_s1 + $0x160] sm:$0xff] }
  0x8e   : > { %2802 = vmatpush.bf16.msra.mxu1 %v5505_v27 }
  0x8f   : > { %v1974_v49 = vrot.slane %v1973_v45, 4  ;;  %v1978_v54 = vrot.slane %v1976_v46, 5  ;;  %v1301_v46 = vpack.c.b16 %v1275_v29, %v1274_v28  ;;  %v5435_v29 = vld [vmem:[%s5686_s23 + $0x48] sm:$0xff] }
  0x91   : > { %1709 = vmatmul.bf16.gmra.mxu3 %v5471_v31  ;;  %v5433_v31 = vld [vmem:[%s5686_s23 + $0x30] sm:$0xff]  ;;  %v1979_v63 = vsel %vm5701_vm2, %v1974_v49, %v1978_v54  ;;  %v1179_v54 = vrot.slane %v5844_v2, 5 }
  0x92   : > { %v2270_v5 = vunpack.c.l.b16 %v1979_v63  ;;  %v5474_v63 = vld [vmem:[%s5686_s23 + $0x48] sm:$0xff] }
  0x93   : > { %v1181_v0 = vrot.slane %v1179_v54, 4 }
  0x94   : > { %v2297_v51 = vpack.c.b16 %v2270_v5, %v2269_v3  ;;  %v2020_v3 = vrot.slane %v2018_v12, 4  ;;  %v4950_v5 = vld [vmem:[%s5686_s23 + $0x5c] sm:$0x1] }
  0x95   : > { %2391 = vmatmul.bf16.gmra.mxu0 %v2295_v60  ;;  %v1990_v60 = vshll.u32 %v4946_v19, 16  ;;  %v1090_v19 = vld [vmem:[%s5686_s23 + $0x48] sm:$0xe]  ;;  %v2024_v59 = vshll.u32 %v4950_v5, 16  ;;  %v5528_v5 = vld [vmem:[%s7071_s1 + $0x198] sm:$0xff] }
  0x96   : > { %v4728_v62 = vrot.slane %v1090_v19, 9  ;;  %3118 = vmatpush.bf16.msra.mxu2 %v5528_v5 }
  0x97   : > { %v1992_v8 = vrot.slane %v1990_v60, 5  ;;  %v2016_v60 = vrot.slane %v2014_v47, 5  ;;  %v2026_v21 = vrot.slane %v2024_v59, 5  ;;  %v4954_v59 = vld [vmem:[%s5686_s23 + $0x6c] sm:$0xf] }
  0x98   : > { %v1180_v10 = vsel %vm6001_vm5, %v4728_v62, %v1179_v54  ;;  %v5475_v54 = vld [vmem:[%s5686_s23 + $0x54] sm:$0xff] }
  0x99   : > { %v1993_v35 = vsel %vm5701_vm2, %v1988_v32, %v1992_v8  ;;  %v2021_v13 = vor.u32 %v2020_v3, %v2016_v60  ;;  %v1276_v18 = vunpack.c.l.b16 %v1180_v10 }
  0x9a   : > { %v2271_v58 = vunpack.c.l.b16 %v1993_v35  ;;  %v2034_v35 = vrot.slane %v2032_v37, 5  ;;  %v5587_v37 = vld [vmem:[%s5686_s23 + $0x64] sm:$0xf] }
  0x9b   : > { %1018 = vmatmul.bf16.gmra.mxu1 %v5432_v15  ;;  %v1996_v15 = vrot.slane %v1994_v14, 4  ;;  %v5586_v14 = vld [vmem:[%s5686_s23 + $0x50] sm:$0x1]  ;;  %v2022_v20 = vrot.slane %v2021_v13, 4 }
  0x9c   : > { %1399 = vmatmul.bf16.gmra.mxu2 %v1299_v50  ;;  %v1182_v1 = vrot.slane %v5586_v14, 5 }
  0x9d   : > { %v1997_v23 = vor.u32 %v1996_v15, %v1992_v8  ;;  %v2027_v27 = vsel %vm5701_vm2, %v2022_v20, %v2026_v21  ;;  %v5436_v20 = vld [vmem:[%s5686_s23 + $0x54] sm:$0xff]  ;;  %v4955_v21 = vld [vmem:[%s5686_s23 + $0x70] sm:$0xf] }
  0x9e   : > { %v1183_v11 = vsel %vm6001_vm5, %v1181_v0, %v1182_v1  ;;  %v2274_v47 = vunpack.c.l.b16 %v2027_v27  ;;  %v2056_v27 = vshll.u32 %v4954_v59, 16 }
  0x9f   : > { %v1998_v34 = vrot.slane %v1997_v23, 4  ;;  %v4952_v23 = vld [vmem:[%s5686_s23 + $0x64] sm:$0xf] }
  0xa0   : > { %v2038_v38 = vshll.u32 %v4952_v23, 16 }
  0xa1   : > { %1714 = vmatmul.bf16.gmra.mxu3 %v5472_v33  ;;  %v4948_v33 = vld [vmem:[%s5686_s23 + $0x54] sm:$0xf]  ;;  %v2003_v49 = vsel %vm5701_vm2, %v1998_v34, %v2002_v36  ;;  %v2029_v36 = vshrl.u32 %v4951_v22, 16 }
  0xa2   : > { %v2005_v42 = vshrl.u32 %v4948_v33, 16  ;;  %v2008_v44 = vshll.u32 %v4948_v33, 16  ;;  %v2272_v61 = vunpack.c.l.b16 %v2003_v49  ;;  %v2040_v49 = vrot.slane %v2038_v38, 5 }
  0xa3   : > { %v2031_v48 = vrot.slane %v2029_v36, 4  ;;  %v1193_v38 = vrot.slane %v5587_v37, 5 }
  0xa4   : > { %v2010_v55 = vrot.slane %v2008_v44, 5  ;;  %v2298_v8 = vpack.c.b16 %v2272_v61, %v2271_v58  ;;  %v1091_v44 = vld [vmem:[%s5686_s23 + $0x54] sm:$0xe]  ;;  %v4953_v61 = vld [vmem:[%s5686_s23 + $0x68] sm:$0x1] }
  0xa5   : > { %2396 = vmatmul.bf16.gmra.mxu0 %v2296_v41  ;;  %v5434_v41 = vld [vmem:[%s5686_s23 + $0x3c] sm:$0xff]  ;;  %v4729_v12 = vrot.slane %v1091_v44, 9  ;;  %v2035_v62 = vor.u32 %v2034_v35, %v2031_v48  ;;  %v2048_v3 = vshll.u32 %v4953_v61, 16  ;;  %v2062_v44 = vshll.u32 %v4955_v21, 16 }
  0xa6   : > { %v2058_v61 = vrot.slane %v2056_v27, 5  ;;  %v5437_v27 = vld [vmem:[%s5686_s23 + $0x60] sm:$0xff] }
  0xa7   : > { %v2036_v10 = vrot.slane %v2035_v62, 4  ;;  %v2050_v13 = vrot.slane %v2048_v3, 5 }
  0xa8   : > { %v6109_v56 = vpop.f32.mrf.mxu1 }
  0xab   : > { %v6114_v4 = vpop.f32.mrf.mxu0  ;;  %1023 = vmatmul.bf16.gmra.mxu1 %v5433_v31  ;;  %v2007_v31 = vrot.slane %v2005_v42, 4  ;;  %v2042_v42 = vshrl.u32 %v4952_v23, 16 }
  0xac   : > { %1404 = vmatmul.bf16.gmra.mxu2 %v1300_v57 }
  0xad   : > { %v2011_v7 = vor.u32 %v2010_v55, %v2007_v31  ;;  %v1189_v31 = vrot.slane %v5934_v53, 5  ;;  %v2044_v55 = vrot.slane %v2042_v42, 4  ;;  %v1092_v42 = vld [vmem:[%s5686_s23 + $0x60] sm:$0xe] }
  0xae   : > { %v6119_v17 = vpop.f32.mrf.mxu2 }
  0xaf   : > { %v6122_v50 = vpop.f32.mrf.mxu3  ;;  %v2012_v15 = vrot.slane %v2011_v7, 4  ;;  %v2045_v1 = vor.u32 %v2044_v55, %v2040_v49 }
  0xb0   : > { %v6124_v16 = vpop.f32.mrf.mxu1 }
  0xb1   : > { %1719 = vmatmul.bf16.gmra.mxu3 %v5473_v9  ;;  %v2017_v32 = vsel %vm5701_vm2, %v2012_v15, %v2016_v60  ;;  %v5536_v15 = vld [vmem:[%s7071_s1 + $0x1d8] sm:$0xff] }
  0xb2   : > { %3800 = vmatpush.bf16.msra.mxu3 %v5536_v15 }
  0xb3   : > { %v6133_v26 = vpop.f32.mrf.mxu0 }
  0xb5   : > { %2401 = vmatmul.bf16.gmra.mxu0 %v2297_v51  ;;  %v1277_v51 = vunpack.c.l.b16 %v1183_v11  ;;  %v2046_v11 = vrot.slane %v2045_v1, 4 }
  0xb6   : > { %v6143_v39 = vpop.f32.mrf.mxu2 }
  0xb7   : > { %v6145_v40 = vpop.f32.mrf.mxu3  ;;  %v1302_v34 = vpack.c.b16 %v1277_v51, %v1276_v18  ;;  %v5504_v18 = vld [vmem:[%s7071_s1 + $0x158] sm:$0xff]  ;;  %v2051_v36 = vsel %vm5701_vm2, %v2046_v11, %v2050_v13 }
  0xb8   : > { %v6148_v45 = vpop.f32.mrf.mxu1  ;;  %2803 = vmatpush.bf16.msra.mxu1 %v5504_v18  ;;  %v2276_v35 = vunpack.c.l.b16 %v2051_v36 }
  0xbb   : > { %1028 = vmatmul.bf16.gmra.mxu1 %v5434_v41  ;;  %v1186_v41 = vrot.slane %v5931_v52, 5 }
  0xbc   : > { %v6159_v57 = vpop.f32.mrf.mxu0  ;;  %1409 = vmatmul.bf16.gmra.mxu2 %v1301_v46  ;;  %v2273_v46 = vunpack.c.l.b16 %v2017_v32 }
  0xbd   : > { %v1188_v19 = vrot.slane %v1186_v41, 4  ;;  %v1187_v14 = vsel %vm6001_vm5, %v4729_v12, %v1186_v41  ;;  %v4730_v12 = vrot.slane %v1092_v42, 9 }
  0xbe   : > { %v6163_v2 = vpop.f32.mrf.mxu2  ;;  %v2299_v60 = vpack.c.b16 %v2274_v47, %v2273_v46  ;;  %v1278_v7 = vunpack.c.l.b16 %v1187_v14  ;;  %v2066_v46 = vshrl.u32 %v4955_v21, 16  ;;  %v5544_v47 = vld [vmem:[%s7071_s1 + $0x218] sm:$0xff] }
  0xbf   : > { %v6166_v6 = vpop.f32.mrf.mxu3  ;;  %v1190_v53 = vsel %vm6001_vm5, %v1188_v19, %v1189_v31  ;;  %4226 = vmatpush.bf16.msra.mxu0 %v5544_v47  ;;  %v1195_v19 = vrot.slane %v1193_v38, 4  ;;  %v5588_v31 = vld [vmem:[%s5686_s23 + $0x68] sm:$0x1]  ;;  %v1194_v5 = vsel %vm6001_vm5, %v4730_v12, %v1193_v38  ;;  %v4958_v21 = vld [vmem:[%s5686_s23 + $0x7c] sm:$0xf] }
  0xc0   : > { %v6168_v9 = vpop.f32.mrf.mxu1  ;;  %v1196_v55 = vrot.slane %v5588_v31, 5  ;;  %v2068_v62 = vrot.slane %v2066_v46, 4  ;;  %v1280_v18 = vunpack.c.l.b16 %v1194_v5  ;;  %v2086_v42 = vshll.u32 %v4958_v21, 16  ;;  %v5589_v47 = vld [vmem:[%s5686_s23 + $0x70] sm:$0xf] }
  0xc1   : > { %1724 = vmatmul.bf16.gmra.mxu3 %v5474_v63 }
  0xc4   : > { %v6176_v24 = vpop.f32.mrf.mxu0 }
  0xc5   : > { %2406 = vmatmul.bf16.gmra.mxu0 %v2298_v8  ;;  %v1279_v8 = vunpack.c.l.b16 %v1190_v53  ;;  %v4956_v53 = vld [vmem:[%s5686_s23 + $0x74] sm:$0x1] }
  0xc6   : > { %v6178_v25 = vpop.f32.mrf.mxu2  ;;  %v2072_v13 = vshll.u32 %v4956_v53, 16 }
  0xc7   : > { %v6180_v28 = vpop.f32.mrf.mxu3  ;;  %v1303_v23 = vpack.c.b16 %v1279_v8, %v1278_v7  ;;  %v1197_v7 = vsel %vm6001_vm5, %v1195_v19, %v1196_v55 }
  0xc8   : > { %v6185_v33 = vpop.f32.mrf.mxu1 }
  0xcb   : > { %1033 = vmatmul.bf16.gmra.mxu1 %v5435_v29  ;;  %v2053_v29 = vshrl.u32 %v4954_v59, 16  ;;  %v4957_v59 = vld [vmem:[%s5686_s23 + $0x78] sm:$0xf] }
  0xcc   : > { %1414 = vmatmul.bf16.gmra.mxu2 %v1302_v34  ;;  %v2041_v34 = vsel %vm5701_vm2, %v2036_v10, %v2040_v49  ;;  %v2077_v36 = vshrl.u32 %v4957_v59, 16  ;;  %v2080_v37 = vshll.u32 %v4957_v59, 16 }
  0xcd   : > { %v2275_v48 = vunpack.c.l.b16 %v2041_v34  ;;  %v2055_v49 = vrot.slane %v2053_v29, 4  ;;  %v2074_v34 = vrot.slane %v2072_v13, 5  ;;  %v5477_v13 = vld [vmem:[%s5686_s23 + $0x6c] sm:$0xff] }
  0xce   : > { %v6193_v58 = vpop.f32.mrf.mxu2  ;;  %v2079_v55 = vrot.slane %v2077_v36, 4 }
  0xcf   : > { %v2300_v1 = vpack.c.b16 %v2276_v35, %v2275_v48  ;;  %v2059_v8 = vor.u32 %v2058_v61, %v2055_v49  ;;  %v1200_v48 = vrot.slane %v5589_v47, 5  ;;  %v2082_v61 = vrot.slane %v2080_v37, 5  ;;  %v5527_v47 = vld [vmem:[%s7071_s1 + $0x190] sm:$0xff] }
  0xd0   : > { %v6196_v52 = vpop.f32.mrf.mxu0  ;;  %v6198_v63 = vpop.f32.mrf.mxu3  ;;  %3119 = vmatpush.bf16.msra.mxu2 %v5527_v47 }
  0xd1   : > { %1729 = vmatmul.bf16.gmra.mxu3 %v5475_v54  ;;  %v6200_v0 = vpop.f32.mrf.mxu1  ;;  %v5476_v54 = vld [vmem:[%s5686_s23 + $0x60] sm:$0xff] }
  0xd5   : > { %2411 = vmatmul.bf16.gmra.mxu0 %v2299_v60  ;;  %v2064_v60 = vrot.slane %v2062_v44, 5  ;;  %v2090_v44 = vshrl.u32 %v4958_v21, 16 }
  0xd6   : > { %v6216_v51 = vpop.f32.mrf.mxu2 }
  0xd7   : > { %v2069_v11 = vor.u32 %v2068_v62, %v2064_v60  ;;  %v2088_v62 = vrot.slane %v2086_v42, 5  ;;  %v2092_v53 = vrot.slane %v2090_v44, 4 }
  0xd8   : > { %v6220_v22 = vpop.f32.mrf.mxu0  ;;  %v6229_v41 = vpop.f32.mrf.mxu3 }
  0xd9   : > { %v6222_v32 = vpop.f32.mrf.mxu1  ;;  %v2070_v29 = vrot.slane %v2069_v11, 4  ;;  %v4959_v11 = vld [vmem:[%s5686_s23 + $0x80] sm:$0x1]  ;;  %v2093_v21 = vor.u32 %v2092_v53, %v2088_v62  ;;  %v5503_v53 = vld [vmem:[%s7071_s1 + $0x150] sm:$0xff] }
  0xda   : > { %2804 = vmatpush.bf16.msra.mxu1 %v5503_v53 }
  0xdb   : > { %1038 = vmatmul.bf16.gmra.mxu1 %v5436_v20  ;;  %v1281_v20 = vunpack.c.l.b16 %v1197_v7  ;;  %v2075_v31 = vsel %vm5701_vm2, %v2070_v29, %v2074_v34  ;;  %v5590_v7 = vld [vmem:[%s5686_s23 + $0x74] sm:$0x1] }
  0xdc   : > { %1419 = vmatmul.bf16.gmra.mxu2 %v1303_v23  ;;  %v2060_v23 = vrot.slane %v2059_v8, 4  ;;  %v1203_v8 = vrot.slane %v5590_v7, 5  ;;  %v5438_v7 = vld [vmem:[%s5686_s23 + $0x6c] sm:$0xff] }
  0xdd   : > { %v1304_v46 = vpack.c.b16 %v1281_v20, %v1280_v18  ;;  %v2278_v18 = vunpack.c.l.b16 %v2075_v31  ;;  %v4960_v31 = vld [vmem:[%s5686_s23 + $0x84] sm:$0xf] }
  0xde   : > { %v2065_v49 = vsel %vm5701_vm2, %v2060_v23, %v2064_v60  ;;  %v1202_v60 = vrot.slane %v1200_v48, 4  ;;  %v2096_v23 = vshll.u32 %v4959_v11, 16 }
  0xdf   : > { %v6237_v14 = vpop.f32.mrf.mxu2  ;;  %v2277_v59 = vunpack.c.l.b16 %v2065_v49 }
  0xe0   : > { %v1204_v36 = vsel %vm6001_vm5, %v1202_v60, %v1203_v8 }
  0xe1   : > { %1734 = vmatmul.bf16.gmra.mxu3 %v5476_v54  ;;  %v6240_v3 = vpop.f32.mrf.mxu1  ;;  %v1093_v54 = vld [vmem:[%s5686_s23 + $0x6c] sm:$0xe]  ;;  %v2301_v37 = vpack.c.b16 %v2278_v18, %v2277_v59  ;;  %v1283_v49 = vunpack.c.l.b16 %v1204_v36 }
  0xe2   : > { %v6246_v10 = vpop.f32.mrf.mxu0  ;;  %v4731_v5 = vrot.slane %v1093_v54, 9  ;;  %v2094_v54 = vrot.slane %v2093_v21, 4 }
  0xe4   : > { %v6249_v15 = vpop.f32.mrf.mxu3  ;;  %v1201_v34 = vsel %vm6001_vm5, %v4731_v5, %v1200_v48  ;;  %v2098_v48 = vrot.slane %v2096_v23, 5 }
  0xe5   : > { %2416 = vmatmul.bf16.gmra.mxu0 %v2300_v1 }
  0xe6   : > { %v2099_v11 = vsel %vm5701_vm2, %v2094_v54, %v2098_v48 }
  0xe7   : > { %v6252_v38 = vpop.f32.mrf.mxu2 }
  0xe9   : > { %v1004_v35 = vpop.f32.mrf.mxu1 }
  0xea   : > { %v6259_v12 = vpop.f32.mrf.mxu0  ;;  %v1005_v19 = vadd.f32 %v1004_v35, %v6114_v4  ;;  %v2083_v4 = vor.u32 %v2082_v61, %v2079_v55  ;;  %v1282_v35 = vunpack.c.l.b16 %v1201_v34  ;;  %v4961_v61 = vld [vmem:[%s5686_s23 + $0x88] sm:$0xf] }
  0xeb   : > { %1043 = vmatmul.bf16.gmra.mxu1 %v5437_v27  ;;  %v2114_v21 = vshrl.u32 %v4961_v61, 16 }
  0xec   : > { %v6264_v1 = vpop.f32.mrf.mxu3  ;;  %1424 = vmatmul.bf16.gmra.mxu2 %v1304_v46  ;;  %v2084_v46 = vrot.slane %v2083_v4, 4  ;;  %v1305_v8 = vpack.c.b16 %v1283_v49, %v1282_v35  ;;  %v2104_v4 = vshll.u32 %v4960_v31, 16 }
  0xed   : > { %v2116_v54 = vrot.slane %v2114_v21, 4 }
  0xee   : > { %v2089_v5 = vsel %vm5701_vm2, %v2084_v46, %v2088_v62  ;;  %v2106_v35 = vrot.slane %v2104_v4, 5 }
  0xef   : > { %v1385_v20 = vpop.f32.mrf.mxu2 }
  0xf0   : > { %v1465_v29 = vadd.f32 %v1385_v20, %v1005_v19  ;;  %v2110_v20 = vshll.u32 %v4961_v61, 16 }
  0xf1   : > { %1739 = vmatmul.bf16.gmra.mxu3 %v5477_v13  ;;  %v1006_v27 = vpop.f32.mrf.mxu1  ;;  %v2101_v13 = vshrl.u32 %v4960_v31, 16 }
  0xf2   : > { %v2382_v42 = vpop.f32.mrf.mxu0  ;;  %v1007_v44 = vadd.f32 %v1006_v27, %v6133_v26  ;;  %v5535_v26 = vld [vmem:[%s7071_s1 + $0x1d0] sm:$0xff]  ;;  %v2112_v49 = vrot.slane %v2110_v20, 5 }
  0xf3   : > { %3801 = vmatpush.bf16.msra.mxu3 %v5535_v26  ;;  %v5543_v27 = vld [vmem:[%s7071_s1 + $0x210] sm:$0xff]  ;;  %v2103_v47 = vrot.slane %v2101_v13, 4  ;;  %v4962_v26 = vld [vmem:[%s5686_s23 + $0x8c] sm:$0x1] }
  0xf4   : > { %v1700_v19 = vpop.f32.mrf.mxu3  ;;  %4227 = vmatpush.bf16.msra.mxu0 %v5543_v27  ;;  %v2120_v4 = vshll.u32 %v4962_v26, 16  ;;  %v5593_v26 = vld [vmem:[%s5686_s23 + $0x88] sm:$0xf] }
  0xf5   : > { %2421 = vmatmul.bf16.gmra.mxu0 %v2301_v37  ;;  %v1780_v55 = vadd.f32 %v1700_v19, %v1465_v29  ;;  %v5591_v29 = vld [vmem:[%s5686_s23 + $0x7c] sm:$0xf]  ;;  %v1094_v37 = vld [vmem:[%s5686_s23 + $0x78] sm:$0xe] }
  0xf6   : > { %v1207_v34 = vrot.slane %v5591_v29, 5  ;;  %v5478_v19 = vld [vmem:[%s5686_s23 + $0x78] sm:$0xff] }
  0xf7   : > { %v1387_v60 = vpop.f32.mrf.mxu2  ;;  %v6290_v59 = vadd.f32 %v2382_v42, %v1780_v55  ;;  %v2279_v42 = vunpack.c.l.b16 %v2089_v5  ;;  %v5592_v55 = vld [vmem:[%s5686_s23 + $0x80] sm:$0x1] }
  0xf8   : > { %v1466_v18 = vadd.f32 %v1387_v60, %v1007_v44  ;;  %v2280_v44 = vunpack.c.l.b16 %v2099_v11  ;;  %v1209_v31 = vrot.slane %v1207_v34, 4  ;;  %v1210_v61 = vrot.slane %v5592_v55, 5 }
  0xf9   : > { %v1009_v23 = vpop.f32.mrf.mxu1 }
  0xfa   : > { %v2384_v62 = vpop.f32.mrf.mxu0  ;;  %v1010_v36 = vadd.f32 %v1009_v23, %v6159_v57  ;;  %v4732_v57 = vrot.slane %v1094_v37, 9  ;;  %v2302_v60 = vpack.c.b16 %v2280_v44, %v2279_v42  ;;  %v2107_v23 = vor.u32 %v2106_v35, %v2103_v47  ;;  %v5439_v47 = vld [vmem:[%s5686_s23 + $0x78] sm:$0xff]  ;;  %v4964_v35 = vld [vmem:[%s5686_s23 + $0x94] sm:$0xf] }
  0xfb   : > { %1048 = vmatmul.bf16.gmra.mxu1 %v5438_v7  ;;  %v1211_v13 = vsel %vm6001_vm5, %v1209_v31, %v1210_v61  ;;  %v2122_v44 = vrot.slane %v2120_v4, 5 }
  0xfc   : > { %v1702_v46 = vpop.f32.mrf.mxu3  ;;  %1429 = vmatmul.bf16.gmra.mxu2 %v1305_v8  ;;  %v1208_v11 = vsel %vm6001_vm5, %v4732_v57, %v1207_v34  ;;  %v2108_v27 = vrot.slane %v2107_v23, 4  ;;  %v4963_v34 = vld [vmem:[%s5686_s23 + $0x90] sm:$0xf]  ;;  %v1095_v23 = vld [vmem:[%s5686_s23 + $0x84] sm:$0xe] }
  0xfd   : > { %v1781_v48 = vadd.f32 %v1702_v46, %v1466_v18  ;;  %v2117_v18 = vor.u32 %v2116_v54, %v2112_v49  ;;  %v2125_v57 = vshrl.u32 %v4963_v34, 16 }
  0xfe   : > { %v2113_v55 = vsel %vm5701_vm2, %v2108_v27, %v2112_v49 }
  0xff   : > { %v1390_v53 = vpop.f32.mrf.mxu2  ;;  %v6301_v5 = vadd.f32 %v2384_v62, %v1781_v48  ;;  %v1285_v62 = vunpack.c.l.b16 %v1211_v13  ;;  %v2118_v42 = vrot.slane %v2117_v18, 4  ;;  %v2281_v18 = vunpack.c.l.b16 %v2113_v55 }
 0x100   : > { %v1467_v7 = vadd.f32 %v1390_v53, %v1010_v36  ;;  %v1284_v36 = vunpack.c.l.b16 %v1208_v11  ;;  %v1214_v53 = vrot.slane %v5593_v26, 5  ;;  %v2138_v11 = vshrl.u32 %v4964_v35, 16 }
 0x101   : > { %1744 = vmatmul.bf16.gmra.mxu3 %v5478_v19  ;;  %v1011_v8 = vpop.f32.mrf.mxu1  ;;  %v2123_v61 = vsel %vm5701_vm2, %v2118_v42, %v2122_v44  ;;  %v2127_v49 = vrot.slane %v2125_v57, 4 }
 0x102   : > { %v2387_v20 = vpop.f32.mrf.mxu0  ;;  %v1012_v21 = vadd.f32 %v1011_v8, %v6176_v24  ;;  %v1306_v19 = vpack.c.b16 %v1285_v62, %v1284_v36  ;;  %v2128_v24 = vshll.u32 %v4963_v34, 16  ;;  %v2134_v8 = vshll.u32 %v4964_v35, 16  ;;  %v4965_v34 = vld [vmem:[%s5686_s23 + $0x98] sm:$0x1] }
 0x103   : > { %v2282_v4 = vunpack.c.l.b16 %v2123_v61  ;;  %v4733_v36 = vrot.slane %v1095_v23, 9  ;;  %v1216_v62 = vrot.slane %v1214_v53, 4  ;;  %v2144_v26 = vshll.u32 %v4965_v34, 16 }
 0x104   : > { %v1705_v29 = vpop.f32.mrf.mxu3  ;;  %v6322_v42 = vrot.slane %v2134_v8, 5 }
 0x105   : > { %2426 = vmatmul.bf16.gmra.mxu0 %v2302_v60  ;;  %v1782_v37 = vadd.f32 %v1705_v29, %v1467_v7  ;;  %v5479_v29 = vld [vmem:[%s5686_s23 + $0x84] sm:$0xff]  ;;  %v2303_v35 = vpack.c.b16 %v2282_v4, %v2281_v18 }
 0x106   : > { %v5502_v4 = vld [vmem:[%s7071_s1 + $0x148] sm:$0xff] }
 0x107   : > { %v1392_v46 = vpop.f32.mrf.mxu2  ;;  %v6311_v48 = vadd.f32 %v2387_v20, %v1782_v37  ;;  %v2130_v20 = vrot.slane %v2128_v24, 5  ;;  %v5594_v37 = vld [vmem:[%s5686_s23 + $0x8c] sm:$0x1]  ;;  %2805 = vmatpush.bf16.msra.mxu1 %v5502_v4 }
 0x108   : > { %v1468_v54 = vadd.f32 %v1392_v46, %v1012_v21  ;;  %v1217_v27 = vrot.slane %v5594_v37, 5 }
 0x109   : > { %v1014_v31 = vpop.f32.mrf.mxu1  ;;  %v2131_v24 = vor.u32 %v2130_v20, %v2127_v49  ;;  %v2146_v20 = vrot.slane %v2144_v26, 5 }
 0x10a   : > { %v2389_v60 = vpop.f32.mrf.mxu0  ;;  %v1015_v7 = vadd.f32 %v1014_v31, %v6196_v52  ;;  %v2140_v52 = vrot.slane %v2138_v11, 4  ;;  %v1218_v57 = vsel %vm6001_vm5, %v1216_v62, %v1217_v27  ;;  %v5440_v62 = vld [vmem:[%s5686_s23 + $0x84] sm:$0xff] }
 0x10b   : > { %1053 = vmatmul.bf16.gmra.mxu1 %v5439_v47  ;;  %v1287_v11 = vunpack.c.l.b16 %v1218_v57  ;;  %v2132_v18 = vrot.slane %v2131_v24, 4  ;;  %v1096_v57 = vld [vmem:[%s5686_s23 + $0x90] sm:$0xe] }
 0x10c   : > { %v1707_v13 = vpop.f32.mrf.mxu3  ;;  %1434 = vmatmul.bf16.gmra.mxu2 %v1306_v19  ;;  %v2141_v61 = vor.u32 %v2140_v52, %v6322_v42 }
 0x10d   : > { %v1783_v21 = vadd.f32 %v1707_v13, %v1468_v54  ;;  %v1215_v54 = vsel %vm6001_vm5, %v4733_v36, %v1214_v53  ;;  %v4967_v53 = vld [vmem:[%s5686_s23 + $0xa0] sm:$0xf] }
 0x10e   : > { %v1286_v8 = vunpack.c.l.b16 %v1215_v54  ;;  %v2142_v49 = vrot.slane %v2141_v61, 4  ;;  %v2158_v37 = vshll.u32 %v4967_v53, 16  ;;  %v2162_v27 = vshrl.u32 %v4967_v53, 16  ;;  %v5596_v53 = vld [vmem:[%s5686_s23 + $0x98] sm:$0x1] }
 0x10f   : > { %v1395_v44 = vpop.f32.mrf.mxu2  ;;  %v6325_v47 = vadd.f32 %v2389_v60, %v1783_v21  ;;  %v5526_v60 = vld [vmem:[%s7071_s1 + $0x188] sm:$0xff]  ;;  %v2137_v54 = vsel %vm5701_vm2, %v2132_v18, %v6322_v42  ;;  %v4734_v42 = vrot.slane %v1096_v57, 9 }
 0x110   : > { %v1469_v46 = vadd.f32 %v1395_v44, %v1015_v7  ;;  %v4966_v7 = vld [vmem:[%s5686_s23 + $0x9c] sm:$0xf]  ;;  %3120 = vmatpush.bf16.msra.mxu2 %v5526_v60  ;;  %v1307_v34 = vpack.c.b16 %v1287_v11, %v1286_v8  ;;  %v2147_v26 = vsel %vm5701_vm2, %v2142_v49, %v2146_v20  ;;  %v5542_v60 = vld [vmem:[%s7071_s1 + $0x208] sm:$0xff]  ;;  %v2283_v4 = vunpack.c.l.b16 %v2137_v54 }
 0x111   : > { %1749 = vmatmul.bf16.gmra.mxu3 %v5479_v29  ;;  %v1016_v19 = vpop.f32.mrf.mxu1  ;;  %v2149_v21 = vshrl.u32 %v4966_v7, 16  ;;  %v2152_v29 = vshll.u32 %v4966_v7, 16  ;;  %v2160_v7 = vrot.slane %v2158_v37, 5  ;;  %4228 = vmatpush.bf16.msra.mxu0 %v5542_v60  ;;  %v2284_v49 = vunpack.c.l.b16 %v2147_v26 }
 0x112   : > { %v2392_v31 = vpop.f32.mrf.mxu0  ;;  %v1017_v55 = vadd.f32 %v1016_v19, %v6220_v22  ;;  %v5534_v22 = vld [vmem:[%s7071_s1 + $0x1c8] sm:$0xff] }
 0x113   : > { %3802 = vmatpush.bf16.msra.mxu3 %v5534_v22  ;;  %v5480_v22 = vld [vmem:[%s5686_s23 + $0x90] sm:$0xff] }
 0x114   : > { %v1710_v23 = vpop.f32.mrf.mxu3 }
 0x115   : > { %2431 = vmatmul.bf16.gmra.mxu0 %v2303_v35  ;;  %v1784_v13 = vadd.f32 %v1710_v23, %v1469_v46  ;;  %v5595_v46 = vld [vmem:[%s5686_s23 + $0x94] sm:$0xf]  ;;  %v2164_v23 = vrot.slane %v2162_v27, 4 }
 0x116   : > { %v1221_v35 = vrot.slane %v5595_v46, 5 }
 0x117   : > { %v1397_v36 = vpop.f32.mrf.mxu2  ;;  %v6345_v52 = vadd.f32 %v2392_v31, %v1784_v13  ;;  %v2151_v31 = vrot.slane %v2149_v21, 4  ;;  %v1224_v13 = vrot.slane %v5596_v53, 5 }
 0x118   : > { %v1470_v44 = vadd.f32 %v1397_v36, %v1017_v55  ;;  %v2154_v55 = vrot.slane %v2152_v29, 5  ;;  %v1223_v11 = vrot.slane %v1221_v35, 4  ;;  %v2165_v29 = vor.u32 %v2164_v23, %v2160_v7 }
 0x119   : > { %v1019_v19 = vpop.f32.mrf.mxu1  ;;  %v1222_v37 = vsel %vm6001_vm5, %v4734_v42, %v1221_v35  ;;  %v4969_v35 = vld [vmem:[%s5686_s23 + $0xa8] sm:$0xf] }
 0x11a   : > { %v2394_v24 = vpop.f32.mrf.mxu0  ;;  %v1020_v61 = vadd.f32 %v1019_v19, %v6246_v10  ;;  %v4968_v10 = vld [vmem:[%s5686_s23 + $0xa4] sm:$0x1]  ;;  %v2155_v20 = vor.u32 %v2154_v55, %v2151_v31  ;;  %v1225_v27 = vsel %vm6001_vm5, %v1223_v11, %v1224_v13  ;;  %v1288_v26 = vunpack.c.l.b16 %v1222_v37  ;;  %v5441_v11 = vld [vmem:[%s5686_s23 + $0x90] sm:$0xff] }
 0x11b   : > { %1058 = vmatmul.bf16.gmra.mxu1 %v5440_v62  ;;  %v2168_v36 = vshll.u32 %v4968_v10, 16  ;;  %v1289_v31 = vunpack.c.l.b16 %v1225_v27  ;;  %v2173_v13 = vshrl.u32 %v4969_v35, 16 }
 0x11c   : > { %v1712_v8 = vpop.f32.mrf.mxu3  ;;  %1439 = vmatmul.bf16.gmra.mxu2 %v1307_v34  ;;  %v2156_v57 = vrot.slane %v2155_v20, 4 }
 0x11d   : > { %v1785_v18 = vadd.f32 %v1712_v8, %v1470_v44  ;;  %v2304_v44 = vpack.c.b16 %v2284_v49, %v2283_v4  ;;  %v2170_v55 = vrot.slane %v2168_v36, 5  ;;  %v4970_v8 = vld [vmem:[%s5686_s23 + $0xac] sm:$0xf]  ;;  %v1308_v53 = vpack.c.b16 %v1289_v31, %v1288_v26  ;;  %v5481_v26 = vld [vmem:[%s5686_s23 + $0x9c] sm:$0xff] }
 0x11e   : > { %v2182_v4 = vshll.u32 %v4970_v8, 16  ;;  %v2186_v49 = vshrl.u32 %v4970_v8, 16 }
 0x11f   : > { %v1400_v21 = vpop.f32.mrf.mxu2  ;;  %v6365_v34 = vadd.f32 %v2394_v24, %v1785_v18  ;;  %v2161_v24 = vsel %vm5701_vm2, %v2156_v57, %v2160_v7  ;;  %v1097_v7 = vld [vmem:[%s5686_s23 + $0x9c] sm:$0xe] }
 0x120   : > { %v1471_v62 = vadd.f32 %v1400_v21, %v1020_v61  ;;  %v2166_v61 = vrot.slane %v2165_v29, 4  ;;  %v5597_v21 = vld [vmem:[%s5686_s23 + $0xa0] sm:$0xf]  ;;  %v4735_v31 = vrot.slane %v1097_v7, 9  ;;  %v4972_v7 = vld [vmem:[%s5686_s23 + $0xb4] sm:$0xf] }
 0x121   : > { %1754 = vmatmul.bf16.gmra.mxu3 %v5480_v22  ;;  %v1021_v46 = vpop.f32.mrf.mxu1  ;;  %v2176_v22 = vshll.u32 %v4969_v35, 16  ;;  %v1228_v29 = vrot.slane %v5597_v21, 5 }
 0x122   : > { %v2397_v19 = vpop.f32.mrf.mxu0  ;;  %v1022_v54 = vadd.f32 %v1021_v46, %v6259_v12  ;;  %v2171_v12 = vsel %vm5701_vm2, %v2166_v61, %v2170_v55  ;;  %v5598_v55 = vld [vmem:[%s5686_s23 + $0xa4] sm:$0x1] }
 0x123   : > { %v2286_v37 = vunpack.c.l.b16 %v2171_v12  ;;  %v2178_v46 = vrot.slane %v2176_v22, 5  ;;  %v1230_v61 = vrot.slane %v1228_v29, 4 }
 0x124   : > { %v1715_v60 = vpop.f32.mrf.mxu3 }
 0x125   : > { %2436 = vmatmul.bf16.gmra.mxu0 %v2304_v44  ;;  %v1786_v23 = vadd.f32 %v1715_v60, %v1471_v62  ;;  %v2285_v62 = vunpack.c.l.b16 %v2161_v24  ;;  %v2175_v44 = vrot.slane %v2173_v13, 4  ;;  %v1231_v60 = vrot.slane %v5598_v55, 5 }
 0x126   : > { %v1229_v13 = vsel %vm6001_vm5, %v4735_v31, %v1228_v29  ;;  %v4973_v31 = vld [vmem:[%s5686_s23 + $0xb8] sm:$0xf]  ;;  %v2200_v55 = vshll.u32 %v4972_v7, 16 }
 0x127   : > { %v1402_v42 = vpop.f32.mrf.mxu2  ;;  %v6375_v10 = vadd.f32 %v2397_v19, %v1786_v23  ;;  %v2184_v19 = vrot.slane %v2182_v4, 5  ;;  %v4971_v23 = vld [vmem:[%s5686_s23 + $0xb0] sm:$0x1]  ;;  %v1290_v21 = vunpack.c.l.b16 %v1229_v13  ;;  %v1098_v13 = vld [vmem:[%s5686_s23 + $0xa8] sm:$0xe] }
 0x128   : > { %v1472_v18 = vadd.f32 %v1402_v42, %v1022_v54  ;;  %v2188_v54 = vrot.slane %v2186_v49, 4  ;;  %v2305_v42 = vpack.c.b16 %v2286_v37, %v2285_v62  ;;  %v2192_v4 = vshll.u32 %v4971_v23, 16 }
 0x129   : > { %v1024_v20 = vpop.f32.mrf.mxu1 }
 0x12a   : > { %v2399_v36 = vpop.f32.mrf.mxu0  ;;  %v1025_v35 = vadd.f32 %v1024_v20, %v6109_v56  ;;  %v2189_v22 = vor.u32 %v2188_v54, %v2184_v19  ;;  %v5525_v56 = vld [vmem:[%s7071_s1 + $0x180] sm:$0xff] }
 0x12b   : > { %1063 = vmatmul.bf16.gmra.mxu1 %v5441_v11  ;;  %v2179_v11 = vor.u32 %v2178_v46, %v2175_v44  ;;  %3121 = vmatpush.bf16.msra.mxu2 %v5525_v56  ;;  %v5533_v44 = vld [vmem:[%s7071_s1 + $0x1c0] sm:$0xff]  ;;  %v2202_v56 = vrot.slane %v2200_v55, 5 }
 0x12c   : > { %v1717_v27 = vpop.f32.mrf.mxu3  ;;  %1444 = vmatmul.bf16.gmra.mxu2 %v1308_v53  ;;  %v2190_v37 = vrot.slane %v2189_v22, 4  ;;  %v5501_v46 = vld [vmem:[%s7071_s1 + $0x140] sm:$0xff]  ;;  %3803 = vmatpush.bf16.msra.mxu3 %v5533_v44  ;;  %v2210_v22 = vshrl.u32 %v4973_v31, 16 }
 0x12d   : > { %v1787_v57 = vadd.f32 %v1717_v27, %v1472_v18  ;;  %v1232_v18 = vsel %vm6001_vm5, %v1230_v61, %v1231_v60  ;;  %v2180_v29 = vrot.slane %v2179_v11, 4  ;;  %v2194_v27 = vrot.slane %v2192_v4, 5  ;;  %2806 = vmatpush.bf16.msra.mxu1 %v5501_v46  ;;  %v5541_v4 = vld [vmem:[%s7071_s1 + $0x200] sm:$0xff] }
 0x12e   : > { %v2197_v61 = vshrl.u32 %v4972_v7, 16  ;;  %4229 = vmatpush.bf16.msra.mxu0 %v5541_v4  ;;  %v5482_v7 = vld [vmem:[%s5686_s23 + $0xa8] sm:$0xff]  ;;  %v4975_v4 = vld [vmem:[%s5686_s23 + $0xc0] sm:$0xf] }
 0x12f   : > { %v1405_v8 = vpop.f32.mrf.mxu2  ;;  %v6383_v12 = vadd.f32 %v2399_v36, %v1787_v57  ;;  %v1291_v36 = vunpack.c.l.b16 %v1232_v18  ;;  %v2206_v18 = vshll.u32 %v4973_v31, 16 }
 0x130   : > { %v1473_v24 = vadd.f32 %v1405_v8, %v1025_v35 }
 0x131   : > { %1759 = vmatmul.bf16.gmra.mxu3 %v5481_v26  ;;  %v1026_v53 = vpop.f32.mrf.mxu1  ;;  %v5442_v26 = vld [vmem:[%s5686_s23 + $0x9c] sm:$0xff]  ;;  %v1309_v23 = vpack.c.b16 %v1291_v36, %v1290_v21  ;;  %v2208_v46 = vrot.slane %v2206_v18, 5 }
 0x132   : > { %v2402_v49 = vpop.f32.mrf.mxu0  ;;  %v1027_v54 = vadd.f32 %v1026_v53, %v6124_v16  ;;  %v5599_v16 = vld [vmem:[%s5686_s23 + $0xac] sm:$0xf] }
 0x133   : > { %v1235_v11 = vrot.slane %v5599_v16, 5 }
 0x134   : > { %v1720_v20 = vpop.f32.mrf.mxu3 }
 0x135   : > { %2441 = vmatmul.bf16.gmra.mxu0 %v2305_v42  ;;  %v1788_v62 = vadd.f32 %v1720_v20, %v1473_v24  ;;  %v2185_v42 = vsel %vm5701_vm2, %v2180_v29, %v2184_v19  ;;  %v2195_v24 = vsel %vm5701_vm2, %v2190_v37, %v2194_v27  ;;  %v1237_v29 = vrot.slane %v1235_v11, 4  ;;  %v5600_v37 = vld [vmem:[%s5686_s23 + $0xb0] sm:$0x1] }
 0x136   : > { %v2287_v20 = vunpack.c.l.b16 %v2185_v42  ;;  %v2288_v21 = vunpack.c.l.b16 %v2195_v24  ;;  %v1238_v27 = vrot.slane %v5600_v37, 5  ;;  %v2221_v37 = vshrl.u32 %v4975_v4, 16 }
 0x137   : > { %v1407_v57 = vpop.f32.mrf.mxu2  ;;  %v6402_v60 = vadd.f32 %v2402_v49, %v1788_v62  ;;  %v2199_v49 = vrot.slane %v2197_v61, 4  ;;  %v4736_v62 = vrot.slane %v1098_v13, 9 }
 0x138   : > { %v1474_v35 = vadd.f32 %v1407_v57, %v1027_v54  ;;  %v2212_v54 = vrot.slane %v2210_v22, 4 }
 0x139   : > { %v1029_v8 = vpop.f32.mrf.mxu1  ;;  %v2203_v31 = vor.u32 %v2202_v56, %v2199_v49  ;;  %v1236_v42 = vsel %vm6001_vm5, %v4736_v62, %v1235_v11  ;;  %v4976_v56 = vld [vmem:[%s5686_s23 + $0xc4] sm:$0xf]  ;;  %v5443_v62 = vld [vmem:[%s5686_s23 + $0xa8] sm:$0xff] }
 0x13a   : > { %v2404_v53 = vpop.f32.mrf.mxu0  ;;  %v1030_v44 = vadd.f32 %v1029_v8, %v6148_v45  ;;  %v1239_v45 = vsel %vm6001_vm5, %v1237_v29, %v1238_v27  ;;  %v2213_v24 = vor.u32 %v2212_v54, %v2208_v46  ;;  %v1292_v22 = vunpack.c.l.b16 %v1236_v42 }
 0x13b   : > { %1068 = vmatmul.bf16.gmra.mxu1 %v5442_v26  ;;  %v4974_v26 = vld [vmem:[%s5686_s23 + $0xbc] sm:$0x1]  ;;  %v2204_v13 = vrot.slane %v2203_v31, 4  ;;  %v2224_v27 = vshll.u32 %v4975_v4, 16  ;;  %v2234_v31 = vshrl.u32 %v4976_v56, 16 }
 0x13c   : > { %v1722_v19 = vpop.f32.mrf.mxu3  ;;  %1449 = vmatmul.bf16.gmra.mxu2 %v1309_v23  ;;  %v2216_v16 = vshll.u32 %v4974_v26, 16  ;;  %v2230_v26 = vshll.u32 %v4976_v56, 16 }
 0x13d   : > { %v1789_v36 = vadd.f32 %v1722_v19, %v1474_v35  ;;  %v2306_v35 = vpack.c.b16 %v2288_v21, %v2287_v20  ;;  %v5601_v19 = vld [vmem:[%s5686_s23 + $0x10] sm:$0xf]  ;;  %v2214_v21 = vrot.slane %v2213_v24, 4  ;;  %v2209_v29 = vsel %vm5701_vm2, %v2204_v13, %v2208_v46 }
 0x13e   : > { %v2560_v20 = vrot.slane %v5601_v19, 5  ;;  %v2223_v13 = vrot.slane %v2221_v37, 4  ;;  %v2236_v56 = vrot.slane %v2234_v31, 4 }
 0x13f   : > { %v1410_v57 = vpop.f32.mrf.mxu2  ;;  %v6417_v55 = vadd.f32 %v2404_v53, %v1789_v36  ;;  %v1293_v53 = vunpack.c.l.b16 %v1239_v45  ;;  %v2218_v36 = vrot.slane %v2216_v16, 5  ;;  %v5603_v45 = vld [vmem:[%s5686_s23 + $0x14] sm:$0x1] }
 0x140   : > { %v1475_v61 = vadd.f32 %v1410_v57, %v1030_v44  ;;  %v2562_v42 = vrot.slane %v2560_v20, 4  ;;  %v2563_v24 = vrot.slane %v5603_v45, 5 }
 0x141   : > { %7078 = vst [vmem:[#allocation2_spill] sm:$0xff] %v6417_v55  ;;  %1764 = vmatmul.bf16.gmra.mxu3 %v5482_v7  ;;  %v1031_v23 = vpop.f32.mrf.mxu1  ;;  %v1310_v57 = vpack.c.b16 %v1293_v53, %v1292_v22  ;;  %v2219_v46 = vsel %vm5701_vm2, %v2214_v21, %v2218_v36  ;;  %v5026_v22 = vld [vmem:[%s5686_s23 + $0xc] sm:$0xe]  ;;  %v4977_v21 = vld [vmem:[%s5686_s23 + $0xc8] sm:$0x1] }
 0x142   : > { %v2407_v8 = vpop.f32.mrf.mxu0  ;;  %v1032_v11 = vadd.f32 %v1031_v23, %v6168_v9  ;;  %v5602_v9 = vld [vmem:[%s5686_s23 + $0xb8] sm:$0xf]  ;;  %v5042_v19 = vrot.slane %v5026_v22, 9 }
 0x143   : > { %v1242_v23 = vrot.slane %v5602_v9, 5  ;;  %v2290_v9 = vunpack.c.l.b16 %v2219_v46 }
 0x144   : > { %v1725_v18 = vpop.f32.mrf.mxu3 }
 0x145   : > { %2446 = vmatmul.bf16.gmra.mxu0 %v2306_v35  ;;  %v1790_v49 = vadd.f32 %v1725_v18, %v1475_v61  ;;  %v1099_v35 = vld [vmem:[%s5686_s23 + $0xb4] sm:$0xe]  ;;  %v2226_v18 = vrot.slane %v2224_v27, 5  ;;  %v1244_v45 = vrot.slane %v1242_v23, 4 }
 0x146   : > { %v4737_v4 = vrot.slane %v1099_v35, 9  ;;  %v2240_v35 = vshll.u32 %v4977_v21, 16  ;;  %v5444_v21 = vld [vmem:[%s5686_s23 + $0xb4] sm:$0xff] }
 0x147   : > { %v1412_v7 = vpop.f32.mrf.mxu2  ;;  %v6430_v44 = vadd.f32 %v2407_v8, %v1790_v49  ;;  %v2289_v8 = vunpack.c.l.b16 %v2209_v29  ;;  %v2232_v49 = vrot.slane %v2230_v26, 5  ;;  %v2564_v29 = vsel %vm6001_vm5, %v2562_v42, %v2563_v24  ;;  %v5250_v42 = vld [vmem:[%s5686_s23 + $0x18] sm:$0xf] }
 0x148   : > { %v1476_v54 = vadd.f32 %v1412_v7, %v1032_v11  ;;  %v5483_v7 = vld [vmem:[%s5686_s23 + $0xb4] sm:$0xff]  ;;  %v2227_v27 = vor.u32 %v2226_v18, %v2223_v13  ;;  %v1243_v31 = vsel %vm6001_vm5, %v4737_v4, %v1242_v23  ;;  %v6456_v18 = vld [vmem:[%s5686_s23 + $0x1c] sm:$0xf] }
 0x149   : > { %7079 = vst [vmem:[#allocation3_spill] sm:$0xff] %v6430_v44  ;;  %v1034_v61 = vpop.f32.mrf.mxu1  ;;  %v5604_v44 = vld [vmem:[%s5686_s23 + $0xbc] sm:$0x1]  ;;  %v1294_v22 = vunpack.c.l.b16 %v1243_v31 }
 0x14a   : > { %v2409_v16 = vpop.f32.mrf.mxu0  ;;  %v1245_v55 = vrot.slane %v5604_v44, 5  ;;  %v1035_v36 = vadd.f32 %v1034_v61, %v6185_v33  ;;  %v2237_v44 = vor.u32 %v2236_v56, %v2232_v49  ;;  %v2307_v33 = vpack.c.b16 %v2290_v9, %v2289_v8 }
 0x14b   : > { %1073 = vmatmul.bf16.gmra.mxu1 %v5443_v62  ;;  %v2561_v62 = vsel %vm6001_vm5, %v5042_v19, %v2560_v20  ;;  %v2242_v19 = vrot.slane %v2240_v35, 5  ;;  %v3284_v8 = vshrl.u32 %v5250_v42, 16  ;;  %v3287_v9 = vshll.u32 %v5250_v42, 16  ;;  %v5252_v35 = vld [vmem:[%s5686_s23 + $0x20] sm:$0x1] }
 0x14c   : > { %v1727_v53 = vpop.f32.mrf.mxu3  ;;  %1454 = vmatmul.bf16.gmra.mxu2 %v1310_v57  ;;  %v2687_v57 = vunpack.c.l.b16 %v2561_v62  ;;  %v1246_v20 = vsel %vm6001_vm5, %v1244_v45, %v1245_v55  ;;  %v2238_v56 = vrot.slane %v2237_v44, 4  ;;  %v3293_v55 = vshll.u32 %v6456_v18, 16 }
 0x14d   : > { %v1791_v11 = vadd.f32 %v1727_v53, %v1476_v54  ;;  %v2688_v54 = vunpack.c.l.b16 %v2564_v29  ;;  %v2228_v53 = vrot.slane %v2227_v27, 4  ;;  %v1295_v4 = vunpack.c.l.b16 %v1246_v20 }
 0x14e   : > { %v2243_v27 = vsel %vm5701_vm2, %v2238_v56, %v2242_v19  ;;  %v3295_v31 = vrot.slane %v3293_v55, 5  ;;  %v5253_v56 = vld [vmem:[%s5686_s23 + $0x24] sm:$0xf] }
 0x14f   : > { %v1415_v37 = vpop.f32.mrf.mxu2  ;;  %v6450_v46 = vpack.c.b16 %v2688_v54, %v2687_v57  ;;  %v6453_v24 = vadd.f32 %v2409_v16, %v1791_v11  ;;  %v3297_v16 = vshrl.u32 %v6456_v18, 16  ;;  %v1311_v29 = vpack.c.b16 %v1295_v4, %v1294_v22 }
 0x150   : > { %v1477_v26 = vadd.f32 %v1415_v37, %v1035_v36  ;;  %v2233_v37 = vsel %vm5701_vm2, %v2228_v53, %v2232_v49  ;;  %v3286_v54 = vrot.slane %v3284_v8, 4  ;;  %v2292_v20 = vunpack.c.l.b16 %v2243_v27 }
 0x151   : > { %1769 = vmatmul.bf16.gmra.mxu3 %v5483_v7  ;;  %v1036_v61 = vpop.f32.mrf.mxu1  ;;  %v3299_v44 = vrot.slane %v3297_v16, 4  ;;  %v3303_v53 = vshll.u32 %v5252_v35, 16  ;;  %v3311_v27 = vshll.u32 %v5253_v56, 16 }
 0x152   : > { %v2412_v13 = vpop.f32.mrf.mxu0  ;;  %v1037_v11 = vadd.f32 %v1036_v61, %v6200_v0  ;;  %v2291_v61 = vunpack.c.l.b16 %v2233_v37  ;;  %v3308_v37 = vshrl.u32 %v5253_v56, 16  ;;  %v5605_v56 = vld [vmem:[%s5686_s23 + $0x1c] sm:$0xf] }
 0x153   : > { %v3300_v22 = vor.u32 %v3299_v44, %v3295_v31 }
 0x154   : > { %v1730_v23 = vpop.f32.mrf.mxu3  ;;  %v2308_v19 = vpack.c.b16 %v2292_v20, %v2291_v61  ;;  %v3986_v20 = vrot.slane %v5252_v35, 5 }
 0x155   : > { %2451 = vmatmul.bf16.gmra.mxu0 %v2307_v33  ;;  %v1792_v7 = vadd.f32 %v1730_v23, %v1477_v26  ;;  %v3289_v26 = vrot.slane %v3287_v9, 5  ;;  %v3301_v16 = vrot.slane %v3300_v22, 4 }
 0x157   : > { %v1417_v45 = vpop.f32.mrf.mxu2  ;;  %v6462_v36 = vadd.f32 %v2412_v13, %v1792_v7  ;;  %v5484_v13 = vld [vmem:[%s5686_s23 + $0xc0] sm:$0xff]  ;;  %v3290_v49 = vor.u32 %v3289_v26, %v3286_v54  ;;  %v6473_v7 = vld [vmem:[%s5686_s23 + $0x28] sm:$0xf] }
 0x158   : > { %v1478_v62 = vadd.f32 %v1417_v45, %v1037_v11  ;;  %v3305_v11 = vrot.slane %v3303_v53, 5 }
 0x159   : > { %v1039_v57 = vpop.f32.mrf.mxu1  ;;  %v3291_v55 = vrot.slane %v3290_v49, 4  ;;  %v3313_v49 = vrot.slane %v3311_v27, 5 }
 0x15a   : > { %v2414_v0 = vpop.f32.mrf.mxu0  ;;  %v1040_v23 = vadd.f32 %v1039_v57, %v6222_v32  ;;  %v3317_v32 = vshll.u32 %v6473_v7, 16  ;;  %v3321_v57 = vshrl.u32 %v6473_v7, 16 }
 0x15b   : > { %1078 = vmatmul.bf16.gmra.mxu1 %v5444_v21  ;;  %v3296_v44 = vsel %vm5701_vm2, %v3291_v55, %v3295_v31  ;;  %v5509_v31 = vld [vmem:[%s5686_s23 + $0x18] sm:$0xff] }
 0x15c   : > { %v1732_v33 = vpop.f32.mrf.mxu3  ;;  %1459 = vmatmul.bf16.gmra.mxu2 %v1311_v29  ;;  %v3983_v29 = vrot.slane %v6456_v18, 5  ;;  %v6486_v22 = vrot.slane %v3317_v32, 5  ;;  %v3323_v53 = vrot.slane %v3321_v57, 4 }
 0x15d   : > { %v1793_v42 = vadd.f32 %v1732_v33, %v1478_v62  ;;  %v5346_v62 = vld [vmem:[%s5686_s23 + $0x18] sm:$0xe] }
 0x15e   : > { %v5362_v33 = vrot.slane %v5346_v62, 9  ;;  %v3985_v61 = vrot.slane %v3983_v29, 4 }
 0x15f   : > { %v1420_v4 = vpop.f32.mrf.mxu2  ;;  %v6475_v45 = vadd.f32 %v2414_v0, %v1793_v42  ;;  %v3306_v0 = vsel %vm5701_vm2, %v3301_v16, %v3305_v11  ;;  %v3310_v42 = vrot.slane %v3308_v37, 4  ;;  %v5027_v16 = vld [vmem:[%s5686_s23 + $0x18] sm:$0xe]  ;;  %v3324_v37 = vor.u32 %v3323_v53, %v6486_v22 }
 0x160   : > { %v1479_v8 = vadd.f32 %v1420_v4, %v1040_v23  ;;  %v3984_v11 = vsel %vm6001_vm5, %v5362_v33, %v3983_v29  ;;  %v3987_v62 = vsel %vm6001_vm5, %v3985_v61, %v3986_v20  ;;  %v5043_v57 = vrot.slane %v5027_v16, 9  ;;  %v5256_v16 = vld [vmem:[%s5686_s23 + $0x30] sm:$0xf] }
 0x161   : > { %1774 = vmatmul.bf16.gmra.mxu3 %v5484_v13  ;;  %v1041_v9 = vpop.f32.mrf.mxu1  ;;  %v4110_v29 = vunpack.c.l.b16 %v3984_v11  ;;  %v4111_v33 = vunpack.c.l.b16 %v3987_v62  ;;  %v6515_v11 = vld [vmem:[%s5686_s23 + $0x34] sm:$0xf] }
 0x162   : > { %v2417_v21 = vpop.f32.mrf.mxu0  ;;  %v1042_v18 = vadd.f32 %v1041_v9, %v6240_v3  ;;  %v3684_v3 = vunpack.c.l.b16 %v3296_v44  ;;  %v3685_v9 = vunpack.c.l.b16 %v3306_v0 }
 0x164   : > { %v1735_v54 = vpop.f32.mrf.mxu3 }
 0x165   : > { %2456 = vmatmul.bf16.gmra.mxu0 %v2308_v19  ;;  %v1794_v26 = vadd.f32 %v1735_v54, %v1479_v8  ;;  %v2567_v19 = vrot.slane %v5605_v56, 5  ;;  %v6493_v8 = vld [vmem:[%s5686_s23 + $0x2c] sm:$0x1]  ;;  %v5347_v56 = vld [vmem:[%s5686_s23 + $0x24] sm:$0xe] }
 0x166   : > { %v3327_v27 = vshll.u32 %v6493_v8, 16 }
 0x167   : > { %v1422_v13 = vpop.f32.mrf.mxu2  ;;  %v6488_v23 = vadd.f32 %v2417_v21, %v1794_v26  ;;  %v3314_v21 = vor.u32 %v3313_v49, %v3310_v42  ;;  %v2569_v54 = vrot.slane %v2567_v19, 4  ;;  %v5606_v26 = vld [vmem:[%s5686_s23 + $0x20] sm:$0x1]  ;;  %v3325_v42 = vrot.slane %v3324_v37, 4 }
 0x168   : > { %v1480_v4 = vadd.f32 %v1422_v13, %v1042_v18  ;;  %v2570_v44 = vrot.slane %v5606_v26, 5  ;;  %v3716_v18 = vpack.c.b16 %v3685_v9, %v3684_v3  ;;  %v3329_v13 = vrot.slane %v3327_v27, 5 }
 0x169   : > { %v1044_v55 = vpop.f32.mrf.mxu1  ;;  %v3315_v20 = vrot.slane %v3314_v21, 4  ;;  %v2568_v53 = vsel %vm6001_vm5, %v5043_v57, %v2567_v19  ;;  %v4142_v3 = vpack.c.b16 %v4111_v33, %v4110_v29  ;;  %v5363_v37 = vrot.slane %v5347_v56, 9 }
 0x16a   : > { %v2419_v35 = vpop.f32.mrf.mxu0  ;;  %v1045_v61 = vadd.f32 %v1044_v55, %v6119_v17  ;;  %v2689_v62 = vunpack.c.l.b16 %v2568_v53  ;;  %v3332_v57 = vshrl.u32 %v5256_v16, 16  ;;  %v3993_v26 = vrot.slane %v6493_v8, 5  ;;  %v5028_v53 = vld [vmem:[%s5686_s23 + $0x24] sm:$0xe] }
 0x16b   : > { %2807 = vmatmul.bf16.vlgmr.msra.gmra.mxu1 %v6450_v46  ;;  %v3320_v19 = vsel %vm5701_vm2, %v3315_v20, %v6486_v22 }
 0x16c   : > { %v1737_v32 = vpop.f32.mrf.mxu3  ;;  %3122 = vmatmul.bf16.vlgmr.msra.gmra.mxu2 %v5509_v31  ;;  %v2571_v31 = vsel %vm6001_vm5, %v2569_v54, %v2570_v44  ;;  %v3341_v44 = vshll.u32 %v6515_v11, 16  ;;  %v3686_v33 = vunpack.c.l.b16 %v3320_v19  ;;  %v3334_v8 = vrot.slane %v3332_v57, 4 }
 0x16d   : > { %v1795_v0 = vadd.f32 %v1737_v32, %v1480_v4  ;;  %v3990_v4 = vrot.slane %v6473_v7, 5  ;;  %v2690_v21 = vunpack.c.l.b16 %v2571_v31  ;;  %v3330_v7 = vsel %vm5701_vm2, %v3325_v42, %v3329_v13  ;;  %v5510_v13 = vld [vmem:[%s5686_s23 + $0x24] sm:$0xff] }
 0x16f   : > { %v1425_v46 = vpop.f32.mrf.mxu2  ;;  %v6512_v17 = vadd.f32 %v2419_v35, %v1795_v0  ;;  %v3992_v32 = vrot.slane %v3990_v4, 4  ;;  %v3335_v35 = vshll.u32 %v5256_v16, 16  ;;  %v3345_v0 = vshrl.u32 %v6515_v11, 16 }
 0x170   : > { %v1481_v49 = vadd.f32 %v1425_v46, %v1045_v61  ;;  %v2720_v29 = vpack.c.b16 %v2690_v21, %v2689_v62  ;;  %v5607_v61 = vld [vmem:[%s5686_s23 + $0x28] sm:$0xf]  ;;  %v5044_v21 = vrot.slane %v5028_v53, 9 }
 0x171   : > { %3804 = vmatmul.bf16.vlgmr.msra.gmra.mxu3 %v3716_v18  ;;  %v1046_v9 = vpop.f32.mrf.mxu1  ;;  %v2574_v46 = vrot.slane %v5607_v61, 5  ;;  %v3337_v31 = vrot.slane %v3335_v35, 5  ;;  %v3347_v16 = vrot.slane %v3345_v0, 4  ;;  %v5259_v61 = vld [vmem:[%s5686_s23 + $0x3c] sm:$0xf] }
 0x172   : > { %v2422_v55 = vpop.f32.mrf.mxu0  ;;  %v1047_v22 = vadd.f32 %v1046_v9, %v6143_v39  ;;  %v3994_v39 = vsel %vm6001_vm5, %v3992_v32, %v3993_v26  ;;  %v6535_v9 = vrot.slane %v3341_v44, 5 }
 0x173   : > { %v2576_v19 = vrot.slane %v2574_v46, 4 }
 0x174   : > { %v1740_v27 = vpop.f32.mrf.mxu3  ;;  %v3348_v26 = vor.u32 %v3347_v16, %v6535_v9  ;;  %v5348_v16 = vld [vmem:[%s5686_s23 + $0x30] sm:$0xe] }
 0x175   : > { %4230 = vmatmul.bf16.vlgmr.msra.gmra.mxu0 %v4142_v3  ;;  %v1796_v54 = vadd.f32 %v1740_v27, %v1481_v49  ;;  %v3687_v49 = vunpack.c.l.b16 %v3330_v7  ;;  %v3991_v3 = vsel %vm6001_vm5, %v5363_v37, %v3990_v4  ;;  %v5608_v27 = vld [vmem:[%s5686_s23 + $0x2c] sm:$0x1]  ;;  %v4113_v4 = vunpack.c.l.b16 %v3994_v39 }
 0x176   : > { %v2577_v7 = vrot.slane %v5608_v27, 5  ;;  %v4112_v35 = vunpack.c.l.b16 %v3991_v3  ;;  %v3338_v37 = vor.u32 %v3337_v31, %v3334_v8 }
 0x177   : > { %v1427_v18 = vpop.f32.mrf.mxu2  ;;  %v6527_v20 = vadd.f32 %v2422_v55, %v1796_v54  ;;  %v6538_v55 = vld [vmem:[%s5686_s23 + $0x38] sm:$0x1]  ;;  %v3717_v32 = vpack.c.b16 %v3687_v49, %v3686_v33  ;;  %v3349_v49 = vrot.slane %v3348_v26, 4 }
 0x178   : > { %v1482_v42 = vadd.f32 %v1427_v18, %v1047_v22  ;;  %v3351_v44 = vshll.u32 %v6538_v55, 16  ;;  %v2575_v18 = vsel %vm6001_vm5, %v5044_v21, %v2574_v46  ;;  %v3339_v8 = vrot.slane %v3338_v37, 4 }
 0x179   : > { %v1049_v56 = vpop.f32.mrf.mxu1  ;;  %v2691_v46 = vunpack.c.l.b16 %v2575_v18  ;;  %v3356_v21 = vshrl.u32 %v5259_v61, 16  ;;  %v4000_v26 = vrot.slane %v6538_v55, 5 }
 0x17a   : > { %v2424_v62 = vpop.f32.mrf.mxu0  ;;  %v1050_v0 = vadd.f32 %v1049_v56, %v6163_v2  ;;  %v3353_v31 = vrot.slane %v3351_v44, 5  ;;  %v3997_v2 = vrot.slane %v6515_v11, 5 }
 0x17b   : > { %2812 = vmatmul.bf16.gmra.mxu1 %v2720_v29  ;;  %v2578_v29 = vsel %vm6001_vm5, %v2576_v19, %v2577_v7  ;;  %v3359_v19 = vshll.u32 %v5259_v61, 16  ;;  %v3358_v44 = vrot.slane %v3356_v21, 4 }
 0x17c   : > { %v1742_v57 = vpop.f32.mrf.mxu3  ;;  %3127 = vmatmul.bf16.gmra.mxu2 %v5510_v13  ;;  %v4143_v13 = vpack.c.b16 %v4113_v4, %v4112_v35  ;;  %v2692_v39 = vunpack.c.l.b16 %v2578_v29  ;;  %v3344_v35 = vsel %vm5701_vm2, %v3339_v8, %v6535_v9  ;;  %v5364_v4 = vrot.slane %v5348_v16, 9 }
 0x17d   : > { %v1797_v54 = vadd.f32 %v1742_v57, %v1482_v42  ;;  %v6550_v42 = vld [vmem:[%s5686_s23 + $0x40] sm:$0xf]  ;;  %v3999_v37 = vrot.slane %v3997_v2, 4 }
 0x17e   : > { %v3365_v27 = vshll.u32 %v6550_v42, 16  ;;  %v3369_v7 = vshrl.u32 %v6550_v42, 16 }
 0x17f   : > { %v1430_v22 = vpop.f32.mrf.mxu2  ;;  %v6553_v56 = vadd.f32 %v2424_v62, %v1797_v54  ;;  %v3354_v62 = vsel %vm5701_vm2, %v3349_v49, %v3353_v31  ;;  %v6572_v49 = vld [vmem:[%s5686_s23 + $0x44] sm:$0x1]  ;;  %v4001_v16 = vsel %vm6001_vm5, %v3999_v37, %v4000_v26 }
 0x180   : > { %v1483_v53 = vadd.f32 %v1430_v22, %v1050_v0  ;;  %v3361_v22 = vrot.slane %v3359_v19, 5  ;;  %v6565_v9 = vrot.slane %v3365_v27, 5  ;;  %v3371_v18 = vrot.slane %v3369_v7, 4 }
 0x181   : > { %3809 = vmatmul.bf16.gmra.mxu3 %v3717_v32  ;;  %v1051_v33 = vpop.f32.mrf.mxu1  ;;  %v2721_v32 = vpack.c.b16 %v2692_v39, %v2691_v46  ;;  %v3689_v31 = vunpack.c.l.b16 %v3354_v62  ;;  %v5029_v46 = vld [vmem:[%s5686_s23 + $0x30] sm:$0xe]  ;;  %v3998_v39 = vsel %vm6001_vm5, %v5364_v4, %v3997_v2  ;;  %v3375_v19 = vshll.u32 %v6572_v49, 16 }
 0x182   : > { %v2427_v3 = vpop.f32.mrf.mxu0  ;;  %v1052_v54 = vadd.f32 %v1051_v33, %v6178_v25  ;;  %v3688_v33 = vunpack.c.l.b16 %v3344_v35  ;;  %v3372_v21 = vor.u32 %v3371_v18, %v6565_v9  ;;  %v5045_v7 = vrot.slane %v5029_v46, 9  ;;  %v5610_v35 = vld [vmem:[%s5686_s23 + $0x38] sm:$0x1]  ;;  %v5262_v46 = vld [vmem:[%s5686_s23 + $0x48] sm:$0xf] }
 0x183   : > { %v4114_v2 = vunpack.c.l.b16 %v3998_v39  ;;  %v4115_v4 = vunpack.c.l.b16 %v4001_v16  ;;  %v6593_v39 = vld [vmem:[%s5686_s23 + $0x4c] sm:$0xf] }
 0x184   : > { %v1745_v57 = vpop.f32.mrf.mxu3 }
 0x185   : > { %4235 = vmatmul.bf16.gmra.mxu0 %v4143_v13  ;;  %v1798_v11 = vadd.f32 %v1745_v57, %v1483_v53  ;;  %v5511_v13 = vld [vmem:[%s5686_s23 + $0x30] sm:$0xff] }
 0x186   : > { %v5609_v53 = vld [vmem:[%s5686_s23 + $0x34] sm:$0xf] }
 0x187   : > { %v1432_v0 = vpop.f32.mrf.mxu2  ;;  %v6567_v29 = vadd.f32 %v2427_v3, %v1798_v11  ;;  %v2581_v8 = vrot.slane %v5609_v53, 5  ;;  %v3362_v3 = vor.u32 %v3361_v22, %v3358_v44  ;;  %v2584_v11 = vrot.slane %v5610_v35, 5  ;;  %v5349_v53 = vld [vmem:[%s5686_s23 + $0x3c] sm:$0xe] }
 0x188   : > { %v1484_v61 = vadd.f32 %v1432_v0, %v1052_v54  ;;  %v3718_v54 = vpack.c.b16 %v3689_v31, %v3688_v33  ;;  %v3373_v44 = vrot.slane %v3372_v21, 4  ;;  %v3377_v0 = vrot.slane %v3375_v19, 5 }
 0x189   : > { %v1054_v25 = vpop.f32.mrf.mxu1  ;;  %v2583_v57 = vrot.slane %v2581_v8, 4  ;;  %v3363_v26 = vrot.slane %v3362_v3, 4  ;;  %v2582_v18 = vsel %vm6001_vm5, %v5045_v7, %v2581_v8  ;;  %v4144_v33 = vpack.c.b16 %v4115_v4, %v4114_v2 }
 0x18a   : > { %v2429_v55 = vpop.f32.mrf.mxu0  ;;  %v1055_v37 = vadd.f32 %v1054_v25, %v6193_v58  ;;  %v2693_v16 = vunpack.c.l.b16 %v2582_v18  ;;  %v5365_v21 = vrot.slane %v5349_v53, 9  ;;  %v3380_v7 = vshrl.u32 %v5262_v46, 16  ;;  %v5030_v18 = vld [vmem:[%s5686_s23 + $0x3c] sm:$0xe] }
 0x18b   : > { %2817 = vmatmul.bf16.gmra.mxu1 %v2721_v32  ;;  %v3368_v8 = vsel %vm5701_vm2, %v3363_v26, %v6565_v9  ;;  %v4007_v35 = vrot.slane %v6572_v49, 5 }
 0x18c   : > { %v1747_v27 = vpop.f32.mrf.mxu3  ;;  %3132 = vmatmul.bf16.gmra.mxu2 %v5511_v13  ;;  %v2585_v13 = vsel %vm6001_vm5, %v2583_v57, %v2584_v11  ;;  %v3389_v11 = vshll.u32 %v6593_v39, 16  ;;  %v3690_v4 = vunpack.c.l.b16 %v3368_v8  ;;  %v3382_v49 = vrot.slane %v3380_v7, 4 }
 0x18d   : > { %v1799_v62 = vadd.f32 %v1747_v27, %v1484_v61  ;;  %v4004_v61 = vrot.slane %v6550_v42, 5  ;;  %v2694_v3 = vunpack.c.l.b16 %v2585_v13  ;;  %v3378_v42 = vsel %vm5701_vm2, %v3373_v44, %v3377_v0  ;;  %v5512_v0 = vld [vmem:[%s5686_s23 + $0x3c] sm:$0xff] }
 0x18f   : > { %v1435_v32 = vpop.f32.mrf.mxu2  ;;  %v6590_v58 = vadd.f32 %v2429_v55, %v1799_v62  ;;  %v4006_v27 = vrot.slane %v4004_v61, 4  ;;  %v3383_v55 = vshll.u32 %v5262_v46, 16  ;;  %v3393_v62 = vshrl.u32 %v6593_v39, 16 }
 0x190   : > { %v1485_v22 = vadd.f32 %v1435_v32, %v1055_v37  ;;  %v2722_v2 = vpack.c.b16 %v2694_v3, %v2693_v16  ;;  %v5611_v37 = vld [vmem:[%s5686_s23 + $0x40] sm:$0xf]  ;;  %v5046_v3 = vrot.slane %v5030_v18, 9 }
 0x191   : > { %3814 = vmatmul.bf16.gmra.mxu3 %v3718_v54  ;;  %v1056_v31 = vpop.f32.mrf.mxu1  ;;  %v2588_v32 = vrot.slane %v5611_v37, 5  ;;  %v3385_v13 = vrot.slane %v3383_v55, 5  ;;  %v3395_v46 = vrot.slane %v3393_v62, 4  ;;  %v5265_v37 = vld [vmem:[%s5686_s23 + $0x54] sm:$0xf] }
 0x192   : > { %v2432_v25 = vpop.f32.mrf.mxu0  ;;  %v1057_v9 = vadd.f32 %v1056_v31, %v6216_v51  ;;  %v4008_v51 = vsel %vm6001_vm5, %v4006_v27, %v4007_v35  ;;  %v6613_v31 = vrot.slane %v3389_v11, 5 }
 0x193   : > { %v2590_v8 = vrot.slane %v2588_v32, 4 }
 0x194   : > { %v1750_v19 = vpop.f32.mrf.mxu3  ;;  %v3396_v35 = vor.u32 %v3395_v46, %v6613_v31  ;;  %v5350_v46 = vld [vmem:[%s5686_s23 + $0x48] sm:$0xe] }
 0x195   : > { %4240 = vmatmul.bf16.gmra.mxu0 %v4144_v33  ;;  %v1800_v57 = vadd.f32 %v1750_v19, %v1485_v22  ;;  %v3691_v22 = vunpack.c.l.b16 %v3378_v42  ;;  %v4005_v33 = vsel %vm6001_vm5, %v5365_v21, %v4004_v61  ;;  %v5612_v19 = vld [vmem:[%s5686_s23 + $0x44] sm:$0x1]  ;;  %v4117_v61 = vunpack.c.l.b16 %v4008_v51 }
 0x196   : > { %v2591_v42 = vrot.slane %v5612_v19, 5  ;;  %v4116_v55 = vunpack.c.l.b16 %v4005_v33  ;;  %v3386_v21 = vor.u32 %v3385_v13, %v3382_v49 }
 0x197   : > { %v1437_v54 = vpop.f32.mrf.mxu2  ;;  %v6605_v26 = vadd.f32 %v2432_v25, %v1800_v57  ;;  %v6616_v25 = vld [vmem:[%s5686_s23 + $0x50] sm:$0x1]  ;;  %v3719_v27 = vpack.c.b16 %v3691_v22, %v3690_v4  ;;  %v3397_v22 = vrot.slane %v3396_v35, 4 }
 0x198   : > { %v1486_v44 = vadd.f32 %v1437_v54, %v1057_v9  ;;  %v3399_v11 = vshll.u32 %v6616_v25, 16  ;;  %v2589_v54 = vsel %vm6001_vm5, %v5046_v3, %v2588_v32  ;;  %v3387_v49 = vrot.slane %v3386_v21, 4 }
 0x199   : > { %v1059_v53 = vpop.f32.mrf.mxu1  ;;  %v2695_v32 = vunpack.c.l.b16 %v2589_v54  ;;  %v3404_v3 = vshrl.u32 %v5265_v37, 16  ;;  %v4014_v35 = vrot.slane %v6616_v25, 5 }
 0x19a   : > { %v2434_v16 = vpop.f32.mrf.mxu0  ;;  %v1060_v62 = vadd.f32 %v1059_v53, %v6237_v14  ;;  %v3401_v13 = vrot.slane %v3399_v11, 5  ;;  %v4011_v14 = vrot.slane %v6593_v39, 5 }
 0x19b   : > { %2822 = vmatmul.bf16.gmra.mxu1 %v2722_v2  ;;  %v2592_v2 = vsel %vm6001_vm5, %v2590_v8, %v2591_v42  ;;  %v3407_v8 = vshll.u32 %v5265_v37, 16  ;;  %v3406_v11 = vrot.slane %v3404_v3, 4 }
 0x19c   : > { %v1752_v7 = vpop.f32.mrf.mxu3  ;;  %3137 = vmatmul.bf16.gmra.mxu2 %v5512_v0  ;;  %v4145_v0 = vpack.c.b16 %v4117_v61, %v4116_v55  ;;  %v2696_v51 = vunpack.c.l.b16 %v2592_v2  ;;  %v3392_v55 = vsel %vm5701_vm2, %v3387_v49, %v6613_v31  ;;  %v5366_v61 = vrot.slane %v5350_v46, 9 }
 0x19d   : > { %v1801_v57 = vadd.f32 %v1752_v7, %v1486_v44  ;;  %v6628_v44 = vld [vmem:[%s5686_s23 + $0x58] sm:$0xf]  ;;  %v4013_v21 = vrot.slane %v4011_v14, 4 }
 0x19e   : > { %v3413_v19 = vshll.u32 %v6628_v44, 16  ;;  %v3417_v42 = vshrl.u32 %v6628_v44, 16 }
 0x19f   : > { %v1440_v9 = vpop.f32.mrf.mxu2  ;;  %v6631_v53 = vadd.f32 %v2434_v16, %v1801_v57  ;;  %v3402_v16 = vsel %vm5701_vm2, %v3397_v22, %v3401_v13  ;;  %v6650_v22 = vld [vmem:[%s5686_s23 + $0x5c] sm:$0x1]  ;;  %v4015_v46 = vsel %vm6001_vm5, %v4013_v21, %v4014_v35 }
 0x1a0   : > { %v1487_v18 = vadd.f32 %v1440_v9, %v1060_v62  ;;  %v3409_v9 = vrot.slane %v3407_v8, 5  ;;  %v6643_v31 = vrot.slane %v3413_v19, 5  ;;  %v3419_v54 = vrot.slane %v3417_v42, 4 }
 0x1a1   : > { %3819 = vmatmul.bf16.gmra.mxu3 %v3719_v27  ;;  %v1061_v4 = vpop.f32.mrf.mxu1  ;;  %v2723_v27 = vpack.c.b16 %v2696_v51, %v2695_v32  ;;  %v3693_v13 = vunpack.c.l.b16 %v3402_v16  ;;  %v5031_v32 = vld [vmem:[%s5686_s23 + $0x48] sm:$0xe]  ;;  %v4012_v51 = vsel %vm6001_vm5, %v5366_v61, %v4011_v14  ;;  %v3423_v8 = vshll.u32 %v6650_v22, 16 }
 0x1a2   : > { %v2437_v33 = vpop.f32.mrf.mxu0  ;;  %v1062_v57 = vadd.f32 %v1061_v4, %v6252_v38  ;;  %v3692_v4 = vunpack.c.l.b16 %v3392_v55  ;;  %v3420_v3 = vor.u32 %v3419_v54, %v6643_v31  ;;  %v5047_v42 = vrot.slane %v5031_v32, 9  ;;  %v5614_v55 = vld [vmem:[%s5686_s23 + $0x50] sm:$0x1]  ;;  %v5268_v32 = vld [vmem:[%s5686_s23 + $0x60] sm:$0xf] }
 0x1a3   : > { %v4118_v14 = vunpack.c.l.b16 %v4012_v51  ;;  %v4119_v61 = vunpack.c.l.b16 %v4015_v46  ;;  %v6671_v51 = vld [vmem:[%s5686_s23 + $0x64] sm:$0xf] }
 0x1a4   : > { %v1755_v7 = vpop.f32.mrf.mxu3 }
 0x1a5   : > { %4245 = vmatmul.bf16.gmra.mxu0 %v4145_v0  ;;  %v1802_v39 = vadd.f32 %v1755_v7, %v1487_v18  ;;  %v5513_v0 = vld [vmem:[%s5686_s23 + $0x48] sm:$0xff] }
 0x1a6   : > { %v5613_v18 = vld [vmem:[%s5686_s23 + $0x4c] sm:$0xf] }
 0x1a7   : > { %v1442_v62 = vpop.f32.mrf.mxu2  ;;  %v6645_v2 = vadd.f32 %v2437_v33, %v1802_v39  ;;  %v2595_v49 = vrot.slane %v5613_v18, 5  ;;  %v3410_v33 = vor.u32 %v3409_v9, %v3406_v11  ;;  %v2598_v39 = vrot.slane %v5614_v55, 5  ;;  %v5351_v18 = vld [vmem:[%s5686_s23 + $0x54] sm:$0xe] }
 0x1a8   : > { %v1488_v37 = vadd.f32 %v1442_v62, %v1062_v57  ;;  %v3720_v57 = vpack.c.b16 %v3693_v13, %v3692_v4  ;;  %v3421_v11 = vrot.slane %v3420_v3, 4  ;;  %v3425_v62 = vrot.slane %v3423_v8, 5 }
 0x1a9   : > { %v1064_v38 = vpop.f32.mrf.mxu1  ;;  %v2597_v7 = vrot.slane %v2595_v49, 4  ;;  %v3411_v35 = vrot.slane %v3410_v33, 4  ;;  %v2596_v54 = vsel %vm6001_vm5, %v5047_v42, %v2595_v49  ;;  %v4146_v4 = vpack.c.b16 %v4119_v61, %v4118_v14 }
 0x1aa   : > { %v2439_v25 = vpop.f32.mrf.mxu0  ;;  %v1065_v21 = vadd.f32 %v1064_v38, %v6122_v50  ;;  %v2697_v46 = vunpack.c.l.b16 %v2596_v54  ;;  %v5367_v3 = vrot.slane %v5351_v18, 9  ;;  %v3428_v42 = vshrl.u32 %v5268_v32, 16  ;;  %v5032_v54 = vld [vmem:[%s5686_s23 + $0x54] sm:$0xe] }
 0x1ab   : > { %2827 = vmatmul.bf16.gmra.mxu1 %v2723_v27  ;;  %v3416_v49 = vsel %vm5701_vm2, %v3411_v35, %v6643_v31  ;;  %v4021_v55 = vrot.slane %v6650_v22, 5 }
 0x1ac   : > { %v1757_v19 = vpop.f32.mrf.mxu3  ;;  %3142 = vmatmul.bf16.gmra.mxu2 %v5513_v0  ;;  %v2599_v0 = vsel %vm6001_vm5, %v2597_v7, %v2598_v39  ;;  %v3437_v39 = vshll.u32 %v6671_v51, 16  ;;  %v3694_v61 = vunpack.c.l.b16 %v3416_v49  ;;  %v3430_v22 = vrot.slane %v3428_v42, 4 }
 0x1ad   : > { %v1803_v16 = vadd.f32 %v1757_v19, %v1488_v37  ;;  %v4018_v37 = vrot.slane %v6628_v44, 5  ;;  %v2698_v33 = vunpack.c.l.b16 %v2599_v0  ;;  %v3426_v44 = vsel %vm5701_vm2, %v3421_v11, %v3425_v62  ;;  %v5514_v62 = vld [vmem:[%s5686_s23 + $0x54] sm:$0xff] }
 0x1af   : > { %v1445_v27 = vpop.f32.mrf.mxu2  ;;  %v6668_v50 = vadd.f32 %v2439_v25, %v1803_v16  ;;  %v4020_v19 = vrot.slane %v4018_v37, 4  ;;  %v3431_v25 = vshll.u32 %v5268_v32, 16  ;;  %v3441_v16 = vshrl.u32 %v6671_v51, 16 }
 0x1b0   : > { %v1489_v9 = vadd.f32 %v1445_v27, %v1065_v21  ;;  %v2724_v14 = vpack.c.b16 %v2698_v33, %v2697_v46  ;;  %v5615_v21 = vld [vmem:[%s5686_s23 + $0x58] sm:$0xf]  ;;  %v5048_v33 = vrot.slane %v5032_v54, 9 }
 0x1b1   : > { %3824 = vmatmul.bf16.gmra.mxu3 %v3720_v57  ;;  %v1066_v13 = vpop.f32.mrf.mxu1  ;;  %v2602_v27 = vrot.slane %v5615_v21, 5  ;;  %v3433_v0 = vrot.slane %v3431_v25, 5  ;;  %v3443_v32 = vrot.slane %v3441_v16, 4  ;;  %v5271_v21 = vld [vmem:[%s5686_s23 + $0x6c] sm:$0xf] }
 0x1b2   : > { %v2442_v38 = vpop.f32.mrf.mxu0  ;;  %v1067_v31 = vadd.f32 %v1066_v13, %v6145_v40  ;;  %v4022_v40 = vsel %vm6001_vm5, %v4020_v19, %v4021_v55  ;;  %v6691_v13 = vrot.slane %v3437_v39, 5 }
 0x1b3   : > { %v2604_v49 = vrot.slane %v2602_v27, 4 }
 0x1b4   : > { %v1760_v8 = vpop.f32.mrf.mxu3  ;;  %v3444_v55 = vor.u32 %v3443_v32, %v6691_v13  ;;  %v5352_v32 = vld [vmem:[%s5686_s23 + $0x60] sm:$0xe] }
 0x1b5   : > { %4250 = vmatmul.bf16.gmra.mxu0 %v4146_v4  ;;  %v1804_v7 = vadd.f32 %v1760_v8, %v1489_v9  ;;  %v3695_v9 = vunpack.c.l.b16 %v3426_v44  ;;  %v4019_v4 = vsel %vm6001_vm5, %v5367_v3, %v4018_v37  ;;  %v5616_v8 = vld [vmem:[%s5686_s23 + $0x5c] sm:$0x1]  ;;  %v4121_v37 = vunpack.c.l.b16 %v4022_v40 }
 0x1b6   : > { %v2605_v44 = vrot.slane %v5616_v8, 5  ;;  %v4120_v25 = vunpack.c.l.b16 %v4019_v4  ;;  %v3434_v3 = vor.u32 %v3433_v0, %v3430_v22 }
 0x1b7   : > { %v1447_v57 = vpop.f32.mrf.mxu2  ;;  %v6683_v35 = vadd.f32 %v2442_v38, %v1804_v7  ;;  %v6694_v38 = vld [vmem:[%s5686_s23 + $0x68] sm:$0x1]  ;;  %v3721_v19 = vpack.c.b16 %v3695_v9, %v3694_v61  ;;  %v3445_v9 = vrot.slane %v3444_v55, 4 }
 0x1b8   : > { %v1490_v11 = vadd.f32 %v1447_v57, %v1067_v31  ;;  %v3447_v39 = vshll.u32 %v6694_v38, 16  ;;  %v2603_v57 = vsel %vm6001_vm5, %v5048_v33, %v2602_v27  ;;  %v3435_v22 = vrot.slane %v3434_v3, 4 }
 0x1b9   : > { %v1069_v18 = vpop.f32.mrf.mxu1  ;;  %v2699_v27 = vunpack.c.l.b16 %v2603_v57  ;;  %v3452_v33 = vshrl.u32 %v5271_v21, 16  ;;  %v4028_v55 = vrot.slane %v6694_v38, 5 }
 0x1ba   : > { %v2444_v46 = vpop.f32.mrf.mxu0  ;;  %v1070_v16 = vadd.f32 %v1069_v18, %v6166_v6  ;;  %v3449_v0 = vrot.slane %v3447_v39, 5  ;;  %v4025_v6 = vrot.slane %v6671_v51, 5 }
 0x1bb   : > { %2832 = vmatmul.bf16.gmra.mxu1 %v2724_v14  ;;  %v2606_v14 = vsel %vm6001_vm5, %v2604_v49, %v2605_v44  ;;  %v3455_v49 = vshll.u32 %v5271_v21, 16  ;;  %v3454_v39 = vrot.slane %v3452_v33, 4 }
 0x1bc   : > { %v1762_v42 = vpop.f32.mrf.mxu3  ;;  %3147 = vmatmul.bf16.gmra.mxu2 %v5514_v62  ;;  %v4147_v62 = vpack.c.b16 %v4121_v37, %v4120_v25  ;;  %v2700_v40 = vunpack.c.l.b16 %v2606_v14  ;;  %v3440_v25 = vsel %vm5701_vm2, %v3435_v22, %v6691_v13  ;;  %v5368_v37 = vrot.slane %v5352_v32, 9 }
 0x1bd   : > { %v1805_v7 = vadd.f32 %v1762_v42, %v1490_v11  ;;  %v6706_v11 = vld [vmem:[%s5686_s23 + $0x70] sm:$0xf]  ;;  %v4027_v3 = vrot.slane %v4025_v6, 4 }
 0x1be   : > { %v3461_v8 = vshll.u32 %v6706_v11, 16  ;;  %v3465_v44 = vshrl.u32 %v6706_v11, 16 }
 0x1bf   : > { %v1450_v31 = vpop.f32.mrf.mxu2  ;;  %v6709_v18 = vadd.f32 %v2444_v46, %v1805_v7  ;;  %v3450_v46 = vsel %vm5701_vm2, %v3445_v9, %v3449_v0  ;;  %v6728_v9 = vld [vmem:[%s5686_s23 + $0x74] sm:$0x1]  ;;  %v4029_v32 = vsel %vm6001_vm5, %v4027_v3, %v4028_v55 }
 0x1c0   : > { %v1491_v54 = vadd.f32 %v1450_v31, %v1070_v16  ;;  %v3457_v31 = vrot.slane %v3455_v49, 5  ;;  %v6721_v13 = vrot.slane %v3461_v8, 5  ;;  %v3467_v57 = vrot.slane %v3465_v44, 4 }
 0x1c1   : > { %3829 = vmatmul.bf16.gmra.mxu3 %v3721_v19  ;;  %v1071_v61 = vpop.f32.mrf.mxu1  ;;  %v2725_v19 = vpack.c.b16 %v2700_v40, %v2699_v27  ;;  %v3697_v0 = vunpack.c.l.b16 %v3450_v46  ;;  %v5033_v27 = vld [vmem:[%s5686_s23 + $0x60] sm:$0xe]  ;;  %v4026_v40 = vsel %vm6001_vm5, %v5368_v37, %v4025_v6  ;;  %v3471_v49 = vshll.u32 %v6728_v9, 16 }
 0x1c2   : > { %v2447_v4 = vpop.f32.mrf.mxu0  ;;  %v1072_v7 = vadd.f32 %v1071_v61, %v6180_v28  ;;  %v3696_v61 = vunpack.c.l.b16 %v3440_v25  ;;  %v3468_v33 = vor.u32 %v3467_v57, %v6721_v13  ;;  %v5049_v44 = vrot.slane %v5033_v27, 9  ;;  %v5618_v25 = vld [vmem:[%s5686_s23 + $0x68] sm:$0x1]  ;;  %v5274_v27 = vld [vmem:[%s5686_s23 + $0x78] sm:$0xf] }
 0x1c3   : > { %v4122_v6 = vunpack.c.l.b16 %v4026_v40  ;;  %v4123_v37 = vunpack.c.l.b16 %v4029_v32  ;;  %v6749_v40 = vld [vmem:[%s5686_s23 + $0x7c] sm:$0xf] }
 0x1c4   : > { %v1765_v42 = vpop.f32.mrf.mxu3 }
 0x1c5   : > { %4255 = vmatmul.bf16.gmra.mxu0 %v4147_v62  ;;  %v1806_v51 = vadd.f32 %v1765_v42, %v1491_v54  ;;  %v5515_v62 = vld [vmem:[%s5686_s23 + $0x60] sm:$0xff] }
 0x1c6   : > { %v5617_v54 = vld [vmem:[%s5686_s23 + $0x64] sm:$0xf] }
 0x1c7   : > { %v1452_v16 = vpop.f32.mrf.mxu2  ;;  %v6723_v14 = vadd.f32 %v2447_v4, %v1806_v51  ;;  %v2609_v22 = vrot.slane %v5617_v54, 5  ;;  %v3458_v4 = vor.u32 %v3457_v31, %v3454_v39  ;;  %v2612_v51 = vrot.slane %v5618_v25, 5  ;;  %v5353_v54 = vld [vmem:[%s5686_s23 + $0x6c] sm:$0xe] }
 0x1c8   : > { %v1492_v21 = vadd.f32 %v1452_v16, %v1072_v7  ;;  %v3722_v7 = vpack.c.b16 %v3697_v0, %v3696_v61  ;;  %v3469_v39 = vrot.slane %v3468_v33, 4  ;;  %v3473_v16 = vrot.slane %v3471_v49, 5 }
 0x1c9   : > { %v1074_v28 = vpop.f32.mrf.mxu1  ;;  %v2611_v42 = vrot.slane %v2609_v22, 4  ;;  %v3459_v55 = vrot.slane %v3458_v4, 4  ;;  %v2610_v57 = vsel %vm6001_vm5, %v5049_v44, %v2609_v22  ;;  %v4148_v61 = vpack.c.b16 %v4123_v37, %v4122_v6 }
 0x1ca   : > { %v2449_v38 = vpop.f32.mrf.mxu0  ;;  %v1075_v3 = vadd.f32 %v1074_v28, %v6198_v63  ;;  %v2701_v32 = vunpack.c.l.b16 %v2610_v57  ;;  %v5369_v33 = vrot.slane %v5353_v54, 9  ;;  %v3476_v44 = vshrl.u32 %v5274_v27, 16  ;;  %v5034_v57 = vld [vmem:[%s5686_s23 + $0x6c] sm:$0xe] }
 0x1cb   : > { %2837 = vmatmul.bf16.gmra.mxu1 %v2725_v19  ;;  %v3464_v22 = vsel %vm5701_vm2, %v3459_v55, %v6721_v13  ;;  %v4035_v25 = vrot.slane %v6728_v9, 5 }
 0x1cc   : > { %v1767_v8 = vpop.f32.mrf.mxu3  ;;  %3152 = vmatmul.bf16.gmra.mxu2 %v5515_v62  ;;  %v2613_v62 = vsel %vm6001_vm5, %v2611_v42, %v2612_v51  ;;  %v3485_v51 = vshll.u32 %v6749_v40, 16  ;;  %v3698_v37 = vunpack.c.l.b16 %v3464_v22  ;;  %v3478_v9 = vrot.slane %v3476_v44, 4 }
 0x1cd   : > { %v1807_v46 = vadd.f32 %v1767_v8, %v1492_v21  ;;  %v4032_v21 = vrot.slane %v6706_v11, 5  ;;  %v2702_v4 = vunpack.c.l.b16 %v2613_v62  ;;  %v3474_v11 = vsel %vm5701_vm2, %v3469_v39, %v3473_v16  ;;  %v5516_v16 = vld [vmem:[%s5686_s23 + $0x6c] sm:$0xff] }
 0x1cf   : > { %v1455_v19 = vpop.f32.mrf.mxu2  ;;  %v6746_v63 = vadd.f32 %v2449_v38, %v1807_v46  ;;  %v4034_v8 = vrot.slane %v4032_v21, 4  ;;  %v3479_v38 = vshll.u32 %v5274_v27, 16  ;;  %v3489_v46 = vshrl.u32 %v6749_v40, 16 }
 0x1d0   : > { %v1493_v31 = vadd.f32 %v1455_v19, %v1075_v3  ;;  %v2726_v6 = vpack.c.b16 %v2702_v4, %v2701_v32  ;;  %v5619_v3 = vld [vmem:[%s5686_s23 + $0x70] sm:$0xf]  ;;  %v6770_v4 = vld [vmem:[%s5686_s23 + $0x80] sm:$0x1] }
 0x1d1   : > { %3834 = vmatmul.bf16.gmra.mxu3 %v3722_v7  ;;  %v1076_v0 = vpop.f32.mrf.mxu1  ;;  %v2616_v19 = vrot.slane %v5619_v3, 5  ;;  %v3481_v62 = vrot.slane %v3479_v38, 5  ;;  %v3491_v27 = vrot.slane %v3489_v46, 4  ;;  %v5277_v3 = vld [vmem:[%s5686_s23 + $0x84] sm:$0xf] }
 0x1d2   : > { %v2452_v28 = vpop.f32.mrf.mxu0  ;;  %v1077_v13 = vadd.f32 %v1076_v0, %v6229_v41  ;;  %v4036_v41 = vsel %vm6001_vm5, %v4034_v8, %v4035_v25  ;;  %v3487_v0 = vrot.slane %v3485_v51, 5  ;;  %v3495_v25 = vshll.u32 %v6770_v4, 16 }
 0x1d3   : > { %v2618_v22 = vrot.slane %v2616_v19, 4 }
 0x1d4   : > { %v1770_v49 = vpop.f32.mrf.mxu3  ;;  %v3492_v8 = vor.u32 %v3491_v27, %v3487_v0  ;;  %v5354_v27 = vld [vmem:[%s5686_s23 + $0x78] sm:$0xe] }
 0x1d5   : > { %4260 = vmatmul.bf16.gmra.mxu0 %v4148_v61  ;;  %v1808_v42 = vadd.f32 %v1770_v49, %v1493_v31  ;;  %v3699_v31 = vunpack.c.l.b16 %v3474_v11  ;;  %v4033_v61 = vsel %vm6001_vm5, %v5369_v33, %v4032_v21  ;;  %v5620_v49 = vld [vmem:[%s5686_s23 + $0x74] sm:$0x1]  ;;  %v3482_v21 = vor.u32 %v3481_v62, %v3478_v9  ;;  %v6781_v9 = vld [vmem:[%s5686_s23 + $0x88] sm:$0xf] }
 0x1d6   : > { %v2619_v11 = vrot.slane %v5620_v49, 5  ;;  %v4124_v38 = vunpack.c.l.b16 %v4033_v61  ;;  %v3509_v49 = vshll.u32 %v6781_v9, 16 }
 0x1d7   : > { %v1457_v7 = vpop.f32.mrf.mxu2  ;;  %v6761_v55 = vadd.f32 %v2452_v28, %v1808_v42  ;;  %v5050_v28 = vrot.slane %v5034_v57, 9  ;;  %v4125_v42 = vunpack.c.l.b16 %v4036_v41  ;;  %v3483_v61 = vrot.slane %v3482_v21, 4 }
 0x1d8   : > { %v1494_v39 = vadd.f32 %v1457_v7, %v1077_v13  ;;  %v3723_v13 = vpack.c.b16 %v3699_v31, %v3698_v37  ;;  %v3497_v31 = vrot.slane %v3495_v25, 5 }
 0x1d9   : > { %v1079_v54 = vpop.f32.mrf.mxu1  ;;  %v2617_v7 = vsel %vm6001_vm5, %v5050_v28, %v2616_v19  ;;  %v3500_v28 = vshrl.u32 %v5277_v3, 16 }
 0x1da   : > { %v2454_v32 = vpop.f32.mrf.mxu0  ;;  %v1080_v51 = vadd.f32 %v1079_v54, %v6249_v15  ;;  %v4039_v15 = vrot.slane %v6749_v40, 5  ;;  %v2703_v19 = vunpack.c.l.b16 %v2617_v7 }
 0x1db   : > { %2842 = vmatmul.bf16.gmra.mxu1 %v2726_v6  ;;  %v2620_v6 = vsel %vm6001_vm5, %v2618_v22, %v2619_v11  ;;  %v3503_v22 = vshll.u32 %v5277_v3, 16  ;;  %v3513_v11 = vshrl.u32 %v6781_v9, 16  ;;  %v3502_v25 = vrot.slane %v3500_v28, 4 }
 0x1dc   : > { %v1772_v44 = vpop.f32.mrf.mxu3  ;;  %3157 = vmatmul.bf16.gmra.mxu2 %v5516_v16  ;;  %v4149_v16 = vpack.c.b16 %v4125_v42, %v4124_v38  ;;  %v2704_v41 = vunpack.c.l.b16 %v2620_v6  ;;  %v3488_v38 = vsel %vm5701_vm2, %v3483_v61, %v3487_v0  ;;  %v5370_v42 = vrot.slane %v5354_v27, 9 }
 0x1dd   : > { %v1809_v33 = vadd.f32 %v1772_v44, %v1494_v39  ;;  %v3493_v39 = vrot.slane %v3492_v8, 4  ;;  %v4041_v21 = vrot.slane %v4039_v15, 4  ;;  %v4042_v8 = vrot.slane %v6770_v4, 5 }
 0x1de   : > { %v6795_v0 = vrot.slane %v3509_v49, 5  ;;  %v3515_v7 = vrot.slane %v3513_v11, 4 }
 0x1df   : > { %v1460_v46 = vpop.f32.mrf.mxu2  ;;  %v6784_v62 = vadd.f32 %v2454_v32, %v1809_v33  ;;  %v3498_v32 = vsel %vm5701_vm2, %v3493_v39, %v3497_v31  ;;  %v5035_v31 = vld [vmem:[%s5686_s23 + $0x78] sm:$0xe]  ;;  %v4043_v27 = vsel %vm6001_vm5, %v4041_v21, %v4042_v8 }
 0x1e0   : > { %v1495_v57 = vadd.f32 %v1460_v46, %v1080_v51  ;;  %v3505_v46 = vrot.slane %v3503_v22, 5  ;;  %v3516_v28 = vor.u32 %v3515_v7, %v6795_v0  ;;  %v5051_v49 = vrot.slane %v5035_v31, 9 }
 0x1e1   : > { %3839 = vmatmul.bf16.gmra.mxu3 %v3723_v13  ;;  %v1081_v37 = vpop.f32.mrf.mxu1  ;;  %v2727_v13 = vpack.c.b16 %v2704_v41, %v2703_v19  ;;  %v6803_v19 = vld [vmem:[%s5686_s23 + $0x8c] sm:$0x1]  ;;  %v4040_v41 = vsel %vm6001_vm5, %v5370_v42, %v4039_v15  ;;  %v4127_v42 = vunpack.c.l.b16 %v4043_v27 }
 0x1e2   : > { %v2457_v54 = vpop.f32.mrf.mxu0  ;;  %v1082_v33 = vadd.f32 %v1081_v37, %v6264_v1  ;;  %v3700_v1 = vunpack.c.l.b16 %v3488_v38  ;;  %v3701_v37 = vunpack.c.l.b16 %v3498_v32  ;;  %v4126_v15 = vunpack.c.l.b16 %v4040_v41  ;;  %v6823_v41 = vld [vmem:[%s5686_s23 + $0x94] sm:$0xf] }
 0x1e4   : > { %v1775_v44 = vpop.f32.mrf.mxu3 }
 0x1e5   : > { %4265 = vmatmul.bf16.gmra.mxu0 %v4149_v16  ;;  %v1810_v40 = vadd.f32 %v1775_v44, %v1495_v57  ;;  %v5517_v16 = vld [vmem:[%s5686_s23 + $0x78] sm:$0xff]  ;;  %v5622_v44 = vld [vmem:[%s5686_s23 + $0x80] sm:$0x1] }
 0x1e6   : > { %v5621_v57 = vld [vmem:[%s5686_s23 + $0x7c] sm:$0xf]  ;;  %v2626_v38 = vrot.slane %v5622_v44, 5 }
 0x1e7   : > { %v1462_v51 = vpop.f32.mrf.mxu2  ;;  %v6797_v6 = vadd.f32 %v2457_v54, %v1810_v40  ;;  %v2623_v61 = vrot.slane %v5621_v57, 5  ;;  %v3506_v54 = vor.u32 %v3505_v46, %v3502_v25  ;;  %v3519_v40 = vshll.u32 %v6803_v19, 16 }
 0x1e8   : > { %v1496_v3 = vadd.f32 %v1462_v51, %v1082_v33  ;;  %v3724_v33 = vpack.c.b16 %v3701_v37, %v3700_v1  ;;  %v3517_v25 = vrot.slane %v3516_v28, 4  ;;  %v5280_v51 = vld [vmem:[%s5686_s23 + $0x90] sm:$0xf]  ;;  %v4150_v57 = vpack.c.b16 %v4127_v42, %v4126_v15 }
 0x1e9   : > { %v2808_v39 = vpop.f32.mrf.mxu1  ;;  %v2625_v11 = vrot.slane %v2623_v61, 4  ;;  %v3507_v8 = vrot.slane %v3506_v54, 4  ;;  %v2624_v46 = vsel %vm6001_vm5, %v5051_v49, %v2623_v61  ;;  %v3524_v27 = vshrl.u32 %v5280_v51, 16 }
 0x1ea   : > { %v2459_v4 = vpop.f32.mrf.mxu0  ;;  %v2888_v21 = vadd.f32 %v2808_v39, %v6290_v59  ;;  %v5355_v59 = vld [vmem:[%s5686_s23 + $0x84] sm:$0xe]  ;;  %v3527_v54 = vshll.u32 %v5280_v51, 16  ;;  %v2705_v61 = vunpack.c.l.b16 %v2624_v46 }
 0x1eb   : > { %2847 = vmatmul.bf16.gmra.mxu1 %v2727_v13  ;;  %v2627_v7 = vsel %vm6001_vm5, %v2625_v11, %v2626_v38  ;;  %v5371_v11 = vrot.slane %v5355_v59, 9  ;;  %v4049_v38 = vrot.slane %v6803_v19, 5 }
 0x1ec   : > { %v1777_v22 = vpop.f32.mrf.mxu3  ;;  %3162 = vmatmul.bf16.gmra.mxu2 %v5517_v16  ;;  %v3521_v16 = vrot.slane %v3519_v40, 5  ;;  %v2706_v28 = vunpack.c.l.b16 %v2627_v7  ;;  %v3533_v40 = vshll.u32 %v6823_v41, 16 }
 0x1ed   : > { %v1811_v32 = vadd.f32 %v1777_v22, %v1496_v3  ;;  %v4046_v3 = vrot.slane %v6781_v9, 5  ;;  %v3512_v9 = vsel %vm5701_vm2, %v3507_v8, %v6795_v0  ;;  %v3526_v0 = vrot.slane %v3524_v27, 4  ;;  %v5623_v8 = vld [vmem:[%s5686_s23 + $0x88] sm:$0xf] }
 0x1ee   : > { %v3522_v49 = vsel %vm5701_vm2, %v3517_v25, %v3521_v16  ;;  %v2630_v19 = vrot.slane %v5623_v8, 5  ;;  %v5518_v25 = vld [vmem:[%s5686_s23 + $0x84] sm:$0xff]  ;;  %v3702_v51 = vunpack.c.l.b16 %v3512_v9  ;;  %v5282_v9 = vld [vmem:[%s5686_s23 + $0x98] sm:$0x1]  ;;  %v5356_v8 = vld [vmem:[%s5686_s23 + $0x90] sm:$0xe] }
 0x1ef   : > { %v3123_v13 = vpop.f32.mrf.mxu2  ;;  %v6820_v39 = vadd.f32 %v2459_v4, %v1811_v32  ;;  %v4048_v4 = vrot.slane %v4046_v3, 4  ;;  %v3537_v32 = vshrl.u32 %v6823_v41, 16  ;;  %v3703_v46 = vunpack.c.l.b16 %v3522_v49  ;;  %v5036_v16 = vld [vmem:[%s5686_s23 + $0x84] sm:$0xe] }
 0x1f0   : > { %v3203_v1 = vadd.f32 %v3123_v13, %v2888_v21  ;;  %v2728_v13 = vpack.c.b16 %v2706_v28, %v2705_v61  ;;  %v4047_v7 = vsel %vm6001_vm5, %v5371_v11, %v4046_v3  ;;  %v2632_v61 = vrot.slane %v2630_v19, 4  ;;  %v5624_v28 = vld [vmem:[%s5686_s23 + $0x8c] sm:$0x1] }
 0x1f1   : > { %3844 = vmatmul.bf16.gmra.mxu3 %v3724_v33  ;;  %v2810_v37 = vpop.f32.mrf.mxu1  ;;  %v3529_v33 = vrot.slane %v3527_v54, 5  ;;  %v4050_v59 = vsel %vm6001_vm5, %v4048_v4, %v4049_v38  ;;  %v5052_v54 = vrot.slane %v5036_v16, 9  ;;  %v4128_v3 = vunpack.c.l.b16 %v4047_v7 }
 0x1f2   : > { %v4231_v31 = vpop.f32.mrf.mxu0  ;;  %v2889_v42 = vadd.f32 %v2810_v37, %v6301_v5  ;;  %v3535_v5 = vrot.slane %v3533_v40, 5  ;;  %v3539_v37 = vrot.slane %v3537_v32, 4  ;;  %v4129_v11 = vunpack.c.l.b16 %v4050_v59 }
 0x1f3   : > { %v3530_v27 = vor.u32 %v3529_v33, %v3526_v0  ;;  %v3543_v40 = vshll.u32 %v5282_v9, 16  ;;  %v4053_v16 = vrot.slane %v6823_v41, 5 }
 0x1f4   : > { %v3805_v22 = vpop.f32.mrf.mxu3  ;;  %v3540_v4 = vor.u32 %v3539_v37, %v3535_v5  ;;  %v4151_v7 = vpack.c.b16 %v4129_v11, %v4128_v3  ;;  %v6860_v37 = vld [vmem:[%s5686_s23 + $0xa0] sm:$0xf]  ;;  %v4056_v11 = vrot.slane %v5282_v9, 5 }
 0x1f5   : > { %4270 = vmatmul.bf16.gmra.mxu0 %v4150_v57  ;;  %v3885_v44 = vadd.f32 %v3805_v22, %v3203_v1  ;;  %v2633_v22 = vrot.slane %v5624_v28, 5  ;;  %v3531_v38 = vrot.slane %v3530_v27, 4 }
 0x1f7   : > { %v4311_v15 = vadd.f32 %v4231_v31, %v3885_v44  ;;  %v3125_v21 = vpop.f32.mrf.mxu2 }
 0x1f8   : > { %v3204_v57 = vadd.f32 %v3125_v21, %v2889_v42  ;;  %v3725_v42 = vpack.c.b16 %v3703_v46, %v3702_v51  ;;  %v2631_v21 = vsel %vm6001_vm5, %v5052_v54, %v2630_v19  ;;  %v5283_v51 = vld [vmem:[%s5686_s23 + $0x9c] sm:$0xf]  ;;  %v3545_v54 = vrot.slane %v3543_v40, 5 }
 0x1f9   : > { %4343 = vst [vmem:[%s6837_s20] sm:$0xff] %v4311_v15  ;;  %v2813_v1 = vpop.f32.mrf.mxu1  ;;  %v2707_v19 = vunpack.c.l.b16 %v2631_v21  ;;  %v3548_v41 = vshrl.u32 %v5283_v51, 16 }
 0x1fa   : > { %v4233_v31 = vpop.f32.mrf.mxu0  ;;  %v2890_v0 = vadd.f32 %v2813_v1, %v6311_v48  ;;  %v3541_v1 = vrot.slane %v3540_v4, 4 }
 0x1fb   : > { %2852 = vmatmul.bf16.gmra.mxu1 %v2728_v13  ;;  %v2634_v13 = vsel %vm6001_vm5, %v2632_v61, %v2633_v22  ;;  %v5372_v61 = vrot.slane %v5356_v8, 9  ;;  %v3536_v22 = vsel %vm5701_vm2, %v3531_v38, %v3535_v5  ;;  %v3550_v21 = vrot.slane %v3548_v41, 4  ;;  %v5519_v8 = vld [vmem:[%s5686_s23 + $0x90] sm:$0xff] }
 0x1fc   : > { %v3807_v49 = vpop.f32.mrf.mxu3  ;;  %3167 = vmatmul.bf16.gmra.mxu2 %v5518_v25  ;;  %v4413_v25 = vmul.f32 %v4311_v15, %v4311_v15  ;;  %v2708_v27 = vunpack.c.l.b16 %v2634_v13 }
 0x1fd   : > { %v3886_v44 = vadd.f32 %v3807_v49, %v3204_v57  ;;  %v3551_v49 = vshll.u32 %v5283_v51, 16  ;;  %v4054_v5 = vsel %vm6001_vm5, %v5372_v61, %v4053_v16 }
 0x1fe   : > { %v2729_v40 = vpack.c.b16 %v2708_v27, %v2707_v19 }
 0x1ff   : > { %v4312_v32 = vadd.f32 %v4233_v31, %v3886_v44  ;;  %v3128_v33 = vpop.f32.mrf.mxu2  ;;  %v3557_v44 = vshll.u32 %v6860_v37, 16  ;;  %v3553_v13 = vrot.slane %v3551_v49, 5 }
 0x200   : > { %v3205_v59 = vadd.f32 %v3128_v33, %v2890_v0  ;;  %v3704_v0 = vunpack.c.l.b16 %v3536_v22  ;;  %v4130_v22 = vunpack.c.l.b16 %v4054_v5 }
 0x201   : > { %4344 = vst [vmem:[%s6837_s20 + $0x8] sm:$0xff] %v4312_v32  ;;  %v4375_v46 = vadd.f32 %v4312_v32, %v4311_v15  ;;  %v4414_v57 = vmul.f32 %v4312_v32, %v4312_v32  ;;  %3849 = vmatmul.bf16.gmra.mxu3 %v3725_v42  ;;  %v2815_v48 = vpop.f32.mrf.mxu1  ;;  %v4055_v15 = vrot.slane %v4053_v16, 4  ;;  %v3561_v42 = vshrl.u32 %v6860_v37, 16 }
 0x202   : > { %v4236_v31 = vpop.f32.mrf.mxu0  ;;  %v3546_v32 = vsel %vm5701_vm2, %v3541_v1, %v3545_v54  ;;  %v2891_v33 = vadd.f32 %v2815_v48, %v6325_v47  ;;  %v5037_v48 = vld [vmem:[%s5686_s23 + $0x90] sm:$0xe]  ;;  %v6878_v54 = vld [vmem:[%s5686_s23 + $0xa4] sm:$0x1]  ;;  %v3554_v49 = vor.u32 %v3553_v13, %v3550_v21  ;;  %v5286_v21 = vld [vmem:[%s5686_s23 + $0xa8] sm:$0xf] }
 0x203   : > { %v4445_v28 = vadd.f32 %v4414_v57, %v4413_v25  ;;  %v4057_v25 = vsel %vm6001_vm5, %v4055_v15, %v4056_v11  ;;  %v3559_v57 = vrot.slane %v3557_v44, 5  ;;  %v3705_v47 = vunpack.c.l.b16 %v3546_v32 }
 0x204   : > { %v3810_v3 = vpop.f32.mrf.mxu3  ;;  %v4131_v41 = vunpack.c.l.b16 %v4057_v25  ;;  %v5053_v15 = vrot.slane %v5037_v48, 9 }
 0x205   : > { %4275 = vmatmul.bf16.gmra.mxu0 %v4151_v7  ;;  %v3887_v4 = vadd.f32 %v3810_v3, %v3205_v59  ;;  %v5625_v7 = vld [vmem:[%s5686_s23 + $0x94] sm:$0xf]  ;;  %v3563_v59 = vrot.slane %v3561_v42, 4  ;;  %v3726_v32 = vpack.c.b16 %v3705_v47, %v3704_v0  ;;  %v4060_v0 = vrot.slane %v6860_v37, 5  ;;  %v6892_v47 = vld [vmem:[%s5686_s23 + $0xac] sm:$0xf] }
 0x206   : > { %v2637_v51 = vrot.slane %v5625_v7, 5 }
 0x207   : > { %v4313_v38 = vadd.f32 %v4236_v31, %v3887_v4  ;;  %v3130_v9 = vpop.f32.mrf.mxu2  ;;  %v3564_v42 = vor.u32 %v3563_v59, %v3559_v57 }
 0x208   : > { %v3206_v16 = vadd.f32 %v3130_v9, %v2891_v33  ;;  %v2639_v11 = vrot.slane %v2637_v51, 4  ;;  %v3555_v9 = vrot.slane %v3554_v49, 4  ;;  %v2638_v13 = vsel %vm6001_vm5, %v5053_v15, %v2637_v51 }
 0x209   : > { %4345 = vst [vmem:[%s6837_s20 + $0x10] sm:$0xff] %v4313_v38  ;;  %v4376_v1 = vadd.f32 %v4375_v46, %v4313_v38  ;;  %v4415_v19 = vmul.f32 %v4313_v38, %v4313_v38  ;;  %v2818_v31 = vpop.f32.mrf.mxu1  ;;  %v5626_v46 = vld [vmem:[%s5686_s23 + $0x98] sm:$0x1]  ;;  %v3567_v38 = vshll.u32 %v6878_v54, 16  ;;  %v3565_v25 = vrot.slane %v3564_v42, 4 }
 0x20a   : > { %v4238_v27 = vpop.f32.mrf.mxu0  ;;  %v2640_v44 = vrot.slane %v5626_v46, 5  ;;  %v4062_v15 = vrot.slane %v4060_v0, 4  ;;  %v3581_v46 = vshll.u32 %v6892_v47, 16  ;;  %v3585_v42 = vshrl.u32 %v6892_v47, 16 }
 0x20b   : > { %v4446_v61 = vadd.f32 %v4445_v28, %v4415_v19  ;;  %2857 = vmatmul.bf16.gmra.mxu1 %v2729_v40  ;;  %v2892_v28 = vadd.f32 %v2818_v31, %v6345_v52  ;;  %v4152_v40 = vpack.c.b16 %v4131_v41, %v4130_v22  ;;  %v5357_v31 = vld [vmem:[%s5686_s23 + $0x9c] sm:$0xe]  ;;  %v3575_v22 = vshll.u32 %v5286_v21, 16 }
 0x20c   : > { %v3812_v3 = vpop.f32.mrf.mxu3  ;;  %3172 = vmatmul.bf16.gmra.mxu2 %v5519_v8  ;;  %v2641_v8 = vsel %vm6001_vm5, %v2639_v11, %v2640_v44  ;;  %v2709_v41 = vunpack.c.l.b16 %v2638_v13  ;;  %v4063_v11 = vrot.slane %v6878_v54, 5  ;;  %v5627_v54 = vld [vmem:[%s5686_s23 + $0xa0] sm:$0xf] }
 0x20d   : > { %v3888_v4 = vadd.f32 %v3812_v3, %v3206_v16  ;;  %v3569_v16 = vrot.slane %v3567_v38, 5  ;;  %v2710_v49 = vunpack.c.l.b16 %v2641_v8  ;;  %v3560_v3 = vsel %vm5701_vm2, %v3555_v9, %v3559_v57 }
 0x20e   : > { %v2644_v9 = vrot.slane %v5627_v54, 5  ;;  %v4064_v8 = vsel %vm6001_vm5, %v4062_v15, %v4063_v11  ;;  %v4067_v54 = vrot.slane %v6892_v47, 5 }
 0x20f   : > { %v4314_v33 = vadd.f32 %v4238_v27, %v3888_v4  ;;  %v3133_v5 = vpop.f32.mrf.mxu2  ;;  %v3572_v27 = vshrl.u32 %v5286_v21, 16  ;;  %v3706_v4 = vunpack.c.l.b16 %v3560_v3  ;;  %v5520_v21 = vld [vmem:[%s5686_s23 + $0x9c] sm:$0xff] }
 0x210   : > { %v3207_v52 = vadd.f32 %v3133_v5, %v2892_v28  ;;  %v2730_v5 = vpack.c.b16 %v2710_v49, %v2709_v41  ;;  %v2646_v49 = vrot.slane %v2644_v9, 4 }
 0x211   : > { %4346 = vst [vmem:[%s6837_s20 + $0x18] sm:$0xff] %v4314_v33  ;;  %v4377_v7 = vadd.f32 %v4376_v1, %v4314_v33  ;;  %v4416_v59 = vmul.f32 %v4314_v33, %v4314_v33  ;;  %3854 = vmatmul.bf16.gmra.mxu3 %v3726_v32  ;;  %v2820_v19 = vpop.f32.mrf.mxu1  ;;  %v5373_v1 = vrot.slane %v5357_v31, 9  ;;  %v3574_v57 = vrot.slane %v3572_v27, 4 }
 0x212   : > { %v4241_v48 = vpop.f32.mrf.mxu0  ;;  %v3577_v32 = vrot.slane %v3575_v22, 5  ;;  %v2893_v33 = vadd.f32 %v2820_v19, %v6365_v34  ;;  %v3587_v31 = vrot.slane %v3585_v42, 4 }
 0x213   : > { %v4447_v51 = vadd.f32 %v4446_v61, %v4416_v59  ;;  %v3570_v61 = vsel %vm5701_vm2, %v3565_v25, %v3569_v16  ;;  %v4061_v13 = vsel %vm6001_vm5, %v5373_v1, %v4060_v0  ;;  %v5038_v25 = vld [vmem:[%s5686_s23 + $0x9c] sm:$0xe]  ;;  %v3583_v59 = vrot.slane %v3581_v46, 5  ;;  %v5628_v0 = vld [vmem:[%s5686_s23 + $0xa4] sm:$0x1] }
 0x214   : > { %v3815_v37 = vpop.f32.mrf.mxu3  ;;  %v3578_v27 = vor.u32 %v3577_v32, %v3574_v57  ;;  %v5054_v41 = vrot.slane %v5038_v25, 9  ;;  %v2647_v3 = vrot.slane %v5628_v0, 5  ;;  %v4132_v15 = vunpack.c.l.b16 %v4061_v13 }
 0x215   : > { %4280 = vmatmul.bf16.gmra.mxu0 %v4152_v40  ;;  %v3889_v44 = vadd.f32 %v3815_v37, %v3207_v52  ;;  %v3707_v40 = vunpack.c.l.b16 %v3570_v61  ;;  %v5288_v37 = vld [vmem:[%s5686_s23 + $0xb0] sm:$0x1] }
 0x216   : > { %v3579_v61 = vrot.slane %v3578_v27, 4  ;;  %v3591_v42 = vshll.u32 %v5288_v37, 16  ;;  %v4070_v0 = vrot.slane %v5288_v37, 5 }
 0x217   : > { %v4315_v38 = vadd.f32 %v4241_v48, %v3889_v44  ;;  %v3135_v28 = vpop.f32.mrf.mxu2  ;;  %v3727_v46 = vpack.c.b16 %v3707_v40, %v3706_v4  ;;  %v3588_v44 = vor.u32 %v3587_v31, %v3583_v59 }
 0x218   : > { %v3208_v34 = vadd.f32 %v3135_v28, %v2893_v33  ;;  %v2648_v33 = vsel %vm6001_vm5, %v2646_v49, %v2647_v3  ;;  %v5358_v28 = vld [vmem:[%s5686_s23 + $0xa8] sm:$0xe]  ;;  %v3584_v27 = vsel %vm5701_vm2, %v3579_v61, %v3583_v59 }
 0x219   : > { %4347 = vst [vmem:[%s6837_s20 + $0x20] sm:$0xff] %v4315_v38  ;;  %v4378_v52 = vadd.f32 %v4377_v7, %v4315_v38  ;;  %v4417_v16 = vmul.f32 %v4315_v38, %v4315_v38  ;;  %v2823_v19 = vpop.f32.mrf.mxu1  ;;  %v4133_v7 = vunpack.c.l.b16 %v4064_v8  ;;  %v2645_v38 = vsel %vm6001_vm5, %v5054_v41, %v2644_v9 }
 0x21a   : > { %v4243_v48 = vpop.f32.mrf.mxu0  ;;  %v3589_v25 = vrot.slane %v3588_v44, 4  ;;  %v2712_v9 = vunpack.c.l.b16 %v2648_v33  ;;  %v5374_v31 = vrot.slane %v5358_v28, 9 }
 0x21b   : > { %v4448_v22 = vadd.f32 %v4447_v51, %v4417_v16  ;;  %2862 = vmatmul.bf16.gmra.mxu1 %v2730_v5  ;;  %v2894_v51 = vadd.f32 %v2823_v19, %v6375_v10  ;;  %v4153_v5 = vpack.c.b16 %v4133_v7, %v4132_v15  ;;  %v6922_v10 = vld [vmem:[%s5686_s23 + $0xb8] sm:$0xf]  ;;  %v3593_v19 = vrot.slane %v3591_v42, 5 }
 0x21c   : > { %v3817_v1 = vpop.f32.mrf.mxu3  ;;  %3177 = vmatmul.bf16.gmra.mxu2 %v5520_v21  ;;  %v5289_v21 = vld [vmem:[%s5686_s23 + $0xb4] sm:$0xf]  ;;  %v3605_v3 = vshll.u32 %v6922_v10, 16  ;;  %v4068_v59 = vsel %vm6001_vm5, %v5374_v31, %v4067_v54 }
 0x21d   : > { %v3890_v11 = vadd.f32 %v3817_v1, %v3208_v34  ;;  %v2711_v34 = vunpack.c.l.b16 %v2645_v38  ;;  %v3596_v47 = vshrl.u32 %v5289_v21, 16  ;;  %v3599_v41 = vshll.u32 %v5289_v21, 16 }
 0x21e   : > { %v3609_v1 = vshrl.u32 %v6922_v10, 16  ;;  %v3607_v33 = vrot.slane %v3605_v3, 5 }
 0x21f   : > { %v4316_v57 = vadd.f32 %v4243_v48, %v3890_v11  ;;  %v3138_v32 = vpop.f32.mrf.mxu2  ;;  %v2731_v7 = vpack.c.b16 %v2712_v9, %v2711_v34  ;;  %v3708_v11 = vunpack.c.l.b16 %v3584_v27  ;;  %v3598_v61 = vrot.slane %v3596_v47, 4 }
 0x220   : > { %v3209_v13 = vadd.f32 %v3138_v32, %v2894_v51  ;;  %v3601_v42 = vrot.slane %v3599_v41, 5  ;;  %v5629_v32 = vld [vmem:[%s5686_s23 + $0xac] sm:$0xf]  ;;  %v3611_v28 = vrot.slane %v3609_v1, 4  ;;  %v4134_v34 = vunpack.c.l.b16 %v4068_v59  ;;  %v5292_v59 = vld [vmem:[%s5686_s23 + $0xc0] sm:$0xf] }
 0x221   : > { %4348 = vst [vmem:[%s6837_s20 + $0x28] sm:$0xff] %v4316_v57  ;;  %v4379_v4 = vadd.f32 %v4378_v52, %v4316_v57  ;;  %v4418_v40 = vmul.f32 %v4316_v57, %v4316_v57  ;;  %3859 = vmatmul.bf16.gmra.mxu3 %v3727_v46  ;;  %v2825_v8 = vpop.f32.mrf.mxu1  ;;  %v4069_v52 = vrot.slane %v4067_v54, 4  ;;  %v5521_v57 = vld [vmem:[%s5686_s23 + $0xa8] sm:$0xff]  ;;  %v2651_v38 = vrot.slane %v5629_v32, 5  ;;  %v5359_v32 = vld [vmem:[%s5686_s23 + $0xb4] sm:$0xe] }
 0x222   : > { %v4246_v16 = vpop.f32.mrf.mxu0  ;;  %v2895_v44 = vadd.f32 %v2825_v8, %v6383_v12 }
 0x223   : > { %v4449_v48 = vadd.f32 %v4448_v22, %v4418_v40  ;;  %v3594_v22 = vsel %vm5701_vm2, %v3589_v25, %v3593_v19  ;;  %v4071_v51 = vsel %vm6001_vm5, %v4069_v52, %v4070_v0  ;;  %v6940_v25 = vld [vmem:[%s5686_s23 + $0xbc] sm:$0x1]  ;;  %v3602_v19 = vor.u32 %v3601_v42, %v3598_v61 }
 0x224   : > { %v3820_v49 = vpop.f32.mrf.mxu3  ;;  %v3709_v12 = vunpack.c.l.b16 %v3594_v22  ;;  %v4135_v9 = vunpack.c.l.b16 %v4071_v51  ;;  %v2653_v47 = vrot.slane %v2651_v38, 4  ;;  %v3615_v3 = vshll.u32 %v6940_v25, 16 }
 0x225   : > { %4285 = vmatmul.bf16.gmra.mxu0 %v4153_v5  ;;  %v3891_v15 = vadd.f32 %v3820_v49, %v3209_v13  ;;  %v5039_v13 = vld [vmem:[%s5686_s23 + $0xa8] sm:$0xe]  ;;  %v3612_v49 = vor.u32 %v3611_v28, %v3607_v33  ;;  %v3603_v22 = vrot.slane %v3602_v19, 4  ;;  %v6954_v28 = vld [vmem:[%s5686_s23 + $0xc4] sm:$0xf] }
 0x226   : > { %v5055_v27 = vrot.slane %v5039_v13, 9  ;;  %v3728_v0 = vpack.c.b16 %v3709_v12, %v3708_v11  ;;  %v4074_v11 = vrot.slane %v6922_v10, 5  ;;  %v3617_v51 = vrot.slane %v3615_v3, 5 }
 0x227   : > { %v4317_v46 = vadd.f32 %v4246_v16, %v3891_v15  ;;  %v3140_v37 = vpop.f32.mrf.mxu2  ;;  %v4154_v15 = vpack.c.b16 %v4135_v9, %v4134_v34  ;;  %v4077_v9 = vrot.slane %v6940_v25, 5  ;;  %v3629_v19 = vshll.u32 %v6954_v28, 16  ;;  %v5631_v25 = vld [vmem:[%s5686_s23 + $0xb8] sm:$0xf] }
 0x228   : > { %v3210_v54 = vadd.f32 %v3140_v37, %v2895_v44  ;;  %v3613_v37 = vrot.slane %v3612_v49, 4  ;;  %v4076_v34 = vrot.slane %v4074_v11, 4  ;;  %v7080_v49 = vld [vmem:[#allocation2_spill] sm:$0xff] }
 0x229   : > { %4349 = vst [vmem:[%s6837_s20 + $0x30] sm:$0xff] %v4317_v46  ;;  %v4380_v5 = vadd.f32 %v4379_v4, %v4317_v46  ;;  %v4419_v21 = vmul.f32 %v4317_v46, %v4317_v46  ;;  %v2828_v40 = vpop.f32.mrf.mxu1  ;;  %v5630_v4 = vld [vmem:[%s5686_s23 + $0xb0] sm:$0x1]  ;;  %v2652_v46 = vsel %vm6001_vm5, %v5055_v27, %v2651_v38  ;;  %v3633_v27 = vshrl.u32 %v6954_v28, 16 }
 0x22a   : > { %v4248_v8 = vpop.f32.mrf.mxu0  ;;  %v2654_v41 = vrot.slane %v5630_v4, 5  ;;  %v2713_v12 = vunpack.c.l.b16 %v2652_v46  ;;  %v3631_v46 = vrot.slane %v3629_v19, 5 }
 0x22b   : > { %v4450_v16 = vadd.f32 %v4449_v48, %v4419_v21  ;;  %2867 = vmatmul.bf16.gmra.mxu1 %v2731_v7  ;;  %v2896_v48 = vadd.f32 %v2828_v40, %v6402_v60  ;;  %v3623_v40 = vshll.u32 %v5292_v59, 16 }
 0x22c   : > { %v3822_v31 = vpop.f32.mrf.mxu3  ;;  %3182 = vmatmul.bf16.gmra.mxu2 %v5521_v57  ;;  %v2655_v44 = vsel %vm6001_vm5, %v2653_v47, %v2654_v41 }
 0x22d   : > { %v3892_v52 = vadd.f32 %v3822_v31, %v3210_v54  ;;  %v3620_v54 = vshrl.u32 %v5292_v59, 16  ;;  %v2714_v13 = vunpack.c.l.b16 %v2655_v44  ;;  %v3625_v4 = vrot.slane %v3623_v40, 5  ;;  %v5040_v59 = vld [vmem:[%s5686_s23 + $0xb4] sm:$0xe] }
 0x22f   : > { %v4318_v1 = vadd.f32 %v4248_v8, %v3892_v52  ;;  %v3143_v7 = vpop.f32.mrf.mxu2  ;;  %v3608_v8 = vsel %vm5701_vm2, %v3603_v22, %v3607_v33  ;;  %v3622_v33 = vrot.slane %v3620_v54, 4  ;;  %v2732_v3 = vpack.c.b16 %v2714_v13, %v2713_v12  ;;  %v5294_v13 = vld [vmem:[%s5686_s23 + $0xc8] sm:$0x1] }
 0x230   : > { %v3211_v60 = vadd.f32 %v3143_v7, %v2896_v48  ;;  %v3710_v47 = vunpack.c.l.b16 %v3608_v8  ;;  %v5522_v48 = vld [vmem:[%s5686_s23 + $0xb4] sm:$0xff]  ;;  %v4078_v22 = vsel %vm6001_vm5, %v4076_v34, %v4077_v9  ;;  %v5056_v54 = vrot.slane %v5040_v59, 9 }
 0x231   : > { %4350 = vst [vmem:[%s6837_s20 + $0x38] sm:$0xff] %v4318_v1  ;;  %v4381_v61 = vadd.f32 %v4380_v5, %v4318_v1  ;;  %v4420_v42 = vmul.f32 %v4318_v1, %v4318_v1  ;;  %3864 = vmatmul.bf16.gmra.mxu3 %v3728_v0  ;;  %v2830_v57 = vpop.f32.mrf.mxu1  ;;  %v5375_v5 = vrot.slane %v5359_v32, 9  ;;  %v2658_v1 = vrot.slane %v5631_v25, 5 }
 0x232   : > { %v4251_v21 = vpop.f32.mrf.mxu0  ;;  %v2897_v52 = vadd.f32 %v2830_v57, %v7080_v49  ;;  %v3635_v57 = vrot.slane %v3633_v27, 4  ;;  %v3626_v32 = vor.u32 %v3625_v4, %v3622_v33  ;;  %v5360_v49 = vld [vmem:[%s5686_s23 + $0xc0] sm:$0xe] }
 0x233   : > { %v4451_v38 = vadd.f32 %v4450_v16, %v4420_v42  ;;  %v3618_v16 = vsel %vm5701_vm2, %v3613_v37, %v3617_v51  ;;  %v4075_v7 = vsel %vm6001_vm5, %v5375_v5, %v4074_v11  ;;  %v2660_v40 = vrot.slane %v2658_v1, 4  ;;  %v5632_v11 = vld [vmem:[%s5686_s23 + $0xbc] sm:$0x1] }
 0x234   : > { %v3825_v10 = vpop.f32.mrf.mxu3  ;;  %v2661_v12 = vrot.slane %v5632_v11, 5  ;;  %v3636_v9 = vor.u32 %v3635_v57, %v3631_v46  ;;  %v3627_v19 = vrot.slane %v3626_v32, 4  ;;  %v2659_v4 = vsel %vm6001_vm5, %v5056_v54, %v2658_v1 }
 0x235   : > { %4290 = vmatmul.bf16.gmra.mxu0 %v4154_v15  ;;  %v3893_v31 = vadd.f32 %v3825_v10, %v3211_v60  ;;  %v3711_v15 = vunpack.c.l.b16 %v3618_v16  ;;  %v4136_v10 = vunpack.c.l.b16 %v4075_v7 }
 0x236   : > { %v3637_v7 = vrot.slane %v3636_v9, 4 }
 0x237   : > { %v4319_v41 = vadd.f32 %v4251_v21, %v3893_v31  ;;  %v3145_v0 = vpop.f32.mrf.mxu2  ;;  %v3729_v34 = vpack.c.b16 %v3711_v15, %v3710_v47  ;;  %v3639_v31 = vshll.u32 %v5294_v13, 16 }
 0x238   : > { %v3212_v42 = vadd.f32 %v3145_v0, %v2897_v52  ;;  %v4081_v0 = vrot.slane %v6954_v28, 5 }
 0x239   : > { %4351 = vst [vmem:[%s6837_s20 + $0x40] sm:$0xff] %v4319_v41  ;;  %v4382_v44 = vadd.f32 %v4381_v61, %v4319_v41  ;;  %v4421_v37 = vmul.f32 %v4319_v41, %v4319_v41  ;;  %v2833_v60 = vpop.f32.mrf.mxu1  ;;  %v4137_v61 = vunpack.c.l.b16 %v4078_v22  ;;  %v2662_v41 = vsel %vm6001_vm5, %v2660_v40, %v2661_v12  ;;  %v6984_v22 = vld [vmem:[%s5686_s23 + $0xd0] sm:$0xf] }
 0x23a   : > { %v4253_v51 = vpop.f32.mrf.mxu0  ;;  %v2716_v1 = vunpack.c.l.b16 %v2662_v41  ;;  %v4084_v40 = vrot.slane %v5294_v13, 5  ;;  %v3653_v11 = vshll.u32 %v6984_v22, 16  ;;  %v3657_v12 = vshrl.u32 %v6984_v22, 16 }
 0x23b   : > { %v4452_v21 = vadd.f32 %v4451_v38, %v4421_v37  ;;  %2872 = vmatmul.bf16.gmra.mxu1 %v2732_v3  ;;  %v7081_v38 = vld [vmem:[#allocation3_spill] sm:$0xff]  ;;  %v4155_v52 = vpack.c.b16 %v4137_v61, %v4136_v10  ;;  %v2715_v37 = vunpack.c.l.b16 %v2659_v4 }
 0x23c   : > { %v3827_v8 = vpop.f32.mrf.mxu3  ;;  %3187 = vmatmul.bf16.gmra.mxu2 %v5522_v48  ;;  %v2898_v27 = vadd.f32 %v2833_v60, %v7081_v38  ;;  %v5295_v3 = vld [vmem:[%s5686_s23 + $0xcc] sm:$0xf]  ;;  %v5376_v60 = vrot.slane %v5360_v49, 9  ;;  %v5633_v38 = vld [vmem:[%s5686_s23 + $0xc4] sm:$0xf]  ;;  %v3655_v4 = vrot.slane %v3653_v11, 5 }
 0x23d   : > { %v3894_v5 = vadd.f32 %v3827_v8, %v3212_v42  ;;  %v3641_v42 = vrot.slane %v3639_v31, 5  ;;  %v3644_v28 = vshrl.u32 %v5295_v3, 16  ;;  %v3647_v32 = vshll.u32 %v5295_v3, 16  ;;  %v5523_v31 = vld [vmem:[%s5686_s23 + $0xc0] sm:$0xff] }
 0x23e   : > { %v2733_v10 = vpack.c.b16 %v2716_v1, %v2715_v37  ;;  %v4082_v61 = vsel %vm6001_vm5, %v5376_v60, %v4081_v0  ;;  %v3659_v41 = vrot.slane %v3657_v12, 4 }
 0x23f   : > { %v4320_v16 = vadd.f32 %v4253_v51, %v3894_v5  ;;  %v3148_v33 = vpop.f32.mrf.mxu2  ;;  %v3632_v51 = vsel %vm5701_vm2, %v3627_v19, %v3631_v46  ;;  %v3646_v9 = vrot.slane %v3644_v28, 4  ;;  %v3649_v19 = vrot.slane %v3647_v32, 5 }
 0x240   : > { %v3213_v48 = vadd.f32 %v3148_v33, %v2898_v27  ;;  %v3712_v46 = vunpack.c.l.b16 %v3632_v51  ;;  %v2665_v27 = vrot.slane %v5633_v38, 5  ;;  %v7000_v33 = vld [vmem:[%s5686_s23 + $0xd4] sm:$0x1]  ;;  %v3660_v32 = vor.u32 %v3659_v41, %v3655_v4 }
 0x241   : > { %4352 = vst [vmem:[%s6837_s20 + $0x48] sm:$0xff] %v4320_v16  ;;  %v4383_v47 = vadd.f32 %v4382_v44, %v4320_v16  ;;  %v4422_v25 = vmul.f32 %v4320_v16, %v4320_v16  ;;  %3869 = vmatmul.bf16.gmra.mxu3 %v3729_v34  ;;  %v2835_v15 = vpop.f32.mrf.mxu1  ;;  %v4083_v44 = vrot.slane %v4081_v0, 4  ;;  %v3650_v37 = vor.u32 %v3649_v19, %v3646_v9  ;;  %v5361_v19 = vld [vmem:[%s5686_s23 + $0xcc] sm:$0xe] }
 0x242   : > { %v4256_v59 = vpop.f32.mrf.mxu0  ;;  %v2899_v13 = vadd.f32 %v2835_v15, %v6453_v24  ;;  %v4138_v15 = vunpack.c.l.b16 %v4082_v61  ;;  %v3663_v1 = vshll.u32 %v7000_v33, 16  ;;  %v2667_v51 = vrot.slane %v2665_v27, 4 }
 0x243   : > { %v4453_v57 = vadd.f32 %v4452_v21, %v4422_v25  ;;  %v3642_v21 = vsel %vm5701_vm2, %v3637_v7, %v3641_v42  ;;  %v4085_v16 = vsel %vm6001_vm5, %v4083_v44, %v4084_v40  ;;  %v5041_v25 = vld [vmem:[%s5686_s23 + $0xc0] sm:$0xe]  ;;  %v3661_v61 = vrot.slane %v3660_v32, 4 }
 0x244   : > { %v3830_v54 = vpop.f32.mrf.mxu3  ;;  %v3713_v3 = vunpack.c.l.b16 %v3642_v21  ;;  %v5057_v60 = vrot.slane %v5041_v25, 9  ;;  %v4091_v25 = vrot.slane %v7000_v33, 5 }
 0x245   : > { %4295 = vmatmul.bf16.gmra.mxu0 %v4155_v52  ;;  %v3895_v8 = vadd.f32 %v3830_v54, %v3213_v48 }
 0x246   : > { %v3730_v44 = vpack.c.b16 %v3713_v3, %v3712_v46 }
 0x247   : > { %v4321_v5 = vadd.f32 %v4256_v59, %v3895_v8  ;;  %v3150_v34 = vpop.f32.mrf.mxu2  ;;  %v4139_v59 = vunpack.c.l.b16 %v4085_v16  ;;  %v3651_v8 = vrot.slane %v3650_v37, 4 }
 0x248   : > { %v3214_v0 = vadd.f32 %v3150_v34, %v2899_v13 }
 0x249   : > { %4353 = vst [vmem:[%s6837_s20 + $0x50] sm:$0xff] %v4321_v5  ;;  %v4384_v49 = vadd.f32 %v4383_v47, %v4321_v5  ;;  %v4423_v52 = vmul.f32 %v4321_v5, %v4321_v5  ;;  %v2838_v24 = vpop.f32.mrf.mxu1  ;;  %v5634_v47 = vld [vmem:[%s5686_s23 + $0xc8] sm:$0x1]  ;;  %v3665_v5 = vrot.slane %v3663_v1, 5 }
 0x24a   : > { %v4258_v48 = vpop.f32.mrf.mxu0  ;;  %v2668_v28 = vrot.slane %v5634_v47, 5  ;;  %v2900_v11 = vadd.f32 %v2838_v24, %v6462_v36  ;;  %v4088_v36 = vrot.slane %v6984_v22, 5 }
 0x24b   : > { %v4454_v7 = vadd.f32 %v4453_v57, %v4423_v52  ;;  %2877 = vmatmul.bf16.gmra.mxu1 %v2733_v10  ;;  %v4156_v57 = vpack.c.b16 %v4139_v59, %v4138_v15  ;;  %v2666_v10 = vsel %vm6001_vm5, %v5057_v60, %v2665_v27  ;;  %v3656_v52 = vsel %vm5701_vm2, %v3651_v8, %v3655_v4  ;;  %v5524_v59 = vld [vmem:[%s5686_s23 + $0xcc] sm:$0xff]  ;;  %s4577_s23 = sshll.u32 %s7083_s13, 1 }
 0x24c   : > { %v3832_v42 = vpop.f32.mrf.mxu3  ;;  %3192 = vmatmul.bf16.gmra.mxu2 %v5523_v31  ;;  %v2669_v21 = vsel %vm6001_vm5, %v2667_v51, %v2668_v28  ;;  %v2717_v38 = vunpack.c.l.b16 %v2666_v10  ;;  %v3666_v24 = vsel %vm5701_vm2, %v3661_v61, %v3665_v5  ;;  %v4090_v3 = vrot.slane %v4088_v36, 4  ;;  %s181_s24 = scalar_lea.vmem %s7073_s3, %s4577_s23 }
 0x24d   : > { %v3896_v54 = vadd.f32 %v3832_v42, %v3214_v0  ;;  %v2718_v41 = vunpack.c.l.b16 %v2669_v21  ;;  %v5377_v0 = vrot.slane %v5361_v19, 9  ;;  %v3714_v37 = vunpack.c.l.b16 %v3656_v52 }
 0x24e   : > { %v3715_v1 = vunpack.c.l.b16 %v3666_v24  ;;  %v4092_v33 = vsel %vm6001_vm5, %v4090_v3, %v4091_v25 }
 0x24f   : > { %v4322_v40 = vadd.f32 %v4258_v48, %v3896_v54  ;;  %v3153_v12 = vpop.f32.mrf.mxu2  ;;  %v4089_v4 = vsel %vm6001_vm5, %v5377_v0, %v4088_v36  ;;  %v4141_v54 = vunpack.c.l.b16 %v4092_v33 }
 0x250   : > { %v3215_v46 = vadd.f32 %v3153_v12, %v2900_v11  ;;  %v4140_v32 = vunpack.c.l.b16 %v4089_v4 }
 0x251   : > { %4354 = vst [vmem:[%s6837_s20 + $0x58] sm:$0xff] %v4322_v40  ;;  %v4385_v13 = vadd.f32 %v4384_v49, %v4322_v40  ;;  %v4424_v34 = vmul.f32 %v4322_v40, %v4322_v40  ;;  %3874 = vmatmul.bf16.gmra.mxu3 %v3730_v44  ;;  %v2840_v9 = vpop.f32.mrf.mxu1  ;;  %v3731_v40 = vpack.c.b16 %v3715_v1, %v3714_v37 }
 0x252   : > { %v4261_v31 = vpop.f32.mrf.mxu0  ;;  %v2901_v48 = vadd.f32 %v2840_v9, %v6475_v45  ;;  %v4157_v8 = vpack.c.b16 %v4141_v54, %v4140_v32 }
 0x253   : > { %v4455_v16 = vadd.f32 %v4454_v7, %v4424_v34  ;;  %v2734_v7 = vpack.c.b16 %v2718_v41, %v2717_v38 }
 0x254   : > { %v3835_v27 = vpop.f32.mrf.mxu3 }
 0x255   : > { %4300 = vmatmul.bf16.gmra.mxu0 %v4156_v57  ;;  %v3897_v49 = vadd.f32 %v3835_v27, %v3215_v46 }
 0x257   : > { %v4323_v22 = vadd.f32 %v4261_v31, %v3897_v49  ;;  %v3155_v15 = vpop.f32.mrf.mxu2 }
 0x258   : > { %v3216_v51 = vadd.f32 %v3155_v15, %v2901_v48 }
 0x259   : > { %4355 = vst [vmem:[%s6837_s20 + $0x60] sm:$0xff] %v4323_v22  ;;  %v4386_v42 = vadd.f32 %v4385_v13, %v4323_v22  ;;  %v4425_v60 = vmul.f32 %v4323_v22, %v4323_v22  ;;  %v2843_v30 = vpop.f32.mrf.mxu1 }
 0x25a   : > { %v4263_v47 = vpop.f32.mrf.mxu0  ;;  %v2902_v57 = vadd.f32 %v2843_v30, %v6488_v23 }
 0x25b   : > { %v4456_v28 = vadd.f32 %v4455_v16, %v4425_v60  ;;  %2882 = vmatmul.bf16.gmra.mxu1 %v2734_v7 }
 0x25c   : > { %v3837_v45 = vpop.f32.mrf.mxu3  ;;  %3197 = vmatmul.bf16.gmra.mxu2 %v5524_v59 }
 0x25d   : > { %v3898_v44 = vadd.f32 %v3837_v45, %v3216_v51 }
 0x25f   : > { %v4324_v11 = vadd.f32 %v4263_v47, %v3898_v44  ;;  %v3158_v12 = vpop.f32.mrf.mxu2 }
 0x260   : > { %v3217_v43 = vadd.f32 %v3158_v12, %v2902_v57 }
 0x261   : > { %4356 = vst [vmem:[%s6837_s20 + $0x68] sm:$0xff] %v4324_v11  ;;  %v4387_v10 = vadd.f32 %v4386_v42, %v4324_v11  ;;  %v4426_v21 = vmul.f32 %v4324_v11, %v4324_v11  ;;  %3879 = vmatmul.bf16.gmra.mxu3 %v3731_v40  ;;  %v2845_v61 = vpop.f32.mrf.mxu1 }
 0x262   : > { %v4266_v5 = vpop.f32.mrf.mxu0  ;;  %v2903_v19 = vadd.f32 %v2845_v61, %v6512_v17 }
 0x263   : > { %v4457_v13 = vadd.f32 %v4456_v28, %v4426_v21 }
 0x264   : > { %v3840_v34 = vpop.f32.mrf.mxu3 }
 0x265   : > { %4305 = vmatmul.bf16.gmra.mxu0 %v4157_v8  ;;  %v3899_v46 = vadd.f32 %v3840_v34, %v3217_v43 }
 0x267   : > { %v4325_v9 = vadd.f32 %v4266_v5, %v3899_v46  ;;  %v3160_v36 = vpop.f32.mrf.mxu2 }
 0x268   : > { %v3218_v16 = vadd.f32 %v3160_v36, %v2903_v19 }
 0x269   : > { %4357 = vst [vmem:[%s6837_s20 + $0x70] sm:$0xff] %v4325_v9  ;;  %v4388_v23 = vadd.f32 %v4387_v10, %v4325_v9  ;;  %v4427_v31 = vmul.f32 %v4325_v9, %v4325_v9  ;;  %v2848_v38 = vpop.f32.mrf.mxu1 }
 0x26a   : > { %v4268_v41 = vpop.f32.mrf.mxu0  ;;  %v2904_v24 = vadd.f32 %v2848_v38, %v6527_v20 }
 0x26b   : > { %v4458_v27 = vadd.f32 %v4457_v13, %v4427_v31 }
 0x26c   : > { %v3842_v52 = vpop.f32.mrf.mxu3 }
 0x26d   : > { %v3900_v0 = vadd.f32 %v3842_v52, %v3218_v16 }
 0x26f   : > { %v4326_v49 = vadd.f32 %v4268_v41, %v3900_v0  ;;  %v3163_v3 = vpop.f32.mrf.mxu2 }
 0x270   : > { %v3219_v48 = vadd.f32 %v3163_v3, %v2904_v24 }
 0x271   : > { %4358 = vst [vmem:[%s6837_s20 + $0x78] sm:$0xff] %v4326_v49  ;;  %v4389_v25 = vadd.f32 %v4388_v23, %v4326_v49  ;;  %v4428_v22 = vmul.f32 %v4326_v49, %v4326_v49  ;;  %v2850_v17 = vpop.f32.mrf.mxu1 }
 0x272   : > { %v4271_v15 = vpop.f32.mrf.mxu0  ;;  %v2905_v4 = vadd.f32 %v2850_v17, %v6553_v56 }
 0x273   : > { %v4459_v7 = vadd.f32 %v4458_v27, %v4428_v22 }
 0x274   : > { %v3845_v59 = vpop.f32.mrf.mxu3 }
 0x275   : > { %v3901_v37 = vadd.f32 %v3845_v59, %v3219_v48 }
 0x277   : > { %v4327_v1 = vadd.f32 %v4271_v15, %v3901_v37  ;;  %v3165_v42 = vpop.f32.mrf.mxu2 }
 0x278   : > { %v3220_v30 = vadd.f32 %v3165_v42, %v2905_v4 }
 0x279   : > { %4359 = vst [vmem:[%s6837_s20 + $0x80] sm:$0xff] %v4327_v1  ;;  %v4390_v60 = vadd.f32 %v4389_v25, %v4327_v1  ;;  %v4429_v51 = vmul.f32 %v4327_v1, %v4327_v1  ;;  %v2853_v20 = vpop.f32.mrf.mxu1 }
 0x27a   : > { %v4273_v33 = vpop.f32.mrf.mxu0  ;;  %v2906_v54 = vadd.f32 %v2853_v20, %v6567_v29 }
 0x27b   : > { %v4460_v47 = vadd.f32 %v4459_v7, %v4429_v51 }
 0x27c   : > { %v3847_v28 = vpop.f32.mrf.mxu3 }
 0x27d   : > { %v3902_v45 = vadd.f32 %v3847_v28, %v3220_v30 }
 0x27f   : > { %v4328_v32 = vadd.f32 %v4273_v33, %v3902_v45  ;;  %v3168_v44 = vpop.f32.mrf.mxu2 }
 0x280   : > { %v3221_v57 = vadd.f32 %v3168_v44, %v2906_v54 }
 0x281   : > { %4360 = vst [vmem:[%s6837_s20 + $0x88] sm:$0xff] %v4328_v32  ;;  %v4391_v40 = vadd.f32 %v4390_v60, %v4328_v32  ;;  %v4430_v11 = vmul.f32 %v4328_v32, %v4328_v32  ;;  %v2855_v56 = vpop.f32.mrf.mxu1 }
 0x282   : > { %v4276_v12 = vpop.f32.mrf.mxu0  ;;  %v2907_v61 = vadd.f32 %v2855_v56, %v6590_v58 }
 0x283   : > { %v4461_v8 = vadd.f32 %v4460_v47, %v4430_v11 }
 0x284   : > { %v3850_v10 = vpop.f32.mrf.mxu3 }
 0x285   : > { %v3903_v21 = vadd.f32 %v3850_v10, %v3221_v57 }
 0x287   : > { %v4329_v43 = vadd.f32 %v4276_v12, %v3903_v21  ;;  %v3170_v5 = vpop.f32.mrf.mxu2 }
 0x288   : > { %v3222_v46 = vadd.f32 %v3170_v5, %v2907_v61 }
 0x289   : > { %4361 = vst [vmem:[%s6837_s20 + $0x90] sm:$0xff] %v4329_v43  ;;  %v4392_v13 = vadd.f32 %v4391_v40, %v4329_v43  ;;  %v4431_v34 = vmul.f32 %v4329_v43, %v4329_v43  ;;  %v2858_v29 = vpop.f32.mrf.mxu1 }
 0x28a   : > { %v4278_v9 = vpop.f32.mrf.mxu0  ;;  %v2908_v16 = vadd.f32 %v2858_v29, %v6605_v26 }
 0x28b   : > { %v4462_v19 = vadd.f32 %v4461_v8, %v4431_v34 }
 0x28c   : > { %v3852_v36 = vpop.f32.mrf.mxu3 }
 0x28d   : > { %v3904_v23 = vadd.f32 %v3852_v36, %v3222_v46 }
 0x28f   : > { %v4330_v31 = vadd.f32 %v4278_v9, %v3904_v23  ;;  %v3173_v38 = vpop.f32.mrf.mxu2 }
 0x290   : > { %v3223_v52 = vadd.f32 %v3173_v38, %v2908_v16 }
 0x291   : > { %4362 = vst [vmem:[%s6837_s20 + $0x98] sm:$0xff] %v4330_v31  ;;  %v4393_v41 = vadd.f32 %v4392_v13, %v4330_v31  ;;  %v4432_v27 = vmul.f32 %v4330_v31, %v4330_v31  ;;  %v2860_v58 = vpop.f32.mrf.mxu1 }
 0x292   : > { %v4281_v0 = vpop.f32.mrf.mxu0  ;;  %v2909_v22 = vadd.f32 %v2860_v58, %v6631_v53 }
 0x293   : > { %v4463_v49 = vadd.f32 %v4462_v19, %v4432_v27 }
 0x294   : > { %v3855_v24 = vpop.f32.mrf.mxu3 }
 0x295   : > { %v3905_v3 = vadd.f32 %v3855_v24, %v3223_v52 }
 0x297   : > { %v4331_v25 = vadd.f32 %v4281_v0, %v3905_v3  ;;  %v3175_v48 = vpop.f32.mrf.mxu2 }
 0x298   : > { %v3224_v7 = vadd.f32 %v3175_v48, %v2909_v22 }
 0x299   : > { %4363 = vst [vmem:[%s6837_s20 + $0xa0] sm:$0xff] %v4331_v25  ;;  %v4394_v17 = vadd.f32 %v4393_v41, %v4331_v25  ;;  %v4433_v15 = vmul.f32 %v4331_v25, %v4331_v25  ;;  %v2863_v26 = vpop.f32.mrf.mxu1 }
 0x29a   : > { %v4283_v59 = vpop.f32.mrf.mxu0  ;;  %v2910_v60 = vadd.f32 %v2863_v26, %v6645_v2 }
 0x29b   : > { %v4464_v37 = vadd.f32 %v4463_v49, %v4433_v15 }
 0x29c   : > { %v3857_v1 = vpop.f32.mrf.mxu3 }
 0x29d   : > { %v3906_v4 = vadd.f32 %v3857_v1, %v3224_v7 }
 0x29f   : > { %v4332_v42 = vadd.f32 %v4283_v59, %v3906_v4  ;;  %v3178_v51 = vpop.f32.mrf.mxu2 }
 0x2a0   : > { %v3225_v33 = vadd.f32 %v3178_v51, %v2910_v60 }
 0x2a1   : > { %4364 = vst [vmem:[%s6837_s20 + $0xa8] sm:$0xff] %v4332_v42  ;;  %v4395_v30 = vadd.f32 %v4394_v17, %v4332_v42  ;;  %v4434_v20 = vmul.f32 %v4332_v42, %v4332_v42  ;;  %v2865_v53 = vpop.f32.mrf.mxu1 }
 0x2a2   : > { %v4286_v47 = vpop.f32.mrf.mxu0  ;;  %v2911_v44 = vadd.f32 %v2865_v53, %v6668_v50 }
 0x2a3   : > { %v4465_v28 = vadd.f32 %v4464_v37, %v4434_v20 }
 0x2a4   : > { %v3860_v45 = vpop.f32.mrf.mxu3 }
 0x2a5   : > { %v3907_v32 = vadd.f32 %v3860_v45, %v3225_v33 }
 0x2a7   : > { %v4333_v54 = vadd.f32 %v4286_v47, %v3907_v32  ;;  %v3180_v40 = vpop.f32.mrf.mxu2 }
 0x2a8   : > { %v3226_v56 = vadd.f32 %v3180_v40, %v2911_v44 }
 0x2a9   : > { %4365 = vst [vmem:[%s6837_s20 + $0xb0] sm:$0xff] %v4333_v54  ;;  %v4396_v11 = vadd.f32 %v4395_v30, %v4333_v54  ;;  %v4435_v57 = vmul.f32 %v4333_v54, %v4333_v54  ;;  %v2868_v2 = vpop.f32.mrf.mxu1 }
 0x2aa   : > { %v4288_v12 = vpop.f32.mrf.mxu0  ;;  %v2912_v61 = vadd.f32 %v2868_v2, %v6683_v35 }
 0x2ab   : > { %v4466_v8 = vadd.f32 %v4465_v28, %v4435_v57 }
 0x2ac   : > { %v3862_v10 = vpop.f32.mrf.mxu3 }
 0x2ad   : > { %v3908_v21 = vadd.f32 %v3862_v10, %v3226_v56 }
 0x2af   : > { %v4334_v43 = vadd.f32 %v4288_v12, %v3908_v21  ;;  %v3183_v5 = vpop.f32.mrf.mxu2 }
 0x2b0   : > { %v3227_v46 = vadd.f32 %v3183_v5, %v2912_v61 }
 0x2b1   : > { %4366 = vst [vmem:[%s6837_s20 + $0xb8] sm:$0xff] %v4334_v43  ;;  %v4397_v13 = vadd.f32 %v4396_v11, %v4334_v43  ;;  %v4436_v34 = vmul.f32 %v4334_v43, %v4334_v43  ;;  %v2870_v50 = vpop.f32.mrf.mxu1 }
 0x2b2   : > { %v4291_v29 = vpop.f32.mrf.mxu0  ;;  %v2913_v31 = vadd.f32 %v2870_v50, %v6709_v18 }
 0x2b3   : > { %v4467_v9 = vadd.f32 %v4466_v8, %v4436_v34 }
 0x2b4   : > { %v3865_v19 = vpop.f32.mrf.mxu3 }
 0x2b5   : > { %v3909_v36 = vadd.f32 %v3865_v19, %v3227_v46 }
 0x2b7   : > { %v4335_v23 = vadd.f32 %v4291_v29, %v3909_v36  ;;  %v3185_v16 = vpop.f32.mrf.mxu2 }
 0x2b8   : > { %v3228_v27 = vadd.f32 %v3185_v16, %v2913_v31 }
 0x2b9   : > { %4367 = vst [vmem:[%s6837_s20 + $0xc0] sm:$0xff] %v4335_v23  ;;  %v4398_v38 = vadd.f32 %v4397_v13, %v4335_v23  ;;  %v4437_v41 = vmul.f32 %v4335_v23, %v4335_v23  ;;  %v2873_v35 = vpop.f32.mrf.mxu1 }
 0x2ba   : > { %v4293_v52 = vpop.f32.mrf.mxu0  ;;  %v2914_v3 = vadd.f32 %v2873_v35, %v6723_v14 }
 0x2bb   : > { %v4468_v58 = vadd.f32 %v4467_v9, %v4437_v41 }
 0x2bc   : > { %v3867_v0 = vpop.f32.mrf.mxu3 }
 0x2bd   : > { %v3910_v49 = vadd.f32 %v3867_v0, %v3228_v27 }
 0x2bf   : > { %v4336_v24 = vadd.f32 %v4293_v52, %v3910_v49  ;;  %v3188_v25 = vpop.f32.mrf.mxu2 }
 0x2c0   : > { %v3229_v17 = vadd.f32 %v3188_v25, %v2914_v3 }
 0x2c1   : > { %4368 = vst [vmem:[%s6837_s20 + $0xc8] sm:$0xff] %v4336_v24  ;;  %v4399_v22 = vadd.f32 %v4398_v38, %v4336_v24  ;;  %v4438_v48 = vmul.f32 %v4336_v24, %v4336_v24  ;;  %v2875_v18 = vpop.f32.mrf.mxu1 }
 0x2c2   : > { %v4296_v15 = vpop.f32.mrf.mxu0  ;;  %v2915_v1 = vadd.f32 %v2875_v18, %v6746_v63 }
 0x2c3   : > { %v4469_v7 = vadd.f32 %v4468_v58, %v4438_v48 }
 0x2c4   : > { %v3870_v26 = vpop.f32.mrf.mxu3 }
 0x2c5   : > { %v3911_v59 = vadd.f32 %v3870_v26, %v3229_v17 }
 0x2c7   : > { %v4337_v37 = vadd.f32 %v4296_v15, %v3911_v59  ;;  %v3190_v4 = vpop.f32.mrf.mxu2 }
 0x2c8   : > { %v3230_v51 = vadd.f32 %v3190_v4, %v2915_v1 }
 0x2c9   : > { %4369 = vst [vmem:[%s6837_s20 + $0xd0] sm:$0xff] %v4337_v37  ;;  %v4400_v42 = vadd.f32 %v4399_v22, %v4337_v37  ;;  %v4439_v60 = vmul.f32 %v4337_v37, %v4337_v37  ;;  %v2878_v14 = vpop.f32.mrf.mxu1 }
 0x2ca   : > { %v4298_v30 = vpop.f32.mrf.mxu0  ;;  %v2916_v28 = vadd.f32 %v2878_v14, %v6761_v55 }
 0x2cb   : > { %v4470_v20 = vadd.f32 %v4469_v7, %v4439_v60 }
 0x2cc   : > { %v3872_v33 = vpop.f32.mrf.mxu3 }
 0x2cd   : > { %v3912_v53 = vadd.f32 %v3872_v33, %v3230_v51 }
 0x2cf   : > { %v4338_v47 = vadd.f32 %v4298_v30, %v3912_v53  ;;  %v3193_v45 = vpop.f32.mrf.mxu2 }
 0x2d0   : > { %v3231_v44 = vadd.f32 %v3193_v45, %v2916_v28 }
 0x2d1   : > { %4370 = vst [vmem:[%s6837_s20 + $0xd8] sm:$0xff] %v4338_v47  ;;  %v4401_v32 = vadd.f32 %v4400_v42, %v4338_v47  ;;  %v4440_v54 = vmul.f32 %v4338_v47, %v4338_v47  ;;  %v2880_v63 = vpop.f32.mrf.mxu1 }
 0x2d2   : > { %v4301_v40 = vpop.f32.mrf.mxu0  ;;  %v2917_v12 = vadd.f32 %v2880_v63, %v6784_v62 }
 0x2d3   : > { %v4471_v11 = vadd.f32 %v4470_v20, %v4440_v54 }
 0x2d4   : > { %v3875_v57 = vpop.f32.mrf.mxu3 }
 0x2d5   : > { %v3913_v56 = vadd.f32 %v3875_v57, %v3231_v44 }
 0x2d7   : > { %v4339_v2 = vadd.f32 %v4301_v40, %v3913_v56  ;;  %v3195_v8 = vpop.f32.mrf.mxu2 }
 0x2d8   : > { %v3232_v43 = vadd.f32 %v3195_v8, %v2917_v12 }
 0x2d9   : > { %4371 = vst [vmem:[%s6837_s20 + $0xe0] sm:$0xff] %v4339_v2  ;;  %v4402_v10 = vadd.f32 %v4401_v32, %v4339_v2  ;;  %v4441_v21 = vmul.f32 %v4339_v2, %v4339_v2  ;;  %v2883_v55 = vpop.f32.mrf.mxu1 }
 0x2da   : > { %v4303_v61 = vpop.f32.mrf.mxu0  ;;  %v2918_v50 = vadd.f32 %v2883_v55, %v6797_v6 }
 0x2db   : > { %v4472_v5 = vadd.f32 %v4471_v11, %v4441_v21 }
 0x2dc   : > { %v3877_v13 = vpop.f32.mrf.mxu3 }
 0x2dd   : > { %v3914_v34 = vadd.f32 %v3877_v13, %v3232_v43 }
 0x2df   : > { %v4340_v46 = vadd.f32 %v4303_v61, %v3914_v34  ;;  %v3198_v29 = vpop.f32.mrf.mxu2 }
 0x2e0   : > { %v3233_v36 = vadd.f32 %v3198_v29, %v2918_v50 }
 0x2e1   : > { %4372 = vst [vmem:[%s6837_s20 + $0xe8] sm:$0xff] %v4340_v46  ;;  %v4403_v9 = vadd.f32 %v4402_v10, %v4340_v46  ;;  %v4442_v19 = vmul.f32 %v4340_v46, %v4340_v46  ;;  %v2885_v23 = vpop.f32.mrf.mxu1 }
 0x2e2   : > { %v4306_v31 = vpop.f32.mrf.mxu0  ;;  %v2919_v27 = vadd.f32 %v2885_v23, %v6820_v39 }
 0x2e3   : > { %v4473_v62 = vadd.f32 %v4472_v5, %v4442_v19 }
 0x2e4   : > { %v3880_v16 = vpop.f32.mrf.mxu3 }
 0x2e5   : > { %v3915_v38 = vadd.f32 %v3880_v16, %v3233_v36 }
 0x2e7   : > { %v4341_v41 = vadd.f32 %v4306_v31, %v3915_v38  ;;  %v3200_v35 = vpop.f32.mrf.mxu2 }
 0x2e8   : > { %v3234_v6 = vadd.f32 %v3200_v35, %v2919_v27 }
 0x2e9   : > { %4373 = vst [vmem:[%s6837_s20 + $0xf0] sm:$0xff] %v4341_v41  ;;  %v4404_v52 = vadd.f32 %v4403_v9, %v4341_v41  ;;  %v4443_v58 = vmul.f32 %v4341_v41, %v4341_v41 }
 0x2ea   : > { %v4308_v3 = vpop.f32.mrf.mxu0 }
 0x2eb   : > { %v4474_v0 = vadd.f32 %v4473_v62, %v4443_v58 }
 0x2ec   : > { %v3882_v49 = vpop.f32.mrf.mxu3 }
 0x2ed   : > { %v3916_v24 = vadd.f32 %v3882_v49, %v3234_v6 }
 0x2ef   : > { %v4342_v25 = vadd.f32 %v4308_v3, %v3916_v24 }
 0x2f1   : > { %4374 = vst [vmem:[%s6837_s20 + $0xf8] sm:$0xff] %v4342_v25  ;;  %v4405_v22 = vadd.f32 %v4404_v52, %v4342_v25  ;;  %v4444_v48 = vmul.f32 %v4342_v25, %v4342_v25 }
 0x2f3   : > { %v4406_v17 = vrot.slane %v4405_v22, 4  ;;  %v4475_v18 = vadd.f32 %v4474_v0, %v4444_v48 }
 0x2f5   : > { %v4407_v15 = vadd.f32 %v4406_v17, %v4405_v22  ;;  %v4476_v7 = vrot.slane %v4475_v18, 4 }
 0x2f7   : > { %v4408_v26 = vrot.slane %v4407_v15, 2  ;;  %v4477_v39 = vadd.f32 %v4476_v7, %v4475_v18 }
 0x2f9   : > { %v4409_v59 = vadd.f32 %v4408_v26, %v4407_v15  ;;  %v4478_v37 = vrot.slane %v4477_v39, 2 }
 0x2fb   : > { %v4410_v1 = vrot.slane %v4409_v59, 1  ;;  %v4479_v4 = vadd.f32 %v4478_v37, %v4477_v39 }
 0x2fd   : > { %v4411_v42 = vadd.f32 %v4410_v1, %v4409_v59  ;;  %v4480_v60 = vrot.slane %v4479_v4, 1 }
 0x2ff   : > { %4412 = vst [vmem:[%s181_s24] sm:$0x1] %v4411_v42  ;;  %v4481_v51 = vadd.f32 %v4480_v60, %v4479_v4 }
 0x301   : > { %4482 = vst [vmem:[%s181_s24 + $0x1] sm:$0x1] %v4481_v51 }
 0x302 PF: > { %s14_s12 = sadd.s32 1, %s5641_s12  }
 0x303   : > { %p11_p4 = scmp.ge.s32.totalorder %s14_s12, 4  }
 0x305   :  { %13 = sbr.rel (!%p11_p4) target bundleno = 1 (0x1), region = 80 }

// kernel: resnet_block_forward.4
= control target key start
LH: loop header
LB: loop body
LE: loop exit
PB: predicated region body
PF: predicated region fallthrough
CT: control target
= control target key end

     0   :  { %s6210_s18 = smov 0   ;;  %s7813_s0 = inlined_call_operand.vmem [shape: f32[2,256,128], index: 0, kind: input, shape index: {}]   ;;  %s7814_s1 = inlined_call_operand.vmem [shape: f32[1,128], index: 1, kind: input, shape index: {}]   ;;  %s7815_s2 = inlined_call_operand.vmem [shape: f32[1,128], index: 2, kind: input, shape index: {}]   ;;  %s7816_s3 = inlined_call_operand.vmem [shape: bf16[9,128,128], index: 3, kind: input, shape index: {}]   ;;  %s7817_s4 = inlined_call_operand.vmem [shape: f32[2,256,128], index: 4, kind: output, shape index: {0}]   ;;  %s7818_s5 = inlined_call_operand.vmem [shape: f32[2,2,128], index: 5, kind: output, shape index: {1}]  }
   0x1 LB: > { %s5286_s19 = sadd.s32 4294967295, %s6177_s18   ;;  %p5290_p0 = scmp.ge.s32.totalorder %s6177_s18, 1  ;;  %s6177_s18 = sphi %s6210_s18, %s16_s18  }
   0x2   : > { %p190_p1 = scmp.lt.s32.totalorder %s6177_s18, 3 }
   0x4   : > { %p191_p2 = pnand %p5290_p0, %p190_p1 }
   0x6   : > { %194 = sbr.rel (%p191_p2) target bundleno = 862 (0x35e), region = 36 }
   0xb   : > { %v5987_v0 = vld [vmem:[%s7816_s3 + $0x78] sm:$0xff]  ;;  %p222_p3 = scmp.lt.s32.totalorder %s5286_s19, 1  ;;  %v6179_v1 = vmov 0   ;;  %v5986_v2 = vld [vmem:[%s7816_s3 + $0x70] sm:$0xff]  ;;  %v6230_v3 = vld [vmem:[%s7814_s1] ss:$0 sm:$0xff] }
   0xc   : > { %385 = vst [vmem:[#allocation2 + $0x30] sm:$0xf] %v6179_v1  ;;  %6076 = vmatpush.bf16.msra.mxu1 %v5987_v0  ;;  %6077 = vmatpush.bf16.msra.mxu2 %v5987_v0  ;;  %v6244_v4 = vld [vmem:[%s7815_s2] ss:$0 sm:$0xff]  ;;  %v5985_v5 = vld [vmem:[%s7816_s3 + $0x68] sm:$0xff]  ;;  %v5983_v20 = vld [vmem:[%s7816_s3 + $0x58] sm:$0xff] }
   0xd   : > { %s7846_s19 = smov (!%p222_p3, %s5286_s19), 1  ;;  %6078 = vmatpush.bf16.msra.mxu3 %v5987_v0  ;;  %1480 = vmatpush.bf16.msra.mxu0 %v5987_v0  ;;  %386 = vst [vmem:[#allocation2 + $0x34] sm:$0xf] %v6179_v1  ;;  %v5984_v16 = vld [vmem:[%s7816_s3 + $0x60] sm:$0xff]  ;;  %vm783_vm0 = vcmask 1043456   ;;  %vm790_vm1 = vcmask 1040384  }
   0xe   : > { %s5954_s26 = sshll.u32 %s7846_s19, 8  ;;  %387 = vst [vmem:[#allocation2 + $0x38] sm:$0x1] %v6179_v1  ;;  %vm459_vm2 = vsmask.f32 256  ;;  %v5982_v34 = vld [vmem:[%s7816_s3 + $0x50] sm:$0xff] }
   0xf   : > { %s6239_s29 = scalar_lea.vmem %s7813_s0, %s5954_s26  ;;  %373 = vst [vmem:[#allocation2] sm:$0xf] %v6179_v1  ;;  %vm460_vm3 = vsmask.f32 4368  ;;  %vm784_vm4 = vsmask.f32 7938  ;;  %vm6281_vm5 = vmand %vm790_vm1, %vm459_vm2  ;;  %s7567_s9 = scalar_lea.vmem %s7817_s4, %s5954_s26 }
  0x10   : > { %6079 = vmatpush.bf16.msra.mxu1 %v5986_v2  ;;  %6080 = vmatpush.bf16.msra.mxu2 %v5986_v2  ;;  %v243_v6 = vld [vmem:[%s6239_s29 + $0x30] sm:$0xff]  ;;  %v244_v7 = vld [vmem:[%s6239_s29 + $0x38] sm:$0xff]  ;;  %374 = vst [vmem:[#allocation2 + $0x4] sm:$0xf] %v6179_v1  ;;  %vm6293_vm6 = vmor %vm459_vm2, %vm460_vm3  ;;  %vm964_vm8 = vsmask.f32 3328 }
  0x11   : > { %6081 = vmatpush.bf16.msra.mxu3 %v5986_v2  ;;  %1481 = vmatpush.bf16.msra.mxu0 %v5986_v2  ;;  %v279_v8 = vmul.f32 %v6230_v3, %v243_v6  ;;  %v280_v9 = vmul.f32 %v6230_v3, %v244_v7  ;;  %v251_v10 = vld [vmem:[%s6239_s29 + $0x70] sm:$0xff]  ;;  %v252_v11 = vld [vmem:[%s6239_s29 + $0x78] sm:$0xff]  ;;  %375 = vst [vmem:[#allocation2 + $0x8] sm:$0x1] %v6179_v1  ;;  %vm6301_vm7 = vmand %vm783_vm0, %vm784_vm4  ;;  %vm965_vm9 = vsmask.f32 7440 }
  0x12   : > { %v287_v12 = vmul.f32 %v6230_v3, %v251_v10  ;;  %v288_v13 = vmul.f32 %v6230_v3, %v252_v11  ;;  %376 = vst [vmem:[#allocation2 + $0xc] sm:$0xf] %v6179_v1  ;;  %v259_v25 = vld [vmem:[%s6239_s29 + $0xb0] sm:$0xff]  ;;  %v260_v26 = vld [vmem:[%s6239_s29 + $0xb8] sm:$0xff]  ;;  %v5981_v53 = vld [vmem:[%s7816_s3 + $0x48] sm:$0xff]  ;;  %vm1850_vm11 = vcmask 1042432  }
  0x13   : > { %v315_v14 = vadd.f32 %v6244_v4, %v279_v8  ;;  %v316_v15 = vadd.f32 %v6244_v4, %v280_v9  ;;  %377 = vst [vmem:[#allocation2 + $0x10] sm:$0xf] %v6179_v1  ;;  %v295_v38 = vmul.f32 %v6230_v3, %v259_v25  ;;  %v809_v40 = vld [vmem:[#allocation2 + $0x30] sm:$0xf]  ;;  %v296_v42 = vmul.f32 %v6230_v3, %v260_v26  ;;  %v5980_v60 = vld [vmem:[%s7816_s3 + $0x40] sm:$0xff]  ;;  %vm6364_vm10 = vmor %vm964_vm8, %vm965_vm9  ;;  %s5295_s26 = sshll.u32 %s7846_s19, 1 }
  0x14   : > { %6082 = vmatpush.bf16.msra.mxu1 %v5985_v5  ;;  %6083 = vmatpush.bf16.msra.mxu2 %v5985_v5  ;;  %v323_v17 = vadd.f32 %v6244_v4, %v287_v12  ;;  %378 = vst [vmem:[#allocation2 + $0x14] sm:$0x1] %v6179_v1  ;;  %v324_v21 = vadd.f32 %v6244_v4, %v288_v13  ;;  %vm1851_vm12 = vcmask 1046532   ;;  %s235_s12 = scalar_lea.vmem %s7818_s5, %s5295_s26 }
  0x15   : > { %6084 = vmatpush.bf16.msra.mxu3 %v5985_v5  ;;  %1482 = vmatpush.bf16.msra.mxu0 %v5985_v5  ;;  %v347_v18 = vmax.f32 %v315_v14, 0.0  ;;  %v348_v19 = vmax.f32 %v316_v15, 0.0  ;;  %379 = vst [vmem:[#allocation2 + $0x18] sm:$0xf] %v6179_v1  ;;  %v813_v41 = vld [vmem:[#allocation2 + $0x38] sm:$0x1]  ;;  %v331_v49 = vadd.f32 %v6244_v4, %v295_v38  ;;  %v332_v54 = vadd.f32 %v6244_v4, %v296_v42  ;;  %vm6903_vm13 = vmor %vm1850_vm11, %vm1851_vm12 }
  0x16   : > { %v355_v22 = vmax.f32 %v323_v17, 0.0  ;;  %380 = vst [vmem:[#allocation2 + $0x1c] sm:$0xf] %v6179_v1  ;;  %v356_v32 = vmax.f32 %v324_v21, 0.0 }
  0x17   : > { %v433_v23 = vpack.c.bf16 %v347_v18, %v347_v18  ;;  %v434_v24 = vpack.c.bf16 %v348_v19, %v348_v19  ;;  %381 = vst [vmem:[#allocation2 + $0x20] sm:$0x1] %v6179_v1  ;;  %v363_v55 = vmax.f32 %v331_v49, 0.0  ;;  %v364_v58 = vmax.f32 %v332_v54, 0.0 }
  0x18   : > { %6085 = vmatpush.bf16.msra.mxu1 %v5984_v16  ;;  %6086 = vmatpush.bf16.msra.mxu2 %v5984_v16  ;;  %382 = vst [vmem:[#allocation2 + $0x24] sm:$0xf] %v6179_v1  ;;  %v6286_v33 = vpack.c.bf16 %v355_v22, %v355_v22  ;;  %v6309_v47 = vpack.c.bf16 %v356_v32, %v356_v32 }
  0x19   : > { %6087 = vmatpush.bf16.msra.mxu3 %v5984_v16  ;;  %1483 = vmatpush.bf16.msra.mxu0 %v5984_v16  ;;  %v514_v27 = vshrl.u32 %v433_v23, 16  ;;  %v517_v28 = vshll.u32 %v433_v23, 16  ;;  %v522_v29 = vshrl.u32 %v434_v24, 16  ;;  %v525_v30 = vshll.u32 %v434_v24, 16  ;;  %383 = vst [vmem:[#allocation2 + $0x28] sm:$0xf] %v6179_v1 }
  0x1a   : > { %384 = vst [vmem:[#allocation2 + $0x2c] sm:$0x1] %v6179_v1  ;;  %v582_v48 = vshrl.u32 %v6286_v33, 16  ;;  %v590_v57 = vshrl.u32 %v6309_v47, 16  ;;  %v6327_v59 = vpack.c.bf16 %v363_v55, %v363_v55  ;;  %v450_v61 = vpack.c.bf16 %v364_v58, %v364_v58  ;;  %v245_v23 = vld [vmem:[%s6239_s29 + $0x40] sm:$0xff] }
  0x1b   : > { %v516_v36 = vrot.slane %v514_v27, 7  ;;  %v524_v37 = vrot.slane %v522_v29, 7  ;;  %388 = vst [vmem:[#allocation2 + $0x3c] sm:$0xf] %v6179_v1  ;;  %v585_v63 = vshll.u32 %v6286_v33, 16  ;;  %v593_v5 = vshll.u32 %v6309_v47, 16 }
  0x1c   : > { %6088 = vmatpush.bf16.msra.mxu1 %v5983_v20  ;;  %6089 = vmatpush.bf16.msra.mxu2 %v5983_v20  ;;  %389 = vst [vmem:[#allocation2 + $0x40] sm:$0xf] %v6179_v1  ;;  %v6324_v56 = vrot.slane %v582_v48, 7  ;;  %v650_v62 = vshrl.u32 %v6327_v59, 16  ;;  %v6339_v2 = vrot.slane %v590_v57, 7  ;;  %v658_v8 = vshrl.u32 %v450_v61, 16 }
  0x1d   : > { %6090 = vmatpush.bf16.msra.mxu3 %v5983_v20  ;;  %1484 = vmatpush.bf16.msra.mxu0 %v5983_v20  ;;  %v519_v43 = vor.u32 %v517_v28, %v516_v36  ;;  %v520_v44 = vrot.slane %v516_v36, 4  ;;  %v527_v45 = vor.u32 %v525_v30, %v524_v37  ;;  %v529_v46 = vrot.slane %v524_v37, 4  ;;  %390 = vst [vmem:[#allocation2 + $0x44] sm:$0x1] %v6179_v1  ;;  %v246_v27 = vld [vmem:[%s6239_s29 + $0x48] sm:$0xff]  ;;  %v253_v29 = vld [vmem:[%s6239_s29 + $0x80] sm:$0xff] }
  0x1e   : > { %391 = vst [vmem:[#allocation2 + $0x48] sm:$0xf] %v6179_v1  ;;  %v588_v0 = vrot.slane %v6324_v56, 4  ;;  %v6343_v7 = vrot.slane %v650_v62, 7  ;;  %v661_v18 = vshll.u32 %v450_v61, 16  ;;  %v6350_v21 = vor.u32 %v585_v63, %v6324_v56  ;;  %v254_v30 = vld [vmem:[%s6239_s29 + $0x88] sm:$0xff] }
  0x1f   : > { %v528_v50 = vsel %vm6293_vm6, %v520_v44, %v527_v45  ;;  %v810_v51 = vsel %vm6301_vm7, %v519_v43, %v809_v40  ;;  %v814_v52 = vsel %vm6281_vm5, %v529_v46, %v813_v41  ;;  %392 = vst [vmem:[#allocation2 + $0x4c] sm:$0xf] %v6179_v1  ;;  %v6352_v22 = vrot.slane %v658_v8, 7  ;;  %v261_v57 = vld [vmem:[%s6239_s29 + $0xc0] sm:$0xff] }
  0x20   : > { %6091 = vmatpush.bf16.msra.mxu1 %v5982_v34  ;;  %6092 = vmatpush.bf16.msra.mxu2 %v5982_v34  ;;  %811 = vst [vmem:[#allocation2 + $0x30] sm:$0xf] %v810_v51  ;;  %v595_v25 = vor.u32 %v593_v5, %v6339_v2  ;;  %v597_v26 = vrot.slane %v6339_v2, 4  ;;  %v281_v28 = vmul.f32 %v6230_v3, %v245_v23  ;;  %v653_v36 = vshll.u32 %v6327_v59, 16  ;;  %v262_v5 = vld [vmem:[%s6239_s29 + $0xc8] sm:$0xff] }
  0x21   : > { %6093 = vmatpush.bf16.msra.mxu3 %v5982_v34  ;;  %1485 = vmatpush.bf16.msra.mxu0 %v5982_v34  ;;  %812 = vst [vmem:[#allocation2 + $0x34] sm:$0xf] %v528_v50  ;;  %v282_v37 = vmul.f32 %v6230_v3, %v246_v27  ;;  %v289_v41 = vmul.f32 %v6230_v3, %v253_v29  ;;  %v656_v44 = vrot.slane %v6343_v7, 4  ;;  %v665_v62 = vrot.slane %v6352_v22, 4  ;;  %v900_v8 = vld [vmem:[#allocation2] sm:$0xf] }
  0x22   : > { %815 = vst [vmem:[#allocation2 + $0x38] sm:$0x1] %v814_v52  ;;  %v317_v40 = vadd.f32 %v6244_v4, %v281_v28  ;;  %v290_v42 = vmul.f32 %v6230_v3, %v254_v30  ;;  %v663_v45 = vor.u32 %v661_v18, %v6352_v22  ;;  %v6398_v59 = vor.u32 %v653_v36, %v6343_v7  ;;  %v948_v27 = vld [vmem:[#allocation2 + $0x8] sm:$0x1] }
  0x23   : > { %393 = vst [vmem:[#allocation2 + $0x50] sm:$0x1] %v6179_v1  ;;  %v318_v46 = vadd.f32 %v6244_v4, %v282_v37  ;;  %v325_v49 = vadd.f32 %v6244_v4, %v289_v41  ;;  %v987_v37 = vshll.u32 %v948_v27, 16  ;;  %v238_v41 = vld [vmem:[%s6239_s29 + $0x8] sm:$0xff] }
  0x24   : > { %6094 = vmatpush.bf16.msra.mxu1 %v5981_v53  ;;  %6095 = vmatpush.bf16.msra.mxu2 %v5981_v53  ;;  %394 = vst [vmem:[#allocation2 + $0x54] sm:$0xf] %v6179_v1  ;;  %v349_v48 = vmax.f32 %v317_v40, 0.0  ;;  %v326_v50 = vadd.f32 %v6244_v4, %v290_v42  ;;  %v6403_v56 = vsel %vm6293_vm6, %v656_v44, %v663_v45  ;;  %v237_v40 = vld [vmem:[%s6239_s29] sm:$0xff] }
  0x25   : > { %6096 = vmatpush.bf16.msra.mxu3 %v5981_v53  ;;  %1486 = vmatpush.bf16.msra.mxu0 %v5981_v53  ;;  %395 = vst [vmem:[#allocation2 + $0x58] sm:$0xf] %v6179_v1  ;;  %v6391_v53 = vsel %vm6293_vm6, %v588_v0, %v595_v25  ;;  %v350_v55 = vmax.f32 %v318_v46, 0.0  ;;  %v357_v61 = vmax.f32 %v325_v49, 0.0  ;;  %v989_v49 = vrot.slane %v987_v37, 5 }
  0x26   : > { %396 = vst [vmem:[#allocation2 + $0x5c] sm:$0x1] %v6179_v1  ;;  %v358_v0 = vmax.f32 %v326_v50, 0.0 }
  0x27   : > { %v908_v6 = vld [vmem:[#allocation2 + $0x30] sm:$0xf]  ;;  %397 = vst [vmem:[#allocation2 + $0x60] sm:$0xf] %v6179_v1  ;;  %v436_v63 = vpack.c.bf16 %v350_v55, %v350_v55 }
  0x28   : > { %6097 = vmatpush.bf16.msra.mxu1 %v5980_v60  ;;  %6098 = vmatpush.bf16.msra.mxu2 %v5980_v60  ;;  %v909_v9 = vld [vmem:[#allocation2 + $0x34] sm:$0xf]  ;;  %v1064_v10 = vshrl.u32 %v908_v6, 16  ;;  %v1067_v11 = vshll.u32 %v908_v6, 16  ;;  %398 = vst [vmem:[#allocation2 + $0x64] sm:$0xf] %v6179_v1  ;;  %v444_v30 = vpack.c.bf16 %v358_v0, %v358_v0 }
  0x29   : > { %6099 = vmatpush.bf16.msra.mxu3 %v5980_v60  ;;  %1487 = vmatpush.bf16.msra.mxu0 %v5980_v60  ;;  %v952_v12 = vld [vmem:[#allocation2 + $0x38] sm:$0x1]  ;;  %v1073_v13 = vshll.u32 %v909_v9, 16  ;;  %v1077_v14 = vshrl.u32 %v909_v9, 16  ;;  %399 = vst [vmem:[#allocation2 + $0x68] sm:$0x1] %v6179_v1  ;;  %v435_v60 = vpack.c.bf16 %v349_v48, %v349_v48 }
  0x2a   : > { %v1066_v15 = vrot.slane %v1064_v10, 4  ;;  %v1069_v16 = vrot.slane %v1067_v11, 5  ;;  %v1083_v17 = vshll.u32 %v952_v12, 16  ;;  %400 = vst [vmem:[#allocation2 + $0x6c] sm:$0xf] %v6179_v1  ;;  %v6412_v10 = vpack.c.bf16 %v357_v61, %v357_v61 }
  0x2b   : > { %v1075_v19 = vrot.slane %v1073_v13, 5  ;;  %v1079_v20 = vrot.slane %v1077_v14, 4  ;;  %401 = vst [vmem:[#allocation2 + $0x70] sm:$0xf] %v6179_v1  ;;  %v901_v9 = vld [vmem:[#allocation2 + $0x4] sm:$0xf]  ;;  %v297_v11 = vmul.f32 %v6230_v3, %v261_v57  ;;  %v273_v57 = vmul.f32 %v6230_v3, %v237_v40 }
  0x2c   : > { %v1070_v24 = vor.u32 %v1069_v16, %v1066_v15  ;;  %v1085_v34 = vrot.slane %v1083_v17, 5  ;;  %402 = vst [vmem:[#allocation2 + $0x74] sm:$0x1] %v6179_v1  ;;  %v968_v12 = vshrl.u32 %v900_v8, 16  ;;  %v971_v13 = vshll.u32 %v900_v8, 16  ;;  %v6018_v40 = vld [vmem:[%s7816_s3 + $0xf0] sm:$0xff] }
  0x2d   : > { %v1080_v33 = vor.u32 %v1079_v20, %v1075_v19  ;;  %403 = vst [vmem:[#allocation2 + $0x78] sm:$0xf] %v6179_v1  ;;  %v977_v14 = vshll.u32 %v901_v9, 16  ;;  %v981_v15 = vshrl.u32 %v901_v9, 16  ;;  %v531_v16 = vshrl.u32 %v435_v60, 16 }
  0x2e   : > { %v1071_v38 = vrot.slane %v1070_v24, 4  ;;  %404 = vst [vmem:[#allocation2 + $0x7c] sm:$0xf] %v6179_v1  ;;  %v6393_v54 = vld [vmem:[#allocation2 + $0x60] sm:$0xf]  ;;  %v534_v17 = vshll.u32 %v435_v60, 16  ;;  %v333_v55 = vadd.f32 %v6244_v4, %v297_v11 }
  0x2f   : > { %v1081_v43 = vrot.slane %v1080_v33, 4  ;;  %405 = vst [vmem:[#allocation2 + $0x80] sm:$0x1] %v6179_v1  ;;  %v838_v7 = vsel %vm6301_vm7, %v6350_v21, %v6393_v54  ;;  %v539_v18 = vshrl.u32 %v436_v63, 16  ;;  %v970_v20 = vrot.slane %v968_v12, 4  ;;  %v247_v11 = vld [vmem:[%s6239_s29 + $0x50] sm:$0xff] }
  0x30   : > { %v1076_v47 = vsel %vm6364_vm10, %v1071_v38, %v1075_v19  ;;  %406 = vst [vmem:[#allocation2 + $0x84] sm:$0xf] %v6179_v1  ;;  %v542_v19 = vshll.u32 %v436_v63, 16  ;;  %v973_v23 = vrot.slane %v971_v13, 5  ;;  %v979_v24 = vrot.slane %v977_v14, 5 }
  0x31   : > { %v1086_v51 = vsel %vm6364_vm10, %v1081_v43, %v1085_v34  ;;  %v1376_v52 = vunpack.c.l.b16 %v1076_v47  ;;  %407 = vst [vmem:[#allocation2 + $0x88] sm:$0xf] %v6179_v1  ;;  %v983_v25 = vrot.slane %v981_v15, 4  ;;  %v533_v28 = vrot.slane %v531_v16, 7  ;;  %v841_v42 = vld [vmem:[#allocation2 + $0x68] sm:$0x1] }
  0x32   : > { %v1377_v58 = vunpack.c.l.b16 %v1086_v51  ;;  %408 = vst [vmem:[#allocation2 + $0x8c] sm:$0x1] %v6179_v1  ;;  %v6419_v29 = vrot.slane %v539_v18, 7  ;;  %v298_v33 = vmul.f32 %v6230_v3, %v262_v5  ;;  %v974_v34 = vor.u32 %v973_v23, %v970_v20  ;;  %v6435_v51 = vld [vmem:[#allocation2 + $0x3c] sm:$0xf] }
  0x33   : > { %409 = vst [vmem:[#allocation2 + $0x90] sm:$0xf] %v6179_v1  ;;  %v984_v36 = vor.u32 %v983_v25, %v979_v24  ;;  %v599_v38 = vshrl.u32 %v6412_v10, 16  ;;  %v6427_v43 = vor.u32 %v534_v17, %v533_v28  ;;  %v537_v44 = vrot.slane %v533_v28, 4  ;;  %v820_v9 = vld [vmem:[#allocation2 + $0x44] sm:$0x1] }
  0x34   : > { %v1404_v6 = vpack.c.b16 %v1377_v58, %v1376_v52  ;;  %410 = vst [vmem:[#allocation2 + $0x94] sm:$0xf] %v6179_v1  ;;  %v544_v45 = vor.u32 %v542_v19, %v6419_v29  ;;  %v602_v46 = vshll.u32 %v6412_v10, 16  ;;  %v975_v47 = vrot.slane %v974_v34, 4  ;;  %v6460_v10 = vld [vmem:[#allocation2 + $0x6c] sm:$0xf] }
  0x35   : > { %411 = vst [vmem:[#allocation2 + $0x98] sm:$0x1] %v6179_v1  ;;  %v985_v48 = vrot.slane %v984_v36, 4  ;;  %v6432_v50 = vrot.slane %v599_v38, 7  ;;  %v607_v52 = vshrl.u32 %v444_v30, 16  ;;  %v274_v58 = vmul.f32 %v6230_v3, %v238_v41  ;;  %v5995_v17 = vld [vmem:[%s7816_s3 + $0xb8] sm:$0xff] }
  0x36   : > { %1508 = vmatmul.bf16.vlgmr.msra.gmra.mxu1 %v1404_v6  ;;  %412 = vst [vmem:[#allocation2 + $0x9c] sm:$0xf] %v6179_v1  ;;  %v6445_v60 = vsel %vm6281_vm5, %v597_v26, %v841_v42  ;;  %v980_v63 = vsel %vm6364_vm10, %v975_v47, %v979_v24  ;;  %v334_v5 = vadd.f32 %v6244_v4, %v298_v33  ;;  %v546_v26 = vrot.slane %v6419_v29, 4  ;;  %v6019_v19 = vld [vmem:[%s7816_s3 + $0xf8] sm:$0xff]  ;;  %v5994_v34 = vld [vmem:[%s7816_s3 + $0xb0] sm:$0xff] }
  0x37   : > { %413 = vst [vmem:[#allocation2 + $0xa0] sm:$0xf] %v6179_v1  ;;  %v990_v0 = vsel %vm6364_vm10, %v985_v48, %v989_v49  ;;  %v1368_v6 = vunpack.c.l.b16 %v980_v63  ;;  %v6457_v2 = vsel %vm6293_vm6, %v537_v44, %v544_v45  ;;  %v817_v13 = vsel %vm6301_vm7, %v6427_v43, %v6435_v51  ;;  %v5979_v20 = vld [vmem:[%s7816_s3 + $0x38] sm:$0xff]  ;;  %2094 = vmatpush.bf16.msrb.mxu2 %v5995_v17  ;;  %v5978_v41 = vld [vmem:[%s7816_s3 + $0x30] sm:$0xff]  ;;  %v6541_v17 = vld [vmem:[#allocation2 + $0xc] sm:$0xf] }
  0x38   : > { %414 = vst [vmem:[#allocation2 + $0xa4] sm:$0x1] %v6179_v1  ;;  %v1369_v8 = vunpack.c.l.b16 %v990_v0  ;;  %v6469_v14 = vor.u32 %v602_v46, %v6432_v50  ;;  %v6471_v15 = vrot.slane %v607_v52, 7  ;;  %v610_v16 = vshll.u32 %v444_v30, 16  ;;  %v6027_v28 = vld [vmem:[%s7816_s3 + $0x138] sm:$0xff]  ;;  %2408 = vmatpush.bf16.msrb.mxu3 %v6019_v19  ;;  %1713 = vmatpush.bf16.msrb.mxu1 %v5979_v20 }
  0x39   : > { %415 = vst [vmem:[#allocation2 + $0xa8] sm:$0xf] %v6179_v1  ;;  %v365_v23 = vmax.f32 %v333_v55, 0.0  ;;  %v309_v24 = vadd.f32 %v6244_v4, %v273_v57  ;;  %v310_v25 = vadd.f32 %v6244_v4, %v274_v58  ;;  %v605_v29 = vrot.slane %v6432_v50, 4  ;;  %3090 = vmatpush.bf16.msrb.mxu0 %v6027_v28  ;;  %v848_v49 = vld [vmem:[#allocation2 + $0x74] sm:$0x1] }
  0x3a   : > { %416 = vst [vmem:[#allocation2 + $0xac] sm:$0xf] %v6179_v1  ;;  %v6447_v61 = vld [vmem:[#allocation2 + $0x90] sm:$0xf]  ;;  %v1400_v18 = vpack.c.b16 %v1369_v8, %v1368_v6  ;;  %v612_v30 = vor.u32 %v610_v16, %v6471_v15  ;;  %v283_v33 = vmul.f32 %v6230_v3, %v247_v11  ;;  %v366_v36 = vmax.f32 %v334_v5, 0.0  ;;  %v248_v55 = vld [vmem:[%s6239_s29 + $0x58] sm:$0xff] }
  0x3b   : > { %417 = vst [vmem:[#allocation2 + $0xb0] sm:$0x1] %v6179_v1  ;;  %v866_v27 = vsel %vm6301_vm7, %v6398_v59, %v6447_v61  ;;  %v6502_v59 = vsel %vm6281_vm5, %v546_v26, %v820_v9  ;;  %v451_v37 = vpack.c.bf16 %v365_v23, %v365_v23  ;;  %v845_v42 = vsel %vm6301_vm7, %v6469_v14, %v6460_v10  ;;  %v255_v5 = vld [vmem:[%s6239_s29 + $0x90] sm:$0xff] }
  0x3c   : > { %418 = vst [vmem:[#allocation2 + $0xb4] sm:$0xf] %v6179_v1  ;;  %v869_v12 = vld [vmem:[#allocation2 + $0x98] sm:$0x1]  ;;  %1488 = vmatmul.bf16.vlgmr.msra.gmra.mxu0 %v1400_v18  ;;  %v341_v22 = vmax.f32 %v309_v24, 0.0  ;;  %v342_v44 = vmax.f32 %v310_v25, 0.0  ;;  %v452_v45 = vpack.c.bf16 %v366_v36, %v366_v36  ;;  %v6524_v48 = vsel %vm6293_vm6, %v605_v29, %v612_v30  ;;  %2095 = vmatpush.bf16.msrb.mxu2 %v5994_v34 }
  0x3d   : > { %419 = vst [vmem:[#allocation2 + $0xb8] sm:$0xf] %v6179_v1  ;;  %v870_v38 = vsel %vm6281_vm5, %v665_v62, %v869_v12  ;;  %v614_v62 = vrot.slane %v6471_v15, 4  ;;  %v667_v46 = vshrl.u32 %v451_v37, 16  ;;  %v670_v47 = vshll.u32 %v451_v37, 16  ;;  %2409 = vmatpush.bf16.msrb.mxu3 %v6018_v40  ;;  %1714 = vmatpush.bf16.msrb.mxu1 %v5978_v41  ;;  %v256_v25 = vld [vmem:[%s6239_s29 + $0x98] sm:$0xff] }
  0x3e   : > { %420 = vst [vmem:[#allocation2 + $0xbc] sm:$0x1] %v6179_v1  ;;  %v427_v50 = vpack.c.bf16 %v341_v22, %v341_v22  ;;  %v428_v52 = vpack.c.bf16 %v342_v44, %v342_v44  ;;  %v319_v57 = vadd.f32 %v6244_v4, %v283_v33  ;;  %v675_v61 = vshrl.u32 %v452_v45, 16  ;;  %v6536_v6 = vld [vmem:[#allocation2 + $0x9c] sm:$0xf]  ;;  %v263_v34 = vld [vmem:[%s6239_s29 + $0xd0] sm:$0xff] }
  0x3f   : > { %421 = vst [vmem:[#allocation2 + $0xc0] sm:$0xf] %v6179_v1  ;;  %v669_v58 = vrot.slane %v667_v46, 7  ;;  %v678_v63 = vshll.u32 %v452_v45, 16  ;;  %v284_v0 = vmul.f32 %v6230_v3, %v248_v55  ;;  %v876_v8 = vld [vmem:[#allocation2 + $0xa4] sm:$0x1]  ;;  %v6547_v54 = vsel %vm6281_vm5, %v614_v62, %v848_v49 }
  0x40   : > { %422 = vst [vmem:[#allocation2 + $0xc4] sm:$0xf] %v6179_v1  ;;  %v463_v26 = vshrl.u32 %v427_v50, 16  ;;  %v471_v9 = vshrl.u32 %v428_v52, 16  ;;  %v474_v11 = vshll.u32 %v428_v52, 16  ;;  %v677_v16 = vrot.slane %v675_v61, 7 }
  0x41   : > { %423 = vst [vmem:[#allocation2 + $0xc8] sm:$0x1] %v6179_v1  ;;  %v6539_v12 = vor.u32 %v670_v47, %v669_v58  ;;  %v673_v15 = vrot.slane %v669_v58, 4  ;;  %v320_v21 = vadd.f32 %v6244_v4, %v284_v0  ;;  %v792_v19 = vld [vmem:[#allocation2 + $0x14] sm:$0x1]  ;;  %v291_v28 = vmul.f32 %v6230_v3, %v255_v5  ;;  %v264_v40 = vld [vmem:[%s6239_s29 + $0xd8] sm:$0xff] }
  0x42   : > { %424 = vst [vmem:[#allocation2 + $0xcc] sm:$0xf] %v6179_v1  ;;  %v473_v18 = vrot.slane %v471_v9, 7  ;;  %v680_v20 = vor.u32 %v678_v63, %v677_v16  ;;  %v682_v23 = vrot.slane %v677_v16, 4  ;;  %v292_v44 = vmul.f32 %v6230_v3, %v256_v25 }
  0x43   : > { %425 = vst [vmem:[#allocation2 + $0xd0] sm:$0xf] %v6179_v1  ;;  %v352_v24 = vmax.f32 %v320_v21, 0.0  ;;  %v299_v45 = vmul.f32 %v6230_v3, %v263_v34 }
  0x44   : > { %426 = vst [vmem:[#allocation2 + $0xd4] sm:$0x1] %v6179_v1  ;;  %v466_v1 = vshll.u32 %v427_v50, 16  ;;  %v476_v30 = vor.u32 %v474_v11, %v473_v18  ;;  %v478_v33 = vrot.slane %v473_v18, 4  ;;  %v6557_v36 = vsel %vm6293_vm6, %v673_v15, %v680_v20 }
  0x45   : > { %839 = vst [vmem:[#allocation2 + $0x60] sm:$0xf] %v838_v7  ;;  %v465_v7 = vrot.slane %v463_v26, 7  ;;  %v6565_v37 = vsel %vm6281_vm5, %v682_v23, %v876_v8  ;;  %v6583_v22 = vpack.c.bf16 %v352_v24, %v352_v24  ;;  %v6596_v50 = vadd.f32 %v6244_v4, %v291_v28 }
  0x46   : > { %840 = vst [vmem:[#allocation2 + $0x64] sm:$0xf] %v6391_v53  ;;  %v351_v53 = vmax.f32 %v319_v57, 0.0  ;;  %v6589_v43 = vsel %vm6281_vm5, %v478_v33, %v792_v19  ;;  %v6605_v58 = vadd.f32 %v6244_v4, %v292_v44  ;;  %v6608_v61 = vadd.f32 %v6244_v4, %v299_v45  ;;  %v6017_v44 = vld [vmem:[%s7816_s3 + $0xe8] sm:$0xff] }
  0x47   : > { %843 = vst [vmem:[#allocation2 + $0x68] sm:$0x1] %v6445_v60  ;;  %v6552_v60 = vor.u32 %v466_v1, %v465_v7  ;;  %v469_v29 = vrot.slane %v465_v7, 4  ;;  %2410 = vmatpush.bf16.msrb.mxu3 %v6017_v44 }
  0x48   : > { %867 = vst [vmem:[#allocation2 + $0x90] sm:$0xf] %v866_v27  ;;  %v873_v27 = vsel %vm6301_vm7, %v6539_v12, %v6536_v6  ;;  %v6025_v6 = vld [vmem:[%s7816_s3 + $0x128] sm:$0xff] }
  0x49   : > { %868 = vst [vmem:[#allocation2 + $0x94] sm:$0xf] %v6403_v56  ;;  %v6567_v56 = vpack.c.bf16 %v351_v53, %v351_v53  ;;  %v787_v41 = vsel %vm6301_vm7, %v6552_v60, %v6541_v17  ;;  %v559_v17 = vshll.u32 %v6583_v22, 16  ;;  %v359_v60 = vmax.f32 %v6596_v50, 0.0 }
  0x4a   : > { %871 = vst [vmem:[#allocation2 + $0x98] sm:$0x1] %v870_v38  ;;  %v6577_v38 = vsel %vm6293_vm6, %v469_v29, %v476_v30 }
  0x4b   : > { %818 = vst [vmem:[#allocation2 + $0x3c] sm:$0xf] %v817_v13  ;;  %v548_v51 = vshrl.u32 %v6567_v56, 16  ;;  %v551_v13 = vshll.u32 %v6567_v56, 16 }
  0x4c   : > { %v916_v62 = vld [vmem:[#allocation2 + $0x60] sm:$0xf]  ;;  %819 = vst [vmem:[#allocation2 + $0x40] sm:$0xf] %v6457_v2  ;;  %v300_v2 = vmul.f32 %v6230_v3, %v264_v40  ;;  %v5993_v3 = vld [vmem:[%s7816_s3 + $0xa8] sm:$0xff] }
  0x4d   : > { %v917_v46 = vld [vmem:[#allocation2 + $0x64] sm:$0xf]  ;;  %v1160_v47 = vshrl.u32 %v916_v62, 16  ;;  %v1163_v49 = vshll.u32 %v916_v62, 16  ;;  %822 = vst [vmem:[#allocation2 + $0x44] sm:$0x1] %v6502_v59  ;;  %2096 = vmatpush.bf16.msrb.mxu2 %v5993_v3 }
  0x4e   : > { %v956_v52 = vld [vmem:[#allocation2 + $0x68] sm:$0x1]  ;;  %v1169_v55 = vshll.u32 %v917_v46, 16  ;;  %v1173_v57 = vshrl.u32 %v917_v46, 16  ;;  %846 = vst [vmem:[#allocation2 + $0x6c] sm:$0xf] %v845_v42  ;;  %v6614_v8 = vadd.f32 %v6244_v4, %v300_v2 }
  0x4f   : > { %v1162_v59 = vrot.slane %v1160_v47, 4  ;;  %v1165_v63 = vrot.slane %v1163_v49, 5  ;;  %v1179_v0 = vshll.u32 %v956_v52, 16  ;;  %v924_v5 = vld [vmem:[#allocation2 + $0x90] sm:$0xf] }
  0x50   : > { %v1171_v26 = vrot.slane %v1169_v55, 5  ;;  %v1175_v10 = vrot.slane %v1173_v57, 4  ;;  %v925_v14 = vld [vmem:[#allocation2 + $0x94] sm:$0xf]  ;;  %v1256_v42 = vshrl.u32 %v924_v5, 16  ;;  %v1259_v1 = vshll.u32 %v924_v5, 16 }
  0x51   : > { %v1166_v9 = vor.u32 %v1165_v63, %v1162_v59  ;;  %v1181_v11 = vrot.slane %v1179_v0, 5  ;;  %v960_v15 = vld [vmem:[#allocation2 + $0x98] sm:$0x1]  ;;  %v1265_v16 = vshll.u32 %v925_v14, 16  ;;  %v1269_v21 = vshrl.u32 %v925_v14, 16  ;;  %v6026_v59 = vld [vmem:[%s7816_s3 + $0x130] sm:$0xff] }
  0x52   : > { %v1176_v7 = vor.u32 %v1175_v10, %v1171_v26  ;;  %v1258_v18 = vrot.slane %v1256_v42, 4  ;;  %v1261_v19 = vrot.slane %v1259_v1, 5  ;;  %v1275_v53 = vshll.u32 %v960_v15, 16  ;;  %v910_v20 = vld [vmem:[#allocation2 + $0x3c] sm:$0xf]  ;;  %v5977_v63 = vld [vmem:[%s7816_s3 + $0x28] sm:$0xff]  ;;  %3091 = vmatpush.bf16.msrb.mxu0 %v6026_v59 }
  0x53   : > { %v1167_v23 = vrot.slane %v1166_v9, 4  ;;  %v1267_v24 = vrot.slane %v1265_v16, 5  ;;  %v1271_v4 = vrot.slane %v1269_v21, 4  ;;  %v911_v25 = vld [vmem:[#allocation2 + $0x40] sm:$0xf]  ;;  %v1088_v28 = vshrl.u32 %v910_v20, 16  ;;  %1715 = vmatpush.bf16.msrb.mxu1 %v5977_v63 }
  0x54   : > { %v1177_v29 = vrot.slane %v1176_v7, 4  ;;  %v1262_v30 = vor.u32 %v1261_v19, %v1258_v18  ;;  %v1277_v33 = vrot.slane %v1275_v53, 5  ;;  %v953_v34 = vld [vmem:[#allocation2 + $0x44] sm:$0x1]  ;;  %v1091_v40 = vshll.u32 %v910_v20, 16 }
  0x55   : > { %v1172_v62 = vsel %vm6364_vm10, %v1167_v23, %v1171_v26  ;;  %v1272_v45 = vor.u32 %v1271_v4, %v1267_v24  ;;  %v1090_v46 = vrot.slane %v1088_v28, 4  ;;  %v1097_v47 = vshll.u32 %v911_v25, 16  ;;  %847 = vst [vmem:[#allocation2 + $0x70] sm:$0xf] %v6524_v48  ;;  %v918_v49 = vld [vmem:[#allocation2 + $0x6c] sm:$0xf] }
  0x56   : > { %v1182_v2 = vsel %vm6364_vm10, %v1177_v29, %v1181_v11  ;;  %v1384_v52 = vunpack.c.l.b16 %v1172_v62  ;;  %v1263_v55 = vrot.slane %v1262_v30, 4  ;;  %v1093_v57 = vrot.slane %v1091_v40, 5  ;;  %850 = vst [vmem:[#allocation2 + $0x74] sm:$0x1] %v6547_v54  ;;  %v5992_v54 = vld [vmem:[%s7816_s3 + $0xa0] sm:$0xff]  ;;  %3092 = vmatpush.bf16.msrb.mxu0 %v6025_v6 }
  0x57   : > { %v1385_v0 = vunpack.c.l.b16 %v1182_v2  ;;  %v1273_v48 = vrot.slane %v1272_v45, 4  ;;  %v1099_v5 = vrot.slane %v1097_v47, 5  ;;  %v1101_v3 = vshrl.u32 %v911_v25, 16  ;;  %874 = vst [vmem:[#allocation2 + $0x9c] sm:$0xf] %v873_v27  ;;  %v6016_v1 = vld [vmem:[%s7816_s3 + $0xe0] sm:$0xff]  ;;  %2097 = vmatpush.bf16.msrb.mxu2 %v5992_v54 }
  0x58   : > { %v1268_v26 = vsel %vm6364_vm10, %v1263_v55, %v1267_v24  ;;  %v1094_v10 = vor.u32 %v1093_v57, %v1090_v46  ;;  %v1107_v14 = vshll.u32 %v953_v34, 16  ;;  %v1184_v42 = vshrl.u32 %v918_v49, 16  ;;  %875 = vst [vmem:[#allocation2 + $0xa0] sm:$0xf] %v6557_v36  ;;  %v5976_v36 = vld [vmem:[%s7816_s3 + $0x20] sm:$0xff]  ;;  %2411 = vmatpush.bf16.msrb.mxu3 %v6016_v1 }
  0x59   : > { %v1408_v12 = vpack.c.b16 %v1385_v0, %v1384_v52  ;;  %v1278_v27 = vsel %vm6364_vm10, %v1273_v48, %v1277_v33  ;;  %v1392_v9 = vunpack.c.l.b16 %v1268_v26  ;;  %v1103_v11 = vrot.slane %v1101_v3, 4  ;;  %878 = vst [vmem:[#allocation2 + $0xa4] sm:$0x1] %v6565_v37  ;;  %1716 = vmatpush.bf16.msrb.mxu1 %v5976_v36 }
  0x5a   : > { %v1393_v15 = vunpack.c.l.b16 %v1278_v27  ;;  %v1095_v16 = vrot.slane %v1094_v10, 4  ;;  %v1109_v21 = vrot.slane %v1107_v14, 5  ;;  %v1186_v7 = vrot.slane %v1184_v42, 4  ;;  %788 = vst [vmem:[#allocation2 + $0xc] sm:$0xf] %v787_v41 }
  0x5b   : > { %1528 = vmatmul.bf16.vlgmr.msra.gmra.mxu2 %v1408_v12  ;;  %v1104_v18 = vor.u32 %v1103_v11, %v1099_v5  ;;  %v1187_v19 = vshll.u32 %v918_v49, 16  ;;  %789 = vst [vmem:[#allocation2 + $0x10] sm:$0xf] %v6577_v38  ;;  %v6662_v37 = vrot.slane %v548_v51, 7  ;;  %v556_v53 = vshrl.u32 %v6583_v22, 16 }
  0x5c   : > { %v1412_v20 = vpack.c.b16 %v1393_v15, %v1392_v9  ;;  %v1100_v23 = vsel %vm6364_vm10, %v1095_v16, %v1099_v5  ;;  %v919_v24 = vld [vmem:[#allocation2 + $0x70] sm:$0xf]  ;;  %794 = vst [vmem:[#allocation2 + $0x14] sm:$0x1] %v6589_v43 }
  0x5d   : > { %v1105_v38 = vrot.slane %v1104_v18, 4  ;;  %v1378_v41 = vunpack.c.l.b16 %v1100_v23  ;;  %v957_v4 = vld [vmem:[#allocation2 + $0x74] sm:$0x1]  ;;  %v1189_v51 = vrot.slane %v1187_v19, 5  ;;  %v1193_v25 = vshll.u32 %v919_v24, 16 }
  0x5e   : > { %1548 = vmatmul.bf16.vlgmr.msra.gmra.mxu3 %v1412_v20  ;;  %v1197_v28 = vshrl.u32 %v919_v24, 16  ;;  %v1203_v29 = vshll.u32 %v957_v4, 16  ;;  %v926_v30 = vld [vmem:[#allocation2 + $0x9c] sm:$0xf]  ;;  %v6673_v33 = vor.u32 %v551_v13, %v6662_v37  ;;  %v554_v43 = vrot.slane %v6662_v37, 4 }
  0x5f   : > { %v1110_v34 = vsel %vm6364_vm10, %v1105_v38, %v1109_v21  ;;  %v1190_v40 = vor.u32 %v1189_v51, %v1186_v7  ;;  %v1195_v44 = vrot.slane %v1193_v25, 5  ;;  %v927_v62 = vld [vmem:[#allocation2 + $0xa0] sm:$0xf]  ;;  %v1280_v45 = vshrl.u32 %v926_v30, 16  ;;  %v823_v25 = vld [vmem:[#allocation2 + $0x48] sm:$0xf] }
  0x60   : > { %v1379_v46 = vunpack.c.l.b16 %v1110_v34  ;;  %v1199_v47 = vrot.slane %v1197_v28, 4  ;;  %v1205_v49 = vrot.slane %v1203_v29, 5  ;;  %v961_v2 = vld [vmem:[#allocation2 + $0xa4] sm:$0x1]  ;;  %v1283_v52 = vshll.u32 %v926_v30, 16 }
  0x61   : > { %v1191_v55 = vrot.slane %v1190_v40, 4  ;;  %v1282_v57 = vrot.slane %v1280_v45, 4  ;;  %v1289_v59 = vshll.u32 %v927_v62, 16  ;;  %v1293_v56 = vshrl.u32 %v927_v62, 16  ;;  %v902_v13 = vld [vmem:[#allocation2 + $0xc] sm:$0xf] }
  0x62   : > { %v1405_v63 = vpack.c.b16 %v1379_v46, %v1378_v41  ;;  %v1200_v0 = vor.u32 %v1199_v47, %v1195_v44  ;;  %v1285_v48 = vrot.slane %v1283_v52, 5  ;;  %v1299_v5 = vshll.u32 %v961_v2, 16  ;;  %v6678_v3 = vld [vmem:[#allocation2 + $0x10] sm:$0xf] }
  0x63   : > { %v1196_v54 = vsel %vm6364_vm10, %v1191_v55, %v1195_v44  ;;  %v1291_v26 = vrot.slane %v1289_v59, 5  ;;  %v1295_v10 = vrot.slane %v1293_v56, 4  ;;  %v6682_v14 = vld [vmem:[#allocation2 + $0x14] sm:$0x1]  ;;  %v992_v42 = vshrl.u32 %v902_v13, 16 }
  0x64   : > { %1513 = vmatmul.bf16.gmra.mxu1 %v1405_v63  ;;  %v1201_v1 = vrot.slane %v1200_v0, 4  ;;  %v1386_v6 = vunpack.c.l.b16 %v1196_v54  ;;  %v1286_v12 = vor.u32 %v1285_v48, %v1282_v57  ;;  %v1301_v27 = vrot.slane %v1299_v5, 5  ;;  %v827_v40 = vld [vmem:[#allocation2 + $0x50] sm:$0x1]  ;;  %v851_v54 = vld [vmem:[#allocation2 + $0x78] sm:$0xf] }
  0x65   : > { %v1296_v9 = vor.u32 %v1295_v10, %v1291_v26  ;;  %v994_v11 = vrot.slane %v992_v42, 4  ;;  %v995_v36 = vshll.u32 %v902_v13, 16  ;;  %v1001_v15 = vshll.u32 %v6678_v3, 16  ;;  %v239_v59 = vld [vmem:[%s6239_s29 + $0x10] sm:$0xff]  ;;  %v6721_v42 = vld [vmem:[%s7814_s1] ss:$0 sm:$0xff] }
  0x66   : > { %v1206_v16 = vsel %vm6364_vm10, %v1201_v1, %v1205_v49  ;;  %v1287_v21 = vrot.slane %v1286_v12, 4  ;;  %v1005_v7 = vshrl.u32 %v6678_v3, 16  ;;  %v1011_v18 = vshll.u32 %v6682_v14, 16 }
  0x67   : > { %v1387_v19 = vunpack.c.l.b16 %v1206_v16  ;;  %v1297_v20 = vrot.slane %v1296_v9, 4  ;;  %v997_v23 = vrot.slane %v995_v36, 5  ;;  %v1003_v24 = vrot.slane %v1001_v15, 5  ;;  %v5991_v9 = vld [vmem:[%s7816_s3 + $0x98] sm:$0xff]  ;;  %v855_v36 = vld [vmem:[#allocation2 + $0x80] sm:$0x1] }
  0x68   : > { %v1292_v38 = vsel %vm6364_vm10, %v1287_v21, %v1291_v26  ;;  %v1007_v41 = vrot.slane %v1005_v7, 4  ;;  %v1013_v4 = vrot.slane %v1011_v18, 5  ;;  %v558_v51 = vrot.slane %v556_v53, 7  ;;  %2098 = vmatpush.bf16.msrb.mxu2 %v5991_v9 }
  0x69   : > { %v1409_v28 = vpack.c.b16 %v1387_v19, %v1386_v6  ;;  %v1302_v29 = vsel %vm6364_vm10, %v1297_v20, %v1301_v27  ;;  %v1394_v30 = vunpack.c.l.b16 %v1292_v38  ;;  %v998_v34 = vor.u32 %v997_v23, %v994_v11  ;;  %v249_v11 = vld [vmem:[%s6239_s29 + $0x60] sm:$0xff] }
  0x6a   : > { %v1395_v44 = vunpack.c.l.b16 %v1302_v29  ;;  %v1008_v62 = vor.u32 %v1007_v41, %v1003_v24  ;;  %v561_v45 = vor.u32 %v559_v17, %v558_v51  ;;  %v563_v46 = vrot.slane %v558_v51, 4 }
  0x6b   : > { %1533 = vmatmul.bf16.gmra.mxu2 %v1409_v28  ;;  %v999_v47 = vrot.slane %v998_v34, 4  ;;  %v824_v53 = vsel %vm6301_vm7, %v6673_v33, %v823_v25  ;;  %v360_v49 = vmax.f32 %v6605_v58, 0.0  ;;  %v445_v2 = vpack.c.bf16 %v359_v60, %v359_v60  ;;  %v240_v60 = vld [vmem:[%s6239_s29 + $0x18] sm:$0xff] }
  0x6c   : > { %v1413_v52 = vpack.c.b16 %v1395_v44, %v1394_v30  ;;  %v1009_v55 = vrot.slane %v1008_v62, 4  ;;  %v562_v22 = vsel %vm6293_vm6, %v554_v43, %v561_v45  ;;  %825 = vst [vmem:[#allocation2 + $0x48] sm:$0xf] %v824_v53  ;;  %v828_v17 = vsel %vm6281_vm5, %v563_v46, %v827_v40  ;;  %v879_v62 = vld [vmem:[#allocation2 + $0xa8] sm:$0xf] }
  0x6d   : > { %v1004_v33 = vsel %vm6364_vm10, %v999_v47, %v1003_v24  ;;  %826 = vst [vmem:[#allocation2 + $0x4c] sm:$0xf] %v562_v22  ;;  %v446_v58 = vpack.c.bf16 %v360_v49, %v360_v49  ;;  %v616_v57 = vshrl.u32 %v445_v2, 16  ;;  %v619_v50 = vshll.u32 %v445_v2, 16  ;;  %v6734_v24 = vld [vmem:[%s7815_s2] ss:$0 sm:$0xff] }
  0x6e   : > { %1553 = vmatmul.bf16.gmra.mxu3 %v1413_v52  ;;  %v1014_v37 = vsel %vm6364_vm10, %v1009_v55, %v1013_v4  ;;  %v1370_v56 = vunpack.c.l.b16 %v1004_v33  ;;  %829 = vst [vmem:[#allocation2 + $0x50] sm:$0x1] %v828_v17  ;;  %v367_v43 = vmax.f32 %v6608_v61, 0.0  ;;  %v368_v13 = vmax.f32 %v6614_v8, 0.0  ;;  %v250_v45 = vld [vmem:[%s6239_s29 + $0x68] sm:$0xff] }
  0x6f   : > { %v1371_v63 = vunpack.c.l.b16 %v1014_v37  ;;  %v618_v0 = vrot.slane %v616_v57, 7  ;;  %v624_v48 = vshrl.u32 %v446_v58, 16  ;;  %v627_v5 = vshll.u32 %v446_v58, 16 }
  0x70   : > { %v453_v26 = vpack.c.bf16 %v367_v43, %v367_v43  ;;  %v454_v10 = vpack.c.bf16 %v368_v13, %v368_v13  ;;  %v275_v1 = vmul.f32 %v6721_v42, %v239_v59  ;;  %v276_v6 = vmul.f32 %v6721_v42, %v240_v60 }
  0x71   : > { %v1401_v61 = vpack.c.b16 %v1371_v63, %v1370_v56  ;;  %v621_v12 = vor.u32 %v619_v50, %v618_v0  ;;  %v622_v8 = vrot.slane %v618_v0, 4  ;;  %v626_v27 = vrot.slane %v624_v48, 7  ;;  %v883_v50 = vld [vmem:[#allocation2 + $0xb0] sm:$0x1]  ;;  %v6015_v0 = vld [vmem:[%s7816_s3 + $0xd8] sm:$0xff]  ;;  %v6024_v48 = vld [vmem:[%s7816_s3 + $0x120] sm:$0xff] }
  0x72   : > { %v684_v15 = vshrl.u32 %v453_v26, 16  ;;  %v687_v16 = vshll.u32 %v453_v26, 16  ;;  %v692_v21 = vshrl.u32 %v454_v10, 16  ;;  %v695_v7 = vshll.u32 %v454_v10, 16  ;;  %2412 = vmatpush.bf16.msrb.mxu3 %v6015_v0  ;;  %3093 = vmatpush.bf16.msrb.mxu0 %v6024_v48 }
  0x73   : > { %1493 = vmatmul.bf16.gmra.mxu0 %v1401_v61  ;;  %v912_v18 = vld [vmem:[#allocation2 + $0x48] sm:$0xf]  ;;  %v629_v19 = vor.u32 %v627_v5, %v626_v27  ;;  %v631_v20 = vrot.slane %v626_v27, 4  ;;  %v852_v23 = vsel %vm6301_vm7, %v621_v12, %v851_v54  ;;  %v311_v38 = vadd.f32 %v6734_v24, %v275_v1  ;;  %v5975_v5 = vld [vmem:[%s7816_s3 + $0x18] sm:$0xff]  ;;  %v5990_v12 = vld [vmem:[%s7816_s3 + $0x90] sm:$0xff] }
  0x74   : > { %v913_v41 = vld [vmem:[#allocation2 + $0x4c] sm:$0xf]  ;;  %v1112_v4 = vshrl.u32 %v912_v18, 16  ;;  %v1115_v51 = vshll.u32 %v912_v18, 16  ;;  %853 = vst [vmem:[#allocation2 + $0x78] sm:$0xf] %v852_v23  ;;  %v312_v25 = vadd.f32 %v6734_v24, %v276_v6  ;;  %v6739_v28 = vmul.f32 %v6721_v42, %v249_v11  ;;  %1717 = vmatpush.bf16.msrb.mxu1 %v5975_v5  ;;  %2099 = vmatpush.bf16.msrb.mxu2 %v5990_v12 }
  0x75   : > { %v954_v29 = vld [vmem:[#allocation2 + $0x50] sm:$0x1]  ;;  %v1121_v30 = vshll.u32 %v913_v41, 16  ;;  %v1125_v34 = vshrl.u32 %v913_v41, 16  ;;  %v630_v40 = vsel %vm6293_vm6, %v622_v8, %v629_v19  ;;  %v856_v44 = vsel %vm6281_vm5, %v631_v20, %v855_v36 }
  0x76   : > { %v1114_v46 = vrot.slane %v1112_v4, 4  ;;  %v1117_v47 = vrot.slane %v1115_v51, 5  ;;  %v1131_v53 = vshll.u32 %v954_v29, 16  ;;  %854 = vst [vmem:[#allocation2 + $0x7c] sm:$0xf] %v630_v40  ;;  %v686_v49 = vrot.slane %v684_v15, 7 }
  0x77   : > { %v1123_v2 = vrot.slane %v1121_v30, 5  ;;  %v1127_v52 = vrot.slane %v1125_v34, 4  ;;  %857 = vst [vmem:[#allocation2 + $0x80] sm:$0x1] %v856_v44  ;;  %v694_v55 = vrot.slane %v692_v21, 7  ;;  %v343_v22 = vmax.f32 %v311_v38, 0.0 }
  0x78   : > { %v1118_v17 = vor.u32 %v1117_v47, %v1114_v46  ;;  %v1133_v33 = vrot.slane %v1131_v53, 5  ;;  %v689_v58 = vor.u32 %v687_v16, %v686_v49  ;;  %v690_v57 = vrot.slane %v686_v49, 4  ;;  %v6014_v36 = vld [vmem:[%s7816_s3 + $0xd0] sm:$0xff]  ;;  %v6023_v4 = vld [vmem:[%s7816_s3 + $0x118] sm:$0xff] }
  0x79   : > { %v1128_v59 = vor.u32 %v1127_v52, %v1123_v2  ;;  %v697_v60 = vor.u32 %v695_v7, %v694_v55  ;;  %v699_v37 = vrot.slane %v694_v55, 4  ;;  %v344_v56 = vmax.f32 %v312_v25, 0.0  ;;  %v5974_v34 = vld [vmem:[%s7816_s3 + $0x10] sm:$0xff]  ;;  %v795_v46 = vld [vmem:[#allocation2 + $0x18] sm:$0xf]  ;;  %2413 = vmatpush.bf16.msrb.mxu3 %v6014_v36  ;;  %3094 = vmatpush.bf16.msrb.mxu0 %v6023_v4 }
  0x7a   : > { %v1119_v43 = vrot.slane %v1118_v17, 4  ;;  %v880_v13 = vsel %vm6301_vm7, %v689_v58, %v879_v62  ;;  %v429_v63 = vpack.c.bf16 %v343_v22, %v343_v22  ;;  %v6758_v54 = vmul.f32 %v6721_v42, %v250_v45  ;;  %1718 = vmatpush.bf16.msrb.mxu1 %v5974_v34 }
  0x7b   : > { %v1129_v26 = vrot.slane %v1128_v59, 4  ;;  %v920_v10 = vld [vmem:[#allocation2 + $0x78] sm:$0xf]  ;;  %v698_v1 = vsel %vm6293_vm6, %v690_v57, %v697_v60  ;;  %881 = vst [vmem:[#allocation2 + $0xa8] sm:$0xf] %v880_v13  ;;  %v884_v6 = vsel %vm6281_vm5, %v699_v37, %v883_v50  ;;  %v430_v61 = vpack.c.bf16 %v344_v56, %v344_v56 }
  0x7c   : > { %v1124_v8 = vsel %vm6364_vm10, %v1119_v43, %v1123_v2  ;;  %v1208_v27 = vshrl.u32 %v920_v10, 16  ;;  %v1211_v9 = vshll.u32 %v920_v10, 16  ;;  %882 = vst [vmem:[#allocation2 + $0xac] sm:$0xf] %v698_v1  ;;  %v480_v11 = vshrl.u32 %v429_v63, 16  ;;  %v257_v10 = vld [vmem:[%s6239_s29 + $0xa0] sm:$0xff] }
  0x7d   : > { %v1134_v15 = vsel %vm6364_vm10, %v1129_v26, %v1133_v33  ;;  %v1380_v16 = vunpack.c.l.b16 %v1124_v8  ;;  %v921_v21 = vld [vmem:[#allocation2 + $0x7c] sm:$0xf]  ;;  %885 = vst [vmem:[#allocation2 + $0xb0] sm:$0x1] %v884_v6  ;;  %v483_v7 = vshll.u32 %v429_v63, 16  ;;  %v488_v18 = vshrl.u32 %v430_v61, 16 }
  0x7e   : > { %v1381_v19 = vunpack.c.l.b16 %v1134_v15  ;;  %v958_v20 = vld [vmem:[#allocation2 + $0x80] sm:$0x1]  ;;  %v1210_v23 = vrot.slane %v1208_v27, 4  ;;  %v1213_v38 = vrot.slane %v1211_v9, 5  ;;  %v1217_v41 = vshll.u32 %v921_v21, 16  ;;  %v258_v8 = vld [vmem:[%s6239_s29 + $0xa8] sm:$0xff] }
  0x7f   : > { %v1221_v51 = vshrl.u32 %v921_v21, 16  ;;  %v1227_v25 = vshll.u32 %v958_v20, 16  ;;  %v482_v29 = vrot.slane %v480_v11, 7  ;;  %v490_v30 = vrot.slane %v488_v18, 7  ;;  %v799_v37 = vld [vmem:[#allocation2 + $0x20] sm:$0x1] }
  0x80   : > { %v1406_v40 = vpack.c.b16 %v1381_v19, %v1380_v16  ;;  %v1214_v44 = vor.u32 %v1213_v38, %v1210_v23  ;;  %v1219_v62 = vrot.slane %v1217_v41, 5  ;;  %v491_v45 = vshll.u32 %v430_v61, 16  ;;  %v265_v15 = vld [vmem:[%s6239_s29 + $0xe0] sm:$0xff] }
  0x81   : > { %v1223_v47 = vrot.slane %v1221_v51, 4  ;;  %v1229_v53 = vrot.slane %v1227_v25, 5  ;;  %v485_v49 = vor.u32 %v483_v7, %v482_v29  ;;  %v486_v2 = vrot.slane %v482_v29, 4 }
  0x82   : > { %1518 = vmatmul.bf16.gmra.mxu1 %v1406_v40  ;;  %v1215_v52 = vrot.slane %v1214_v44, 4  ;;  %v928_v55 = vld [vmem:[#allocation2 + $0xa8] sm:$0xf]  ;;  %v493_v22 = vor.u32 %v491_v45, %v490_v30  ;;  %v495_v17 = vrot.slane %v490_v30, 4  ;;  %v321_v33 = vadd.f32 %v6734_v24, %v6739_v28 }
  0x83   : > { %v1224_v58 = vor.u32 %v1223_v47, %v1219_v62  ;;  %v929_v57 = vld [vmem:[#allocation2 + $0xac] sm:$0xf]  ;;  %v1304_v50 = vshrl.u32 %v928_v55, 16  ;;  %v1307_v59 = vshll.u32 %v928_v55, 16  ;;  %v796_v60 = vsel %vm6301_vm7, %v485_v49, %v795_v46 }
  0x84   : > { %v1220_v56 = vsel %vm6364_vm10, %v1215_v52, %v1219_v62  ;;  %v962_v43 = vld [vmem:[#allocation2 + $0xb0] sm:$0x1]  ;;  %v1313_v13 = vshll.u32 %v929_v57, 16  ;;  %v1317_v63 = vshrl.u32 %v929_v57, 16  ;;  %v494_v0 = vsel %vm6293_vm6, %v486_v2, %v493_v22  ;;  %797 = vst [vmem:[#allocation2 + $0x18] sm:$0xf] %v796_v60 }
  0x85   : > { %v1225_v28 = vrot.slane %v1224_v58, 4  ;;  %v1388_v48 = vunpack.c.l.b16 %v1220_v56  ;;  %v1306_v5 = vrot.slane %v1304_v50, 4  ;;  %v1309_v26 = vrot.slane %v1307_v59, 5  ;;  %798 = vst [vmem:[#allocation2 + $0x1c] sm:$0xf] %v494_v0  ;;  %v266_v0 = vld [vmem:[%s6239_s29 + $0xe8] sm:$0xff] }
  0x86   : > { %v1315_v1 = vrot.slane %v1313_v13, 5  ;;  %v1319_v6 = vrot.slane %v1317_v63, 4  ;;  %v1323_v61 = vshll.u32 %v962_v43, 16  ;;  %v800_v12 = vsel %vm6281_vm5, %v495_v17, %v799_v37  ;;  %v830_v37 = vld [vmem:[#allocation2 + $0x54] sm:$0xf] }
  0x87   : > { %v1230_v27 = vsel %vm6364_vm10, %v1225_v28, %v1229_v53  ;;  %v1310_v9 = vor.u32 %v1309_v26, %v1306_v5  ;;  %801 = vst [vmem:[#allocation2 + $0x20] sm:$0x1] %v800_v12  ;;  %v322_v11 = vadd.f32 %v6734_v24, %v6758_v54  ;;  %v353_v36 = vmax.f32 %v321_v33, 0.0  ;;  %v834_v5 = vld [vmem:[#allocation2 + $0x5c] sm:$0x1] }
  0x88   : > { %v1389_v16 = vunpack.c.l.b16 %v1230_v27  ;;  %v1320_v21 = vor.u32 %v1319_v6, %v1315_v1  ;;  %v1325_v7 = vrot.slane %v1323_v61, 5  ;;  %v293_v18 = vmul.f32 %v6721_v42, %v257_v10 }
  0x89   : > { %v1311_v19 = vrot.slane %v1310_v9, 4  ;;  %v354_v20 = vmax.f32 %v322_v11, 0.0  ;;  %v439_v23 = vpack.c.bf16 %v353_v36, %v353_v36  ;;  %v294_v38 = vmul.f32 %v6721_v42, %v258_v8 }
  0x8a   : > { %v1410_v41 = vpack.c.b16 %v1389_v16, %v1388_v48  ;;  %v1321_v4 = vrot.slane %v1320_v21, 4  ;;  %v329_v51 = vadd.f32 %v6734_v24, %v293_v18  ;;  %v301_v25 = vmul.f32 %v6721_v42, %v265_v15 }
  0x8b   : > { %v1316_v54 = vsel %vm6364_vm10, %v1311_v19, %v1315_v1  ;;  %v904_v29 = vld [vmem:[#allocation2 + $0x18] sm:$0xf]  ;;  %v440_v30 = vpack.c.bf16 %v354_v20, %v354_v20  ;;  %v565_v34 = vshrl.u32 %v439_v23, 16  ;;  %v568_v40 = vshll.u32 %v439_v23, 16 }
  0x8c   : > { %1538 = vmatmul.bf16.gmra.mxu2 %v1410_v41  ;;  %v1326_v44 = vsel %vm6364_vm10, %v1321_v4, %v1325_v7  ;;  %v1396_v62 = vunpack.c.l.b16 %v1316_v54  ;;  %v6805_v45 = vld [vmem:[#allocation2 + $0x1c] sm:$0xf]  ;;  %v1016_v46 = vshrl.u32 %v904_v29, 16  ;;  %v1019_v47 = vshll.u32 %v904_v29, 16  ;;  %v241_v7 = vld [vmem:[%s6239_s29 + $0x20] sm:$0xff] }
  0x8d   : > { %v1397_v53 = vunpack.c.l.b16 %v1326_v44  ;;  %v1025_v49 = vshll.u32 %v6805_v45, 16  ;;  %v1029_v2 = vshrl.u32 %v6805_v45, 16  ;;  %v567_v52 = vrot.slane %v565_v34, 7 }
  0x8e   : > { %v6809_v55 = vld [vmem:[#allocation2 + $0x20] sm:$0x1]  ;;  %v1018_v22 = vrot.slane %v1016_v46, 4  ;;  %v1021_v17 = vrot.slane %v1019_v47, 5  ;;  %v573_v33 = vshrl.u32 %v440_v30, 16  ;;  %v576_v58 = vshll.u32 %v440_v30, 16 }
  0x8f   : > { %v1414_v57 = vpack.c.b16 %v1397_v53, %v1396_v62  ;;  %v1027_v50 = vrot.slane %v1025_v49, 5  ;;  %v1031_v59 = vrot.slane %v1029_v2, 4  ;;  %v1035_v60 = vshll.u32 %v6809_v55, 16  ;;  %v858_v2 = vld [vmem:[#allocation2 + $0x84] sm:$0xf] }
  0x90   : > { %v1022_v56 = vor.u32 %v1021_v17, %v1018_v22  ;;  %v570_v43 = vor.u32 %v568_v40, %v567_v52  ;;  %v571_v13 = vrot.slane %v567_v52, 4  ;;  %v575_v63 = vrot.slane %v573_v33, 7  ;;  %v862_v17 = vld [vmem:[#allocation2 + $0x8c] sm:$0x1] }
  0x91   : > { %1558 = vmatmul.bf16.gmra.mxu3 %v1414_v57  ;;  %v1032_v28 = vor.u32 %v1031_v59, %v1027_v50  ;;  %v1037_v48 = vrot.slane %v1035_v60, 5  ;;  %v330_v26 = vadd.f32 %v6734_v24, %v294_v38  ;;  %v361_v10 = vmax.f32 %v329_v51, 0.0  ;;  %v242_v38 = vld [vmem:[%s6239_s29 + $0x28] sm:$0xff] }
  0x92   : > { %v1023_v1 = vrot.slane %v1022_v56, 4  ;;  %v578_v6 = vor.u32 %v576_v58, %v575_v63  ;;  %v580_v61 = vrot.slane %v575_v63, 4  ;;  %v831_v12 = vsel %vm6301_vm7, %v570_v43, %v830_v37  ;;  %v886_v43 = vld [vmem:[#allocation2 + $0xb4] sm:$0xf] }
  0x93   : > { %v1033_v8 = vrot.slane %v1032_v28, 4  ;;  %832 = vst [vmem:[#allocation2 + $0x54] sm:$0xf] %v831_v12  ;;  %v362_v27 = vmax.f32 %v330_v26, 0.0  ;;  %v447_v9 = vpack.c.bf16 %v361_v10, %v361_v10  ;;  %v302_v11 = vmul.f32 %v6721_v42, %v266_v0 }
  0x94   : > { %v1028_v36 = vsel %vm6364_vm10, %v1023_v1, %v1027_v50  ;;  %v579_v15 = vsel %vm6293_vm6, %v571_v13, %v578_v6  ;;  %v835_v16 = vsel %vm6281_vm5, %v580_v61, %v834_v5  ;;  %v337_v21 = vadd.f32 %v6734_v24, %v301_v25 }
  0x95   : > { %v1038_v18 = vsel %vm6364_vm10, %v1033_v8, %v1037_v48  ;;  %v1372_v19 = vunpack.c.l.b16 %v1028_v36  ;;  %833 = vst [vmem:[#allocation2 + $0x58] sm:$0xf] %v579_v15  ;;  %v448_v20 = vpack.c.bf16 %v362_v27, %v362_v27  ;;  %v633_v23 = vshrl.u32 %v447_v9, 16  ;;  %v890_v36 = vld [vmem:[#allocation2 + $0xbc] sm:$0x1] }
  0x96   : > { %v1373_v41 = vunpack.c.l.b16 %v1038_v18  ;;  %836 = vst [vmem:[#allocation2 + $0x5c] sm:$0x1] %v835_v16  ;;  %v636_v4 = vshll.u32 %v447_v9, 16  ;;  %v338_v51 = vadd.f32 %v6734_v24, %v302_v11  ;;  %v369_v54 = vmax.f32 %v337_v21, 0.0 }
  0x97   : > { %v635_v29 = vrot.slane %v633_v23, 7  ;;  %v641_v30 = vshrl.u32 %v448_v20, 16  ;;  %v644_v34 = vshll.u32 %v448_v20, 16  ;;  %v277_v25 = vmul.f32 %v6721_v42, %v241_v7 }
  0x98   : > { %v1402_v40 = vpack.c.b16 %v1373_v41, %v1372_v19  ;;  %v370_v44 = vmax.f32 %v338_v51, 0.0  ;;  %v455_v62 = vpack.c.bf16 %v369_v54, %v369_v54  ;;  %v278_v46 = vmul.f32 %v6721_v42, %v242_v38  ;;  %v5989_v42 = vld [vmem:[%s7816_s3 + $0x88] sm:$0xff] }
  0x99   : > { %v638_v47 = vor.u32 %v636_v4, %v635_v29  ;;  %v639_v53 = vrot.slane %v635_v29, 4  ;;  %v643_v49 = vrot.slane %v641_v30, 7  ;;  %v313_v52 = vadd.f32 %v6734_v24, %v277_v25  ;;  %2100 = vmatpush.bf16.msrb.mxu2 %v5989_v42 }
  0x9a   : > { %1498 = vmatmul.bf16.gmra.mxu0 %v1402_v40  ;;  %v914_v22 = vld [vmem:[#allocation2 + $0x54] sm:$0xf]  ;;  %v456_v33 = vpack.c.bf16 %v370_v44, %v370_v44  ;;  %v701_v58 = vshrl.u32 %v455_v62, 16  ;;  %v704_v57 = vshll.u32 %v455_v62, 16  ;;  %v314_v50 = vadd.f32 %v6734_v24, %v278_v46 }
  0x9b   : > { %v1136_v59 = vshrl.u32 %v914_v22, 16  ;;  %v1139_v60 = vshll.u32 %v914_v22, 16  ;;  %v646_v37 = vor.u32 %v644_v34, %v643_v49  ;;  %v648_v56 = vrot.slane %v643_v49, 4 }
  0x9c   : > { %v6836_v13 = vld [vmem:[#allocation2 + $0x58] sm:$0xf]  ;;  %v859_v63 = vsel %vm6301_vm7, %v638_v47, %v858_v2  ;;  %v703_v0 = vrot.slane %v701_v58, 7  ;;  %v709_v28 = vshrl.u32 %v456_v33, 16  ;;  %v712_v48 = vshll.u32 %v456_v33, 16 }
  0x9d   : > { %v6840_v5 = vld [vmem:[#allocation2 + $0x5c] sm:$0x1]  ;;  %v1138_v24 = vrot.slane %v1136_v59, 4  ;;  %v1141_v26 = vrot.slane %v1139_v60, 5  ;;  %v1145_v10 = vshll.u32 %v6836_v13, 16  ;;  %v1149_v1 = vshrl.u32 %v6836_v13, 16 }
  0x9e   : > { %v1155_v6 = vshll.u32 %v6840_v5, 16  ;;  %v647_v61 = vsel %vm6293_vm6, %v639_v53, %v646_v37  ;;  %860 = vst [vmem:[#allocation2 + $0x84] sm:$0xf] %v859_v63  ;;  %v863_v12 = vsel %vm6281_vm5, %v648_v56, %v862_v17  ;;  %v706_v8 = vor.u32 %v704_v57, %v703_v0  ;;  %v802_v57 = vld [vmem:[#allocation2 + $0x24] sm:$0xf] }
  0x9f   : > { %v1142_v27 = vor.u32 %v1141_v26, %v1138_v24  ;;  %v1147_v9 = vrot.slane %v1145_v10, 5  ;;  %v1151_v11 = vrot.slane %v1149_v1, 4  ;;  %861 = vst [vmem:[#allocation2 + $0x88] sm:$0xf] %v647_v61  ;;  %v707_v15 = vrot.slane %v703_v0, 4  ;;  %v5973_v24 = vld [vmem:[%s7816_s3 + $0x8] sm:$0xff] }
  0xa0   : > { %864 = vst [vmem:[#allocation2 + $0x8c] sm:$0x1] %v863_v12  ;;  %v711_v16 = vrot.slane %v709_v28, 7  ;;  %v887_v21 = vsel %vm6301_vm7, %v706_v8, %v886_v43  ;;  %v345_v7 = vmax.f32 %v313_v52, 0.0  ;;  %v1157_v20 = vrot.slane %v1155_v6, 5  ;;  %v6013_v43 = vld [vmem:[%s7816_s3 + $0xc8] sm:$0xff]  ;;  %1719 = vmatpush.bf16.msrb.mxu1 %v5973_v24 }
  0xa1   : > { %v1143_v18 = vrot.slane %v1142_v27, 4  ;;  %v1152_v19 = vor.u32 %v1151_v11, %v1147_v9  ;;  %888 = vst [vmem:[#allocation2 + $0xb4] sm:$0xf] %v887_v21  ;;  %v346_v23 = vmax.f32 %v314_v50, 0.0  ;;  %v806_v61 = vld [vmem:[#allocation2 + $0x2c] sm:$0x1]  ;;  %2414 = vmatpush.bf16.msrb.mxu3 %v6013_v43 }
  0xa2   : > { %v714_v38 = vor.u32 %v712_v48, %v711_v16  ;;  %v716_v41 = vrot.slane %v711_v16, 4  ;;  %v431_v4 = vpack.c.bf16 %v345_v7, %v345_v7  ;;  %v6022_v48 = vld [vmem:[%s7816_s3 + $0x110] sm:$0xff]  ;;  %v5988_v12 = vld [vmem:[%s7816_s3 + $0x80] sm:$0xff] }
  0xa3   : > { %v1148_v51 = vsel %vm6364_vm10, %v1143_v18, %v1147_v9  ;;  %v1153_v54 = vrot.slane %v1152_v19, 4  ;;  %v6853_v29 = vpack.c.bf16 %v346_v23, %v346_v23  ;;  %v6012_v8 = vld [vmem:[%s7816_s3 + $0xc0] sm:$0xff]  ;;  %3095 = vmatpush.bf16.msrb.mxu0 %v6022_v48  ;;  %2101 = vmatpush.bf16.msrb.mxu2 %v5988_v12 }
  0xa4   : > { %v1382_v30 = vunpack.c.l.b16 %v1148_v51  ;;  %v715_v34 = vsel %vm6293_vm6, %v707_v15, %v714_v38  ;;  %v891_v25 = vsel %vm6281_vm5, %v716_v41, %v890_v36  ;;  %v497_v40 = vshrl.u32 %v431_v4, 16  ;;  %v6021_v15 = vld [vmem:[%s7816_s3 + $0x108] sm:$0xff]  ;;  %v5972_v16 = vld [vmem:[%s7816_s3] sm:$0xff] }
  0xa5   : > { %v1158_v44 = vsel %vm6364_vm10, %v1153_v54, %v1157_v20  ;;  %v922_v62 = vld [vmem:[#allocation2 + $0x84] sm:$0xf]  ;;  %889 = vst [vmem:[#allocation2 + $0xb8] sm:$0xf] %v715_v34  ;;  %v500_v46 = vshll.u32 %v431_v4, 16  ;;  %v505_v47 = vshrl.u32 %v6853_v29, 16  ;;  %2415 = vmatpush.bf16.msrb.mxu3 %v6012_v8  ;;  %1720 = vmatpush.bf16.msrb.mxu1 %v5972_v16 }
  0xa6   : > { %v1383_v53 = vunpack.c.l.b16 %v1158_v44  ;;  %v923_v49 = vld [vmem:[#allocation2 + $0x88] sm:$0xf]  ;;  %v1232_v2 = vshrl.u32 %v922_v62, 16  ;;  %v1235_v52 = vshll.u32 %v922_v62, 16  ;;  %892 = vst [vmem:[#allocation2 + $0xbc] sm:$0x1] %v891_v25 }
  0xa7   : > { %v959_v22 = vld [vmem:[#allocation2 + $0x8c] sm:$0x1]  ;;  %v1241_v17 = vshll.u32 %v923_v49, 16  ;;  %v1245_v33 = vshrl.u32 %v923_v49, 16  ;;  %v499_v58 = vrot.slane %v497_v40, 7  ;;  %v507_v6 = vrot.slane %v505_v47, 7  ;;  %3096 = vmatpush.bf16.msrb.mxu0 %v6021_v15 }
  0xa8   : > { %v1407_v50 = vpack.c.b16 %v1383_v53, %v1382_v30  ;;  %v1234_v59 = vrot.slane %v1232_v2, 4  ;;  %v1237_v60 = vrot.slane %v1235_v52, 5  ;;  %v1251_v37 = vshll.u32 %v959_v22, 16  ;;  %v930_v56 = vld [vmem:[#allocation2 + $0xb4] sm:$0xf]  ;;  %v6059_v25 = vld [vmem:[%s7816_s3 + $0x1b8] sm:$0xff] }
  0xa9   : > { %v1243_v42 = vrot.slane %v1241_v17, 5  ;;  %v1247_v63 = vrot.slane %v1245_v33, 4  ;;  %v1328_v0 = vshrl.u32 %v930_v56, 16  ;;  %v1331_v28 = vshll.u32 %v930_v56, 16  ;;  %v6020_v47 = vld [vmem:[%s7816_s3 + $0x100] sm:$0xff]  ;;  %3831 = vmatpush.bf16.msra.mxu2 %v6059_v25 }
  0xaa   : > { %1523 = vmatmul.bf16.gmra.mxu1 %v1407_v50  ;;  %v1238_v26 = vor.u32 %v1237_v60, %v1234_v59  ;;  %v1253_v10 = vrot.slane %v1251_v37, 5  ;;  %v502_v1 = vor.u32 %v500_v46, %v499_v58  ;;  %v508_v36 = vshll.u32 %v6853_v29, 16  ;;  %v1802_v17 = vld [vmem:[#allocation2] sm:$0xe]  ;;  %v6114_v56 = vld [vmem:[#allocation2 + $0x8] sm:$0x1] }
  0xab   : > { %v1248_v27 = vor.u32 %v1247_v63, %v1243_v42  ;;  %v1330_v9 = vrot.slane %v1328_v0, 4  ;;  %v1333_v11 = vrot.slane %v1331_v28, 5  ;;  %v503_v18 = vrot.slane %v499_v58, 4  ;;  %3097 = vmatpush.bf16.msrb.mxu0 %v6020_v47  ;;  %v5956_v28 = vld [vmem:[#allocation2] sm:$0xff]  ;;  %v2530_v8 = vld [vmem:[#allocation2 + $0x10] sm:$0xf] }
  0xac   : > { %v1239_v21 = vrot.slane %v1238_v26, 4  ;;  %v931_v7 = vld [vmem:[#allocation2 + $0xb8] sm:$0xf]  ;;  %v512_v19 = vrot.slane %v507_v6, 4  ;;  %v803_v20 = vsel %vm6301_vm7, %v502_v1, %v802_v57  ;;  %v510_v30 = vor.u32 %v508_v36, %v507_v6  ;;  %v6113_v57 = vld [vmem:[#allocation2 + $0x4] sm:$0xf] }
  0xad   : > { %v1249_v23 = vrot.slane %v1248_v27, 4  ;;  %v963_v38 = vld [vmem:[#allocation2 + $0xbc] sm:$0x1]  ;;  %v1334_v41 = vor.u32 %v1333_v11, %v1330_v9  ;;  %v1337_v4 = vshll.u32 %v931_v7, 16  ;;  %v1341_v51 = vshrl.u32 %v931_v7, 16 }
  0xae   : > { %v1244_v54 = vsel %vm6364_vm10, %v1239_v21, %v1243_v42  ;;  %v1347_v29 = vshll.u32 %v963_v38, 16  ;;  %804 = vst [vmem:[#allocation2 + $0x24] sm:$0xf] %v803_v20  ;;  %v807_v34 = vsel %vm6281_vm5, %v512_v19, %v806_v61  ;;  %v511_v2 = vsel %vm6293_vm6, %v503_v18, %v510_v30  ;;  %v2529_v42 = vld [vmem:[#allocation2 + $0xc] sm:$0xf]  ;;  %v6067_v6 = vld [vmem:[%s7816_s3 + $0x1f8] sm:$0xff] }
  0xaf   : > { %v1254_v40 = vsel %vm6364_vm10, %v1249_v23, %v1253_v10  ;;  %v1390_v44 = vunpack.c.l.b16 %v1244_v54  ;;  %v1335_v62 = vrot.slane %v1334_v41, 4  ;;  %v1339_v46 = vrot.slane %v1337_v4, 5  ;;  %808 = vst [vmem:[#allocation2 + $0x2c] sm:$0x1] %v807_v34  ;;  %v6035_v61 = vld [vmem:[%s7816_s3 + $0x178] sm:$0xff]  ;;  %4513 = vmatpush.bf16.msra.mxu3 %v6067_v6  ;;  %v5996_v6 = vld [vmem:[#allocation2 + $0xc] sm:$0xff] }
  0xb0   : > { %v1391_v53 = vunpack.c.l.b16 %v1254_v40  ;;  %v1343_v49 = vrot.slane %v1341_v51, 4  ;;  %v1349_v22 = vrot.slane %v1347_v29, 5  ;;  %805 = vst [vmem:[#allocation2 + $0x28] sm:$0xf] %v511_v2  ;;  %v1855_v50 = vrot.slane %v6113_v57, 5  ;;  %v6075_v11 = vld [vmem:[%s7816_s3 + $0x238] sm:$0xff]  ;;  %3516 = vmatpush.bf16.msra.mxu1 %v6035_v61 }
  0xb1   : > { %v1340_v52 = vsel %vm6364_vm10, %v1335_v62, %v1339_v46  ;;  %v5440_v60 = vrot.slane %v1802_v17, 9  ;;  %v1858_v43 = vrot.slane %v6114_v56, 5  ;;  %v2578_v27 = vshrl.u32 %v2529_v42, 16  ;;  %4939 = vmatpush.bf16.msra.mxu0 %v6075_v11  ;;  %v2531_v2 = vld [vmem:[#allocation2 + $0x14] sm:$0x1] }
  0xb2   : > { %v1411_v33 = vpack.c.b16 %v1391_v53, %v1390_v44  ;;  %v1344_v58 = vor.u32 %v1343_v49, %v1339_v46  ;;  %v1857_v37 = vrot.slane %v1855_v50, 4  ;;  %v1398_v63 = vunpack.c.l.b16 %v1340_v52  ;;  %v2532_v61 = vld [vmem:[#allocation2 + $0x18] sm:$0xf] }
  0xb3   : > { %v2581_v9 = vshll.u32 %v2529_v42, 16  ;;  %v1856_v21 = vsel %vm6903_vm13, %v5440_v60, %v1855_v50  ;;  %v2587_v41 = vshll.u32 %v2530_v8, 16  ;;  %v2591_v4 = vshrl.u32 %v2530_v8, 16  ;;  %v1803_v60 = vld [vmem:[#allocation2 + $0xc] sm:$0xe] }
  0xb4   : > { %1543 = vmatmul.bf16.gmra.mxu2 %v1411_v33  ;;  %v1345_v59 = vrot.slane %v1344_v58, 4  ;;  %v1859_v7 = vsel %vm6903_vm13, %v1857_v37, %v1858_v43  ;;  %v1982_v30 = vunpack.c.l.b16 %v1856_v21  ;;  %v2580_v44 = vrot.slane %v2578_v27, 4  ;;  %v5957_v43 = vld [vmem:[#allocation2 + $0xc] sm:$0xff]  ;;  %v2533_v8 = vld [vmem:[#allocation2 + $0x1c] sm:$0xf] }
  0xb5   : > { %v906_v0 = vld [vmem:[#allocation2 + $0x24] sm:$0xf]  ;;  %v1983_v34 = vunpack.c.l.b16 %v1859_v7  ;;  %v2583_v62 = vrot.slane %v2581_v9, 5  ;;  %v2589_v47 = vrot.slane %v2587_v41, 5  ;;  %v2593_v53 = vrot.slane %v2591_v4, 4 }
  0xb6   : > { %v1350_v24 = vsel %vm6364_vm10, %v1345_v59, %v1349_v22  ;;  %v6909_v26 = vld [vmem:[#allocation2 + $0x2c] sm:$0x1]  ;;  %v1040_v10 = vshrl.u32 %v906_v0, 16  ;;  %v1043_v1 = vshll.u32 %v906_v0, 16  ;;  %v1862_v58 = vrot.slane %v6678_v3, 5 }
  0xb7   : > { %v1399_v12 = vunpack.c.l.b16 %v1350_v24  ;;  %v6920_v36 = vld [vmem:[#allocation2 + $0x28] sm:$0xf]  ;;  %v1059_v23 = vshll.u32 %v6909_v26, 16  ;;  %v2014_v22 = vpack.c.b16 %v1983_v34, %v1982_v30  ;;  %v2584_v33 = vor.u32 %v2583_v62, %v2580_v44  ;;  %v2534_v44 = vld [vmem:[#allocation2 + $0x20] sm:$0x1] }
  0xb8   : > { %v1042_v15 = vrot.slane %v1040_v10, 4  ;;  %v1045_v16 = vrot.slane %v1043_v1, 5  ;;  %v1049_v19 = vshll.u32 %v6920_v36, 16  ;;  %v1053_v20 = vshrl.u32 %v6920_v36, 16  ;;  %v1804_v10 = vld [vmem:[#allocation2 + $0x18] sm:$0xe] }
  0xb9   : > { %v1415_v18 = vpack.c.b16 %v1399_v12, %v1398_v63  ;;  %v1061_v40 = vrot.slane %v1059_v23, 5  ;;  %v2594_v50 = vor.u32 %v2593_v53, %v2589_v47  ;;  %v2597_v59 = vshll.u32 %v2531_v2, 16  ;;  %v6058_v23 = vld [vmem:[%s7816_s3 + $0x1b0] sm:$0xff]  ;;  %v2535_v2 = vld [vmem:[#allocation2 + $0x24] sm:$0xf] }
  0xba   : > { %v1046_v38 = vor.u32 %v1045_v16, %v1042_v15  ;;  %1721 = vmatmul.bf16.vlgmr.msrb.gmra.mxu1 %v5956_v28  ;;  %v1051_v51 = vrot.slane %v1049_v19, 5  ;;  %v1055_v54 = vrot.slane %v1053_v20, 4  ;;  %v2585_v56 = vrot.slane %v2584_v33, 4  ;;  %3832 = vmatpush.bf16.msra.mxu2 %v6058_v23  ;;  %v6074_v33 = vld [vmem:[%s7816_s3 + $0x230] sm:$0xff] }
  0xbb   : > { %1563 = vmatmul.bf16.gmra.mxu3 %v1415_v18  ;;  %v5441_v42 = vrot.slane %v1803_v60, 9  ;;  %v1864_v63 = vrot.slane %v1862_v58, 4  ;;  %v1865_v0 = vrot.slane %v6682_v14, 5  ;;  %v2595_v28 = vrot.slane %v2594_v50, 4  ;;  %4940 = vmatpush.bf16.msra.mxu0 %v6074_v33 }
  0xbc   : > { %v1047_v29 = vrot.slane %v1046_v38, 4  ;;  %v1056_v25 = vor.u32 %v1055_v54, %v1051_v51  ;;  %v2599_v24 = vrot.slane %v2597_v59, 5  ;;  %v1869_v1 = vrot.slane %v6805_v45, 5 }
  0xbd   : > { %v1872_v3 = vrot.slane %v6809_v55, 5  ;;  %v5442_v12 = vrot.slane %v1804_v10, 9  ;;  %v2590_v9 = vsel %vm6364_vm10, %v2585_v56, %v2589_v47  ;;  %v1863_v11 = vsel %vm6903_vm13, %v5441_v42, %v1862_v58  ;;  %v5997_v58 = vld [vmem:[#allocation2 + $0x18] sm:$0xff] }
  0xbe   : > { %v1052_v46 = vsel %vm6364_vm10, %v1047_v29, %v1051_v51  ;;  %v1057_v49 = vrot.slane %v1056_v25, 4  ;;  %v1871_v27 = vrot.slane %v1869_v1, 4  ;;  %v1866_v14 = vsel %vm6903_vm13, %v1864_v63, %v1865_v0 }
  0xbf   : > { %v1374_v52 = vunpack.c.l.b16 %v1052_v46  ;;  %v1870_v15 = vsel %vm6903_vm13, %v5442_v12, %v1869_v1  ;;  %v2600_v45 = vsel %vm6364_vm10, %v2595_v28, %v2599_v24  ;;  %v2602_v55 = vshrl.u32 %v2532_v61, 16  ;;  %v2537_v24 = vld [vmem:[#allocation2 + $0x2c] sm:$0x1] }
  0xc0   : > { %v1062_v17 = vsel %vm6364_vm10, %v1057_v49, %v1061_v40  ;;  %v1873_v16 = vsel %vm6903_vm13, %v1871_v27, %v1872_v3  ;;  %v1986_v21 = vunpack.c.l.b16 %v1870_v15  ;;  %v2605_v7 = vshll.u32 %v2532_v61, 16  ;;  %v5958_v49 = vld [vmem:[#allocation2 + $0x18] sm:$0xff] }
  0xc1   : > { %v1375_v57 = vunpack.c.l.b16 %v1062_v17  ;;  %v2611_v18 = vshll.u32 %v2533_v8, 16  ;;  %v2615_v19 = vshrl.u32 %v2533_v8, 16  ;;  %v1987_v20 = vunpack.c.l.b16 %v1873_v16  ;;  %v6034_v17 = vld [vmem:[%s7816_s3 + $0x170] sm:$0xff] }
  0xc2   : > { %v1984_v38 = vunpack.c.l.b16 %v1863_v11  ;;  %v1985_v41 = vunpack.c.l.b16 %v1866_v14  ;;  %v2978_v51 = vunpack.c.l.b16 %v2590_v9  ;;  %v2979_v54 = vunpack.c.l.b16 %v2600_v45  ;;  %3517 = vmatpush.bf16.msra.mxu1 %v6034_v17  ;;  %v1805_v11 = vld [vmem:[#allocation2 + $0x24] sm:$0xe] }
  0xc3   : > { %v1403_v37 = vpack.c.b16 %v1375_v57, %v1374_v52  ;;  %v2016_v4 = vpack.c.b16 %v1987_v20, %v1986_v21  ;;  %v2604_v29 = vrot.slane %v2602_v55, 4  ;;  %v2607_v30 = vrot.slane %v2605_v7, 5  ;;  %v2536_v52 = vld [vmem:[#allocation2 + $0x28] sm:$0xf]  ;;  %v2539_v20 = vld [vmem:[#allocation2 + $0x34] sm:$0xf] }
  0xc4   : > { %2102 = vmatmul.bf16.vlgmr.msrb.gmra.mxu2 %v2014_v22  ;;  %v2613_v34 = vrot.slane %v2611_v18, 5  ;;  %v2617_v25 = vrot.slane %v2615_v19, 4  ;;  %v2015_v40 = vpack.c.b16 %v1985_v41, %v1984_v38  ;;  %v3010_v62 = vpack.c.b16 %v2979_v54, %v2978_v51  ;;  %v6066_v22 = vld [vmem:[%s7816_s3 + $0x1f0] sm:$0xff]  ;;  %v5959_v7 = vld [vmem:[#allocation2 + $0x24] sm:$0xff] }
  0xc5   : > { %1503 = vmatmul.bf16.gmra.mxu0 %v1403_v37  ;;  %v2608_v46 = vor.u32 %v2607_v30, %v2604_v29  ;;  %v2621_v53 = vshll.u32 %v2534_v44, 16  ;;  %v2626_v60 = vshrl.u32 %v2535_v2, 16  ;;  %v2629_v37 = vshll.u32 %v2535_v2, 16  ;;  %4514 = vmatpush.bf16.msra.mxu3 %v6066_v22  ;;  %v5998_v18 = vld [vmem:[#allocation2 + $0x24] sm:$0xff]  ;;  %v2538_v19 = vld [vmem:[#allocation2 + $0x30] sm:$0xf]  ;;  %v6978_v44 = vpop.f32.mrf.mxu1 }
  0xc6   : > { %v2618_v47 = vor.u32 %v2617_v25, %v2613_v34  ;;  %v2635_v56 = vshll.u32 %v2536_v52, 16  ;;  %v2645_v12 = vshll.u32 %v2537_v24, 16  ;;  %v1876_v27 = vrot.slane %v6920_v36, 5  ;;  %v6057_v29 = vld [vmem:[%s7816_s3 + $0x1a8] sm:$0xff] }
  0xc7   : > { %v2609_v57 = vrot.slane %v2608_v46, 4  ;;  %v2623_v59 = vrot.slane %v2621_v53, 5  ;;  %v2628_v0 = vrot.slane %v2626_v60, 4  ;;  %v2631_v28 = vrot.slane %v2629_v37, 5  ;;  %3833 = vmatpush.bf16.msra.mxu2 %v6057_v29  ;;  %v6033_v24 = vld [vmem:[%s7816_s3 + $0x168] sm:$0xff] }
  0xc8   : > { %v2619_v50 = vrot.slane %v2618_v47, 4  ;;  %v2637_v10 = vrot.slane %v2635_v56, 5  ;;  %v2647_v15 = vrot.slane %v2645_v12, 5  ;;  %v5443_v55 = vrot.slane %v1805_v11, 9  ;;  %v6116_v56 = vld [vmem:[#allocation2 + $0x38] sm:$0x1]  ;;  %3518 = vmatpush.bf16.msra.mxu1 %v6033_v24 }
  0xc9   : > { %v2614_v42 = vsel %vm6364_vm10, %v2609_v57, %v2613_v34  ;;  %v2632_v61 = vor.u32 %v2631_v28, %v2628_v0  ;;  %v1878_v16 = vrot.slane %v1876_v27, 4  ;;  %v1879_v21 = vrot.slane %v6909_v26, 5  ;;  %v6065_v28 = vld [vmem:[%s7816_s3 + $0x1e8] sm:$0xff]  ;;  %v6056_v24 = vld [vmem:[%s7816_s3 + $0x1a0] sm:$0xff] }
  0xca   : > { %1726 = vmatmul.bf16.gmra.mxu1 %v5957_v43  ;;  %v2639_v43 = vshrl.u32 %v2536_v52, 16  ;;  %v2624_v63 = vsel %vm6364_vm10, %v2619_v50, %v2623_v59  ;;  %v2980_v3 = vunpack.c.l.b16 %v2614_v42  ;;  %v1877_v38 = vsel %vm6903_vm13, %v5443_v55, %v1876_v27  ;;  %v6115_v52 = vld [vmem:[#allocation2 + $0x34] sm:$0xf]  ;;  %v1806_v50 = vld [vmem:[#allocation2 + $0x30] sm:$0xe]  ;;  %4515 = vmatpush.bf16.msra.mxu3 %v6065_v28 }
  0xcb   : > { %2416 = vmatmul.bf16.vlgmr.msrb.gmra.mxu3 %v5996_v6  ;;  %v2981_v6 = vunpack.c.l.b16 %v2624_v63  ;;  %v2633_v14 = vrot.slane %v2632_v61, 4  ;;  %v1880_v41 = vsel %vm6903_vm13, %v1878_v16, %v1879_v21  ;;  %v2653_v26 = vshll.u32 %v2538_v19, 16  ;;  %v5960_v59 = vld [vmem:[#allocation2 + $0x30] sm:$0xff]  ;;  %v2542_v61 = vld [vmem:[#allocation2 + $0x40] sm:$0xf]  ;;  %3834 = vmatpush.bf16.msra.mxu2 %v6056_v24 }
  0xcc   : > { %v2641_v1 = vrot.slane %v2639_v43, 4  ;;  %v2659_v51 = vshll.u32 %v2539_v20, 16  ;;  %v2663_v54 = vshrl.u32 %v2539_v20, 16  ;;  %v1988_v30 = vunpack.c.l.b16 %v1877_v38 }
  0xcd   : > { %v3011_v9 = vpack.c.b16 %v2981_v6, %v2980_v3  ;;  %v2638_v23 = vsel %vm6364_vm10, %v2633_v14, %v2637_v10  ;;  %v1989_v34 = vunpack.c.l.b16 %v1880_v41  ;;  %v2655_v46 = vrot.slane %v2653_v26, 5  ;;  %v6989_v3 = vpop.f32.mrf.mxu1  ;;  %v2541_v6 = vld [vmem:[#allocation2 + $0x3c] sm:$0xf]  ;;  %v6117_v26 = vld [vmem:[#allocation2 + $0x40] sm:$0xf] }
  0xce   : > { %v2642_v8 = vor.u32 %v2641_v1, %v2637_v10  ;;  %v2982_v25 = vunpack.c.l.b16 %v2638_v23  ;;  %v2661_v47 = vrot.slane %v2659_v51, 5  ;;  %v2665_v53 = vrot.slane %v2663_v54, 4  ;;  %v6073_v10 = vld [vmem:[%s7816_s3 + $0x228] sm:$0xff]  ;;  %v5999_v1 = vld [vmem:[#allocation2 + $0x30] sm:$0xff] }
  0xcf   : > { %v2017_v2 = vpack.c.b16 %v1989_v34, %v1988_v30  ;;  %v1883_v22 = vrot.slane %v6115_v52, 5  ;;  %v5444_v60 = vrot.slane %v1806_v50, 9  ;;  %v1886_v43 = vrot.slane %v6116_v56, 5  ;;  %4941 = vmatpush.bf16.msra.mxu0 %v6073_v10  ;;  %v1807_v30 = vld [vmem:[#allocation2 + $0x3c] sm:$0xe] }
  0xd0   : > { %v2643_v45 = vrot.slane %v2642_v8, 4  ;;  %v2674_v11 = vshrl.u32 %v2541_v6, 16  ;;  %v2677_v14 = vshll.u32 %v2541_v6, 16  ;;  %v1890_v51 = vrot.slane %v6117_v26, 5  ;;  %v5961_v52 = vld [vmem:[#allocation2 + $0x3c] sm:$0xff] }
  0xd1   : > { %v1885_v37 = vrot.slane %v1883_v22, 4  ;;  %v1884_v12 = vsel %vm6903_vm13, %v5444_v60, %v1883_v22  ;;  %v2545_v22 = vld [vmem:[#allocation2 + $0x4c] sm:$0xf] }
  0xd2   : > { %v2648_v36 = vsel %vm6364_vm10, %v2643_v45, %v2647_v15  ;;  %v2683_v15 = vshll.u32 %v2542_v61, 16  ;;  %v2687_v45 = vshrl.u32 %v2542_v61, 16  ;;  %v1990_v16 = vunpack.c.l.b16 %v1884_v12 }
  0xd3   : > { %v1887_v8 = vsel %vm6903_vm13, %v1885_v37, %v1886_v43  ;;  %v2679_v20 = vrot.slane %v2677_v14, 5  ;;  %v2707_v43 = vshll.u32 %v2545_v22, 16 }
  0xd4   : > { %2107 = vmatmul.bf16.gmra.mxu2 %v2015_v40  ;;  %v2983_v40 = vunpack.c.l.b16 %v2648_v36  ;;  %v1991_v21 = vunpack.c.l.b16 %v1887_v8  ;;  %v2685_v23 = vrot.slane %v2683_v15, 5  ;;  %v2689_v36 = vrot.slane %v2687_v45, 4  ;;  %v2546_v8 = vld [vmem:[#allocation2 + $0x50] sm:$0x1] }
  0xd5   : > { %3098 = vmatmul.bf16.vlgmr.msrb.gmra.mxu0 %v3010_v62 }
  0xd6   : > { %v3012_v17 = vpack.c.b16 %v2983_v40, %v2982_v25  ;;  %v2018_v41 = vpack.c.b16 %v1991_v21, %v1990_v16  ;;  %v2690_v25 = vor.u32 %v2689_v36, %v2685_v23  ;;  %v2717_v21 = vshll.u32 %v2546_v8, 16  ;;  %v1808_v36 = vld [vmem:[#allocation2 + $0x48] sm:$0xe] }
  0xd8   : > { %v2719_v26 = vrot.slane %v2717_v21, 5 }
  0xda   : > { %1731 = vmatmul.bf16.gmra.mxu1 %v5958_v49  ;;  %v2540_v49 = vld [vmem:[#allocation2 + $0x38] sm:$0x1] }
  0xdb   : > { %2421 = vmatmul.bf16.gmra.mxu3 %v5997_v58  ;;  %v2666_v58 = vor.u32 %v2665_v53, %v2661_v47  ;;  %v2669_v57 = vshll.u32 %v2540_v49, 16  ;;  %v6118_v53 = vld [vmem:[#allocation2 + $0x44] sm:$0x1] }
  0xdc   : > { %v1893_v49 = vrot.slane %v6118_v53, 5  ;;  %v6032_v53 = vld [vmem:[%s7816_s3 + $0x160] sm:$0xff] }
  0xdd   : > { %v2667_v63 = vrot.slane %v2666_v58, 4  ;;  %v2671_v0 = vrot.slane %v2669_v57, 5  ;;  %v2691_v57 = vrot.slane %v2690_v25, 4  ;;  %v6120_v25 = vld [vmem:[#allocation2 + $0x50] sm:$0x1]  ;;  %3519 = vmatpush.bf16.msra.mxu1 %v6032_v53 }
  0xde   : > { %v6999_v55 = vpop.f32.mrf.mxu2  ;;  %v2551_v53 = vld [vmem:[#allocation2 + $0x64] sm:$0xf] }
  0xe1   : > { %v7001_v38 = vpop.f32.mrf.mxu1  ;;  %v7003_v29 = vpop.f32.mrf.mxu3 }
  0xe4   : > { %2112 = vmatmul.bf16.gmra.mxu2 %v2016_v4  ;;  %v2650_v4 = vshrl.u32 %v2538_v19, 16  ;;  %v2676_v19 = vrot.slane %v2674_v11, 4 }
  0xe5   : > { %3103 = vmatmul.bf16.gmra.mxu0 %v3011_v9  ;;  %v2672_v9 = vsel %vm6364_vm10, %v2667_v63, %v2671_v0 }
  0xe6   : > { %v2652_v62 = vrot.slane %v2650_v4, 4  ;;  %v2543_v4 = vld [vmem:[#allocation2 + $0x44] sm:$0x1]  ;;  %v2680_v34 = vor.u32 %v2679_v20, %v2676_v19  ;;  %v6119_v19 = vld [vmem:[#allocation2 + $0x4c] sm:$0xf] }
  0xe7   : > { %v2693_v40 = vshll.u32 %v2543_v4, 16  ;;  %v1897_v20 = vrot.slane %v6119_v19, 5 }
  0xe8   : > { %v2656_v33 = vor.u32 %v2655_v46, %v2652_v62  ;;  %v7005_v62 = vpop.f32.mrf.mxu2  ;;  %v5445_v46 = vrot.slane %v1807_v30, 9  ;;  %v2681_v58 = vrot.slane %v2680_v34, 4  ;;  %v5446_v30 = vrot.slane %v1808_v36, 9 }
  0xe9   : > { %v2695_v50 = vrot.slane %v2693_v40, 5  ;;  %v7013_v63 = vpop.f32.mrf.mxu1  ;;  %v7022_v10 = vpop.f32.mrf.mxu3  ;;  %v1899_v34 = vrot.slane %v1897_v20, 4  ;;  %v1900_v40 = vrot.slane %v6120_v25, 5  ;;  %v5963_v25 = vld [vmem:[#allocation2 + $0x54] sm:$0xff] }
  0xea   : > { %1736 = vmatmul.bf16.gmra.mxu1 %v5959_v7  ;;  %v2657_v42 = vrot.slane %v2656_v33, 4  ;;  %v6000_v33 = vld [vmem:[#allocation2 + $0x3c] sm:$0xff]  ;;  %v1891_v37 = vsel %vm6903_vm13, %v5445_v46, %v1890_v51  ;;  %v2686_v0 = vsel %vm6364_vm10, %v2681_v58, %v2685_v23 }
  0xeb   : > { %2426 = vmatmul.bf16.gmra.mxu3 %v5998_v18  ;;  %v2985_v18 = vunpack.c.l.b16 %v2672_v9  ;;  %v2696_v28 = vsel %vm6364_vm10, %v2691_v57, %v2695_v50  ;;  %v2986_v11 = vunpack.c.l.b16 %v2686_v0  ;;  %v1898_v50 = vsel %vm6903_vm13, %v5446_v30, %v1897_v20  ;;  %v1809_v20 = vld [vmem:[#allocation2 + $0x54] sm:$0xe] }
  0xec   : > { %v2662_v27 = vsel %vm6364_vm10, %v2657_v42, %v2661_v47  ;;  %v1892_v47 = vrot.slane %v1890_v51, 4  ;;  %v2711_v42 = vshrl.u32 %v2545_v22, 16  ;;  %v2987_v14 = vunpack.c.l.b16 %v2696_v28  ;;  %v2548_v22 = vld [vmem:[#allocation2 + $0x58] sm:$0xf] }
  0xed   : > { %v2984_v7 = vunpack.c.l.b16 %v2662_v27  ;;  %v2709_v27 = vrot.slane %v2707_v43, 5  ;;  %v2735_v43 = vshrl.u32 %v2548_v22, 16  ;;  %v1994_v0 = vunpack.c.l.b16 %v1898_v50 }
  0xee   : > { %v1894_v56 = vsel %vm6903_vm13, %v1892_v47, %v1893_v49  ;;  %v2713_v9 = vrot.slane %v2711_v42, 4  ;;  %v3014_v23 = vpack.c.b16 %v2987_v14, %v2986_v11  ;;  %v6064_v47 = vld [vmem:[%s7816_s3 + $0x1e0] sm:$0xff]  ;;  %v2755_v50 = vshll.u32 %v2551_v53, 16 }
  0xef   : > { %v3013_v54 = vpack.c.b16 %v2985_v18, %v2984_v7  ;;  %v1993_v6 = vunpack.c.l.b16 %v1894_v56  ;;  %v6072_v49 = vld [vmem:[%s7816_s3 + $0x220] sm:$0xff]  ;;  %4516 = vmatpush.bf16.msra.mxu3 %v6064_v47  ;;  %v2731_v56 = vshll.u32 %v2548_v22, 16 }
  0xf0   : > { %v7024_v15 = vpop.f32.mrf.mxu2  ;;  %v2714_v18 = vor.u32 %v2713_v9, %v2709_v27  ;;  %4942 = vmatpush.bf16.msra.mxu0 %v6072_v49  ;;  %v2549_v9 = vld [vmem:[#allocation2 + $0x5c] sm:$0x1]  ;;  %v2550_v47 = vld [vmem:[#allocation2 + $0x60] sm:$0xf] }
  0xf1   : > { %v7030_v46 = vpop.f32.mrf.mxu3  ;;  %v2733_v8 = vrot.slane %v2731_v56, 5  ;;  %v2741_v19 = vshll.u32 %v2549_v9, 16  ;;  %v2552_v9 = vld [vmem:[#allocation2 + $0x68] sm:$0x1] }
  0xf2   : > { %v2715_v51 = vrot.slane %v2714_v18, 4 }
  0xf4   : > { %2117 = vmatmul.bf16.gmra.mxu2 %v2017_v2  ;;  %v2544_v2 = vld [vmem:[#allocation2 + $0x48] sm:$0xf]  ;;  %v2720_v58 = vsel %vm6364_vm10, %v2715_v51, %v2719_v26  ;;  %v1907_v51 = vrot.slane %v6840_v5, 5 }
  0xf5   : > { %3108 = vmatmul.bf16.gmra.mxu0 %v3012_v17  ;;  %v7007_v17 = vpop.f32.mrf.mxu0  ;;  %v2701_v60 = vshll.u32 %v2544_v2, 16 }
  0xf7   : > { %v2703_v12 = vrot.slane %v2701_v60, 5 }
  0xf8   : > { %v7045_v57 = vpop.f32.mrf.mxu2 }
  0xf9   : > { %v7055_v11 = vpop.f32.mrf.mxu3 }
  0xfa   : > { %1741 = vmatmul.bf16.gmra.mxu1 %v5960_v59  ;;  %v2698_v59 = vshrl.u32 %v2544_v2, 16  ;;  %v6001_v2 = vld [vmem:[#allocation2 + $0x48] sm:$0xff] }
  0xfb   : > { %2431 = vmatmul.bf16.gmra.mxu3 %v5999_v1  ;;  %v1992_v1 = vunpack.c.l.b16 %v1891_v37 }
  0xfc   : > { %v2700_v61 = vrot.slane %v2698_v59, 4  ;;  %v1901_v59 = vsel %vm6903_vm13, %v1899_v34, %v1900_v40  ;;  %v2743_v34 = vrot.slane %v2741_v19, 5 }
  0xfd   : > { %v2019_v45 = vpack.c.b16 %v1993_v6, %v1992_v1  ;;  %v7026_v7 = vpop.f32.mrf.mxu0  ;;  %v1995_v28 = vunpack.c.l.b16 %v1901_v59  ;;  %v2989_v1 = vunpack.c.l.b16 %v2720_v58  ;;  %v2749_v58 = vshll.u32 %v2550_v47, 16 }
  0xfe   : > { %v2704_v16 = vor.u32 %v2703_v12, %v2700_v61  ;;  %v2759_v59 = vshrl.u32 %v2551_v53, 16  ;;  %v6003_v53 = vld [vmem:[#allocation2 + $0x60] sm:$0xff] }
  0xff   : > { %v2020_v14 = vpack.c.b16 %v1995_v28, %v1994_v0 }
 0x100   : > { %v2705_v4 = vrot.slane %v2704_v16, 4 }
 0x104   : > { %2122 = vmatmul.bf16.gmra.mxu2 %v2018_v41  ;;  %v7028_v41 = vpop.f32.mrf.mxu1 }
 0x105   : > { %3113 = vmatmul.bf16.gmra.mxu0 %v3013_v54  ;;  %v5962_v54 = vld [vmem:[#allocation2 + $0x48] sm:$0xff]  ;;  %v7051_v42 = vpop.f32.mrf.mxu0 }
 0x10a   : > { %1746 = vmatmul.bf16.gmra.mxu1 %v5961_v52  ;;  %v2547_v52 = vld [vmem:[#allocation2 + $0x54] sm:$0xf] }
 0x10b   : > { %2436 = vmatmul.bf16.gmra.mxu3 %v6000_v33  ;;  %v2710_v33 = vsel %vm6364_vm10, %v2705_v4, %v2709_v27  ;;  %v2722_v60 = vshrl.u32 %v2547_v52, 16  ;;  %v2725_v37 = vshll.u32 %v2547_v52, 16  ;;  %v2737_v27 = vrot.slane %v2735_v43, 4 }
 0x10c   : > { %v2988_v24 = vunpack.c.l.b16 %v2710_v33  ;;  %v7053_v6 = vpop.f32.mrf.mxu1  ;;  %v5447_v4 = vrot.slane %v1809_v20, 9  ;;  %v2746_v33 = vshrl.u32 %v2550_v47, 16  ;;  %v2765_v20 = vshll.u32 %v2552_v9, 16  ;;  %v6031_v47 = vld [vmem:[%s7816_s3 + $0x158] sm:$0xff] }
 0x10d   : > { %v2724_v61 = vrot.slane %v2722_v60, 4  ;;  %v2727_v12 = vrot.slane %v2725_v37, 5  ;;  %v2738_v18 = vor.u32 %v2737_v27, %v2733_v8  ;;  %v7060_v36 = vpop.f32.mrf.mxu0  ;;  %3520 = vmatpush.bf16.msra.mxu1 %v6031_v47  ;;  %v6071_v9 = vld [vmem:[%s7816_s3 + $0x218] sm:$0xff] }
 0x10e   : > { %v3015_v16 = vpack.c.b16 %v2989_v1, %v2988_v24  ;;  %v2748_v24 = vrot.slane %v2746_v33, 4  ;;  %v2751_v1 = vrot.slane %v2749_v58, 5  ;;  %v2553_v58 = vld [vmem:[#allocation2 + $0x6c] sm:$0xf]  ;;  %4943 = vmatpush.bf16.msra.mxu0 %v6071_v9 }
 0x10f   : > { %v2728_v21 = vor.u32 %v2727_v12, %v2724_v61  ;;  %v2739_v30 = vrot.slane %v2738_v18, 4  ;;  %v2757_v61 = vrot.slane %v2755_v50, 5  ;;  %v2761_v12 = vrot.slane %v2759_v59, 4  ;;  %v2554_v50 = vld [vmem:[#allocation2 + $0x70] sm:$0xf] }
 0x110   : > { %v2752_v18 = vor.u32 %v2751_v1, %v2748_v24 }
 0x111   : > { %v2744_v5 = vsel %vm6364_vm10, %v2739_v30, %v2743_v34  ;;  %v2762_v19 = vor.u32 %v2761_v12, %v2757_v61  ;;  %v6122_v30 = vld [vmem:[#allocation2 + $0x68] sm:$0x1]  ;;  %v2779_v12 = vshll.u32 %v2554_v50, 16 }
 0x112   : > { %v2991_v0 = vunpack.c.l.b16 %v2744_v5  ;;  %v1914_v34 = vrot.slane %v6122_v30, 5 }
 0x114   : > { %2127 = vmatmul.bf16.gmra.mxu2 %v2019_v45  ;;  %v1904_v45 = vrot.slane %v6836_v13, 5  ;;  %v6002_v13 = vld [vmem:[#allocation2 + $0x54] sm:$0xff]  ;;  %v7073_v22 = vpop.f32.mrf.mxu3 }
 0x115   : > { %3118 = vmatmul.bf16.gmra.mxu0 %v3014_v23  ;;  %v7058_v23 = vpop.f32.mrf.mxu2 }
 0x116   : > { %v1906_v26 = vrot.slane %v1904_v45, 4  ;;  %v1905_v49 = vsel %vm6903_vm13, %v5447_v4, %v1904_v45  ;;  %v6055_v4 = vld [vmem:[%s7816_s3 + $0x198] sm:$0xff] }
 0x117   : > { %v1996_v60 = vunpack.c.l.b16 %v1905_v49  ;;  %v7077_v28 = vpop.f32.mrf.mxu0  ;;  %3835 = vmatpush.bf16.msra.mxu2 %v6055_v4  ;;  %v2753_v49 = vrot.slane %v2752_v18, 4 }
 0x119   : > { %v2758_v24 = vsel %vm6364_vm10, %v2753_v49, %v2757_v61  ;;  %v2781_v61 = vrot.slane %v2779_v12, 5  ;;  %v1811_v49 = vld [vmem:[#allocation2 + $0x6c] sm:$0xe] }
 0x11a   : > { %1751 = vmatmul.bf16.gmra.mxu1 %v5962_v54  ;;  %v2729_v54 = vrot.slane %v2728_v21, 4  ;;  %v1810_v21 = vld [vmem:[#allocation2 + $0x60] sm:$0xe]  ;;  %v5965_v12 = vld [vmem:[#allocation2 + $0x6c] sm:$0xff] }
 0x11b   : > { %2441 = vmatmul.bf16.gmra.mxu3 %v6001_v2  ;;  %v1908_v2 = vsel %vm6903_vm13, %v1906_v26, %v1907_v51  ;;  %v5448_v51 = vrot.slane %v1810_v21, 9 }
 0x11c   : > { %v2734_v52 = vsel %vm6364_vm10, %v2729_v54, %v2733_v8  ;;  %v1997_v37 = vunpack.c.l.b16 %v1908_v2  ;;  %v7084_v26 = vpop.f32.mrf.mxu3  ;;  %v2763_v2 = vrot.slane %v2762_v19, 4 }
 0x11d   : > { %v7075_v56 = vpop.f32.mrf.mxu2  ;;  %v2990_v43 = vunpack.c.l.b16 %v2734_v52  ;;  %7829 = vst [vmem:[#allocation3_spill] sm:$0xff] %v7084_v26  ;;  %v2767_v52 = vrot.slane %v2765_v20, 5 }
 0x11e   : > { %v2021_v27 = vpack.c.b16 %v1997_v37, %v1996_v60 }
 0x11f   : > { %v7094_v59 = vpop.f32.mrf.mxu0  ;;  %v2768_v1 = vsel %vm6364_vm10, %v2763_v2, %v2767_v52 }
 0x120   : > { %v2993_v21 = vunpack.c.l.b16 %v2768_v1 }
 0x124   : > { %2132 = vmatmul.bf16.gmra.mxu2 %v2020_v14  ;;  %v6121_v14 = vld [vmem:[#allocation2 + $0x64] sm:$0xf] }
 0x125   : > { %3123 = vmatmul.bf16.gmra.mxu0 %v3015_v16  ;;  %v1911_v45 = vrot.slane %v6121_v14, 5  ;;  %v3016_v16 = vpack.c.b16 %v2991_v0, %v2990_v43  ;;  %v2770_v43 = vshrl.u32 %v2553_v58, 16  ;;  %v2773_v0 = vshll.u32 %v2553_v58, 16 }
 0x127   : > { %v7063_v40 = vpop.f32.mrf.mxu1  ;;  %v1913_v54 = vrot.slane %v1911_v45, 4  ;;  %v1912_v60 = vsel %vm6903_vm13, %v5448_v51, %v1911_v45  ;;  %v2772_v19 = vrot.slane %v2770_v43, 4  ;;  %v2775_v20 = vrot.slane %v2773_v0, 5 }
 0x128   : > { %v1998_v14 = vunpack.c.l.b16 %v1912_v60 }
 0x129   : > { %v1915_v37 = vsel %vm6903_vm13, %v1913_v54, %v1914_v34  ;;  %v2555_v34 = vld [vmem:[#allocation2 + $0x74] sm:$0x1] }
 0x12a   : > { %1756 = vmatmul.bf16.gmra.mxu1 %v5963_v25  ;;  %v5964_v25 = vld [vmem:[#allocation2 + $0x60] sm:$0xff]  ;;  %v1999_v45 = vunpack.c.l.b16 %v1915_v37  ;;  %v2789_v58 = vshll.u32 %v2555_v34, 16  ;;  %v6124_v37 = vld [vmem:[#allocation2 + $0x74] sm:$0x1] }
 0x12b   : > { %2446 = vmatmul.bf16.gmra.mxu3 %v6002_v13  ;;  %v6063_v13 = vld [vmem:[%s7816_s3 + $0x1d8] sm:$0xff]  ;;  %v1921_v43 = vrot.slane %v6124_v37, 5 }
 0x12c   : > { %4517 = vmatpush.bf16.msra.mxu3 %v6063_v13  ;;  %v2022_v30 = vpack.c.b16 %v1999_v45, %v1998_v14  ;;  %v2791_v14 = vrot.slane %v2789_v58, 5 }
 0x12f   : > { %v7079_v8 = vpop.f32.mrf.mxu1 }
 0x134   : > { %2137 = vmatmul.bf16.gmra.mxu2 %v2021_v27  ;;  %v2783_v27 = vshrl.u32 %v2554_v50, 16  ;;  %v5449_v50 = vrot.slane %v1811_v49, 9 }
 0x135   : > { %3128 = vmatmul.bf16.gmra.mxu0 %v3016_v16  ;;  %v2992_v16 = vunpack.c.l.b16 %v2758_v24 }
 0x136   : > { %v2785_v51 = vrot.slane %v2783_v27, 4  ;;  %v6004_v27 = vld [vmem:[#allocation2 + $0x6c] sm:$0xff] }
 0x137   : > { %v7092_v5 = vpop.f32.mrf.mxu2  ;;  %v1722_v33 = vpop.f32.mrf.mxu1  ;;  %v3017_v47 = vpack.c.b16 %v2993_v21, %v2992_v16  ;;  %v2556_v21 = vld [vmem:[#allocation2 + $0x78] sm:$0xf] }
 0x138   : > { %v2786_v52 = vor.u32 %v2785_v51, %v2781_v61  ;;  %v1723_v24 = vadd.f32 %v1722_v33, %v7007_v17  ;;  %v2794_v17 = vshrl.u32 %v2556_v21, 16  ;;  %v2797_v33 = vshll.u32 %v2556_v21, 16 }
 0x13a   : > { %1761 = vmatmul.bf16.gmra.mxu1 %v5964_v25  ;;  %v6123_v25 = vld [vmem:[#allocation2 + $0x70] sm:$0xf]  ;;  %v2787_v9 = vrot.slane %v2786_v52, 4 }
 0x13b   : > { %2451 = vmatmul.bf16.gmra.mxu3 %v6003_v53  ;;  %v1918_v13 = vrot.slane %v6123_v25, 5  ;;  %v2776_v53 = vor.u32 %v2775_v20, %v2772_v19  ;;  %v2557_v20 = vld [vmem:[#allocation2 + $0x7c] sm:$0xf] }
 0x13c   : > { %v2807_v49 = vshrl.u32 %v2557_v20, 16 }
 0x13d   : > { %v1920_v60 = vrot.slane %v1918_v13, 4  ;;  %v2777_v1 = vrot.slane %v2776_v53, 4  ;;  %v1919_v51 = vsel %vm6903_vm13, %v5449_v50, %v1918_v13  ;;  %v2803_v53 = vshll.u32 %v2557_v20, 16 }
 0x13e   : > { %v7107_v18 = vpop.f32.mrf.mxu3  ;;  %v2000_v52 = vunpack.c.l.b16 %v1919_v51 }
 0x13f   : > { %7830 = vst [vmem:[#allocation4_spill] sm:$0xff] %v7107_v18  ;;  %v7109_v4 = vpop.f32.mrf.mxu2  ;;  %v1724_v54 = vpop.f32.mrf.mxu1  ;;  %v2782_v34 = vsel %vm6364_vm10, %v2777_v1, %v2781_v61  ;;  %v2799_v61 = vrot.slane %v2797_v33, 5  ;;  %v2558_v18 = vld [vmem:[#allocation2 + $0x80] sm:$0x1] }
 0x140   : > { %v2994_v13 = vunpack.c.l.b16 %v2782_v34  ;;  %v2813_v26 = vshll.u32 %v2558_v18, 16  ;;  %v6126_v33 = vld [vmem:[#allocation2 + $0x80] sm:$0x1]  ;;  %v6062_v18 = vld [vmem:[%s7816_s3 + $0x1d0] sm:$0xff] }
 0x141   : > { %4518 = vmatpush.bf16.msra.mxu3 %v6062_v18 }
 0x142   : > { %v7111_v2 = vpop.f32.mrf.mxu0 }
 0x144   : > { %2142 = vmatmul.bf16.gmra.mxu2 %v2022_v30  ;;  %v1922_v30 = vsel %vm6903_vm13, %v1920_v60, %v1921_v43  ;;  %v1725_v60 = vadd.f32 %v1724_v54, %v7026_v7  ;;  %v2796_v43 = vrot.slane %v2794_v17, 4  ;;  %v6054_v7 = vld [vmem:[%s7816_s3 + $0x190] sm:$0xff] }
 0x145   : > { %3133 = vmatmul.bf16.gmra.mxu0 %v3017_v47  ;;  %v2792_v47 = vsel %vm6364_vm10, %v2787_v9, %v2791_v14  ;;  %v2001_v58 = vunpack.c.l.b16 %v1922_v30  ;;  %v6125_v9 = vld [vmem:[#allocation2 + $0x7c] sm:$0xf]  ;;  %v1812_v30 = vld [vmem:[#allocation2 + $0x78] sm:$0xe]  ;;  %3836 = vmatpush.bf16.msra.mxu2 %v6054_v7 }
 0x146   : > { %v7113_v0 = vpop.f32.mrf.mxu3  ;;  %v2995_v50 = vunpack.c.l.b16 %v2792_v47  ;;  %v1925_v14 = vrot.slane %v6125_v9, 5  ;;  %v2800_v51 = vor.u32 %v2799_v61, %v2796_v43  ;;  %v2815_v43 = vrot.slane %v2813_v26, 5 }
 0x147   : > { %7831 = vst [vmem:[#allocation5_spill] sm:$0xff] %v7113_v0  ;;  %v2103_v45 = vpop.f32.mrf.mxu2  ;;  %v1727_v16 = vpop.f32.mrf.mxu1  ;;  %v2023_v0 = vpack.c.b16 %v2001_v58, %v2000_v52 }
 0x148   : > { %v2183_v19 = vadd.f32 %v2103_v45, %v1723_v24  ;;  %v2809_v45 = vrot.slane %v2807_v49, 4  ;;  %v3018_v20 = vpack.c.b16 %v2995_v50, %v2994_v13  ;;  %v1927_v17 = vrot.slane %v1925_v14, 4  ;;  %v5966_v13 = vld [vmem:[#allocation2 + $0x78] sm:$0xff] }
 0x149   : > { %v1728_v52 = vadd.f32 %v1727_v16, %v7051_v42  ;;  %v2801_v58 = vrot.slane %v2800_v51, 4  ;;  %v2560_v16 = vld [vmem:[#allocation2 + $0x88] sm:$0xf] }
 0x14a   : > { %1766 = vmatmul.bf16.gmra.mxu1 %v5965_v12  ;;  %v7122_v25 = vpop.f32.mrf.mxu0  ;;  %v2805_v12 = vrot.slane %v2803_v53, 5  ;;  %v1928_v53 = vrot.slane %v6126_v33, 5 }
 0x14b   : > { %2456 = vmatmul.bf16.gmra.mxu3 %v6004_v27 }
 0x14c   : > { %v2810_v47 = vor.u32 %v2809_v45, %v2805_v12 }
 0x14e   : > { %v2417_v37 = vpop.f32.mrf.mxu3 }
 0x14f   : > { %v2497_v24 = vadd.f32 %v2417_v37, %v2183_v19  ;;  %v2105_v1 = vpop.f32.mrf.mxu2  ;;  %v1729_v21 = vpop.f32.mrf.mxu1  ;;  %v5450_v19 = vrot.slane %v1812_v30, 9  ;;  %v6005_v37 = vld [vmem:[#allocation2 + $0x78] sm:$0xff] }
 0x150   : > { %v2184_v27 = vadd.f32 %v2105_v1, %v1725_v60  ;;  %v2811_v60 = vrot.slane %v2810_v47, 4  ;;  %v2559_v1 = vld [vmem:[#allocation2 + $0x84] sm:$0xf]  ;;  %v2831_v47 = vshrl.u32 %v2560_v16, 16 }
 0x151   : > { %v1926_v9 = vsel %vm6903_vm13, %v5450_v19, %v1925_v14  ;;  %v2818_v26 = vshrl.u32 %v2559_v1, 16  ;;  %v6070_v14 = vld [vmem:[%s7816_s3 + $0x210] sm:$0xff] }
 0x152   : > { %v3099_v34 = vpop.f32.mrf.mxu0  ;;  %v2816_v30 = vsel %vm6364_vm10, %v2811_v60, %v2815_v43  ;;  %v2002_v7 = vunpack.c.l.b16 %v1926_v9  ;;  %4944 = vmatpush.bf16.msra.mxu0 %v6070_v14  ;;  %v5967_v14 = vld [vmem:[#allocation2 + $0x84] sm:$0xff] }
 0x153   : > { %v7130_v54 = vadd.f32 %v3099_v34, %v2497_v24  ;;  %v2827_v34 = vshll.u32 %v2560_v16, 16  ;;  %v2997_v33 = vunpack.c.l.b16 %v2816_v30 }
 0x154   : > { %2147 = vmatmul.bf16.gmra.mxu2 %v2023_v0  ;;  %v6030_v0 = vld [vmem:[%s7816_s3 + $0x150] sm:$0xff] }
 0x155   : > { %3138 = vmatmul.bf16.gmra.mxu0 %v3018_v20  ;;  %3521 = vmatpush.bf16.msra.mxu1 %v6030_v0  ;;  %v1929_v20 = vsel %vm6903_vm13, %v1927_v17, %v1928_v53  ;;  %v2829_v0 = vrot.slane %v2827_v34, 5 }
 0x156   : > { %v2419_v49 = vpop.f32.mrf.mxu3  ;;  %v2003_v19 = vunpack.c.l.b16 %v1929_v20  ;;  %v1813_v20 = vld [vmem:[#allocation2 + $0x84] sm:$0xe] }
 0x157   : > { %v2498_v50 = vadd.f32 %v2419_v49, %v2184_v27  ;;  %v2108_v61 = vpop.f32.mrf.mxu2  ;;  %v1732_v24 = vpop.f32.mrf.mxu1  ;;  %v2806_v27 = vsel %vm6364_vm10, %v2801_v58, %v2805_v12  ;;  %v1730_v49 = vadd.f32 %v1729_v21, %v7060_v36 }
 0x158   : > { %v2185_v45 = vadd.f32 %v2108_v61, %v1728_v52  ;;  %v1733_v42 = vadd.f32 %v1732_v24, %v7077_v28  ;;  %v2821_v28 = vshll.u32 %v2559_v1, 16  ;;  %v2996_v12 = vunpack.c.l.b16 %v2806_v27  ;;  %v2561_v24 = vld [vmem:[#allocation2 + $0x8c] sm:$0x1] }
 0x159   : > { %v2820_v52 = vrot.slane %v2818_v26, 4  ;;  %v2024_v61 = vpack.c.b16 %v2003_v19, %v2002_v7  ;;  %v2837_v36 = vshll.u32 %v2561_v24, 16 }
 0x15a   : > { %1771 = vmatmul.bf16.gmra.mxu1 %v5966_v13  ;;  %v3101_v51 = vpop.f32.mrf.mxu0  ;;  %v2823_v18 = vrot.slane %v2821_v28, 5  ;;  %v3019_v9 = vpack.c.b16 %v2997_v33, %v2996_v12  ;;  %v6128_v28 = vld [vmem:[#allocation2 + $0x8c] sm:$0x1] }
 0x15b   : > { %2461 = vmatmul.bf16.gmra.mxu3 %v6005_v37  ;;  %v7151_v17 = vadd.f32 %v3101_v51, %v2498_v50  ;;  %v2833_v37 = vrot.slane %v2831_v47, 4  ;;  %v6127_v50 = vld [vmem:[#allocation2 + $0x88] sm:$0xf]  ;;  %v1935_v34 = vrot.slane %v6128_v28, 5  ;;  %v2839_v12 = vrot.slane %v2837_v36, 5 }
 0x15c   : > { %v1932_v16 = vrot.slane %v6127_v50, 5  ;;  %v2824_v51 = vor.u32 %v2823_v18, %v2820_v52  ;;  %v2562_v52 = vld [vmem:[#allocation2 + $0x90] sm:$0xf] }
 0x15d   : > { %v2834_v30 = vor.u32 %v2833_v37, %v2829_v0 }
 0x15e   : > { %v2422_v53 = vpop.f32.mrf.mxu3  ;;  %v1934_v26 = vrot.slane %v1932_v16, 4  ;;  %v2825_v19 = vrot.slane %v2824_v51, 4 }
 0x15f   : > { %v2499_v58 = vadd.f32 %v2422_v53, %v2185_v45  ;;  %v2110_v13 = vpop.f32.mrf.mxu2  ;;  %v1734_v60 = vpop.f32.mrf.mxu1  ;;  %v5451_v45 = vrot.slane %v1813_v20, 9  ;;  %v2835_v53 = vrot.slane %v2834_v30, 4 }
 0x160   : > { %v2186_v43 = vadd.f32 %v2110_v13, %v1730_v49  ;;  %v1735_v1 = vadd.f32 %v1734_v60, %v7094_v59  ;;  %v6006_v59 = vld [vmem:[#allocation2 + $0x84] sm:$0xff]  ;;  %v1936_v60 = vsel %vm6903_vm13, %v1934_v26, %v1935_v34  ;;  %v2830_v50 = vsel %vm6364_vm10, %v2825_v19, %v2829_v0 }
 0x161   : > { %v1933_v37 = vsel %vm6903_vm13, %v5451_v45, %v1932_v16  ;;  %v2998_v16 = vunpack.c.l.b16 %v2830_v50 }
 0x162   : > { %v3104_v27 = vpop.f32.mrf.mxu0  ;;  %v2004_v20 = vunpack.c.l.b16 %v1933_v37 }
 0x163   : > { %v7155_v21 = vadd.f32 %v3104_v27, %v2499_v58  ;;  %v2563_v58 = vld [vmem:[#allocation2 + $0x94] sm:$0xf]  ;;  %v2005_v27 = vunpack.c.l.b16 %v1936_v60 }
 0x164   : > { %2152 = vmatmul.bf16.gmra.mxu2 %v2024_v61  ;;  %v2842_v61 = vshrl.u32 %v2562_v52, 16 }
 0x165   : > { %3143 = vmatmul.bf16.gmra.mxu0 %v3019_v9  ;;  %v2851_v9 = vshll.u32 %v2563_v58, 16  ;;  %v2025_v19 = vpack.c.b16 %v2005_v27, %v2004_v20  ;;  %v5968_v27 = vld [vmem:[#allocation2 + $0x90] sm:$0xff] }
 0x166   : > { %v2424_v47 = vpop.f32.mrf.mxu3  ;;  %v2844_v45 = vrot.slane %v2842_v61, 4  ;;  %v2565_v61 = vld [vmem:[#allocation2 + $0x9c] sm:$0xf] }
 0x167   : > { %v2500_v7 = vadd.f32 %v2424_v47, %v2186_v43  ;;  %v2113_v33 = vpop.f32.mrf.mxu2  ;;  %v1737_v49 = vpop.f32.mrf.mxu1  ;;  %v2845_v43 = vshll.u32 %v2562_v52, 16  ;;  %v2853_v47 = vrot.slane %v2851_v9, 5  ;;  %v2566_v9 = vld [vmem:[#allocation2 + $0xa0] sm:$0xf] }
 0x168   : > { %v2187_v13 = vadd.f32 %v2113_v33, %v1733_v42  ;;  %v1738_v18 = vadd.f32 %v1737_v49, %v7111_v2  ;;  %v2840_v42 = vsel %vm6364_vm10, %v2835_v53, %v2839_v12  ;;  %v2855_v2 = vshrl.u32 %v2563_v58, 16  ;;  %v2564_v33 = vld [vmem:[#allocation2 + $0x98] sm:$0x1]  ;;  %v6129_v12 = vld [vmem:[#allocation2 + $0x94] sm:$0xf] }
 0x169   : > { %v2999_v30 = vunpack.c.l.b16 %v2840_v42  ;;  %v2847_v26 = vrot.slane %v2845_v43, 5  ;;  %v1939_v49 = vrot.slane %v6129_v12, 5  ;;  %v1814_v58 = vld [vmem:[#allocation2 + $0x90] sm:$0xe]  ;;  %v6130_v42 = vld [vmem:[#allocation2 + $0x98] sm:$0x1] }
 0x16a   : > { %1776 = vmatmul.bf16.gmra.mxu1 %v5967_v14  ;;  %v3106_v24 = vpop.f32.mrf.mxu0  ;;  %v2857_v14 = vrot.slane %v2855_v2, 4 }
 0x16b   : > { %2466 = vmatmul.bf16.gmra.mxu3 %v6006_v59  ;;  %v7166_v51 = vadd.f32 %v3106_v24, %v2500_v7  ;;  %v3020_v52 = vpack.c.b16 %v2999_v30, %v2998_v16  ;;  %v2848_v7 = vor.u32 %v2847_v26, %v2844_v45  ;;  %v2861_v24 = vshll.u32 %v2564_v33, 16  ;;  %v6061_v16 = vld [vmem:[%s7816_s3 + $0x1c8] sm:$0xff]  ;;  %v6007_v45 = vld [vmem:[#allocation2 + $0x90] sm:$0xff] }
 0x16c   : > { %v2858_v60 = vor.u32 %v2857_v14, %v2853_v47  ;;  %v1941_v50 = vrot.slane %v1939_v49, 4  ;;  %v6029_v30 = vld [vmem:[%s7816_s3 + $0x148] sm:$0xff]  ;;  %v2869_v33 = vshll.u32 %v2565_v61, 16  ;;  %4519 = vmatpush.bf16.msra.mxu3 %v6061_v16 }
 0x16d   : > { %v2849_v20 = vrot.slane %v2848_v7, 4  ;;  %3522 = vmatpush.bf16.msra.mxu1 %v6029_v30  ;;  %v2875_v7 = vshll.u32 %v2566_v9, 16 }
 0x16e   : > { %v2427_v36 = vpop.f32.mrf.mxu3  ;;  %v2859_v26 = vrot.slane %v2858_v60, 4 }
 0x16f   : > { %v2501_v28 = vadd.f32 %v2427_v36, %v2187_v13  ;;  %v2115_v34 = vpop.f32.mrf.mxu2  ;;  %v1739_v59 = vpop.f32.mrf.mxu1  ;;  %v6053_v13 = vld [vmem:[%s7816_s3 + $0x188] sm:$0xff] }
 0x170   : > { %v2188_v0 = vadd.f32 %v2115_v34, %v1735_v1  ;;  %v1740_v53 = vadd.f32 %v1739_v59, %v7122_v25  ;;  %v5452_v1 = vrot.slane %v1814_v58, 9  ;;  %v1942_v25 = vrot.slane %v6130_v42, 5  ;;  %3837 = vmatpush.bf16.msra.mxu2 %v6053_v13 }
 0x171   : > { %v2866_v59 = vshrl.u32 %v2565_v61, 16  ;;  %v2879_v58 = vshrl.u32 %v2566_v9, 16  ;;  %v2871_v61 = vrot.slane %v2869_v33, 5  ;;  %v268_v33 = vld [vmem:[%s6239_s29 + $0xf8] sm:$0xff] }
 0x172   : > { %v3109_v37 = vpop.f32.mrf.mxu0  ;;  %v1940_v12 = vsel %vm6903_vm13, %v5452_v1, %v1939_v49 }
 0x173   : > { %v7172_v43 = vadd.f32 %v3109_v37, %v2501_v28  ;;  %v2863_v28 = vrot.slane %v2861_v24, 5  ;;  %v2854_v37 = vsel %vm6364_vm10, %v2849_v20, %v2853_v47  ;;  %v2868_v60 = vrot.slane %v2866_v59, 4  ;;  %v6069_v24 = vld [vmem:[%s7816_s3 + $0x208] sm:$0xff]  ;;  %v267_v59 = vld [vmem:[%s6239_s29 + $0xf0] sm:$0xff] }
 0x174   : > { %2157 = vmatmul.bf16.gmra.mxu2 %v2025_v19  ;;  %v2006_v49 = vunpack.c.l.b16 %v1940_v12  ;;  %v2881_v42 = vrot.slane %v2879_v58, 4  ;;  %4945 = vmatpush.bf16.msra.mxu0 %v6069_v24  ;;  %v3000_v47 = vunpack.c.l.b16 %v2854_v37  ;;  %v6132_v58 = vld [vmem:[%s7814_s1] ss:$0 sm:$0xff] }
 0x175   : > { %3148 = vmatmul.bf16.gmra.mxu0 %v3020_v52  ;;  %v1943_v52 = vsel %vm6903_vm13, %v1941_v50, %v1942_v25  ;;  %v7193_v50 = vrot.slane %v2875_v7, 5  ;;  %v1815_v7 = vld [vmem:[#allocation2 + $0x9c] sm:$0xe] }
 0x176   : > { %v2429_v2 = vpop.f32.mrf.mxu3  ;;  %v2007_v13 = vunpack.c.l.b16 %v1943_v52 }
 0x177   : > { %v2502_v36 = vadd.f32 %v2429_v2, %v2188_v0  ;;  %v2118_v34 = vpop.f32.mrf.mxu2  ;;  %v1742_v14 = vpop.f32.mrf.mxu1 }
 0x178   : > { %v2189_v19 = vadd.f32 %v2118_v34, %v1738_v18  ;;  %v2864_v18 = vsel %vm6364_vm10, %v2859_v26, %v2863_v28  ;;  %v2872_v26 = vor.u32 %v2871_v61, %v2868_v60  ;;  %v2882_v28 = vor.u32 %v2881_v42, %v7193_v50 }
 0x179   : > { %v3001_v25 = vunpack.c.l.b16 %v2864_v18  ;;  %v6133_v18 = vld [vmem:[%s7815_s2] ss:$0 sm:$0xff]  ;;  %v5453_v61 = vrot.slane %v1815_v7, 9 }
 0x17a   : > { %1781 = vmatmul.bf16.gmra.mxu1 %v5968_v27  ;;  %v3111_v0 = vpop.f32.mrf.mxu0  ;;  %v2567_v27 = vld [vmem:[#allocation2 + $0xa4] sm:$0x1] }
 0x17b   : > { %2471 = vmatmul.bf16.gmra.mxu3 %v6007_v45  ;;  %v7191_v1 = vadd.f32 %v3111_v0, %v2502_v36  ;;  %v2026_v45 = vpack.c.b16 %v2007_v13, %v2006_v49  ;;  %v6131_v36 = vld [vmem:[#allocation2 + $0xa0] sm:$0xf]  ;;  %v3021_v12 = vpack.c.b16 %v3001_v25, %v3000_v47  ;;  %v2885_v52 = vshll.u32 %v2567_v27, 16  ;;  %v6134_v47 = vld [vmem:[#allocation2 + $0xa4] sm:$0x1] }
 0x17c   : > { %v1946_v34 = vrot.slane %v6131_v36, 5  ;;  %v304_v0 = vmul.f32 %v6132_v58, %v268_v33  ;;  %v2883_v13 = vrot.slane %v2882_v28, 4  ;;  %v1949_v25 = vrot.slane %v6134_v47, 5  ;;  %v6008_v33 = vld [vmem:[#allocation2 + $0x9c] sm:$0xff]  ;;  %v2569_v28 = vld [vmem:[#allocation2 + $0xac] sm:$0xf] }
 0x17d   : > { %v2887_v27 = vrot.slane %v2885_v52, 5  ;;  %v2899_v47 = vshll.u32 %v2569_v28, 16 }
 0x17e   : > { %v2432_v9 = vpop.f32.mrf.mxu3  ;;  %v340_v24 = vadd.f32 %v6133_v18, %v304_v0  ;;  %v1948_v42 = vrot.slane %v1946_v34, 4 }
 0x17f   : > { %v2503_v2 = vadd.f32 %v2432_v9, %v2189_v19  ;;  %v2120_v20 = vpop.f32.mrf.mxu2  ;;  %v1744_v16 = vpop.f32.mrf.mxu1  ;;  %v303_v19 = vmul.f32 %v6132_v58, %v267_v59 }
 0x180   : > { %v2190_v30 = vadd.f32 %v2120_v20, %v1740_v53  ;;  %v2873_v53 = vrot.slane %v2872_v26, 4  ;;  %v1743_v20 = vadd.f32 %v1742_v14, %v6978_v44  ;;  %v372_v36 = vmax.f32 %v340_v24, 0.0 }
 0x181   : > { %v339_v60 = vadd.f32 %v6133_v18, %v303_v19  ;;  %v1947_v44 = vsel %vm6903_vm13, %v5453_v61, %v1946_v34  ;;  %v1950_v14 = vsel %vm6903_vm13, %v1948_v42, %v1949_v25  ;;  %v1745_v25 = vadd.f32 %v1744_v16, %v6989_v3  ;;  %v1816_v3 = vld [vmem:[#allocation2 + $0xa8] sm:$0xe] }
 0x182   : > { %v3114_v37 = vpop.f32.mrf.mxu0 }
 0x183   : > { %v7204_v49 = vadd.f32 %v3114_v37, %v2503_v2  ;;  %v371_v26 = vmax.f32 %v339_v60, 0.0  ;;  %v2568_v2 = vld [vmem:[#allocation2 + $0xa8] sm:$0xf]  ;;  %v458_v37 = vpack.c.bf16 %v372_v36, %v372_v36 }
 0x184   : > { %2162 = vmatmul.bf16.gmra.mxu2 %v2026_v45  ;;  %v5969_v45 = vld [vmem:[#allocation2 + $0x9c] sm:$0xff]  ;;  %v2890_v52 = vshrl.u32 %v2568_v2, 16  ;;  %v2893_v24 = vshll.u32 %v2568_v2, 16 }
 0x185   : > { %7832 = vst [vmem:[#allocation6_spill] sm:$0xff] %v7204_v49  ;;  %3153 = vmatmul.bf16.gmra.mxu0 %v3021_v12  ;;  %v457_v7 = vpack.c.bf16 %v371_v26, %v371_v26  ;;  %v2878_v12 = vsel %vm6364_vm10, %v2873_v53, %v7193_v50  ;;  %v2009_v50 = vunpack.c.l.b16 %v1950_v14  ;;  %v2570_v14 = vld [vmem:[#allocation2 + $0xb0] sm:$0x1] }
 0x186   : > { %v2434_v9 = vpop.f32.mrf.mxu3  ;;  %v3002_v34 = vunpack.c.l.b16 %v2878_v12  ;;  %v2895_v49 = vrot.slane %v2893_v24, 5  ;;  %v893_v12 = vld [vmem:[#allocation2 + $0xc0] sm:$0xf] }
 0x187   : > { %v2504_v59 = vadd.f32 %v2434_v9, %v2190_v30  ;;  %v2123_v58 = vpop.f32.mrf.mxu2  ;;  %v7207_v19 = vpop.f32.mrf.mxu1  ;;  %v2888_v30 = vsel %vm6364_vm10, %v2883_v13, %v2887_v27  ;;  %v718_v18 = vshrl.u32 %v457_v7, 16  ;;  %v2903_v9 = vshrl.u32 %v2569_v28, 16 }
 0x188   : > { %v2191_v0 = vadd.f32 %v2123_v58, %v1743_v20  ;;  %v2008_v20 = vunpack.c.l.b16 %v1947_v44  ;;  %v3003_v61 = vunpack.c.l.b16 %v2888_v30  ;;  %v2892_v13 = vrot.slane %v2890_v52, 4  ;;  %v6135_v30 = vld [vmem:[#allocation2 + $0xac] sm:$0xf] }
 0x189   : > { %v720_v26 = vrot.slane %v718_v18, 7  ;;  %v721_v27 = vshll.u32 %v457_v7, 16  ;;  %v2905_v2 = vrot.slane %v2903_v9, 4  ;;  %v1953_v18 = vrot.slane %v6135_v30, 5  ;;  %v6052_v9 = vld [vmem:[%s7816_s3 + $0x180] sm:$0xff]  ;;  %v6009_v30 = vld [vmem:[#allocation2 + $0xa8] sm:$0xff] }
 0x18a   : > { %1786 = vmatmul.bf16.gmra.mxu1 %v5969_v45  ;;  %v3116_v60 = vpop.f32.mrf.mxu0  ;;  %v726_v45 = vshrl.u32 %v458_v37, 16  ;;  %v729_v52 = vshll.u32 %v458_v37, 16  ;;  %v5454_v37 = vrot.slane %v1816_v3, 9  ;;  %3838 = vmatpush.bf16.msra.mxu2 %v6052_v9  ;;  %v1748_v39 = vadd.f32 %v7207_v19, %v7001_v38 }
 0x18b   : > { %2476 = vmatmul.bf16.gmra.mxu3 %v6008_v33  ;;  %v7218_v53 = vadd.f32 %v3116_v60, %v2504_v59  ;;  %v7221_v33 = vrot.slane %v2899_v47, 5  ;;  %v2027_v59 = vpack.c.b16 %v2009_v50, %v2008_v20  ;;  %v723_v60 = vor.u32 %v721_v27, %v720_v26  ;;  %v897_v50 = vld [vmem:[#allocation2 + $0xc8] sm:$0x1] }
 0x18c   : > { %v724_v16 = vrot.slane %v720_v26, 4  ;;  %v728_v7 = vrot.slane %v726_v45, 7  ;;  %v2909_v47 = vshll.u32 %v2570_v14, 16  ;;  %v2572_v45 = vld [vmem:[#allocation2 + $0xb8] sm:$0xf]  ;;  %v1954_v35 = vsel %vm6903_vm13, %v5454_v37, %v1953_v18 }
 0x18d   : > { %7833 = vst [vmem:[#allocation7_spill] sm:$0xff] %v7218_v53  ;;  %v3022_v53 = vpack.c.b16 %v3003_v61, %v3002_v34  ;;  %v2906_v24 = vor.u32 %v2905_v2, %v7221_v33  ;;  %v894_v20 = vsel %vm6301_vm7, %v723_v60, %v893_v12  ;;  %v5970_v2 = vld [vmem:[#allocation2 + $0xa8] sm:$0xff] }
 0x18e   : > { %v2437_v42 = vpop.f32.mrf.mxu3  ;;  %v731_v34 = vor.u32 %v729_v52, %v728_v7  ;;  %v733_v61 = vrot.slane %v728_v7, 4  ;;  %895 = vst [vmem:[#allocation2 + $0xc0] sm:$0xf] %v894_v20  ;;  %v2911_v38 = vrot.slane %v2909_v47, 5  ;;  %v6068_v20 = vld [vmem:[%s7816_s3 + $0x200] sm:$0xff] }
 0x18f   : > { %v2505_v36 = vadd.f32 %v2437_v42, %v2191_v0  ;;  %v2125_v58 = vpop.f32.mrf.mxu2  ;;  %v7223_v28 = vpop.f32.mrf.mxu1  ;;  %v2896_v42 = vor.u32 %v2895_v49, %v2892_v13  ;;  %v1955_v49 = vrot.slane %v1953_v18, 4  ;;  %v6136_v13 = vld [vmem:[#allocation2 + $0xb0] sm:$0x1]  ;;  %v2907_v3 = vrot.slane %v2906_v24, 4  ;;  %4946 = vmatpush.bf16.msra.mxu0 %v6068_v20  ;;  %v5971_v20 = vld [vmem:[#allocation2 + $0xb4] sm:$0xff] }
 0x190   : > { %v2192_v44 = vadd.f32 %v2125_v58, %v1745_v25  ;;  %v2571_v25 = vld [vmem:[#allocation2 + $0xb4] sm:$0xf]  ;;  %v1956_v27 = vrot.slane %v6136_v13, 5  ;;  %v732_v14 = vsel %vm6293_vm6, %v724_v16, %v731_v34  ;;  %v898_v12 = vsel %vm6281_vm5, %v733_v61, %v897_v50 }
 0x191   : > { %v2897_v60 = vrot.slane %v2896_v42, 4  ;;  %896 = vst [vmem:[#allocation2 + $0xc4] sm:$0xf] %v732_v14  ;;  %v2917_v9 = vshll.u32 %v2571_v25, 16  ;;  %v2927_v16 = vshrl.u32 %v2572_v45, 16  ;;  %v2912_v47 = vsel %vm6364_vm10, %v2907_v3, %v2911_v38 }
 0x192   : > { %v3119_v0 = vpop.f32.mrf.mxu0  ;;  %899 = vst [vmem:[#allocation2 + $0xc8] sm:$0x1] %v898_v12  ;;  %v1957_v31 = vsel %vm6903_vm13, %v1955_v49, %v1956_v27  ;;  %v2010_v18 = vunpack.c.l.b16 %v1954_v35  ;;  %v3005_v27 = vunpack.c.l.b16 %v2912_v47 }
 0x193   : > { %v7231_v26 = vadd.f32 %v3119_v0, %v2505_v36  ;;  %v6028_v36 = vld [vmem:[%s7816_s3 + $0x140] sm:$0xff]  ;;  %v2914_v0 = vshrl.u32 %v2571_v25, 16  ;;  %v2902_v24 = vsel %vm6364_vm10, %v2897_v60, %v7221_v33  ;;  %v2011_v50 = vunpack.c.l.b16 %v1957_v31  ;;  %v6138_v31 = vld [vmem:[#allocation2 + $0xbc] sm:$0x1] }
 0x194   : > { %2167 = vmatmul.bf16.gmra.mxu2 %v2027_v59  ;;  %v6060_v59 = vld [vmem:[%s7816_s3 + $0x1c0] sm:$0xff]  ;;  %3523 = vmatpush.bf16.msra.mxu1 %v6028_v36  ;;  %v2919_v61 = vrot.slane %v2917_v9, 5  ;;  %v2929_v49 = vrot.slane %v2927_v16, 4  ;;  %v3004_v13 = vunpack.c.l.b16 %v2902_v24  ;;  %v1750_v33 = vadd.f32 %v7223_v28, %v7013_v63  ;;  %v6137_v36 = vld [vmem:[#allocation2 + $0xb8] sm:$0xf] }
 0x195   : > { %3158 = vmatmul.bf16.gmra.mxu0 %v3022_v53  ;;  %4520 = vmatpush.bf16.msra.mxu3 %v6060_v59  ;;  %v2916_v34 = vrot.slane %v2914_v0, 4  ;;  %v1960_v14 = vrot.slane %v6137_v36, 5 }
 0x196   : > { %v2439_v58 = vpop.f32.mrf.mxu3 }
 0x197   : > { %v2506_v53 = vadd.f32 %v2439_v58, %v2192_v44  ;;  %v2128_v19 = vpop.f32.mrf.mxu2  ;;  %v1752_v7 = vpop.f32.mrf.mxu1  ;;  %v2923_v44 = vshll.u32 %v2572_v45, 16  ;;  %v2573_v58 = vld [vmem:[#allocation2 + $0xbc] sm:$0x1]  ;;  %v2920_v60 = vor.u32 %v2919_v61, %v2916_v34  ;;  %v1962_v35 = vrot.slane %v1960_v14, 4 }
 0x198   : > { %v2193_v52 = vadd.f32 %v2128_v19, %v1748_v39  ;;  %v2933_v38 = vshll.u32 %v2573_v58, 16  ;;  %v3023_v19 = vpack.c.b16 %v3005_v27, %v3004_v13  ;;  %v1753_v47 = vadd.f32 %v1752_v7, %v7028_v41 }
 0x199   : > { %v2925_v37 = vrot.slane %v2923_v44, 5  ;;  %v1963_v44 = vrot.slane %v6138_v31, 5  ;;  %v2921_v28 = vrot.slane %v2920_v60, 4  ;;  %v3211_v31 = vld [vmem:[#allocation2 + $0xc] sm:$0xe] }
 0x19a   : > { %1791 = vmatmul.bf16.gmra.mxu1 %v5970_v2  ;;  %v3121_v42 = vpop.f32.mrf.mxu0  ;;  %v2935_v16 = vrot.slane %v2933_v38, 5 }
 0x19b   : > { %2481 = vmatmul.bf16.gmra.mxu3 %v6009_v30  ;;  %v7257_v25 = vadd.f32 %v3121_v42, %v2506_v53  ;;  %v2028_v53 = vpack.c.b16 %v2011_v50, %v2010_v18  ;;  %v1817_v30 = vld [vmem:[#allocation2 + $0xb4] sm:$0xe]  ;;  %v2930_v3 = vor.u32 %v2929_v49, %v2925_v37  ;;  %v2574_v42 = vld [vmem:[#allocation2 + $0xc0] sm:$0xf]  ;;  %v2575_v18 = vld [vmem:[#allocation2 + $0xc4] sm:$0xf] }
 0x19c   : > { %v5455_v9 = vrot.slane %v1817_v30, 9  ;;  %v6139_v50 = vld [vmem:[#allocation2 + $0x10] sm:$0xf]  ;;  %v6010_v49 = vld [vmem:[#allocation2 + $0xb4] sm:$0xff]  ;;  %v2941_v7 = vshll.u32 %v2574_v42, 16  ;;  %v2947_v36 = vshll.u32 %v2575_v18, 16 }
 0x19d   : > { %v3277_v34 = vrot.slane %v6139_v50, 5  ;;  %v2951_v30 = vshrl.u32 %v2575_v18, 16 }
 0x19e   : > { %v2442_v45 = vpop.f32.mrf.mxu3 }
 0x19f   : > { %v2507_v39 = vadd.f32 %v2442_v45, %v2193_v52  ;;  %v2130_v2 = vpop.f32.mrf.mxu2  ;;  %v1754_v59 = vpop.f32.mrf.mxu1  ;;  %v2931_v52 = vrot.slane %v2930_v3, 4  ;;  %v1961_v45 = vsel %vm6903_vm13, %v5455_v9, %v1960_v14  ;;  %v3279_v60 = vrot.slane %v3277_v34, 4  ;;  %v6140_v3 = vld [vmem:[#allocation2 + $0x14] sm:$0x1] }
 0x1a0   : > { %v2194_v12 = vadd.f32 %v2130_v2, %v1750_v33  ;;  %v1964_v33 = vsel %vm6903_vm13, %v1962_v35, %v1963_v44  ;;  %v2926_v2 = vsel %vm6364_vm10, %v2921_v28, %v2925_v37  ;;  %v3280_v14 = vrot.slane %v6140_v3, 5  ;;  %v7272_v37 = vld [vmem:[#allocation2 + $0x1c] sm:$0xf] }
 0x1a1   : > { %v2936_v41 = vsel %vm6364_vm10, %v2931_v52, %v2935_v16  ;;  %v1755_v28 = vadd.f32 %v1754_v59, %v7053_v6  ;;  %v2943_v52 = vrot.slane %v2941_v7, 5  ;;  %v2949_v16 = vrot.slane %v2947_v36, 5 }
 0x1a2   : > { %v3124_v0 = vpop.f32.mrf.mxu0  ;;  %v3007_v9 = vunpack.c.l.b16 %v2936_v41  ;;  %v4010_v6 = vshll.u32 %v7272_v37, 16  ;;  %v4014_v7 = vshrl.u32 %v7272_v37, 16 }
 0x1a3   : > { %v7261_v63 = vadd.f32 %v3124_v0, %v2507_v39  ;;  %v2938_v39 = vshrl.u32 %v2574_v42, 16  ;;  %v3006_v0 = vunpack.c.l.b16 %v2926_v2  ;;  %v5664_v42 = vrot.slane %v3211_v31, 9 }
 0x1a4   : > { %2172 = vmatmul.bf16.gmra.mxu2 %v2028_v53  ;;  %v2013_v53 = vunpack.c.l.b16 %v1964_v33  ;;  %v4016_v31 = vrot.slane %v4014_v7, 4 }
 0x1a5   : > { %3163 = vmatmul.bf16.gmra.mxu0 %v3023_v19  ;;  %v3952_v19 = vld [vmem:[#allocation2 + $0x18] sm:$0xf]  ;;  %v2940_v35 = vrot.slane %v2938_v39, 4  ;;  %v3278_v39 = vsel %vm6903_vm13, %v5664_v42, %v3277_v34  ;;  %v4012_v34 = vrot.slane %v4010_v6, 5 }
 0x1a6   : > { %v2444_v24 = vpop.f32.mrf.mxu3  ;;  %v4001_v18 = vshrl.u32 %v3952_v19, 16  ;;  %v4004_v50 = vshll.u32 %v3952_v19, 16  ;;  %v3404_v2 = vunpack.c.l.b16 %v3278_v39 }
 0x1a7   : > { %v2508_v61 = vadd.f32 %v2444_v24, %v2194_v12  ;;  %v2133_v13 = vpop.f32.mrf.mxu2  ;;  %v1757_v27 = vpop.f32.mrf.mxu1  ;;  %v2012_v12 = vunpack.c.l.b16 %v1961_v45  ;;  %v2576_v45 = vld [vmem:[#allocation2 + $0xc8] sm:$0x1]  ;;  %v2944_v36 = vor.u32 %v2943_v52, %v2940_v35  ;;  %v6011_v52 = vld [vmem:[#allocation2 + $0xc0] sm:$0xff] }
 0x1a8   : > { %v2195_v58 = vadd.f32 %v2133_v13, %v1753_v47  ;;  %v4006_v19 = vrot.slane %v4004_v50, 5 }
 0x1a9   : > { %v2029_v47 = vpack.c.b16 %v2013_v53, %v2012_v12  ;;  %v3024_v12 = vpack.c.b16 %v3007_v9, %v3006_v0 }
 0x1aa   : > { %1796 = vmatmul.bf16.gmra.mxu1 %v5971_v20  ;;  %v3126_v38 = vpop.f32.mrf.mxu0  ;;  %v2953_v20 = vrot.slane %v2951_v30, 4 }
 0x1ab   : > { %2486 = vmatmul.bf16.gmra.mxu3 %v6010_v49  ;;  %v7274_v44 = vadd.f32 %v3126_v38, %v2508_v61  ;;  %v3281_v61 = vsel %vm6903_vm13, %v3279_v60, %v3280_v14  ;;  %v4003_v38 = vrot.slane %v4001_v18, 4  ;;  %v2945_v60 = vrot.slane %v2944_v36, 4  ;;  %v7285_v14 = vld [vmem:[#allocation2 + $0x20] sm:$0x1]  ;;  %v3212_v36 = vld [vmem:[#allocation2 + $0x18] sm:$0xe] }
 0x1ac   : > { %v3405_v41 = vunpack.c.l.b16 %v3281_v61  ;;  %v2954_v53 = vor.u32 %v2953_v20, %v2949_v16 }
 0x1ad   : > { %v4007_v18 = vor.u32 %v4006_v19, %v4003_v38  ;;  %v7295_v19 = vld [vmem:[#allocation2 + $0x28] sm:$0xf] }
 0x1ae   : > { %v2447_v24 = vpop.f32.mrf.mxu3  ;;  %v3436_v30 = vpack.c.b16 %v3405_v41, %v3404_v2  ;;  %v2955_v35 = vrot.slane %v2954_v53, 4 }
 0x1af   : > { %v2509_v49 = vadd.f32 %v2447_v24, %v2195_v58  ;;  %v2135_v13 = vpop.f32.mrf.mxu2  ;;  %v1759_v33 = vpop.f32.mrf.mxu1  ;;  %v2957_v58 = vshll.u32 %v2576_v45, 16  ;;  %v1758_v24 = vadd.f32 %v1757_v27, %v7063_v40  ;;  %v4020_v45 = vshll.u32 %v7285_v14, 16  ;;  %v6141_v27 = vld [vmem:[#allocation2 + $0x1c] sm:$0xf] }
 0x1b0   : > { %v2196_v59 = vadd.f32 %v2135_v13, %v1755_v28  ;;  %v4008_v40 = vrot.slane %v4007_v18, 4  ;;  %v3284_v6 = vrot.slane %v6141_v27, 5 }
 0x1b1   : > { %v2959_v0 = vrot.slane %v2957_v58, 5  ;;  %v4022_v7 = vrot.slane %v4020_v45, 5  ;;  %v5665_v58 = vrot.slane %v3212_v36, 9  ;;  %v4700_v36 = vrot.slane %v7272_v37, 5 }
 0x1b2   : > { %v3129_v3 = vpop.f32.mrf.mxu0 }
 0x1b3   : > { %v7283_v42 = vadd.f32 %v3129_v3, %v2509_v49  ;;  %v2950_v49 = vsel %vm6364_vm10, %v2945_v60, %v2949_v16  ;;  %v2960_v39 = vsel %vm6364_vm10, %v2955_v35, %v2959_v0  ;;  %v3286_v3 = vrot.slane %v3284_v6, 4  ;;  %v6142_v16 = vld [vmem:[#allocation2 + $0x20] sm:$0x1] }
 0x1b4   : > { %2177 = vmatmul.bf16.gmra.mxu2 %v2029_v47  ;;  %v4017_v47 = vor.u32 %v4016_v31, %v4012_v34  ;;  %v3008_v2 = vunpack.c.l.b16 %v2950_v49  ;;  %v3009_v53 = vunpack.c.l.b16 %v2960_v39  ;;  %v3287_v38 = vrot.slane %v6142_v16, 5 }
 0x1b5   : > { %3168 = vmatmul.bf16.gmra.mxu0 %v3024_v12  ;;  %v1760_v31 = vadd.f32 %v1759_v33, %v7079_v8  ;;  %v4013_v0 = vsel %vm6364_vm10, %v4008_v40, %v4012_v34  ;;  %v4034_v8 = vshll.u32 %v7295_v19, 16  ;;  %v4038_v33 = vshrl.u32 %v7295_v19, 16 }
 0x1b6   : > { %v2449_v28 = vpop.f32.mrf.mxu3  ;;  %v4018_v41 = vrot.slane %v4017_v47, 4  ;;  %v6036_v47 = vld [vmem:[#allocation2 + $0x18] sm:$0xff]  ;;  %v4401_v27 = vunpack.c.l.b16 %v4013_v0 }
 0x1b7   : > { %v2510_v9 = vadd.f32 %v2449_v28, %v2196_v59  ;;  %v2138_v20 = vpop.f32.mrf.mxu2  ;;  %v1762_v13 = vpop.f32.mrf.mxu1  ;;  %v3955_v59 = vld [vmem:[#allocation2 + $0x24] sm:$0xf] }
 0x1b8   : > { %v2197_v50 = vadd.f32 %v2138_v20, %v1758_v24  ;;  %v4025_v60 = vshrl.u32 %v3955_v59, 16  ;;  %v4028_v28 = vshll.u32 %v3955_v59, 16  ;;  %v3288_v20 = vsel %vm6903_vm13, %v3286_v3, %v3287_v38  ;;  %v4634_v59 = vld [vmem:[#allocation2 + $0x18] sm:$0xe] }
 0x1b9   : > { %v4023_v45 = vsel %vm6364_vm10, %v4018_v41, %v4022_v7  ;;  %v3407_v39 = vunpack.c.l.b16 %v3288_v20  ;;  %v4040_v3 = vrot.slane %v4038_v33, 4  ;;  %v7311_v41 = vld [vmem:[#allocation2 + $0x2c] sm:$0x1]  ;;  %v3958_v33 = vld [vmem:[#allocation2 + $0x30] sm:$0xf] }
 0x1ba   : > { %3524 = vmatmul.bf16.vlgmr.msra.gmra.mxu1 %v3436_v30  ;;  %v3131_v61 = vpop.f32.mrf.mxu0  ;;  %v4027_v34 = vrot.slane %v4025_v60, 4 }
 0x1bb   : > { %2491 = vmatmul.bf16.gmra.mxu3 %v6011_v52  ;;  %v7293_v12 = vadd.f32 %v3131_v61, %v2510_v9  ;;  %v3285_v9 = vsel %vm6903_vm13, %v5665_v58, %v3284_v6  ;;  %v4030_v61 = vrot.slane %v4028_v28, 5  ;;  %v4402_v6 = vunpack.c.l.b16 %v4023_v45 }
 0x1bc   : > { %v3406_v49 = vunpack.c.l.b16 %v3285_v9  ;;  %v4036_v58 = vrot.slane %v4034_v8, 5  ;;  %v4702_v28 = vrot.slane %v4700_v36, 4 }
 0x1bd   : > { %v4433_v60 = vpack.c.b16 %v4402_v6, %v4401_v27  ;;  %v6144_v27 = vld [vmem:[#allocation2 + $0x2c] sm:$0x1] }
 0x1be   : > { %v2452_v30 = vpop.f32.mrf.mxu3  ;;  %v3437_v38 = vpack.c.b16 %v3407_v39, %v3406_v49  ;;  %v4041_v20 = vor.u32 %v4040_v3, %v4036_v58  ;;  %v3213_v49 = vld [vmem:[#allocation2 + $0x24] sm:$0xe]  ;;  %v3294_v6 = vrot.slane %v6144_v27, 5 }
 0x1bf   : > { %v2511_v24 = vadd.f32 %v2452_v30, %v2197_v50  ;;  %v2140_v35 = vpop.f32.mrf.mxu2  ;;  %v1764_v52 = vpop.f32.mrf.mxu1  ;;  %v3025_v50 = vpack.c.b16 %v3009_v53, %v3008_v2  ;;  %v1763_v2 = vadd.f32 %v1762_v13, %v6999_v55  ;;  %v5888_v53 = vrot.slane %v4634_v59, 9  ;;  %v7322_v59 = vld [vmem:[#allocation2 + $0x34] sm:$0xf] }
 0x1c0   : > { %v2198_v18 = vadd.f32 %v2140_v35, %v1760_v31  ;;  %v4031_v30 = vor.u32 %v4030_v61, %v4027_v34  ;;  %v4703_v35 = vrot.slane %v7285_v14, 5  ;;  %v4042_v14 = vrot.slane %v4041_v20, 4  ;;  %v6037_v20 = vld [vmem:[#allocation2 + $0x24] sm:$0xff] }
 0x1c1   : > { %v5666_v61 = vrot.slane %v3213_v49, 9 }
 0x1c2   : > { %v3134_v40 = vpop.f32.mrf.mxu0  ;;  %v4032_v45 = vrot.slane %v4031_v30, 4  ;;  %v4704_v13 = vsel %vm6903_vm13, %v4702_v28, %v4703_v35  ;;  %v4052_v35 = vshll.u32 %v3958_v33, 16 }
 0x1c3   : > { %v7309_v16 = vadd.f32 %v3134_v40, %v2511_v24  ;;  %v4044_v24 = vshll.u32 %v7311_v41, 16 }
 0x1c4   : > { %3839 = vmatmul.bf16.vlgmr.msra.gmra.mxu2 %v6036_v47  ;;  %v4701_v47 = vsel %vm6903_vm13, %v5888_v53, %v4700_v36  ;;  %v4828_v36 = vunpack.c.l.b16 %v4704_v13  ;;  %v4049_v53 = vshrl.u32 %v3958_v33, 16  ;;  %v4054_v33 = vrot.slane %v4052_v35, 5 }
 0x1c5   : > { %3173 = vmatmul.bf16.gmra.mxu0 %v3025_v50  ;;  %v4046_v50 = vrot.slane %v4044_v24, 5  ;;  %v4827_v34 = vunpack.c.l.b16 %v4701_v47  ;;  %v4707_v47 = vrot.slane %v7295_v19, 5 }
 0x1c6   : > { %v2454_v7 = vpop.f32.mrf.mxu3  ;;  %v4051_v49 = vrot.slane %v4049_v53, 4 }
 0x1c7   : > { %v2512_v31 = vadd.f32 %v2454_v7, %v2198_v18  ;;  %v2143_v37 = vpop.f32.mrf.mxu2  ;;  %v1767_v0 = vpop.f32.mrf.mxu1  ;;  %v6143_v18 = vld [vmem:[#allocation2 + $0x28] sm:$0xf]  ;;  %v1765_v7 = vadd.f32 %v1764_v52, %v7005_v62  ;;  %v4047_v24 = vsel %vm6364_vm10, %v4042_v14, %v4046_v50  ;;  %v4058_v62 = vshll.u32 %v7322_v59, 16  ;;  %v7338_v50 = vld [vmem:[#allocation2 + $0x38] sm:$0x1] }
 0x1c8   : > { %v2199_v9 = vadd.f32 %v2143_v37, %v1763_v2  ;;  %v3291_v8 = vrot.slane %v6143_v18, 5  ;;  %v4037_v2 = vsel %vm6364_vm10, %v4032_v45, %v4036_v58  ;;  %v4062_v52 = vshrl.u32 %v7322_v59, 16 }
 0x1c9   : > { %v4859_v58 = vpack.c.b16 %v4828_v36, %v4827_v34  ;;  %v4403_v18 = vunpack.c.l.b16 %v4037_v2  ;;  %v4709_v19 = vrot.slane %v4707_v47, 4  ;;  %v4710_v36 = vrot.slane %v7311_v41, 5 }
 0x1ca   : > { %3529 = vmatmul.bf16.gmra.mxu1 %v3437_v38  ;;  %v3136_v55 = vpop.f32.mrf.mxu0  ;;  %v3293_v40 = vrot.slane %v3291_v8, 4 }
 0x1cb   : > { %4521 = vmatmul.bf16.vlgmr.msra.gmra.mxu3 %v4433_v60  ;;  %v7320_v39 = vadd.f32 %v3136_v55, %v2512_v31  ;;  %v3292_v31 = vsel %vm6903_vm13, %v5666_v61, %v3291_v8  ;;  %v4404_v8 = vunpack.c.l.b16 %v4047_v24  ;;  %v4060_v61 = vrot.slane %v4058_v62, 5  ;;  %v3961_v62 = vld [vmem:[#allocation2 + $0x3c] sm:$0xf] }
 0x1cc   : > { %v3295_v28 = vsel %vm6903_vm13, %v3293_v40, %v3294_v6  ;;  %v3408_v45 = vunpack.c.l.b16 %v3292_v31  ;;  %v4064_v40 = vrot.slane %v4062_v52, 4  ;;  %v1768_v6 = vadd.f32 %v1767_v0, %v7024_v15  ;;  %v6145_v0 = vld [vmem:[#allocation2 + $0x34] sm:$0xf] }
 0x1cd   : > { %v3409_v55 = vunpack.c.l.b16 %v3295_v28  ;;  %v4434_v2 = vpack.c.b16 %v4404_v8, %v4403_v18  ;;  %v4055_v31 = vor.u32 %v4054_v33, %v4051_v49  ;;  %v4711_v24 = vsel %vm6903_vm13, %v4709_v19, %v4710_v36  ;;  %v7349_v33 = vld [vmem:[#allocation2 + $0x40] sm:$0xf] }
 0x1ce   : > { %v2457_v3 = vpop.f32.mrf.mxu3  ;;  %v4065_v35 = vor.u32 %v4064_v40, %v4060_v61 }
 0x1cf   : > { %v2513_v38 = vadd.f32 %v2457_v3, %v2199_v9  ;;  %v2145_v30 = vpop.f32.mrf.mxu2  ;;  %v1769_v60 = vpop.f32.mrf.mxu1  ;;  %v4635_v9 = vld [vmem:[#allocation2 + $0x24] sm:$0xe]  ;;  %v3438_v3 = vpack.c.b16 %v3409_v55, %v3408_v45  ;;  %v4056_v41 = vrot.slane %v4055_v31, 4  ;;  %v3214_v45 = vld [vmem:[#allocation2 + $0x30] sm:$0xe] }
 0x1d0   : > { %v2200_v37 = vadd.f32 %v2145_v30, %v1765_v7  ;;  %v5889_v14 = vrot.slane %v4635_v9, 9  ;;  %v5667_v18 = vrot.slane %v3214_v45, 9  ;;  %v4714_v45 = vrot.slane %v7322_v59, 5 }
 0x1d2   : > { %v3139_v13 = vpop.f32.mrf.mxu0 }
 0x1d3   : > { %v7336_v27 = vadd.f32 %v3139_v13, %v2513_v38  ;;  %v4068_v38 = vshll.u32 %v7338_v50, 16  ;;  %v4830_v13 = vunpack.c.l.b16 %v4711_v24 }
 0x1d4   : > { %3844 = vmatmul.bf16.gmra.mxu2 %v6037_v20  ;;  %v4708_v20 = vsel %vm6903_vm13, %v5889_v14, %v4707_v47  ;;  %v6146_v47 = vld [vmem:[#allocation2 + $0x38] sm:$0x1]  ;;  %v1770_v14 = vadd.f32 %v1769_v60, %v7045_v57  ;;  %v4082_v57 = vshll.u32 %v7349_v33, 16  ;;  %v4086_v60 = vshrl.u32 %v7349_v33, 16 }
 0x1d5   : > { %4947 = vmatmul.bf16.vlgmr.msra.gmra.mxu0 %v4859_v58  ;;  %v4829_v52 = vunpack.c.l.b16 %v4708_v20  ;;  %v4066_v58 = vrot.slane %v4065_v35, 4  ;;  %v4070_v9 = vrot.slane %v4068_v38, 5  ;;  %v3301_v49 = vrot.slane %v6146_v47, 5  ;;  %v6038_v35 = vld [vmem:[#allocation2 + $0x30] sm:$0xff] }
 0x1d6   : > { %v2459_v34 = vpop.f32.mrf.mxu3 }
 0x1d7   : > { %v2514_v7 = vadd.f32 %v2459_v34, %v2200_v37  ;;  %v2148_v53 = vpop.f32.mrf.mxu2  ;;  %v1772_v30 = vpop.f32.mrf.mxu1  ;;  %v3298_v37 = vrot.slane %v6145_v0, 5  ;;  %v4073_v34 = vshrl.u32 %v3961_v62, 16  ;;  %v4071_v38 = vsel %vm6364_vm10, %v4066_v58, %v4070_v9  ;;  %v7365_v58 = vld [vmem:[#allocation2 + $0x44] sm:$0x1] }
 0x1d8   : > { %v2201_v28 = vadd.f32 %v2148_v53, %v1768_v6  ;;  %v4076_v6 = vshll.u32 %v3961_v62, 16  ;;  %v4636_v62 = vld [vmem:[#allocation2 + $0x30] sm:$0xe] }
 0x1d9   : > { %v3300_v8 = vrot.slane %v3298_v37, 4 }
 0x1da   : > { %3534 = vmatmul.bf16.gmra.mxu1 %v3438_v3  ;;  %v3141_v15 = vpop.f32.mrf.mxu0  ;;  %v4061_v3 = vsel %vm6364_vm10, %v4056_v41, %v4060_v61  ;;  %v4075_v61 = vrot.slane %v4073_v34, 4 }
 0x1db   : > { %4526 = vmatmul.bf16.gmra.mxu3 %v4434_v2  ;;  %v7347_v55 = vadd.f32 %v3141_v15, %v2514_v7  ;;  %v3299_v7 = vsel %vm6903_vm13, %v5667_v18, %v3298_v37  ;;  %v3302_v53 = vsel %vm6903_vm13, %v3300_v8, %v3301_v49  ;;  %v4078_v15 = vrot.slane %v4076_v6, 5 }
 0x1dc   : > { %v3410_v20 = vunpack.c.l.b16 %v3299_v7  ;;  %v3411_v24 = vunpack.c.l.b16 %v3302_v53  ;;  %v4405_v0 = vunpack.c.l.b16 %v4061_v3  ;;  %v4406_v37 = vunpack.c.l.b16 %v4071_v38 }
 0x1dd   : > { %v4084_v18 = vrot.slane %v4082_v57, 5  ;;  %v4088_v8 = vrot.slane %v4086_v60, 4  ;;  %v4716_v6 = vrot.slane %v4714_v45, 4  ;;  %v3964_v60 = vld [vmem:[#allocation2 + $0x48] sm:$0xf] }
 0x1de   : > { %v2462_v40 = vpop.f32.mrf.mxu3  ;;  %v3439_v49 = vpack.c.b16 %v3411_v24, %v3410_v20  ;;  %v4435_v34 = vpack.c.b16 %v4406_v37, %v4405_v0  ;;  %v3215_v20 = vld [vmem:[#allocation2 + $0x3c] sm:$0xe]  ;;  %v6148_v0 = vld [vmem:[#allocation2 + $0x44] sm:$0x1] }
 0x1df   : > { %v2515_v19 = vadd.f32 %v2462_v40, %v2201_v28  ;;  %v2150_v36 = vpop.f32.mrf.mxu2  ;;  %v1774_v2 = vpop.f32.mrf.mxu1  ;;  %v4860_v28 = vpack.c.b16 %v4830_v13, %v4829_v52  ;;  %v1773_v52 = vadd.f32 %v1772_v30, %v7058_v23  ;;  %v5890_v13 = vrot.slane %v4636_v62, 9  ;;  %v7376_v62 = vld [vmem:[#allocation2 + $0x4c] sm:$0xf] }
 0x1e0   : > { %v2202_v31 = vadd.f32 %v2150_v36, %v1770_v14  ;;  %v4079_v40 = vor.u32 %v4078_v15, %v4075_v61  ;;  %v4717_v36 = vrot.slane %v7338_v50, 5  ;;  %v4089_v53 = vor.u32 %v4088_v8, %v4084_v18 }
 0x1e1   : > { %v5668_v15 = vrot.slane %v3215_v20, 9  ;;  %v3308_v37 = vrot.slane %v6148_v0, 5 }
 0x1e2   : > { %v3144_v41 = vpop.f32.mrf.mxu0  ;;  %v4080_v38 = vrot.slane %v4079_v40, 4  ;;  %v4718_v30 = vsel %vm6903_vm13, %v4716_v6, %v4717_v36  ;;  %v4090_v50 = vrot.slane %v4089_v53, 4  ;;  %v4100_v36 = vshll.u32 %v3964_v60, 16  ;;  %v6039_v53 = vld [vmem:[#allocation2 + $0x3c] sm:$0xff] }
 0x1e3   : > { %v7363_v47 = vadd.f32 %v3144_v41, %v2515_v19  ;;  %v4092_v19 = vshll.u32 %v7365_v58, 16 }
 0x1e4   : > { %3849 = vmatmul.bf16.gmra.mxu2 %v6038_v35  ;;  %v4715_v35 = vsel %vm6903_vm13, %v5890_v13, %v4714_v45  ;;  %v4832_v45 = vunpack.c.l.b16 %v4718_v30  ;;  %v4097_v13 = vshrl.u32 %v3964_v60, 16  ;;  %v4102_v60 = vrot.slane %v4100_v36, 5 }
 0x1e5   : > { %4952 = vmatmul.bf16.gmra.mxu0 %v4860_v28  ;;  %v4094_v28 = vrot.slane %v4092_v19, 5  ;;  %v4831_v61 = vunpack.c.l.b16 %v4715_v35  ;;  %v4721_v35 = vrot.slane %v7349_v33, 5 }
 0x1e6   : > { %v2464_v9 = vpop.f32.mrf.mxu3  ;;  %v4099_v20 = vrot.slane %v4097_v13, 4 }
 0x1e7   : > { %v2516_v14 = vadd.f32 %v2464_v9, %v2202_v31  ;;  %v2153_v59 = vpop.f32.mrf.mxu2  ;;  %v1777_v3 = vpop.f32.mrf.mxu1  ;;  %v6147_v31 = vld [vmem:[#allocation2 + $0x40] sm:$0xf]  ;;  %v1775_v9 = vadd.f32 %v1774_v2, %v7075_v56  ;;  %v4095_v19 = vsel %vm6364_vm10, %v4090_v50, %v4094_v28  ;;  %v4106_v56 = vshll.u32 %v7376_v62, 16  ;;  %v7392_v28 = vld [vmem:[#allocation2 + $0x50] sm:$0x1] }
 0x1e8   : > { %v2203_v7 = vadd.f32 %v2153_v59, %v1773_v52  ;;  %v3305_v57 = vrot.slane %v6147_v31, 5  ;;  %v4085_v52 = vsel %vm6364_vm10, %v4080_v38, %v4084_v18  ;;  %v4110_v2 = vshrl.u32 %v7376_v62, 16 }
 0x1e9   : > { %v4861_v18 = vpack.c.b16 %v4832_v45, %v4831_v61  ;;  %v4407_v31 = vunpack.c.l.b16 %v4085_v52  ;;  %v4723_v33 = vrot.slane %v4721_v35, 4  ;;  %v4724_v45 = vrot.slane %v7365_v58, 5 }
 0x1ea   : > { %3539 = vmatmul.bf16.gmra.mxu1 %v3439_v49  ;;  %v3146_v23 = vpop.f32.mrf.mxu0  ;;  %v3307_v41 = vrot.slane %v3305_v57, 4 }
 0x1eb   : > { %4531 = vmatmul.bf16.gmra.mxu3 %v4435_v34  ;;  %v7374_v24 = vadd.f32 %v3146_v23, %v2516_v14  ;;  %v3306_v14 = vsel %vm6903_vm13, %v5668_v15, %v3305_v57  ;;  %v4408_v57 = vunpack.c.l.b16 %v4095_v19  ;;  %v4108_v15 = vrot.slane %v4106_v56, 5  ;;  %v3967_v56 = vld [vmem:[#allocation2 + $0x54] sm:$0xf] }
 0x1ec   : > { %v3309_v6 = vsel %vm6903_vm13, %v3307_v41, %v3308_v37  ;;  %v3412_v38 = vunpack.c.l.b16 %v3306_v14  ;;  %v4112_v41 = vrot.slane %v4110_v2, 4  ;;  %v1778_v37 = vadd.f32 %v1777_v3, %v7092_v5  ;;  %v6149_v3 = vld [vmem:[#allocation2 + $0x4c] sm:$0xf] }
 0x1ed   : > { %v3413_v23 = vunpack.c.l.b16 %v3309_v6  ;;  %v4436_v52 = vpack.c.b16 %v4408_v57, %v4407_v31  ;;  %v4103_v14 = vor.u32 %v4102_v60, %v4099_v20  ;;  %v4725_v19 = vsel %vm6903_vm13, %v4723_v33, %v4724_v45  ;;  %v7403_v60 = vld [vmem:[#allocation2 + $0x58] sm:$0xf] }
 0x1ee   : > { %v2467_v8 = vpop.f32.mrf.mxu3  ;;  %v4113_v36 = vor.u32 %v4112_v41, %v4108_v15 }
 0x1ef   : > { %v2517_v49 = vadd.f32 %v2467_v8, %v2203_v7  ;;  %v2155_v40 = vpop.f32.mrf.mxu2  ;;  %v1779_v34 = vpop.f32.mrf.mxu1  ;;  %v4637_v7 = vld [vmem:[#allocation2 + $0x3c] sm:$0xe]  ;;  %v3440_v8 = vpack.c.b16 %v3413_v23, %v3412_v38  ;;  %v4104_v58 = vrot.slane %v4103_v14, 4  ;;  %v3216_v38 = vld [vmem:[#allocation2 + $0x48] sm:$0xe] }
 0x1f0   : > { %v2204_v59 = vadd.f32 %v2155_v40, %v1775_v9  ;;  %v5891_v50 = vrot.slane %v4637_v7, 9  ;;  %v5669_v31 = vrot.slane %v3216_v38, 9  ;;  %v4728_v38 = vrot.slane %v7376_v62, 5 }
 0x1f2   : > { %v3149_v30 = vpop.f32.mrf.mxu0 }
 0x1f3   : > { %v7390_v0 = vadd.f32 %v3149_v30, %v2517_v49  ;;  %v4116_v49 = vshll.u32 %v7392_v28, 16  ;;  %v4834_v30 = vunpack.c.l.b16 %v4725_v19 }
 0x1f4   : > { %3854 = vmatmul.bf16.gmra.mxu2 %v6039_v53  ;;  %v4722_v53 = vsel %vm6903_vm13, %v5891_v50, %v4721_v35  ;;  %v6150_v35 = vld [vmem:[#allocation2 + $0x50] sm:$0x1]  ;;  %v1780_v50 = vadd.f32 %v1779_v34, %v7109_v4  ;;  %v4130_v4 = vshll.u32 %v7403_v60, 16  ;;  %v4134_v34 = vshrl.u32 %v7403_v60, 16 }
 0x1f5   : > { %4957 = vmatmul.bf16.gmra.mxu0 %v4861_v18  ;;  %v4833_v2 = vunpack.c.l.b16 %v4722_v53  ;;  %v4114_v18 = vrot.slane %v4113_v36, 4  ;;  %v4118_v7 = vrot.slane %v4116_v49, 5  ;;  %v3315_v20 = vrot.slane %v6150_v35, 5  ;;  %v6040_v36 = vld [vmem:[#allocation2 + $0x48] sm:$0xff] }
 0x1f6   : > { %v2469_v61 = vpop.f32.mrf.mxu3 }
 0x1f7   : > { %v2518_v9 = vadd.f32 %v2469_v61, %v2204_v59  ;;  %v2158_v13 = vpop.f32.mrf.mxu2  ;;  %v1782_v40 = vpop.f32.mrf.mxu1  ;;  %v3312_v59 = vrot.slane %v6149_v3, 5  ;;  %v4121_v61 = vshrl.u32 %v3967_v56, 16  ;;  %v4119_v49 = vsel %vm6364_vm10, %v4114_v18, %v4118_v7  ;;  %v7419_v18 = vld [vmem:[#allocation2 + $0x5c] sm:$0x1] }
 0x1f8   : > { %v2205_v6 = vadd.f32 %v2158_v13, %v1778_v37  ;;  %v4124_v37 = vshll.u32 %v3967_v56, 16  ;;  %v4638_v56 = vld [vmem:[#allocation2 + $0x48] sm:$0xe] }
 0x1f9   : > { %v3314_v57 = vrot.slane %v3312_v59, 4 }
 0x1fa   : > { %3544 = vmatmul.bf16.gmra.mxu1 %v3440_v8  ;;  %v3151_v5 = vpop.f32.mrf.mxu0  ;;  %v4109_v8 = vsel %vm6364_vm10, %v4104_v58, %v4108_v15  ;;  %v4123_v15 = vrot.slane %v4121_v61, 4 }
 0x1fb   : > { %4536 = vmatmul.bf16.gmra.mxu3 %v4436_v52  ;;  %v7401_v23 = vadd.f32 %v3151_v5, %v2518_v9  ;;  %v3313_v9 = vsel %vm6903_vm13, %v5669_v31, %v3312_v59  ;;  %v3316_v13 = vsel %vm6903_vm13, %v3314_v57, %v3315_v20  ;;  %v4126_v5 = vrot.slane %v4124_v37, 5 }
 0x1fc   : > { %v3414_v53 = vunpack.c.l.b16 %v3313_v9  ;;  %v3415_v19 = vunpack.c.l.b16 %v3316_v13  ;;  %v4409_v3 = vunpack.c.l.b16 %v4109_v8  ;;  %v4410_v59 = vunpack.c.l.b16 %v4119_v49 }
 0x1fd   : > { %v4132_v31 = vrot.slane %v4130_v4, 5  ;;  %v4136_v57 = vrot.slane %v4134_v34, 4  ;;  %v4730_v37 = vrot.slane %v4728_v38, 4  ;;  %v3970_v34 = vld [vmem:[#allocation2 + $0x60] sm:$0xf] }
 0x1fe   : > { %v2472_v41 = vpop.f32.mrf.mxu3  ;;  %v3441_v20 = vpack.c.b16 %v3415_v19, %v3414_v53  ;;  %v4437_v61 = vpack.c.b16 %v4410_v59, %v4409_v3  ;;  %v3217_v53 = vld [vmem:[#allocation2 + $0x54] sm:$0xe]  ;;  %v6152_v3 = vld [vmem:[#allocation2 + $0x5c] sm:$0x1] }
 0x1ff   : > { %v2519_v33 = vadd.f32 %v2472_v41, %v2205_v6  ;;  %v2160_v45 = vpop.f32.mrf.mxu2  ;;  %v1784_v52 = vpop.f32.mrf.mxu1  ;;  %v4862_v6 = vpack.c.b16 %v4834_v30, %v4833_v2  ;;  %v1783_v2 = vadd.f32 %v1782_v40, %v7003_v29  ;;  %v5892_v30 = vrot.slane %v4638_v56, 9  ;;  %v7430_v56 = vld [vmem:[#allocation2 + $0x64] sm:$0xf] }
 0x200   : > { %v2206_v14 = vadd.f32 %v2160_v45, %v1780_v50  ;;  %v4127_v41 = vor.u32 %v4126_v5, %v4123_v15  ;;  %v4731_v45 = vrot.slane %v7392_v28, 5  ;;  %v4137_v13 = vor.u32 %v4136_v57, %v4132_v31 }
 0x201   : > { %v5670_v5 = vrot.slane %v3217_v53, 9  ;;  %v3322_v59 = vrot.slane %v6152_v3, 5 }
 0x202   : > { %v3154_v58 = vpop.f32.mrf.mxu0  ;;  %v4128_v49 = vrot.slane %v4127_v41, 4  ;;  %v4732_v40 = vsel %vm6903_vm13, %v4730_v37, %v4731_v45  ;;  %v4138_v28 = vrot.slane %v4137_v13, 4  ;;  %v4148_v45 = vshll.u32 %v3970_v34, 16  ;;  %v6041_v13 = vld [vmem:[#allocation2 + $0x54] sm:$0xff] }
 0x203   : > { %v7417_v35 = vadd.f32 %v3154_v58, %v2519_v33  ;;  %v4140_v33 = vshll.u32 %v7419_v18, 16 }
 0x204   : > { %3859 = vmatmul.bf16.gmra.mxu2 %v6040_v36  ;;  %v4729_v36 = vsel %vm6903_vm13, %v5892_v30, %v4728_v38  ;;  %v4836_v38 = vunpack.c.l.b16 %v4732_v40  ;;  %v4145_v30 = vshrl.u32 %v3970_v34, 16  ;;  %v4150_v34 = vrot.slane %v4148_v45, 5 }
 0x205   : > { %4962 = vmatmul.bf16.gmra.mxu0 %v4862_v6  ;;  %v4142_v6 = vrot.slane %v4140_v33, 5  ;;  %v4835_v15 = vunpack.c.l.b16 %v4729_v36  ;;  %v4735_v36 = vrot.slane %v7403_v60, 5 }
 0x206   : > { %v2474_v7 = vpop.f32.mrf.mxu3  ;;  %v4147_v53 = vrot.slane %v4145_v30, 4 }
 0x207   : > { %v2520_v50 = vadd.f32 %v2474_v7, %v2206_v14  ;;  %v2163_v62 = vpop.f32.mrf.mxu2  ;;  %v1787_v8 = vpop.f32.mrf.mxu1  ;;  %v6151_v14 = vld [vmem:[#allocation2 + $0x58] sm:$0xf]  ;;  %v1785_v7 = vadd.f32 %v1784_v52, %v7022_v10  ;;  %v4143_v33 = vsel %vm6364_vm10, %v4138_v28, %v4142_v6  ;;  %v4154_v10 = vshll.u32 %v7430_v56, 16  ;;  %v7446_v6 = vld [vmem:[#allocation2 + $0x68] sm:$0x1] }
 0x208   : > { %v2207_v9 = vadd.f32 %v2163_v62, %v1783_v2  ;;  %v3319_v4 = vrot.slane %v6151_v14, 5  ;;  %v4133_v2 = vsel %vm6364_vm10, %v4128_v49, %v4132_v31  ;;  %v4158_v52 = vshrl.u32 %v7430_v56, 16 }
 0x209   : > { %v4863_v31 = vpack.c.b16 %v4836_v38, %v4835_v15  ;;  %v4411_v14 = vunpack.c.l.b16 %v4133_v2  ;;  %v4737_v60 = vrot.slane %v4735_v36, 4  ;;  %v4738_v38 = vrot.slane %v7419_v18, 5 }
 0x20a   : > { %3549 = vmatmul.bf16.gmra.mxu1 %v3441_v20  ;;  %v3156_v29 = vpop.f32.mrf.mxu0  ;;  %v3321_v58 = vrot.slane %v3319_v4, 4 }
 0x20b   : > { %4541 = vmatmul.bf16.gmra.mxu3 %v4437_v61  ;;  %v7428_v19 = vadd.f32 %v3156_v29, %v2520_v50  ;;  %v3320_v50 = vsel %vm6903_vm13, %v5670_v5, %v3319_v4  ;;  %v4412_v4 = vunpack.c.l.b16 %v4143_v33  ;;  %v4156_v5 = vrot.slane %v4154_v10, 5  ;;  %v3973_v10 = vld [vmem:[#allocation2 + $0x6c] sm:$0xf] }
 0x20c   : > { %v3323_v37 = vsel %vm6903_vm13, %v3321_v58, %v3322_v59  ;;  %v3416_v49 = vunpack.c.l.b16 %v3320_v50  ;;  %v4160_v58 = vrot.slane %v4158_v52, 4  ;;  %v1788_v59 = vadd.f32 %v1787_v8, %v7030_v46  ;;  %v6153_v8 = vld [vmem:[#allocation2 + $0x64] sm:$0xf] }
 0x20d   : > { %v3417_v29 = vunpack.c.l.b16 %v3323_v37  ;;  %v4438_v2 = vpack.c.b16 %v4412_v4, %v4411_v14  ;;  %v4151_v50 = vor.u32 %v4150_v34, %v4147_v53  ;;  %v4739_v33 = vsel %vm6903_vm13, %v4737_v60, %v4738_v38  ;;  %v7457_v34 = vld [vmem:[#allocation2 + $0x70] sm:$0xf] }
 0x20e   : > { %v2477_v57 = vpop.f32.mrf.mxu3  ;;  %v4161_v45 = vor.u32 %v4160_v58, %v4156_v5 }
 0x20f   : > { %v2521_v20 = vadd.f32 %v2477_v57, %v2207_v9  ;;  %v2165_v41 = vpop.f32.mrf.mxu2  ;;  %v1789_v61 = vpop.f32.mrf.mxu1  ;;  %v4639_v9 = vld [vmem:[#allocation2 + $0x54] sm:$0xe]  ;;  %v3442_v57 = vpack.c.b16 %v3417_v29, %v3416_v49  ;;  %v4152_v18 = vrot.slane %v4151_v50, 4  ;;  %v3218_v49 = vld [vmem:[#allocation2 + $0x60] sm:$0xe] }
 0x210   : > { %v2208_v62 = vadd.f32 %v2165_v41, %v1785_v7  ;;  %v5893_v28 = vrot.slane %v4639_v9, 9  ;;  %v5671_v14 = vrot.slane %v3218_v49, 9  ;;  %v4742_v49 = vrot.slane %v7430_v56, 5 }
 0x212   : > { %v3159_v40 = vpop.f32.mrf.mxu0 }
 0x213   : > { %v7444_v3 = vadd.f32 %v3159_v40, %v2521_v20  ;;  %v4164_v20 = vshll.u32 %v7446_v6, 16  ;;  %v4838_v40 = vunpack.c.l.b16 %v4739_v33 }
 0x214   : > { %3864 = vmatmul.bf16.gmra.mxu2 %v6041_v13  ;;  %v4736_v13 = vsel %vm6903_vm13, %v5893_v28, %v4735_v36  ;;  %v6154_v36 = vld [vmem:[#allocation2 + $0x68] sm:$0x1]  ;;  %v1790_v28 = vadd.f32 %v1789_v61, %v7055_v11  ;;  %v4178_v11 = vshll.u32 %v7457_v34, 16  ;;  %v4182_v61 = vshrl.u32 %v7457_v34, 16 }
 0x215   : > { %4967 = vmatmul.bf16.gmra.mxu0 %v4863_v31  ;;  %v4837_v52 = vunpack.c.l.b16 %v4736_v13  ;;  %v4162_v31 = vrot.slane %v4161_v45, 4  ;;  %v4166_v9 = vrot.slane %v4164_v20, 5  ;;  %v3329_v53 = vrot.slane %v6154_v36, 5  ;;  %v6042_v45 = vld [vmem:[#allocation2 + $0x60] sm:$0xff] }
 0x216   : > { %v2479_v15 = vpop.f32.mrf.mxu3 }
 0x217   : > { %v2522_v7 = vadd.f32 %v2479_v15, %v2208_v62  ;;  %v2168_v30 = vpop.f32.mrf.mxu2  ;;  %v1792_v41 = vpop.f32.mrf.mxu1  ;;  %v3326_v62 = vrot.slane %v6153_v8, 5  ;;  %v4169_v15 = vshrl.u32 %v3973_v10, 16  ;;  %v4167_v20 = vsel %vm6364_vm10, %v4162_v31, %v4166_v9  ;;  %v7473_v31 = vld [vmem:[#allocation2 + $0x74] sm:$0x1] }
 0x218   : > { %v2209_v37 = vadd.f32 %v2168_v30, %v1788_v59  ;;  %v4172_v59 = vshll.u32 %v3973_v10, 16  ;;  %v4640_v10 = vld [vmem:[#allocation2 + $0x60] sm:$0xe] }
 0x219   : > { %v3328_v4 = vrot.slane %v3326_v62, 4 }
 0x21a   : > { %3554 = vmatmul.bf16.gmra.mxu1 %v3442_v57  ;;  %v3161_v46 = vpop.f32.mrf.mxu0  ;;  %v4157_v57 = vsel %vm6364_vm10, %v4152_v18, %v4156_v5  ;;  %v4171_v5 = vrot.slane %v4169_v15, 4 }
 0x21b   : > { %4546 = vmatmul.bf16.gmra.mxu3 %v4438_v2  ;;  %v7455_v29 = vadd.f32 %v3161_v46, %v2522_v7  ;;  %v3327_v7 = vsel %vm6903_vm13, %v5671_v14, %v3326_v62  ;;  %v3330_v30 = vsel %vm6903_vm13, %v3328_v4, %v3329_v53  ;;  %v4174_v46 = vrot.slane %v4172_v59, 5 }
 0x21c   : > { %v3418_v13 = vunpack.c.l.b16 %v3327_v7  ;;  %v3419_v33 = vunpack.c.l.b16 %v3330_v30  ;;  %v4413_v8 = vunpack.c.l.b16 %v4157_v57  ;;  %v4414_v62 = vunpack.c.l.b16 %v4167_v20 }
 0x21d   : > { %v4180_v14 = vrot.slane %v4178_v11, 5  ;;  %v4184_v4 = vrot.slane %v4182_v61, 4  ;;  %v4744_v59 = vrot.slane %v4742_v49, 4  ;;  %v3976_v61 = vld [vmem:[#allocation2 + $0x78] sm:$0xf] }
 0x21e   : > { %v2482_v58 = vpop.f32.mrf.mxu3  ;;  %v3443_v53 = vpack.c.b16 %v3419_v33, %v3418_v13  ;;  %v4439_v15 = vpack.c.b16 %v4414_v62, %v4413_v8  ;;  %v3219_v13 = vld [vmem:[#allocation2 + $0x6c] sm:$0xe]  ;;  %v6156_v8 = vld [vmem:[#allocation2 + $0x74] sm:$0x1] }
 0x21f   : > { %v2523_v60 = vadd.f32 %v2482_v58, %v2209_v37  ;;  %v2170_v38 = vpop.f32.mrf.mxu2  ;;  %v1794_v2 = vpop.f32.mrf.mxu1  ;;  %v4864_v37 = vpack.c.b16 %v4838_v40, %v4837_v52  ;;  %v1793_v52 = vadd.f32 %v1792_v41, %v7073_v22  ;;  %v5894_v40 = vrot.slane %v4640_v10, 9  ;;  %v7484_v10 = vld [vmem:[#allocation2 + $0x7c] sm:$0xf] }
 0x220   : > { %v2210_v50 = vadd.f32 %v2170_v38, %v1790_v28  ;;  %v4175_v58 = vor.u32 %v4174_v46, %v4171_v5  ;;  %v4745_v38 = vrot.slane %v7446_v6, 5  ;;  %v4185_v30 = vor.u32 %v4184_v4, %v4180_v14 }
 0x221   : > { %v5672_v46 = vrot.slane %v3219_v13, 9  ;;  %v3336_v62 = vrot.slane %v6156_v8, 5 }
 0x222   : > { %v3164_v18 = vpop.f32.mrf.mxu0  ;;  %v4176_v20 = vrot.slane %v4175_v58, 4  ;;  %v4746_v41 = vsel %vm6903_vm13, %v4744_v59, %v4745_v38  ;;  %v4186_v6 = vrot.slane %v4185_v30, 4 }
 0x223   : > { %v7471_v36 = vadd.f32 %v3164_v18, %v2523_v60  ;;  %v4188_v60 = vshll.u32 %v7473_v31, 16 }
 0x224   : > { %3869 = vmatmul.bf16.gmra.mxu2 %v6042_v45  ;;  %v4743_v45 = vsel %vm6903_vm13, %v5894_v40, %v4742_v49  ;;  %v4840_v49 = vunpack.c.l.b16 %v4746_v41  ;;  %v4181_v40 = vsel %vm6364_vm10, %v4176_v20, %v4180_v14  ;;  %v4206_v14 = vshrl.u32 %v7484_v10, 16 }
 0x225   : > { %4972 = vmatmul.bf16.gmra.mxu0 %v4864_v37  ;;  %v4190_v37 = vrot.slane %v4188_v60, 5  ;;  %v4839_v5 = vunpack.c.l.b16 %v4743_v45  ;;  %v6043_v60 = vld [vmem:[#allocation2 + $0x6c] sm:$0xff]  ;;  %v4415_v13 = vunpack.c.l.b16 %v4181_v40 }
 0x226   : > { %v2484_v9 = vpop.f32.mrf.mxu3 }
 0x227   : > { %v2524_v28 = vadd.f32 %v2484_v9, %v2210_v50  ;;  %v2173_v56 = vpop.f32.mrf.mxu2  ;;  %v1797_v57 = vpop.f32.mrf.mxu1  ;;  %v6155_v50 = vld [vmem:[#allocation2 + $0x70] sm:$0xf]  ;;  %v7834_v9 = vld [vmem:[#allocation3_spill] sm:$0xff]  ;;  %v4191_v45 = vsel %vm6364_vm10, %v4186_v6, %v4190_v37  ;;  %v4865_v20 = vpack.c.b16 %v4840_v49, %v4839_v5  ;;  %v7500_v37 = vld [vmem:[#allocation2 + $0x80] sm:$0x1] }
 0x228   : > { %v2211_v7 = vadd.f32 %v2173_v56, %v1793_v52  ;;  %v3333_v11 = vrot.slane %v6155_v50, 5  ;;  %v1795_v52 = vadd.f32 %v1794_v2, %v7834_v9  ;;  %v4196_v56 = vshll.u32 %v3976_v61, 16  ;;  %v7835_v49 = vld [vmem:[#allocation4_spill] sm:$0xff] }
 0x229   : > { %v4202_v2 = vshll.u32 %v7484_v10, 16  ;;  %v1798_v9 = vadd.f32 %v1797_v57, %v7835_v49 }
 0x22a   : > { %3559 = vmatmul.bf16.gmra.mxu1 %v3443_v53  ;;  %v3166_v22 = vpop.f32.mrf.mxu0  ;;  %v3335_v18 = vrot.slane %v3333_v11, 4  ;;  %v4193_v53 = vshrl.u32 %v3976_v61, 16  ;;  %v4198_v61 = vrot.slane %v4196_v56, 5 }
 0x22b   : > { %4551 = vmatmul.bf16.gmra.mxu3 %v4439_v15  ;;  %v7482_v33 = vadd.f32 %v3166_v22, %v2524_v28  ;;  %v3334_v28 = vsel %vm6903_vm13, %v5672_v46, %v3333_v11  ;;  %v4749_v22 = vrot.slane %v7457_v34, 5  ;;  %v4416_v46 = vunpack.c.l.b16 %v4191_v45 }
 0x22c   : > { %v3337_v38 = vsel %vm6903_vm13, %v3335_v18, %v3336_v62  ;;  %v3420_v41 = vunpack.c.l.b16 %v3334_v28  ;;  %v4195_v18 = vrot.slane %v4193_v53, 4  ;;  %v4204_v8 = vrot.slane %v4202_v2, 5 }
 0x22d   : > { %v3421_v50 = vunpack.c.l.b16 %v3337_v38  ;;  %v4208_v62 = vrot.slane %v4206_v14, 4  ;;  %v4751_v34 = vrot.slane %v4749_v22, 4  ;;  %v4440_v28 = vpack.c.b16 %v4416_v46, %v4415_v13  ;;  %v3220_v13 = vld [vmem:[#allocation2 + $0x78] sm:$0xe] }
 0x22e   : > { %v2487_v4 = vpop.f32.mrf.mxu3  ;;  %v4199_v56 = vor.u32 %v4198_v61, %v4195_v18  ;;  %v4212_v45 = vshll.u32 %v7500_v37, 16  ;;  %v5673_v61 = vrot.slane %v3220_v13, 9 }
 0x22f   : > { %v2525_v58 = vadd.f32 %v2487_v4, %v2211_v7  ;;  %v2175_v15 = vpop.f32.mrf.mxu2  ;;  %v1799_v59 = vpop.f32.mrf.mxu1  ;;  %v4641_v7 = vld [vmem:[#allocation2 + $0x6c] sm:$0xe] }
 0x230   : > { %v2212_v30 = vadd.f32 %v2175_v15, %v1795_v52  ;;  %v5895_v6 = vrot.slane %v4641_v7, 9  ;;  %v4752_v52 = vrot.slane %v7473_v31, 5  ;;  %v3444_v15 = vpack.c.b16 %v3421_v50, %v3420_v41  ;;  %v3979_v7 = vld [vmem:[#allocation2 + $0x84] sm:$0xf] }
 0x231   : > { %v4200_v31 = vrot.slane %v4199_v56, 4 }
 0x232   : > { %v3169_v11 = vpop.f32.mrf.mxu0  ;;  %v4750_v2 = vsel %vm6903_vm13, %v5895_v6, %v4749_v22  ;;  %v4753_v57 = vsel %vm6903_vm13, %v4751_v34, %v4752_v52  ;;  %v6158_v22 = vld [vmem:[#allocation2 + $0x80] sm:$0x1]  ;;  %v4217_v52 = vshrl.u32 %v3979_v7, 16 }
 0x233   : > { %v7498_v4 = vadd.f32 %v3169_v11, %v2525_v58  ;;  %v4209_v58 = vor.u32 %v4208_v62, %v4204_v8  ;;  %v4841_v41 = vunpack.c.l.b16 %v4750_v2  ;;  %v4214_v11 = vrot.slane %v4212_v45, 5 }
 0x234   : > { %3874 = vmatmul.bf16.gmra.mxu2 %v6043_v60  ;;  %v4842_v18 = vunpack.c.l.b16 %v4753_v57  ;;  %v3343_v6 = vrot.slane %v6158_v22, 5  ;;  %v4205_v56 = vsel %vm6364_vm10, %v4200_v31, %v4204_v8  ;;  %v6044_v57 = vld [vmem:[#allocation2 + $0x78] sm:$0xff]  ;;  %v4756_v8 = vrot.slane %v7484_v10, 5 }
 0x235   : > { %4977 = vmatmul.bf16.gmra.mxu0 %v4865_v20  ;;  %v4210_v50 = vrot.slane %v4209_v58, 4  ;;  %v4219_v22 = vrot.slane %v4217_v52, 4  ;;  %v4759_v10 = vrot.slane %v7500_v37, 5 }
 0x236   : > { %v2489_v5 = vpop.f32.mrf.mxu3 }
 0x237   : > { %v2526_v40 = vadd.f32 %v2489_v5, %v2212_v30  ;;  %v2178_v53 = vpop.f32.mrf.mxu2  ;;  %v7504_v38 = vpop.f32.mrf.mxu1  ;;  %v6157_v30 = vld [vmem:[#allocation2 + $0x7c] sm:$0xf]  ;;  %v7513_v5 = vld [vmem:[#allocation2 + $0x88] sm:$0xf] }
 0x238   : > { %v2213_v60 = vadd.f32 %v2178_v53, %v1798_v9  ;;  %v3340_v20 = vrot.slane %v6157_v30, 5  ;;  %v7837_v9 = vld [vmem:[#allocation5_spill] sm:$0xff]  ;;  %v4866_v30 = vpack.c.b16 %v4842_v18, %v4841_v41  ;;  %v4758_v18 = vrot.slane %v4756_v8, 4 }
 0x239   : > { %v1800_v34 = vadd.f32 %v1799_v59, %v7837_v9  ;;  %v4215_v59 = vsel %vm6364_vm10, %v4210_v50, %v4214_v11  ;;  %v7531_v11 = vld [vmem:[#allocation2 + $0x8c] sm:$0x1] }
 0x23a   : > { %3564 = vmatmul.bf16.gmra.mxu1 %v3444_v15  ;;  %v3171_v14 = vpop.f32.mrf.mxu0  ;;  %v3342_v62 = vrot.slane %v3340_v20, 4  ;;  %v4220_v15 = vshll.u32 %v3979_v7, 16  ;;  %v4642_v7 = vld [vmem:[#allocation2 + $0x78] sm:$0xe] }
 0x23b   : > { %4556 = vmatmul.bf16.gmra.mxu3 %v4440_v28  ;;  %v7511_v46 = vadd.f32 %v3171_v14, %v2526_v40  ;;  %v3341_v40 = vsel %vm6903_vm13, %v5673_v61, %v3340_v20  ;;  %v4226_v14 = vshll.u32 %v7513_v5, 16 }
 0x23c   : > { %v3344_v45 = vsel %vm6903_vm13, %v3342_v62, %v3343_v6  ;;  %v3422_v31 = vunpack.c.l.b16 %v3341_v40  ;;  %v4222_v20 = vrot.slane %v4220_v15, 5  ;;  %v4418_v62 = vunpack.c.l.b16 %v4215_v59 }
 0x23d   : > { %7836 = vst [vmem:[#allocation3_spill] sm:$0xff] %v7511_v46  ;;  %v3423_v13 = vunpack.c.l.b16 %v3344_v45  ;;  %v5896_v6 = vrot.slane %v4642_v7, 9  ;;  %v4228_v9 = vrot.slane %v4226_v14, 5  ;;  %v3605_v14 = vadd.f32 %v7504_v38, %v7130_v54  ;;  %v6159_v7 = vld [vmem:[#allocation2 + $0x88] sm:$0xf] }
 0x23e   : > { %v2492_v49 = vpop.f32.mrf.mxu3  ;;  %v4223_v40 = vor.u32 %v4222_v20, %v4219_v22 }
 0x23f   : > { %v2527_v28 = vadd.f32 %v2492_v49, %v2213_v60  ;;  %v2180_v53 = vpop.f32.mrf.mxu2  ;;  %v7518_v58 = vpop.f32.mrf.mxu1  ;;  %v4230_v60 = vshrl.u32 %v7513_v5, 16  ;;  %v4417_v49 = vunpack.c.l.b16 %v4205_v56 }
 0x240   : > { %v2214_v2 = vadd.f32 %v2180_v53, %v1800_v34  ;;  %v3445_v53 = vpack.c.b16 %v3423_v13, %v3422_v31  ;;  %v4224_v37 = vrot.slane %v4223_v40, 4  ;;  %v3347_v31 = vrot.slane %v6159_v7, 5  ;;  %v3982_v13 = vld [vmem:[#allocation2 + $0x90] sm:$0xf] }
 0x241   : > { %v4232_v34 = vrot.slane %v4230_v60, 4  ;;  %v4441_v15 = vpack.c.b16 %v4418_v62, %v4417_v49  ;;  %v4760_v60 = vsel %vm6903_vm13, %v4758_v18, %v4759_v10  ;;  %v7543_v49 = vld [vmem:[#allocation2 + $0x94] sm:$0xf]  ;;  %v4244_v40 = vshll.u32 %v3982_v13, 16 }
 0x242   : > { %v3174_v61 = vpop.f32.mrf.mxu0  ;;  %v4844_v54 = vunpack.c.l.b16 %v4760_v60  ;;  %v4229_v10 = vsel %vm6364_vm10, %v4224_v37, %v4228_v9  ;;  %v6045_v60 = vld [vmem:[#allocation2 + $0x84] sm:$0xff]  ;;  %v3606_v7 = vadd.f32 %v7518_v58, %v7151_v17 }
 0x243   : > { %v7529_v50 = vadd.f32 %v3174_v61, %v2527_v28  ;;  %v4233_v59 = vor.u32 %v4232_v34, %v4228_v9  ;;  %v4236_v28 = vshll.u32 %v7531_v11, 16  ;;  %v3221_v61 = vld [vmem:[#allocation2 + $0x84] sm:$0xe]  ;;  %v6160_v34 = vld [vmem:[#allocation2 + $0x8c] sm:$0x1] }
 0x244   : > { %3879 = vmatmul.bf16.gmra.mxu2 %v6044_v57  ;;  %v4757_v57 = vsel %vm6903_vm13, %v5896_v6, %v4756_v8  ;;  %v5674_v38 = vrot.slane %v3221_v61, 9  ;;  %v3349_v6 = vrot.slane %v3347_v31, 4  ;;  %v4643_v37 = vld [vmem:[#allocation2 + $0x84] sm:$0xe] }
 0x245   : > { %7838 = vst [vmem:[#allocation4_spill] sm:$0xff] %v7529_v50  ;;  %4982 = vmatmul.bf16.gmra.mxu0 %v4866_v30  ;;  %v4234_v20 = vrot.slane %v4233_v59, 4  ;;  %v4238_v8 = vrot.slane %v4236_v28, 5  ;;  %v4250_v59 = vshll.u32 %v7543_v49, 16  ;;  %v4254_v28 = vshrl.u32 %v7543_v49, 16 }
 0x246   : > { %v2494_v41 = vpop.f32.mrf.mxu3 }
 0x247   : > { %v2528_v52 = vadd.f32 %v2494_v41, %v2214_v2  ;;  %v3840_v45 = vpop.f32.mrf.mxu2  ;;  %v7534_v56 = vpop.f32.mrf.mxu1  ;;  %v4843_v2 = vunpack.c.l.b16 %v4757_v57  ;;  %v3350_v41 = vrot.slane %v6160_v34, 5  ;;  %v3348_v57 = vsel %vm6903_vm13, %v5674_v38, %v3347_v31 }
 0x248   : > { %v3920_v22 = vadd.f32 %v3840_v45, %v3605_v14  ;;  %v4239_v9 = vsel %vm6364_vm10, %v4234_v20, %v4238_v8  ;;  %v4763_v31 = vrot.slane %v7513_v5, 5  ;;  %v3424_v61 = vunpack.c.l.b16 %v3348_v57  ;;  %v7571_v5 = vld [vmem:[#allocation2 + $0x98] sm:$0x1] }
 0x249   : > { %v4246_v34 = vrot.slane %v4244_v40, 5  ;;  %v7569_v20 = vrot.slane %v4250_v59, 5  ;;  %v4256_v17 = vrot.slane %v4254_v28, 4  ;;  %v4260_v28 = vshll.u32 %v7571_v5, 16 }
 0x24a   : > { %3569 = vmatmul.bf16.gmra.mxu1 %v3445_v53  ;;  %v3176_v30 = vpop.f32.mrf.mxu0  ;;  %v4241_v53 = vshrl.u32 %v3982_v13, 16  ;;  %v4419_v13 = vunpack.c.l.b16 %v4229_v10  ;;  %v4766_v10 = vrot.slane %v7531_v11, 5  ;;  %v3607_v11 = vadd.f32 %v7534_v56, %v7155_v21 }
 0x24b   : > { %4561 = vmatmul.bf16.gmra.mxu3 %v4441_v15  ;;  %v7545_v62 = vadd.f32 %v3176_v30, %v2528_v52  ;;  %v3351_v52 = vsel %vm6903_vm13, %v3349_v6, %v3350_v41  ;;  %v4867_v30 = vpack.c.b16 %v4844_v54, %v4843_v2  ;;  %v5897_v2 = vrot.slane %v4643_v37, 9  ;;  %v7581_v37 = vld [vmem:[#allocation2 + $0xa0] sm:$0xf] }
 0x24c   : > { %v3425_v38 = vunpack.c.l.b16 %v3351_v52  ;;  %v4243_v6 = vrot.slane %v4241_v53, 4  ;;  %v4274_v21 = vshll.u32 %v7581_v37, 16 }
 0x24d   : > { %7839 = vst [vmem:[#allocation5_spill] sm:$0xff] %v7545_v62  ;;  %v4764_v52 = vsel %vm6903_vm13, %v5897_v2, %v4763_v31 }
 0x24e   : > { %v4522_v18 = vpop.f32.mrf.mxu3  ;;  %v3446_v53 = vpack.c.b16 %v3425_v38, %v3424_v61  ;;  %v4247_v40 = vor.u32 %v4246_v34, %v4243_v6  ;;  %v4262_v38 = vrot.slane %v4260_v28, 5  ;;  %v6161_v6 = vld [vmem:[#allocation2 + $0x94] sm:$0xf]  ;;  %v7602_v50 = vrot.slane %v4274_v21, 5 }
 0x24f   : > { %v3842_v15 = vpop.f32.mrf.mxu2  ;;  %v7549_v45 = vpop.f32.mrf.mxu1  ;;  %v4602_v14 = vadd.f32 %v4522_v18, %v3920_v22  ;;  %v4420_v22 = vunpack.c.l.b16 %v4239_v9  ;;  %v4765_v18 = vrot.slane %v4763_v31, 4  ;;  %v3354_v34 = vrot.slane %v6161_v6, 5 }
 0x250   : > { %v3921_v8 = vadd.f32 %v3842_v15, %v3606_v7  ;;  %v4257_v15 = vor.u32 %v4256_v17, %v7569_v20  ;;  %v4845_v7 = vunpack.c.l.b16 %v4764_v52  ;;  %v3222_v17 = vld [vmem:[#allocation2 + $0x90] sm:$0xe] }
 0x251   : > { %v4442_v57 = vpack.c.b16 %v4420_v22, %v4419_v13  ;;  %v4248_v13 = vrot.slane %v4247_v40, 4  ;;  %v5675_v56 = vrot.slane %v3222_v17, 9 }
 0x252   : > { %v4948_v41 = vpop.f32.mrf.mxu0  ;;  %v4258_v61 = vrot.slane %v4257_v15, 4 }
 0x253   : > { %v5028_v58 = vadd.f32 %v4948_v41, %v4602_v14 }
 0x254   : > { %3884 = vmatmul.bf16.gmra.mxu2 %v6045_v60  ;;  %v3985_v60 = vld [vmem:[#allocation2 + $0x9c] sm:$0xf] }
 0x255   : > { %4987 = vmatmul.bf16.gmra.mxu0 %v4867_v30  ;;  %5060 = vst [vmem:[%s7567_s9] sm:$0xff] %v5028_v58  ;;  %v4767_v30 = vsel %vm6903_vm13, %v4765_v18, %v4766_v10  ;;  %v4265_v41 = vshrl.u32 %v3985_v60, 16  ;;  %v6162_v18 = vld [vmem:[#allocation2 + $0x98] sm:$0x1]  ;;  %v5130_v40 = vmul.f32 %v5028_v58, %v5028_v58 }
 0x256   : > { %v4524_v54 = vpop.f32.mrf.mxu3  ;;  %v3357_v10 = vrot.slane %v6162_v18, 5  ;;  %v4846_v15 = vunpack.c.l.b16 %v4767_v30  ;;  %v6046_v18 = vld [vmem:[#allocation2 + $0x90] sm:$0xff]  ;;  %v4263_v30 = vsel %vm6364_vm10, %v4258_v61, %v4262_v38 }
 0x257   : > { %v3845_v59 = vpop.f32.mrf.mxu2  ;;  %v7577_v9 = vpop.f32.mrf.mxu1  ;;  %v4603_v14 = vadd.f32 %v4524_v54, %v3921_v8  ;;  %v4268_v8 = vshll.u32 %v3985_v60, 16  ;;  %v3356_v54 = vrot.slane %v3354_v34, 4  ;;  %v3355_v60 = vsel %vm6903_vm13, %v5675_v56, %v3354_v34 }
 0x258   : > { %v3922_v2 = vadd.f32 %v3845_v59, %v3607_v11  ;;  %v4868_v34 = vpack.c.b16 %v4846_v15, %v4845_v7  ;;  %v3608_v56 = vadd.f32 %v7549_v45, %v7166_v51 }
 0x259   : > { %v3358_v11 = vsel %vm6903_vm13, %v3356_v54, %v3357_v10  ;;  %v4270_v62 = vrot.slane %v4268_v8, 5  ;;  %v4773_v8 = vrot.slane %v7571_v5, 5 }
 0x25a   : > { %3574 = vmatmul.bf16.gmra.mxu1 %v3446_v53  ;;  %v4950_v31 = vpop.f32.mrf.mxu0  ;;  %v4278_v53 = vshrl.u32 %v7581_v37, 16  ;;  %v3427_v54 = vunpack.c.l.b16 %v3358_v11 }
 0x25b   : > { %4566 = vmatmul.bf16.gmra.mxu3 %v4442_v57  ;;  %v5029_v22 = vadd.f32 %v4950_v31, %v4603_v14  ;;  %v4770_v14 = vrot.slane %v7543_v49, 5  ;;  %v4267_v49 = vrot.slane %v4265_v41, 4 }
 0x25c   : > { %v4280_v46 = vrot.slane %v4278_v53, 4 }
 0x25d   : > { %5061 = vst [vmem:[%s7567_s9 + $0x8] sm:$0xff] %v5029_v22  ;;  %v5092_v57 = vadd.f32 %v5029_v22, %v5028_v58  ;;  %v5131_v52 = vmul.f32 %v5029_v22, %v5029_v22  ;;  %v4253_v58 = vsel %vm6364_vm10, %v4248_v13, %v7569_v20  ;;  %v4644_v22 = vld [vmem:[#allocation2 + $0x90] sm:$0xe]  ;;  %v7606_v20 = vld [vmem:[#allocation2 + $0xa4] sm:$0x1]  ;;  %v4772_v41 = vrot.slane %v4770_v14, 4 }
 0x25e   : > { %v4527_v28 = vpop.f32.mrf.mxu3  ;;  %v5898_v38 = vrot.slane %v4644_v22, 9  ;;  %v4271_v21 = vor.u32 %v4270_v62, %v4267_v49  ;;  %v4281_v7 = vor.u32 %v4280_v46, %v7602_v50  ;;  %v6163_v49 = vld [vmem:[#allocation2 + $0xa0] sm:$0xf] }
 0x25f   : > { %v3847_v6 = vpop.f32.mrf.mxu2  ;;  %v7591_v59 = vpop.f32.mrf.mxu1  ;;  %v5162_v31 = vadd.f32 %v5131_v52, %v5130_v40  ;;  %v4604_v17 = vadd.f32 %v4527_v28, %v3922_v2  ;;  %v3426_v2 = vunpack.c.l.b16 %v3355_v60  ;;  %v4421_v40 = vunpack.c.l.b16 %v4253_v58 }
 0x260   : > { %v4422_v52 = vunpack.c.l.b16 %v4263_v30  ;;  %v3923_v61 = vadd.f32 %v3847_v6, %v3608_v56  ;;  %v4284_v28 = vshll.u32 %v7606_v20, 16  ;;  %v4771_v5 = vsel %vm6903_vm13, %v5898_v38, %v4770_v14  ;;  %v3223_v14 = vld [vmem:[#allocation2 + $0x9c] sm:$0xe] }
 0x261   : > { %v3447_v15 = vpack.c.b16 %v3427_v54, %v3426_v2  ;;  %v4774_v46 = vsel %vm6903_vm13, %v4772_v41, %v4773_v8  ;;  %v4272_v62 = vrot.slane %v4271_v21, 4  ;;  %v4282_v58 = vrot.slane %v4281_v7, 4 }
 0x262   : > { %v4953_v10 = vpop.f32.mrf.mxu0  ;;  %v4443_v60 = vpack.c.b16 %v4422_v52, %v4421_v40  ;;  %v4286_v30 = vrot.slane %v4284_v28, 5  ;;  %v4847_v56 = vunpack.c.l.b16 %v4771_v5  ;;  %v4848_v2 = vunpack.c.l.b16 %v4774_v46  ;;  %v6047_v5 = vld [vmem:[#allocation2 + $0x9c] sm:$0xff] }
 0x263   : > { %v5030_v13 = vadd.f32 %v4953_v10, %v4604_v17  ;;  %v3988_v10 = vld [vmem:[#allocation2 + $0xa8] sm:$0xf]  ;;  %v4277_v40 = vsel %vm6364_vm10, %v4272_v62, %v7602_v50  ;;  %v5676_v52 = vrot.slane %v3223_v14, 9  ;;  %v4777_v7 = vrot.slane %v7581_v37, 5 }
 0x264   : > { %3889 = vmatmul.bf16.gmra.mxu2 %v6046_v18  ;;  %v4287_v21 = vsel %vm6364_vm10, %v4282_v58, %v4286_v30  ;;  %v4869_v37 = vpack.c.b16 %v4848_v2, %v4847_v56  ;;  %v4423_v58 = vunpack.c.l.b16 %v4277_v40 }
 0x265   : > { %4992 = vmatmul.bf16.gmra.mxu0 %v4868_v34  ;;  %5062 = vst [vmem:[%s7567_s9 + $0x10] sm:$0xff] %v5030_v13  ;;  %v5093_v51 = vadd.f32 %v5092_v57, %v5030_v13  ;;  %v5132_v45 = vmul.f32 %v5030_v13, %v5030_v13  ;;  %v3609_v57 = vadd.f32 %v7577_v9, %v7172_v43  ;;  %v3361_v34 = vrot.slane %v6163_v49, 5  ;;  %v6164_v9 = vld [vmem:[#allocation2 + $0xa4] sm:$0x1] }
 0x266   : > { %v4529_v53 = vpop.f32.mrf.mxu3  ;;  %v3364_v13 = vrot.slane %v6164_v9, 5  ;;  %v4424_v30 = vunpack.c.l.b16 %v4287_v21  ;;  %v4779_v14 = vrot.slane %v4777_v7, 4  ;;  %v7640_v9 = vld [vmem:[#allocation2 + $0xb0] sm:$0x1] }
 0x267   : > { %v3850_v11 = vpop.f32.mrf.mxu2  ;;  %v7612_v17 = vpop.f32.mrf.mxu1  ;;  %v5163_v6 = vadd.f32 %v5162_v31, %v5132_v45  ;;  %v4605_v18 = vadd.f32 %v4529_v53, %v3923_v61  ;;  %v3363_v43 = vrot.slane %v3361_v34, 4  ;;  %v7623_v61 = vld [vmem:[#allocation2 + $0xac] sm:$0xf]  ;;  %v4645_v53 = vld [vmem:[#allocation2 + $0x9c] sm:$0xe]  ;;  %v3362_v50 = vsel %vm6903_vm13, %v5676_v52, %v3361_v34 }
 0x268   : > { %v3924_v54 = vadd.f32 %v3850_v11, %v3609_v57  ;;  %v4292_v11 = vshll.u32 %v3988_v10, 16  ;;  %v4298_v46 = vshll.u32 %v7623_v61, 16  ;;  %v4302_v62 = vshrl.u32 %v7623_v61, 16 }
 0x269   : > { %v3365_v28 = vsel %vm6903_vm13, %v3363_v43, %v3364_v13  ;;  %v3610_v57 = vadd.f32 %v7591_v59, %v7191_v1  ;;  %v3428_v49 = vunpack.c.l.b16 %v3362_v50 }
 0x26a   : > { %3579 = vmatmul.bf16.gmra.mxu1 %v3447_v15  ;;  %v4955_v22 = vpop.f32.mrf.mxu0  ;;  %v3429_v34 = vunpack.c.l.b16 %v3365_v28  ;;  %v7642_v56 = vrot.slane %v4298_v46, 5  ;;  %v4304_v1 = vrot.slane %v4302_v62, 4 }
 0x26b   : > { %4571 = vmatmul.bf16.gmra.mxu3 %v4443_v60  ;;  %v5031_v31 = vadd.f32 %v4955_v22, %v4605_v18  ;;  %v4289_v60 = vshrl.u32 %v3988_v10, 16  ;;  %v5899_v22 = vrot.slane %v4645_v53, 9  ;;  %v4294_v10 = vrot.slane %v4292_v11, 5  ;;  %v3991_v11 = vld [vmem:[#allocation2 + $0xb4] sm:$0xf] }
 0x26c   : > { %v3448_v13 = vpack.c.b16 %v3429_v34, %v3428_v49  ;;  %v4308_v53 = vshll.u32 %v7640_v9, 16  ;;  %v3224_v34 = vld [vmem:[#allocation2 + $0xa8] sm:$0xe] }
 0x26d   : > { %5063 = vst [vmem:[%s7567_s9 + $0x18] sm:$0xff] %v5031_v31  ;;  %v5094_v38 = vadd.f32 %v5093_v51, %v5031_v31  ;;  %v5133_v41 = vmul.f32 %v5031_v31, %v5031_v31 }
 0x26e   : > { %v4532_v8 = vpop.f32.mrf.mxu3 }
 0x26f   : > { %v3852_v45 = vpop.f32.mrf.mxu2  ;;  %v7629_v15 = vpop.f32.mrf.mxu1  ;;  %v5164_v51 = vadd.f32 %v5163_v6, %v5133_v41  ;;  %v4606_v18 = vadd.f32 %v4532_v8, %v3924_v54  ;;  %v4780_v6 = vrot.slane %v7606_v20, 5  ;;  %v4291_v54 = vrot.slane %v4289_v60, 4 }
 0x270   : > { %v3925_v43 = vadd.f32 %v3852_v45, %v3610_v57  ;;  %v4444_v41 = vpack.c.b16 %v4424_v30, %v4423_v58  ;;  %v4778_v20 = vsel %vm6903_vm13, %v5899_v22, %v4777_v7  ;;  %v4310_v57 = vrot.slane %v4308_v53, 5  ;;  %v6165_v58 = vld [vmem:[#allocation2 + $0xac] sm:$0xf] }
 0x271   : > { %v4295_v45 = vor.u32 %v4294_v10, %v4291_v54  ;;  %v4781_v60 = vsel %vm6903_vm13, %v4779_v14, %v4780_v6  ;;  %v4849_v46 = vunpack.c.l.b16 %v4778_v20  ;;  %v4313_v14 = vshrl.u32 %v3991_v11, 16 }
 0x272   : > { %v4958_v31 = vpop.f32.mrf.mxu0  ;;  %v4850_v62 = vunpack.c.l.b16 %v4781_v60  ;;  %v5677_v6 = vrot.slane %v3224_v34, 9  ;;  %v6048_v60 = vld [vmem:[#allocation2 + $0xa8] sm:$0xff] }
 0x273   : > { %v5032_v52 = vadd.f32 %v4958_v31, %v4606_v18  ;;  %v7840_v18 = vld [vmem:[#allocation6_spill] sm:$0xff]  ;;  %v7655_v31 = vld [vmem:[#allocation2 + $0xb8] sm:$0xf] }
 0x274   : > { %3894 = vmatmul.bf16.gmra.mxu2 %v6047_v5  ;;  %v3611_v5 = vadd.f32 %v7612_v17, %v7840_v18  ;;  %v6166_v17 = vld [vmem:[#allocation2 + $0xb0] sm:$0x1]  ;;  %v4315_v18 = vrot.slane %v4313_v14, 4 }
 0x275   : > { %4997 = vmatmul.bf16.gmra.mxu0 %v4869_v37  ;;  %5064 = vst [vmem:[%s7567_s9 + $0x20] sm:$0xff] %v5032_v52  ;;  %v5095_v59 = vadd.f32 %v5094_v38, %v5032_v52  ;;  %v5134_v2 = vmul.f32 %v5032_v52, %v5032_v52  ;;  %v4305_v38 = vor.u32 %v4304_v1, %v7642_v56  ;;  %v4296_v37 = vrot.slane %v4295_v45, 4 }
 0x276   : > { %v4534_v40 = vpop.f32.mrf.mxu3  ;;  %v3371_v10 = vrot.slane %v6166_v17, 5  ;;  %v4316_v52 = vshll.u32 %v3991_v11, 16  ;;  %v4326_v45 = vshrl.u32 %v7655_v31, 16  ;;  %v4870_v11 = vpack.c.b16 %v4850_v62, %v4849_v46  ;;  %v7676_v46 = vld [vmem:[#allocation2 + $0xbc] sm:$0x1] }
 0x277   : > { %v3855_v8 = vpop.f32.mrf.mxu2  ;;  %v7647_v21 = vpop.f32.mrf.mxu1  ;;  %v5165_v50 = vadd.f32 %v5164_v51, %v5134_v2  ;;  %v4607_v28 = vadd.f32 %v4534_v40, %v3925_v43  ;;  %v3368_v51 = vrot.slane %v6165_v58, 5  ;;  %v4306_v49 = vrot.slane %v4305_v38, 4 }
 0x278   : > { %v3926_v22 = vadd.f32 %v3855_v8, %v3611_v5  ;;  %v4322_v8 = vshll.u32 %v7655_v31, 16  ;;  %v4318_v5 = vrot.slane %v4316_v52, 5 }
 0x279   : > { %v3370_v54 = vrot.slane %v3368_v51, 4  ;;  %v4311_v38 = vsel %vm6364_vm10, %v4306_v49, %v4310_v57 }
 0x27a   : > { %3584 = vmatmul.bf16.gmra.mxu1 %v3448_v13  ;;  %v4960_v7 = vpop.f32.mrf.mxu0  ;;  %v7674_v17 = vrot.slane %v4322_v8, 5  ;;  %v4319_v49 = vor.u32 %v4318_v5, %v4315_v18  ;;  %v4332_v8 = vshll.u32 %v7676_v46, 16 }
 0x27b   : > { %4576 = vmatmul.bf16.gmra.mxu3 %v4444_v41  ;;  %v5033_v30 = vadd.f32 %v4960_v7, %v4607_v28  ;;  %v3369_v41 = vsel %vm6903_vm13, %v5677_v6, %v3368_v51  ;;  %v3372_v20 = vsel %vm6903_vm13, %v3370_v54, %v3371_v10  ;;  %v7841_v7 = vld [vmem:[#allocation7_spill] sm:$0xff]  ;;  %v4646_v51 = vld [vmem:[#allocation2 + $0xa8] sm:$0xe]  ;;  %v4426_v54 = vunpack.c.l.b16 %v4311_v38 }
 0x27c   : > { %v3612_v58 = vadd.f32 %v7629_v15, %v7841_v7  ;;  %v5900_v62 = vrot.slane %v4646_v51, 9  ;;  %v4787_v15 = vrot.slane %v7640_v9, 5  ;;  %v7684_v9 = vld [vmem:[#allocation2 + $0xc4] sm:$0xf]  ;;  %v6167_v7 = vld [vmem:[#allocation2 + $0xb8] sm:$0xf] }
 0x27d   : > { %5065 = vst [vmem:[%s7567_s9 + $0x28] sm:$0xff] %v5033_v30  ;;  %v5096_v43 = vadd.f32 %v5095_v59, %v5033_v30  ;;  %v5135_v1 = vmul.f32 %v5033_v30, %v5033_v30  ;;  %v4301_v59 = vsel %vm6364_vm10, %v4296_v37, %v7642_v56  ;;  %v4784_v30 = vrot.slane %v7623_v61, 5 }
 0x27e   : > { %v4537_v2 = vpop.f32.mrf.mxu3  ;;  %v4425_v6 = vunpack.c.l.b16 %v4301_v59  ;;  %v4328_v56 = vrot.slane %v4326_v45, 4 }
 0x27f   : > { %v3857_v40 = vpop.f32.mrf.mxu2  ;;  %v7658_v13 = vpop.f32.mrf.mxu1  ;;  %v5166_v53 = vadd.f32 %v5165_v50, %v5135_v1  ;;  %v4608_v28 = vadd.f32 %v4537_v2, %v3926_v22  ;;  %v3430_v50 = vunpack.c.l.b16 %v3369_v41  ;;  %v3431_v22 = vunpack.c.l.b16 %v3372_v20 }
 0x280   : > { %v3927_v57 = vadd.f32 %v3857_v40, %v3612_v58  ;;  %v4786_v52 = vrot.slane %v4784_v30, 4  ;;  %v4445_v2 = vpack.c.b16 %v4426_v54, %v4425_v6  ;;  %v4329_v40 = vor.u32 %v4328_v56, %v7674_v17  ;;  %v6168_v54 = vld [vmem:[#allocation2 + $0xbc] sm:$0x1] }
 0x281   : > { %v3449_v1 = vpack.c.b16 %v3431_v22, %v3430_v50  ;;  %v4785_v59 = vsel %vm6903_vm13, %v5900_v62, %v4784_v30  ;;  %v3375_v58 = vrot.slane %v6167_v7, 5  ;;  %v3378_v56 = vrot.slane %v6168_v54, 5 }
 0x282   : > { %v4963_v34 = vpop.f32.mrf.mxu0  ;;  %v4788_v38 = vsel %vm6903_vm13, %v4786_v52, %v4787_v15  ;;  %v4330_v5 = vrot.slane %v4329_v40, 4  ;;  %v4851_v15 = vunpack.c.l.b16 %v4785_v59  ;;  %v3614_v7 = vadd.f32 %v7658_v13, %v7257_v25 }
 0x283   : > { %v5034_v37 = vadd.f32 %v4963_v34, %v4608_v28  ;;  %v3225_v34 = vld [vmem:[#allocation2 + $0xb4] sm:$0xe]  ;;  %v3377_v6 = vrot.slane %v3375_v58, 4 }
 0x284   : > { %3899 = vmatmul.bf16.gmra.mxu2 %v6048_v60  ;;  %v3994_v60 = vld [vmem:[#allocation2 + $0xc0] sm:$0xf]  ;;  %v5678_v30 = vrot.slane %v3225_v34, 9 }
 0x285   : > { %5002 = vmatmul.bf16.gmra.mxu0 %v4870_v11  ;;  %5066 = vst [vmem:[%s7567_s9 + $0x30] sm:$0xff] %v5034_v37  ;;  %v5097_v61 = vadd.f32 %v5096_v43, %v5034_v37  ;;  %v5136_v14 = vmul.f32 %v5034_v37, %v5034_v37  ;;  %v3613_v43 = vadd.f32 %v7647_v21, %v7231_v26  ;;  %v4320_v11 = vrot.slane %v4319_v49, 4 }
 0x286   : > { %v4539_v10 = vpop.f32.mrf.mxu3  ;;  %v4337_v51 = vshrl.u32 %v3994_v60, 16  ;;  %v4340_v26 = vshll.u32 %v3994_v60, 16  ;;  %v4346_v21 = vshll.u32 %v7684_v9, 16  ;;  %v4350_v37 = vshrl.u32 %v7684_v9, 16 }
 0x287   : > { %v3860_v41 = vpop.f32.mrf.mxu2  ;;  %v7680_v20 = vpop.f32.mrf.mxu1  ;;  %v5167_v45 = vadd.f32 %v5166_v53, %v5136_v14  ;;  %v4609_v28 = vadd.f32 %v4539_v10, %v3927_v57  ;;  %v4334_v53 = vrot.slane %v4332_v8, 5  ;;  %v4852_v49 = vunpack.c.l.b16 %v4788_v38 }
 0x288   : > { %v3928_v22 = vadd.f32 %v3860_v41, %v3613_v43  ;;  %v4325_v52 = vsel %vm6364_vm10, %v4320_v11, %v7674_v17  ;;  %v3379_v41 = vsel %vm6903_vm13, %v3377_v6, %v3378_v56  ;;  %v4791_v60 = vrot.slane %v7655_v31, 5  ;;  %v4647_v43 = vld [vmem:[#allocation2 + $0xb4] sm:$0xe] }
 0x289   : > { %v4339_v59 = vrot.slane %v4337_v51, 4  ;;  %v4342_v38 = vrot.slane %v4340_v26, 5  ;;  %v7707_v17 = vrot.slane %v4346_v21, 5  ;;  %v4352_v11 = vrot.slane %v4350_v37, 4 }
 0x28a   : > { %3589 = vmatmul.bf16.gmra.mxu1 %v3449_v1  ;;  %v4965_v18 = vpop.f32.mrf.mxu0  ;;  %v4793_v51 = vrot.slane %v4791_v60, 4  ;;  %v4794_v26 = vrot.slane %v7676_v46, 5 }
 0x28b   : > { %4581 = vmatmul.bf16.gmra.mxu3 %v4445_v2  ;;  %v5035_v50 = vadd.f32 %v4965_v18, %v4609_v28  ;;  %v3376_v2 = vsel %vm6903_vm13, %v5678_v30, %v3375_v58  ;;  %v4335_v28 = vsel %vm6364_vm10, %v4330_v5, %v4334_v53  ;;  %v4871_v18 = vpack.c.b16 %v4852_v49, %v4851_v15  ;;  %v7711_v30 = vld [vmem:[#allocation2 + $0xc8] sm:$0x1] }
 0x28c   : > { %v3432_v58 = vunpack.c.l.b16 %v3376_v2  ;;  %v4428_v34 = vunpack.c.l.b16 %v4335_v28  ;;  %v5901_v53 = vrot.slane %v4647_v43, 9  ;;  %v4343_v21 = vor.u32 %v4342_v38, %v4339_v59  ;;  %v6169_v28 = vld [vmem:[#allocation2 + $0xc4] sm:$0xf] }
 0x28d   : > { %5067 = vst [vmem:[%s7567_s9 + $0x38] sm:$0xff] %v5035_v50  ;;  %v5098_v57 = vadd.f32 %v5097_v61, %v5035_v50  ;;  %v5137_v62 = vmul.f32 %v5035_v50, %v5035_v50  ;;  %v6049_v61 = vld [vmem:[#allocation2 + $0xb4] sm:$0xff]  ;;  %v4353_v6 = vor.u32 %v4352_v11, %v7707_v17  ;;  %v4356_v37 = vshll.u32 %v7711_v30, 16  ;;  %v3226_v11 = vld [vmem:[#allocation2 + $0xc0] sm:$0xe] }
 0x28e   : > { %v4542_v14 = vpop.f32.mrf.mxu3  ;;  %v4792_v46 = vsel %vm6903_vm13, %v5901_v53, %v4791_v60  ;;  %v4344_v2 = vrot.slane %v4343_v21, 4  ;;  %v3382_v43 = vrot.slane %v6169_v28, 5  ;;  %v3997_v60 = vld [vmem:[#allocation2 + $0xcc] sm:$0xf] }
 0x28f   : > { %v3862_v10 = vpop.f32.mrf.mxu2  ;;  %v7698_v1 = vpop.f32.mrf.mxu1  ;;  %v5168_v40 = vadd.f32 %v5167_v45, %v5137_v62  ;;  %v4610_v8 = vadd.f32 %v4542_v14, %v3928_v22  ;;  %v3433_v45 = vunpack.c.l.b16 %v3379_v41  ;;  %v4427_v22 = vunpack.c.l.b16 %v4325_v52 }
 0x290   : > { %v3929_v31 = vadd.f32 %v3862_v10, %v3614_v7  ;;  %v4795_v52 = vsel %vm6903_vm13, %v4793_v51, %v4794_v26  ;;  %v4354_v41 = vrot.slane %v4353_v6, 4  ;;  %v4853_v59 = vunpack.c.l.b16 %v4792_v46 }
 0x291   : > { %v3450_v56 = vpack.c.b16 %v3433_v45, %v3432_v58  ;;  %v4446_v62 = vpack.c.b16 %v4428_v34, %v4427_v22  ;;  %v5679_v7 = vrot.slane %v3226_v11, 9  ;;  %v3384_v58 = vrot.slane %v3382_v43, 4  ;;  %v6170_v45 = vld [vmem:[#allocation2 + $0xc8] sm:$0x1] }
 0x292   : > { %v4968_v50 = vpop.f32.mrf.mxu0  ;;  %v4361_v6 = vshrl.u32 %v3997_v60, 16 }
 0x293   : > { %v5036_v5 = vadd.f32 %v4968_v50, %v4610_v8  ;;  %v4358_v8 = vrot.slane %v4356_v37, 5  ;;  %v3385_v50 = vrot.slane %v6170_v45, 5  ;;  %v3383_v26 = vsel %vm6903_vm13, %v5679_v7, %v3382_v43 }
 0x294   : > { %3904 = vmatmul.bf16.gmra.mxu2 %v6049_v61  ;;  %v3434_v46 = vunpack.c.l.b16 %v3383_v26 }
 0x295   : > { %5007 = vmatmul.bf16.gmra.mxu0 %v4871_v18  ;;  %5068 = vst [vmem:[%s7567_s9 + $0x40] sm:$0xff] %v5036_v5  ;;  %v5099_v25 = vadd.f32 %v5098_v57, %v5036_v5  ;;  %v5138_v13 = vmul.f32 %v5036_v5, %v5036_v5  ;;  %v3615_v57 = vadd.f32 %v7680_v20, %v7261_v63  ;;  %v4854_v18 = vunpack.c.l.b16 %v4795_v52  ;;  %v7725_v63 = vld [vmem:[#allocation2 + $0xd0] sm:$0xf] }
 0x296   : > { %v4544_v54 = vpop.f32.mrf.mxu3  ;;  %v4349_v5 = vsel %vm6364_vm10, %v4344_v2, %v7707_v17  ;;  %v3386_v21 = vsel %vm6903_vm13, %v3384_v58, %v3385_v50  ;;  %v4370_v37 = vshll.u32 %v7725_v63, 16  ;;  %v4374_v17 = vshrl.u32 %v7725_v63, 16 }
 0x297   : > { %v3865_v15 = vpop.f32.mrf.mxu2  ;;  %v7717_v49 = vpop.f32.mrf.mxu1  ;;  %v5169_v14 = vadd.f32 %v5168_v40, %v5138_v13  ;;  %v4611_v10 = vadd.f32 %v4544_v54, %v3929_v31  ;;  %v4359_v31 = vsel %vm6364_vm10, %v4354_v41, %v4358_v8  ;;  %v3435_v52 = vunpack.c.l.b16 %v3386_v21  ;;  %v4648_v41 = vld [vmem:[#allocation2 + $0xc0] sm:$0xe] }
 0x298   : > { %v3930_v38 = vadd.f32 %v3865_v15, %v3615_v57  ;;  %v3616_v15 = vadd.f32 %v7698_v1, %v7274_v44  ;;  %v4430_v2 = vunpack.c.l.b16 %v4359_v31  ;;  %v4798_v8 = vrot.slane %v7684_v9, 5 }
 0x299   : > { %v4801_v9 = vrot.slane %v7711_v30, 5 }
 0x29a   : > { %3594 = vmatmul.bf16.gmra.mxu1 %v3450_v56  ;;  %v4970_v61 = vpop.f32.mrf.mxu0  ;;  %v6050_v56 = vld [vmem:[#allocation2 + $0xc0] sm:$0xff]  ;;  %v4800_v58 = vrot.slane %v4798_v8, 4 }
 0x29b   : > { %4586 = vmatmul.bf16.gmra.mxu3 %v4446_v62  ;;  %v5037_v40 = vadd.f32 %v4970_v61, %v4611_v10  ;;  %v4872_v62 = vpack.c.b16 %v4854_v18, %v4853_v59  ;;  %v4429_v10 = vunpack.c.l.b16 %v4349_v5  ;;  %v7744_v59 = vld [vmem:[#allocation2 + $0xd4] sm:$0x1]  ;;  %v3451_v18 = vpack.c.b16 %v3435_v52, %v3434_v46 }
 0x29c   : > { %v4802_v30 = vsel %vm6903_vm13, %v4800_v58, %v4801_v9 }
 0x29d   : > { %5069 = vst [vmem:[%s7567_s9 + $0x48] sm:$0xff] %v5037_v40  ;;  %v5100_v20 = vadd.f32 %v5099_v25, %v5037_v40  ;;  %v5139_v22 = vmul.f32 %v5037_v40, %v5037_v40  ;;  %v4364_v25 = vshll.u32 %v3997_v60, 16  ;;  %v4372_v40 = vrot.slane %v4370_v37, 5 }
 0x29e   : > { %v4547_v34 = vpop.f32.mrf.mxu3  ;;  %v5902_v60 = vrot.slane %v4648_v41, 9  ;;  %v4447_v7 = vpack.c.b16 %v4430_v2, %v4429_v10 }
 0x29f   : > { %v3867_v53 = vpop.f32.mrf.mxu2  ;;  %v7733_v51 = vpop.f32.mrf.mxu1  ;;  %v5170_v13 = vadd.f32 %v5169_v14, %v5139_v22  ;;  %v4612_v54 = vadd.f32 %v4547_v34, %v3930_v38  ;;  %v4363_v14 = vrot.slane %v4361_v6, 4  ;;  %v4366_v61 = vrot.slane %v4364_v25, 5 }
 0x2a0   : > { %v3931_v43 = vadd.f32 %v3867_v53, %v3616_v15  ;;  %v4376_v38 = vrot.slane %v4374_v17, 4  ;;  %v4380_v53 = vshll.u32 %v7744_v59, 16  ;;  %v4799_v21 = vsel %vm6903_vm13, %v5902_v60, %v4798_v8 }
 0x2a1   : > { %v4367_v22 = vor.u32 %v4366_v61, %v4363_v14  ;;  %v4856_v15 = vunpack.c.l.b16 %v4802_v30  ;;  %v3618_v14 = vadd.f32 %v7733_v51, %v7293_v12  ;;  %v4808_v12 = vrot.slane %v7744_v59, 5 }
 0x2a2   : > { %v4973_v57 = vpop.f32.mrf.mxu0  ;;  %v4377_v31 = vor.u32 %v4376_v38, %v4372_v40  ;;  %v4805_v38 = vrot.slane %v7725_v63, 5 }
 0x2a3   : > { %v5038_v28 = vadd.f32 %v4973_v57, %v4612_v54  ;;  %v4368_v6 = vrot.slane %v4367_v22, 4  ;;  %v6051_v57 = vld [vmem:[#allocation2 + $0xcc] sm:$0xff] }
 0x2a4   : > { %3909 = vmatmul.bf16.gmra.mxu2 %v6050_v56  ;;  %v4382_v56 = vrot.slane %v4380_v53, 5  ;;  %v4807_v58 = vrot.slane %v4805_v38, 4 }
 0x2a5   : > { %5012 = vmatmul.bf16.gmra.mxu0 %v4872_v62  ;;  %5070 = vst [vmem:[%s7567_s9 + $0x50] sm:$0xff] %v5038_v28  ;;  %v5101_v44 = vadd.f32 %v5100_v20, %v5038_v28  ;;  %v5140_v1 = vmul.f32 %v5038_v28, %v5038_v28  ;;  %v3617_v20 = vadd.f32 %v7717_v49, %v7283_v42  ;;  %v4855_v62 = vunpack.c.l.b16 %v4799_v21 }
 0x2a6   : > { %v4549_v11 = vpop.f32.mrf.mxu3  ;;  %v4373_v2 = vsel %vm6364_vm10, %v4368_v6, %v4372_v40 }
 0x2a7   : > { %v3870_v45 = vpop.f32.mrf.mxu2  ;;  %v3560_v50 = vpop.f32.mrf.mxu1  ;;  %v5171_v34 = vadd.f32 %v5170_v13, %v5140_v1  ;;  %v4613_v5 = vadd.f32 %v4549_v11, %v3931_v43  ;;  %v4378_v13 = vrot.slane %v4377_v31, 4  ;;  %v4873_v8 = vpack.c.b16 %v4856_v15, %v4855_v62  ;;  %v4649_v11 = vld [vmem:[#allocation2 + $0xcc] sm:$0xe] }
 0x2a8   : > { %v3932_v54 = vadd.f32 %v3870_v45, %v3617_v20  ;;  %v4431_v28 = vunpack.c.l.b16 %v4373_v2  ;;  %v3619_v63 = vadd.f32 %v3560_v50, %v7309_v16  ;;  %v4809_v31 = vsel %vm6903_vm13, %v4807_v58, %v4808_v12 }
 0x2a9   : > { %v4383_v41 = vsel %vm6364_vm10, %v4378_v13, %v4382_v56  ;;  %v4858_v30 = vunpack.c.l.b16 %v4809_v31 }
 0x2aa   : > { %3599 = vmatmul.bf16.gmra.mxu1 %v3451_v18  ;;  %v4975_v26 = vpop.f32.mrf.mxu0  ;;  %v4432_v43 = vunpack.c.l.b16 %v4383_v41 }
 0x2ab   : > { %4591 = vmatmul.bf16.gmra.mxu3 %v4447_v7  ;;  %v5039_v25 = vadd.f32 %v4975_v26, %v4613_v5  ;;  %v5903_v7 = vrot.slane %v4649_v11, 9 }
 0x2ac   : > { %v4448_v32 = vpack.c.b16 %v4432_v43, %v4431_v28 }
 0x2ad   : > { %5071 = vst [vmem:[%s7567_s9 + $0x58] sm:$0xff] %v5039_v25  ;;  %v5102_v37 = vadd.f32 %v5101_v44, %v5039_v25  ;;  %v5141_v17 = vmul.f32 %v5039_v25, %v5039_v25  ;;  %v4806_v5 = vsel %vm6903_vm13, %v5903_v7, %v4805_v38 }
 0x2ae   : > { %v4552_v42 = vpop.f32.mrf.mxu3  ;;  %v4857_v21 = vunpack.c.l.b16 %v4806_v5 }
 0x2af   : > { %v3872_v49 = vpop.f32.mrf.mxu2  ;;  %v3562_v10 = vpop.f32.mrf.mxu1  ;;  %v5172_v46 = vadd.f32 %v5171_v34, %v5141_v17  ;;  %v4614_v52 = vadd.f32 %v4552_v42, %v3932_v54 }
 0x2b0   : > { %v3933_v1 = vadd.f32 %v3872_v49, %v3618_v14  ;;  %v4874_v13 = vpack.c.b16 %v4858_v30, %v4857_v21  ;;  %v3620_v56 = vadd.f32 %v3562_v10, %v7320_v39 }
 0x2b2   : > { %v4978_v61 = vpop.f32.mrf.mxu0 }
 0x2b3   : > { %v5040_v44 = vadd.f32 %v4978_v61, %v4614_v52 }
 0x2b4   : > { %3914 = vmatmul.bf16.gmra.mxu2 %v6051_v57 }
 0x2b5   : > { %5017 = vmatmul.bf16.gmra.mxu0 %v4873_v8  ;;  %5072 = vst [vmem:[%s7567_s9 + $0x60] sm:$0xff] %v5040_v44  ;;  %v5103_v60 = vadd.f32 %v5102_v37, %v5040_v44  ;;  %v5142_v40 = vmul.f32 %v5040_v44, %v5040_v44 }
 0x2b6   : > { %v4554_v18 = vpop.f32.mrf.mxu3 }
 0x2b7   : > { %v3875_v51 = vpop.f32.mrf.mxu2  ;;  %v3565_v9 = vpop.f32.mrf.mxu1  ;;  %v5173_v45 = vadd.f32 %v5172_v46, %v5142_v40  ;;  %v4615_v22 = vadd.f32 %v4554_v18, %v3933_v1 }
 0x2b8   : > { %v3934_v20 = vadd.f32 %v3875_v51, %v3619_v63  ;;  %v3621_v2 = vadd.f32 %v3565_v9, %v7336_v27 }
 0x2ba   : > { %v4980_v34 = vpop.f32.mrf.mxu0 }
 0x2bb   : > { %4596 = vmatmul.bf16.gmra.mxu3 %v4448_v32  ;;  %v5041_v53 = vadd.f32 %v4980_v34, %v4615_v22 }
 0x2bd   : > { %5073 = vst [vmem:[%s7567_s9 + $0x68] sm:$0xff] %v5041_v53  ;;  %v5104_v26 = vadd.f32 %v5103_v60, %v5041_v53  ;;  %v5143_v59 = vmul.f32 %v5041_v53, %v5041_v53 }
 0x2be   : > { %v4557_v6 = vpop.f32.mrf.mxu3 }
 0x2bf   : > { %v3877_v25 = vpop.f32.mrf.mxu2  ;;  %v3567_v54 = vpop.f32.mrf.mxu1  ;;  %v5174_v16 = vadd.f32 %v5173_v45, %v5143_v59  ;;  %v4616_v50 = vadd.f32 %v4557_v6, %v3934_v20 }
 0x2c0   : > { %v3935_v17 = vadd.f32 %v3877_v25, %v3620_v56  ;;  %v3622_v1 = vadd.f32 %v3567_v54, %v7347_v55 }
 0x2c2   : > { %v4983_v37 = vpop.f32.mrf.mxu0 }
 0x2c3   : > { %v5042_v48 = vadd.f32 %v4983_v37, %v4616_v50 }
 0x2c5   : > { %5022 = vmatmul.bf16.gmra.mxu0 %v4874_v13  ;;  %5074 = vst [vmem:[%s7567_s9 + $0x70] sm:$0xff] %v5042_v48  ;;  %v5105_v62 = vadd.f32 %v5104_v26, %v5042_v48  ;;  %v5144_v15 = vmul.f32 %v5042_v48, %v5042_v48 }
 0x2c6   : > { %v4559_v42 = vpop.f32.mrf.mxu3 }
 0x2c7   : > { %v3880_v49 = vpop.f32.mrf.mxu2  ;;  %v3570_v46 = vpop.f32.mrf.mxu1  ;;  %v5175_v52 = vadd.f32 %v5174_v16, %v5144_v15  ;;  %v4617_v57 = vadd.f32 %v4559_v42, %v3935_v17 }
 0x2c8   : > { %v3936_v14 = vadd.f32 %v3880_v49, %v3621_v2  ;;  %v3623_v9 = vadd.f32 %v3570_v46, %v7363_v47 }
 0x2ca   : > { %v4985_v41 = vpop.f32.mrf.mxu0 }
 0x2cb   : > { %v5043_v8 = vadd.f32 %v4985_v41, %v4617_v57 }
 0x2cd   : > { %5075 = vst [vmem:[%s7567_s9 + $0x78] sm:$0xff] %v5043_v8  ;;  %v5106_v39 = vadd.f32 %v5105_v62, %v5043_v8  ;;  %v5145_v10 = vmul.f32 %v5043_v8, %v5043_v8 }
 0x2ce   : > { %v4562_v61 = vpop.f32.mrf.mxu3 }
 0x2cf   : > { %v3882_v28 = vpop.f32.mrf.mxu2  ;;  %v3572_v43 = vpop.f32.mrf.mxu1  ;;  %v5176_v38 = vadd.f32 %v5175_v52, %v5145_v10  ;;  %v4618_v44 = vadd.f32 %v4562_v61, %v3936_v14 }
 0x2d0   : > { %v3937_v40 = vadd.f32 %v3882_v28, %v3622_v1  ;;  %v3624_v59 = vadd.f32 %v3572_v43, %v7374_v24 }
 0x2d2   : > { %v4988_v11 = vpop.f32.mrf.mxu0 }
 0x2d3   : > { %v5044_v60 = vadd.f32 %v4988_v11, %v4618_v44 }
 0x2d5   : > { %5076 = vst [vmem:[%s7567_s9 + $0x80] sm:$0xff] %v5044_v60  ;;  %v5107_v27 = vadd.f32 %v5106_v39, %v5044_v60  ;;  %v5146_v18 = vmul.f32 %v5044_v60, %v5044_v60 }
 0x2d6   : > { %v4564_v32 = vpop.f32.mrf.mxu3 }
 0x2d7   : > { %v3885_v7 = vpop.f32.mrf.mxu2  ;;  %v3575_v58 = vpop.f32.mrf.mxu1  ;;  %v5177_v12 = vadd.f32 %v5176_v38, %v5146_v18  ;;  %v4619_v51 = vadd.f32 %v4564_v32, %v3937_v40 }
 0x2d8   : > { %v3938_v63 = vadd.f32 %v3885_v7, %v3623_v9  ;;  %v3625_v37 = vadd.f32 %v3575_v58, %v7390_v0 }
 0x2da   : > { %v4990_v45 = vpop.f32.mrf.mxu0 }
 0x2db   : > { %v5045_v22 = vadd.f32 %v4990_v45, %v4619_v51 }
 0x2dd   : > { %5077 = vst [vmem:[%s7567_s9 + $0x88] sm:$0xff] %v5045_v22  ;;  %v5108_v55 = vadd.f32 %v5107_v27, %v5045_v22  ;;  %v5147_v34 = vmul.f32 %v5045_v22, %v5045_v22 }
 0x2de   : > { %v4567_v5 = vpop.f32.mrf.mxu3 }
 0x2df   : > { %v3887_v31 = vpop.f32.mrf.mxu2  ;;  %v3577_v53 = vpop.f32.mrf.mxu1  ;;  %v5178_v20 = vadd.f32 %v5177_v12, %v5147_v34  ;;  %v4620_v26 = vadd.f32 %v4567_v5, %v3938_v63 }
 0x2e0   : > { %v3939_v6 = vadd.f32 %v3887_v31, %v3624_v59  ;;  %v3626_v2 = vadd.f32 %v3577_v53, %v7401_v23 }
 0x2e2   : > { %v4993_v21 = vpop.f32.mrf.mxu0 }
 0x2e3   : > { %v5046_v30 = vadd.f32 %v4993_v21, %v4620_v26 }
 0x2e5   : > { %5078 = vst [vmem:[%s7567_s9 + $0x90] sm:$0xff] %v5046_v30  ;;  %v5109_v47 = vadd.f32 %v5108_v55, %v5046_v30  ;;  %v5148_v25 = vmul.f32 %v5046_v30, %v5046_v30 }
 0x2e6   : > { %v4569_v54 = vpop.f32.mrf.mxu3 }
 0x2e7   : > { %v3890_v16 = vpop.f32.mrf.mxu2  ;;  %v3580_v50 = vpop.f32.mrf.mxu1  ;;  %v5179_v13 = vadd.f32 %v5178_v20, %v5148_v25  ;;  %v4621_v56 = vadd.f32 %v4569_v54, %v3939_v6 }
 0x2e8   : > { %v3940_v62 = vadd.f32 %v3890_v16, %v3625_v37  ;;  %v3627_v44 = vadd.f32 %v3580_v50, %v7417_v35 }
 0x2ea   : > { %v4995_v48 = vpop.f32.mrf.mxu0 }
 0x2eb   : > { %v5047_v17 = vadd.f32 %v4995_v48, %v4621_v56 }
 0x2ed   : > { %5079 = vst [vmem:[%s7567_s9 + $0x98] sm:$0xff] %v5047_v17  ;;  %v5110_v24 = vadd.f32 %v5109_v47, %v5047_v17  ;;  %v5149_v15 = vmul.f32 %v5047_v17, %v5047_v17 }
 0x2ee   : > { %v4572_v42 = vpop.f32.mrf.mxu3 }
 0x2ef   : > { %v3892_v49 = vpop.f32.mrf.mxu2  ;;  %v3582_v46 = vpop.f32.mrf.mxu1  ;;  %v5180_v52 = vadd.f32 %v5179_v13, %v5149_v15  ;;  %v4622_v57 = vadd.f32 %v4572_v42, %v3940_v62 }
 0x2f0   : > { %v3941_v14 = vadd.f32 %v3892_v49, %v3626_v2  ;;  %v3628_v58 = vadd.f32 %v3582_v46, %v7428_v19 }
 0x2f2   : > { %v4998_v41 = vpop.f32.mrf.mxu0 }
 0x2f3   : > { %v5048_v8 = vadd.f32 %v4998_v41, %v4622_v57 }
 0x2f5   : > { %5080 = vst [vmem:[%s7567_s9 + $0xa0] sm:$0xff] %v5048_v8  ;;  %v5111_v0 = vadd.f32 %v5110_v24, %v5048_v8  ;;  %v5150_v39 = vmul.f32 %v5048_v8, %v5048_v8 }
 0x2f6   : > { %v4574_v10 = vpop.f32.mrf.mxu3 }
 0x2f7   : > { %v3895_v61 = vpop.f32.mrf.mxu2  ;;  %v5181_v28 = vadd.f32 %v5180_v52, %v5150_v39  ;;  %v4623_v43 = vadd.f32 %v4574_v10, %v3941_v14  ;;  %v3585_v38 = vpop.f32.mrf.mxu1 }
 0x2f8   : > { %v3942_v60 = vadd.f32 %v3895_v61, %v3627_v44  ;;  %v3629_v31 = vadd.f32 %v3585_v38, %v7444_v3 }
 0x2fa   : > { %v5000_v1 = vpop.f32.mrf.mxu0 }
 0x2fb   : > { %v5049_v11 = vadd.f32 %v5000_v1, %v4623_v43 }
 0x2fd   : > { %5081 = vst [vmem:[%s7567_s9 + $0xa8] sm:$0xff] %v5049_v11  ;;  %v5112_v23 = vadd.f32 %v5111_v0, %v5049_v11  ;;  %v5151_v40 = vmul.f32 %v5049_v11, %v5049_v11 }
 0x2fe   : > { %v4577_v27 = vpop.f32.mrf.mxu3 }
 0x2ff   : > { %v3897_v18 = vpop.f32.mrf.mxu2  ;;  %v5182_v32 = vadd.f32 %v5181_v28, %v5151_v40  ;;  %v4624_v7 = vadd.f32 %v4577_v27, %v3942_v60  ;;  %v3587_v51 = vpop.f32.mrf.mxu1 }
 0x300   : > { %v3943_v45 = vadd.f32 %v3897_v18, %v3628_v58  ;;  %v3630_v54 = vadd.f32 %v3587_v51, %v7455_v29  ;;  %v7842_v51 = vld [vmem:[#allocation3_spill] sm:$0xff] }
 0x302   : > { %v5003_v12 = vpop.f32.mrf.mxu0 }
 0x303   : > { %v5050_v9 = vadd.f32 %v5003_v12, %v4624_v7 }
 0x305   : > { %5082 = vst [vmem:[%s7567_s9 + $0xb0] sm:$0xff] %v5050_v9  ;;  %v5113_v35 = vadd.f32 %v5112_v23, %v5050_v9  ;;  %v5152_v22 = vmul.f32 %v5050_v9, %v5050_v9 }
 0x306   : > { %v4579_v63 = vpop.f32.mrf.mxu3 }
 0x307   : > { %v3900_v55 = vpop.f32.mrf.mxu2  ;;  %v5183_v34 = vadd.f32 %v5182_v32, %v5152_v22  ;;  %v4625_v5 = vadd.f32 %v4579_v63, %v3943_v45  ;;  %v3590_v59 = vpop.f32.mrf.mxu1 }
 0x308   : > { %v3944_v26 = vadd.f32 %v3900_v55, %v3629_v31  ;;  %v3631_v15 = vadd.f32 %v3590_v59, %v7471_v36 }
 0x30a   : > { %v5005_v53 = vpop.f32.mrf.mxu0 }
 0x30b   : > { %v5051_v20 = vadd.f32 %v5005_v53, %v4625_v5 }
 0x30d   : > { %5083 = vst [vmem:[%s7567_s9 + $0xb8] sm:$0xff] %v5051_v20  ;;  %v5114_v19 = vadd.f32 %v5113_v35, %v5051_v20  ;;  %v5153_v21 = vmul.f32 %v5051_v20, %v5051_v20  ;;  %v7843_v20 = vld [vmem:[#allocation4_spill] sm:$0xff] }
 0x30e   : > { %v4582_v30 = vpop.f32.mrf.mxu3 }
 0x30f   : > { %v3902_v6 = vpop.f32.mrf.mxu2  ;;  %v5184_v47 = vadd.f32 %v5183_v34, %v5153_v21  ;;  %v4626_v25 = vadd.f32 %v4582_v30, %v3944_v26  ;;  %v3592_v17 = vpop.f32.mrf.mxu1 }
 0x310   : > { %v3945_v13 = vadd.f32 %v3902_v6, %v3630_v54  ;;  %v3632_v0 = vadd.f32 %v3592_v17, %v7482_v33 }
 0x312   : > { %v5008_v16 = vpop.f32.mrf.mxu0 }
 0x313   : > { %v5052_v50 = vadd.f32 %v5008_v16, %v4626_v25 }
 0x315   : > { %5084 = vst [vmem:[%s7567_s9 + $0xc0] sm:$0xff] %v5052_v50  ;;  %v5115_v3 = vadd.f32 %v5114_v19, %v5052_v50  ;;  %v5154_v56 = vmul.f32 %v5052_v50, %v5052_v50 }
 0x316   : > { %v4584_v37 = vpop.f32.mrf.mxu3 }
 0x317   : > { %v3905_v48 = vpop.f32.mrf.mxu2  ;;  %v5185_v62 = vadd.f32 %v5184_v47, %v5154_v56  ;;  %v4627_v24 = vadd.f32 %v4584_v37, %v3945_v13  ;;  %v3595_v14 = vpop.f32.mrf.mxu1  ;;  %v7844_v13 = vld [vmem:[#allocation5_spill] sm:$0xff] }
 0x318   : > { %v3946_v46 = vadd.f32 %v3905_v48, %v3631_v15  ;;  %v3633_v11 = vadd.f32 %v3595_v14, %v7498_v4 }
 0x31a   : > { %v5010_v42 = vpop.f32.mrf.mxu0 }
 0x31b   : > { %v5053_v49 = vadd.f32 %v5010_v42, %v4627_v24 }
 0x31d   : > { %5085 = vst [vmem:[%s7567_s9 + $0xc8] sm:$0xff] %v5053_v49  ;;  %v5116_v29 = vadd.f32 %v5115_v3, %v5053_v49  ;;  %v5155_v52 = vmul.f32 %v5053_v49, %v5053_v49 }
 0x31e   : > { %v4587_v57 = vpop.f32.mrf.mxu3 }
 0x31f   : > { %v3907_v2 = vpop.f32.mrf.mxu2  ;;  %v5186_v41 = vadd.f32 %v5185_v62, %v5155_v52  ;;  %v4628_v8 = vadd.f32 %v4587_v57, %v3946_v46  ;;  %v3597_v23 = vpop.f32.mrf.mxu1 }
 0x320   : > { %v3947_v61 = vadd.f32 %v3907_v2, %v3632_v0  ;;  %v3634_v9 = vadd.f32 %v3597_v23, %v7842_v51 }
 0x322   : > { %v5013_v39 = vpop.f32.mrf.mxu0 }
 0x323   : > { %v5054_v10 = vadd.f32 %v5013_v39, %v4628_v8 }
 0x325   : > { %5086 = vst [vmem:[%s7567_s9 + $0xd0] sm:$0xff] %v5054_v10  ;;  %v5117_v36 = vadd.f32 %v5116_v29, %v5054_v10  ;;  %v5156_v28 = vmul.f32 %v5054_v10, %v5054_v10 }
 0x326   : > { %v4589_v43 = vpop.f32.mrf.mxu3 }
 0x327   : > { %v3910_v38 = vpop.f32.mrf.mxu2  ;;  %v5187_v44 = vadd.f32 %v5186_v41, %v5156_v28  ;;  %v4629_v1 = vadd.f32 %v4589_v43, %v3947_v61  ;;  %v3600_v63 = vpop.f32.mrf.mxu1 }
 0x328   : > { %v3948_v27 = vadd.f32 %v3910_v38, %v3633_v11  ;;  %v3635_v26 = vadd.f32 %v3600_v63, %v7843_v20 }
 0x32a   : > { %v5015_v60 = vpop.f32.mrf.mxu0 }
 0x32b   : > { %v5055_v40 = vadd.f32 %v5015_v60, %v4629_v1 }
 0x32d   : > { %5087 = vst [vmem:[%s7567_s9 + $0xd8] sm:$0xff] %v5055_v40  ;;  %v5118_v33 = vadd.f32 %v5117_v36, %v5055_v40  ;;  %v5157_v18 = vmul.f32 %v5055_v40, %v5055_v40 }
 0x32e   : > { %v4592_v32 = vpop.f32.mrf.mxu3 }
 0x32f   : > { %v3912_v7 = vpop.f32.mrf.mxu2  ;;  %v5188_v58 = vadd.f32 %v5187_v44, %v5157_v18  ;;  %v4630_v12 = vadd.f32 %v4592_v32, %v3948_v27  ;;  %v3602_v25 = vpop.f32.mrf.mxu1 }
 0x330   : > { %v3949_v22 = vadd.f32 %v3912_v7, %v3634_v9  ;;  %v3636_v3 = vadd.f32 %v3602_v25, %v7844_v13 }
 0x332   : > { %v5018_v45 = vpop.f32.mrf.mxu0 }
 0x333   : > { %v5056_v35 = vadd.f32 %v5018_v45, %v4630_v12 }
 0x335   : > { %5088 = vst [vmem:[%s7567_s9 + $0xe0] sm:$0xff] %v5056_v35  ;;  %v5119_v4 = vadd.f32 %v5118_v33, %v5056_v35  ;;  %v5158_v55 = vmul.f32 %v5056_v35, %v5056_v35 }
 0x336   : > { %v4594_v34 = vpop.f32.mrf.mxu3 }
 0x337   : > { %v3915_v5 = vpop.f32.mrf.mxu2  ;;  %v5189_v31 = vadd.f32 %v5188_v58, %v5158_v55  ;;  %v4631_v53 = vadd.f32 %v4594_v34, %v3949_v22 }
 0x338   : > { %v3950_v21 = vadd.f32 %v3915_v5, %v3635_v26 }
 0x33a   : > { %v5020_v59 = vpop.f32.mrf.mxu0 }
 0x33b   : > { %v5057_v19 = vadd.f32 %v5020_v59, %v4631_v53 }
 0x33d   : > { %5089 = vst [vmem:[%s7567_s9 + $0xe8] sm:$0xff] %v5057_v19  ;;  %v5120_v30 = vadd.f32 %v5119_v4, %v5057_v19  ;;  %v5159_v6 = vmul.f32 %v5057_v19, %v5057_v19 }
 0x33e   : > { %v4597_v47 = vpop.f32.mrf.mxu3 }
 0x33f   : > { %v5190_v54 = vadd.f32 %v5189_v31, %v5159_v6  ;;  %v4632_v16 = vadd.f32 %v4597_v47, %v3950_v21  ;;  %v3917_v50 = vpop.f32.mrf.mxu2 }
 0x340   : > { %v3951_v48 = vadd.f32 %v3917_v50, %v3636_v3 }
 0x342   : > { %v5023_v56 = vpop.f32.mrf.mxu0 }
 0x343   : > { %v5058_v37 = vadd.f32 %v5023_v56, %v4632_v16 }
 0x345   : > { %5090 = vst [vmem:[%s7567_s9 + $0xf0] sm:$0xff] %v5058_v37  ;;  %v5121_v17 = vadd.f32 %v5120_v30, %v5058_v37  ;;  %v5160_v62 = vmul.f32 %v5058_v37, %v5058_v37 }
 0x346   : > { %v4599_v24 = vpop.f32.mrf.mxu3 }
 0x347   : > { %v5191_v15 = vadd.f32 %v5190_v54, %v5160_v62  ;;  %v4633_v42 = vadd.f32 %v4599_v24, %v3951_v48 }
 0x34a   : > { %v5025_v49 = vpop.f32.mrf.mxu0 }
 0x34b   : > { %v5059_v46 = vadd.f32 %v5025_v49, %v4633_v42 }
 0x34d   : > { %5091 = vst [vmem:[%s7567_s9 + $0xf8] sm:$0xff] %v5059_v46  ;;  %v5122_v29 = vadd.f32 %v5121_v17, %v5059_v46  ;;  %v5161_v52 = vmul.f32 %v5059_v46, %v5059_v46 }
 0x34f   : > { %v5123_v57 = vrot.slane %v5122_v29, 4  ;;  %v5192_v2 = vadd.f32 %v5191_v15, %v5161_v52 }
 0x351   : > { %v5124_v41 = vadd.f32 %v5123_v57, %v5122_v29  ;;  %v5193_v8 = vrot.slane %v5192_v2, 4 }
 0x353   : > { %v5125_v14 = vrot.slane %v5124_v41, 2  ;;  %v5194_v0 = vadd.f32 %v5193_v8, %v5192_v2 }
 0x355   : > { %v5126_v39 = vadd.f32 %v5125_v14, %v5124_v41  ;;  %v5195_v10 = vrot.slane %v5194_v0, 2 }
 0x357   : > { %v5127_v61 = vrot.slane %v5126_v39, 1  ;;  %v5196_v36 = vadd.f32 %v5195_v10, %v5194_v0 }
 0x359   : > { %v5128_v28 = vadd.f32 %v5127_v61, %v5126_v39  ;;  %v5197_v43 = vrot.slane %v5196_v36, 1 }
 0x35b   : > { %5129 = vst [vmem:[%s235_s12] sm:$0x1] %v5128_v28  ;;  %v5198_v38 = vadd.f32 %v5197_v43, %v5196_v36 }
 0x35d   : > { %5199 = vst [vmem:[%s235_s12 + $0x1] sm:$0x1] %v5198_v38 }
 0x35e PF: > { %s16_s18 = sadd.s32 1, %s6177_s18  }
 0x35f   : > { %p13_p4 = scmp.ge.s32.totalorder %s16_s18, 4  }
 0x361   :  { %15 = sbr.rel (!%p13_p4) target bundleno = 1 (0x1), region = 88 }

</bundles_post_ra>
